<compile_context>
chip_gen: v5e
topology: v5e:2x2
jax: 0.10.0
libtpu: 0.0.40
codegen_flags: <defaults>
</compile_context>

<pallas_src>
import jax
import jax.numpy as jnp
import numpy as np
from jax.experimental import pallas as pl
from jax.experimental.pallas import tpu as pltpu

# ---- module constants (from the PyTorch script) ------------------------------
FEATURES_PER_LANDMARK = 3
NUM_LANDMARKS = 21
FEATURES_PER_HAND = NUM_LANDMARKS * FEATURES_PER_LANDMARK
INPUT_SIZE = FEATURES_PER_HAND * 2          # 126
NUM_LAYERS = 2
HIDDEN_SIZE = 128                           # matches the script's hidden_size
NUM_CLASSES = 8
BATCH = 2
SEQ_LEN = 8

_SUBLANE = 8
_LANE = 128


def _lstm_fc_kernel(x_ref, wih0_ref, whh0_ref, b0_ref,
                    w1_ref, b1_ref, wfc_ref, bfc_ref, out_ref):
    """Entire forward pass in one kernel invocation.

    x_ref   : (T*Bp, I)  time-major input, batch padded to Bp sublanes
    wih0_ref: (I, 4H)    layer-0 input weights (pre-transposed)
    whh0_ref: (H, 4H)    layer-0 recurrent weights (pre-transposed)
    b0_ref  : (1, 4H)    b_ih + b_hh, layer 0
    w1_ref  : (2H, 4H)   [W_ih_l1; W_hh_l1] stacked (pre-transposed)
    b1_ref  : (1, 4H)    b_ih + b_hh, layer 1
    wfc_ref : (H, Cp)    FC weight (pre-transposed, lane-padded)
    bfc_ref : (1, Cp)    FC bias (lane-padded)
    out_ref : (Bp, Cp)
    """
    Bp, Cp = out_ref.shape
    H = whh0_ref.shape[0]
    T = x_ref.shape[0] // Bp

    # Hoist all loop-invariant loads / broadcasts out of the unrolled recurrence
    # (JAX does not CSE broadcast_in_dim inside loops).
    whh0 = whh0_ref[...]
    w1 = w1_ref[...]
    b1_b = jnp.broadcast_to(b1_ref[...], (Bp, 4 * H))

    # Layer-0 input projection for ALL time steps as a single MXU matmul,
    # bias folded in: (T*Bp, I) x (I, 4H) -> (T*Bp, 4H).
    gx0 = (jnp.dot(x_ref[...], wih0_ref[...], preferred_element_type=jnp.float32)
           + jnp.broadcast_to(b0_ref[...], (T * Bp, 4 * H)))

    def gates_to_hc(g, c_prev):
        # gate order i, f, g, o — each slice is a lane-aligned 128-wide slab (H=128)
        i_g = jax.nn.sigmoid(g[:, 0 * H:1 * H])
        f_g = jax.nn.sigmoid(g[:, 1 * H:2 * H])
        g_g = jnp.tanh(g[:, 2 * H:3 * H])
        o_g = jax.nn.sigmoid(g[:, 3 * H:4 * H])
        c_new = f_g * c_prev + i_g * g_g
        h_new = o_g * jnp.tanh(c_new)
        return h_new, c_new

    zeros = jnp.zeros((Bp, H), jnp.float32)
    h0, c0, h1, c1 = zeros, zeros, zeros, zeros

    # Fully-unrolled T-step recurrence; h/c state stays in vregs (no scratch traffic).
    # TODO(synk): inter-layer LSTM dropout and the final nn.Dropout only apply in
    # training mode; this kernel implements eval-mode (identity) semantics.
    for t in range(T):
        # layer 0: precomputed input projection + recurrent matmul
        g0 = gx0[t * Bp:(t + 1) * Bp, :] + jnp.dot(
            h0, whh0, preferred_element_type=jnp.float32)
        h0, c0 = gates_to_hc(g0, c0)

        # layer 1: fused input+recurrent matmul on concatenated [h0_t, h1_prev]
        g1 = jnp.dot(jnp.concatenate([h0, h1], axis=1), w1,
                     preferred_element_type=jnp.float32) + b1_b
        h1, c1 = gates_to_hc(g1, c1)

    # out = fc(dropout(out[:, -1, :])) with eval-mode dropout == identity.
    out_ref[...] = (jnp.dot(h1, wfc_ref[...], preferred_element_type=jnp.float32)
                    + jnp.broadcast_to(bfc_ref[...], (Bp, Cp)))


def _round_up(x, m):
    return ((x + m - 1) // m) * m


def hand_gesture_lstm_forward(x, params):
    """x: (B, T, I) float32, batch_first — same convention as the PyTorch module."""
    B, T, I = x.shape
    H = params["whh0_t"].shape[0]
    C = params["wfc_t"].shape[1]

    Bp = _round_up(max(B, _SUBLANE), _SUBLANE)   # sublane-aligned batch
    Cp = _round_up(max(C, _LANE), _LANE)         # lane-dense output

    # Pad batch, go time-major and flatten so the kernel can do one big input
    # projection over all time steps.
    x_p = jnp.pad(x.astype(jnp.float32), ((0, Bp - B), (0, 0), (0, 0)))
    x_flat = jnp.transpose(x_p, (1, 0, 2)).reshape(T * Bp, I)

    # Stack layer-1 weights so its two matmuls fuse into one; pad FC to 128 lanes.
    w1_cat = jnp.concatenate([params["wih1_t"], params["whh1_t"]], axis=0)  # (2H, 4H)
    wfc_p = jnp.pad(params["wfc_t"], ((0, 0), (0, Cp - C)))
    bfc_p = jnp.pad(params["bfc"], ((0, 0), (0, Cp - C)))

    full2 = lambda i: (0, 0)
    in_specs = [
        pl.BlockSpec((T * Bp, I), full2),       # x (whole tensor, single DMA)
        pl.BlockSpec((I, 4 * H), full2),        # W_ih layer0 (transposed)
        pl.BlockSpec((H, 4 * H), full2),        # W_hh layer0 (transposed)
        pl.BlockSpec((1, 4 * H), full2),        # b_ih+b_hh layer0
        pl.BlockSpec((2 * H, 4 * H), full2),    # [W_ih; W_hh] layer1 (transposed)
        pl.BlockSpec((1, 4 * H), full2),        # b_ih+b_hh layer1
        pl.BlockSpec((H, Cp), full2),           # W_fc (transposed, padded)
        pl.BlockSpec((1, Cp), full2),           # b_fc (padded)
    ]

    out = pl.pallas_call(
        _lstm_fc_kernel,
        out_shape=jax.ShapeDtypeStruct((Bp, Cp), jnp.float32),
        grid_spec=pltpu.PrefetchScalarGridSpec(
            num_scalar_prefetch=0,
            grid=(1,),                          # single invocation: no per-step grid overhead
            in_specs=in_specs,
            out_specs=pl.BlockSpec((Bp, Cp), full2),
        ),
        compiler_params=pltpu.CompilerParams(
            dimension_semantics=("arbitrary",)),
    )(x_flat,
      params["wih0_t"], params["whh0_t"], params["b0"],
      w1_cat, params["b1"], wfc_p, bfc_p)

    return out[:B, :C]


def init_params(key, input_size, hidden_size, num_classes):
    """Deterministic init matching PyTorch parameter shapes (then pre-transposed)."""
    H = hidden_size
    k = 1.0 / np.sqrt(H)
    ks = jax.random.split(key, 10)
    u = lambda kk, shape: jax.random.uniform(kk, shape, jnp.float32, -k, k)

    # PyTorch-layout parameters
    w_ih_l0 = u(ks[0], (4 * H, input_size))
    w_hh_l0 = u(ks[1], (4 * H, H))
    b_ih_l0 = u(ks[2], (4 * H,))
    b_hh_l0 = u(ks[3], (4 * H,))
    w_ih_l1 = u(ks[4], (4 * H, H))
    w_hh_l1 = u(ks[5], (4 * H, H))
    b_ih_l1 = u(ks[6], (4 * H,))
    b_hh_l1 = u(ks[7], (4 * H,))
    w_fc = u(ks[8], (num_classes, H))
    b_fc = u(ks[9], (num_classes,))

    return {
        "wih0_t": w_ih_l0.T, "whh0_t": w_hh_l0.T,
        "b0": (b_ih_l0 + b_hh_l0)[None, :],
        "wih1_t": w_ih_l1.T, "whh1_t": w_hh_l1.T,
        "b1": (b_ih_l1 + b_hh_l1)[None, :],
        "wfc_t": w_fc.T, "bfc": b_fc[None, :],
    }


def reference_forward(x, params):
    """Pure-JAX reference (mirrors torch.nn.LSTM eval + Linear)."""
    B, T, I = x.shape
    H = params["whh0_t"].shape[0]

    def cell(x_in, h, c, wih_t, whh_t, b):
        gates = x_in @ wih_t + h @ whh_t + b
        i_g = jax.nn.sigmoid(gates[:, 0 * H:1 * H])
        f_g = jax.nn.sigmoid(gates[:, 1 * H:2 * H])
        g_g = jnp.tanh(gates[:, 2 * H:3 * H])
        o_g = jax.nn.sigmoid(gates[:, 3 * H:4 * H])
        c_new = f_g * c + i_g * g_g
        return o_g * jnp.tanh(c_new), c_new

    def step(carry, x_t):
        h0, c0, h1, c1 = carry
        h0, c0 = cell(x_t, h0, c0, params["wih0_t"], params["whh0_t"], params["b0"])
        h1, c1 = cell(h0, h1, c1, params["wih1_t"], params["whh1_t"], params["b1"])
        return (h0, c0, h1, c1), None

    init = tuple(jnp.zeros((B, H), jnp.float32) for _ in range(4))
    (h0, c0, h1, c1), _ = jax.lax.scan(step, init, jnp.transpose(x, (1, 0, 2)))
    return h1 @ params["wfc_t"] + params["bfc"]


if __name__ == "__main__":
    key = jax.random.PRNGKey(0)
    kx, kp = jax.random.split(key)

    x = jax.random.normal(kx, (BATCH, SEQ_LEN, INPUT_SIZE), jnp.float32)
    params = init_params(kp, INPUT_SIZE, HIDDEN_SIZE, NUM_CLASSES)

    out = hand_gesture_lstm_forward(x, params)
    out = jax.block_until_ready(out)

    ref = jax.block_until_ready(reference_forward(x, params))
    np.testing.assert_allclose(np.asarray(out), np.asarray(ref), rtol=1e-4, atol=1e-4)

    print("KERNEL_OK")
</pallas_src>

<mosaic_0001>
module attributes {stable_mosaic.version = 11 : i64} {
  func.func @_lstm_fc_kernel(%arg0: i32, %arg1: memref<64x126xf32, #tpu.memory_space<vmem>>, %arg2: memref<126x512xf32, #tpu.memory_space<vmem>>, %arg3: memref<128x512xf32, #tpu.memory_space<vmem>>, %arg4: memref<1x512xf32, #tpu.memory_space<vmem>>, %arg5: memref<256x512xf32, #tpu.memory_space<vmem>>, %arg6: memref<1x512xf32, #tpu.memory_space<vmem>>, %arg7: memref<128x128xf32, #tpu.memory_space<vmem>>, %arg8: memref<1x128xf32, #tpu.memory_space<vmem>>, %arg9: memref<8x128xf32, #tpu.memory_space<vmem>>) attributes {dimension_semantics = [#tpu.dimension_semantics<arbitrary>], iteration_bounds = array<i64: 1>, scalar_prefetch = 0 : i64, scratch_operands = 0 : i64, tpu.core_type = #tpu.core_type<tc>, window_params = [{pipeline_mode = #tpu.pipeline_mode<synchronous>, transform_indices = @transform_0, window_bounds = array<i64: 64, 126>}, {pipeline_mode = #tpu.pipeline_mode<synchronous>, transform_indices = @transform_1, window_bounds = array<i64: 126, 512>}, {pipeline_mode = #tpu.pipeline_mode<synchronous>, transform_indices = @transform_2, window_bounds = array<i64: 128, 512>}, {pipeline_mode = #tpu.pipeline_mode<synchronous>, transform_indices = @transform_3, window_bounds = array<i64: 1, 512>}, {pipeline_mode = #tpu.pipeline_mode<synchronous>, transform_indices = @transform_4, window_bounds = array<i64: 256, 512>}, {pipeline_mode = #tpu.pipeline_mode<synchronous>, transform_indices = @transform_5, window_bounds = array<i64: 1, 512>}, {pipeline_mode = #tpu.pipeline_mode<synchronous>, transform_indices = @transform_6, window_bounds = array<i64: 128, 128>}, {pipeline_mode = #tpu.pipeline_mode<synchronous>, transform_indices = @transform_7, window_bounds = array<i64: 1, 128>}, {pipeline_mode = #tpu.pipeline_mode<synchronous>, transform_indices = @transform_8, window_bounds = array<i64: 8, 128>}]} {
    %c0 = arith.constant 0 : index
    %c0_0 = arith.constant 0 : index
    %0 = vector.load %arg3[%c0, %c0_0] : memref<128x512xf32, #tpu.memory_space<vmem>>, vector<128x512xf32>
    %c0_1 = arith.constant 0 : index
    %c0_2 = arith.constant 0 : index
    %1 = vector.load %arg5[%c0_1, %c0_2] : memref<256x512xf32, #tpu.memory_space<vmem>>, vector<256x512xf32>
    %c0_3 = arith.constant 0 : index
    %c0_4 = arith.constant 0 : index
    %2 = vector.load %arg6[%c0_3, %c0_4] : memref<1x512xf32, #tpu.memory_space<vmem>>, vector<1x512xf32>
    %3 = vector.shape_cast %2 : vector<1x512xf32> to vector<1x512xf32>
    %4 = vector.broadcast %3 : vector<1x512xf32> to vector<8x512xf32>
    %c0_5 = arith.constant 0 : index
    %c0_6 = arith.constant 0 : index
    %5 = vector.load %arg1[%c0_5, %c0_6] : memref<64x126xf32, #tpu.memory_space<vmem>>, vector<64x126xf32>
    %c0_7 = arith.constant 0 : index
    %c0_8 = arith.constant 0 : index
    %6 = vector.load %arg2[%c0_7, %c0_8] : memref<126x512xf32, #tpu.memory_space<vmem>>, vector<126x512xf32>
    %cst = arith.constant dense<0.000000e+00> : vector<64x512xf32>
    %7 = tpu.matmul %5, %6, %cst {dimension_numbers = #tpu.dot_dimension_numbers<[1], [0], [0], [1], [0, 0, 1, 1], [], []>} : vector<64x126xf32>, vector<126x512xf32>, vector<64x512xf32> -> vector<64x512xf32>
    %c0_9 = arith.constant 0 : index
    %c0_10 = arith.constant 0 : index
    %8 = vector.load %arg4[%c0_9, %c0_10] : memref<1x512xf32, #tpu.memory_space<vmem>>, vector<1x512xf32>
    %9 = vector.shape_cast %8 : vector<1x512xf32> to vector<1x512xf32>
    %10 = vector.broadcast %9 : vector<1x512xf32> to vector<64x512xf32>
    %11 = arith.addf %7, %10 : vector<64x512xf32>
    %cst_11 = arith.constant 0.000000e+00 : f32
    %12 = vector.broadcast %cst_11 : f32 to vector<8x128xf32>
    %13 = vector.extract_strided_slice %11 {offsets = [0, 0], sizes = [8, 512], strides = [1, 1]} : vector<64x512xf32> to vector<8x512xf32>
    %cst_12 = arith.constant dense<0.000000e+00> : vector<8x512xf32>
    %14 = tpu.matmul %12, %0, %cst_12 {dimension_numbers = #tpu.dot_dimension_numbers<[1], [0], [0], [1], [0, 0, 1, 1], [], []>} : vector<8x128xf32>, vector<128x512xf32>, vector<8x512xf32> -> vector<8x512xf32>
    %15 = arith.addf %13, %14 : vector<8x512xf32>
    %16 = vector.extract_strided_slice %15 {offsets = [0, 0], sizes = [8, 128], strides = [1, 1]} : vector<8x512xf32> to vector<8x128xf32>
    %17 = arith.negf %16 : vector<8x128xf32>
    %18 = math.exp %17 : vector<8x128xf32>
    %cst_13 = arith.constant 1.000000e+00 : f32
    %19 = vector.broadcast %cst_13 : f32 to vector<8x128xf32>
    %20 = arith.addf %19, %18 : vector<8x128xf32>
    %21 = arith.divf %19, %20 : vector<8x128xf32>
    %22 = vector.extract_strided_slice %15 {offsets = [0, 128], sizes = [8, 128], strides = [1, 1]} : vector<8x512xf32> to vector<8x128xf32>
    %23 = arith.negf %22 : vector<8x128xf32>
    %24 = math.exp %23 : vector<8x128xf32>
    %cst_14 = arith.constant 1.000000e+00 : f32
    %25 = vector.broadcast %cst_14 : f32 to vector<8x128xf32>
    %26 = arith.addf %25, %24 : vector<8x128xf32>
    %27 = arith.divf %25, %26 : vector<8x128xf32>
    %28 = vector.extract_strided_slice %15 {offsets = [0, 256], sizes = [8, 128], strides = [1, 1]} : vector<8x512xf32> to vector<8x128xf32>
    %29 = math.tanh %28 : vector<8x128xf32>
    %30 = vector.extract_strided_slice %15 {offsets = [0, 384], sizes = [8, 128], strides = [1, 1]} : vector<8x512xf32> to vector<8x128xf32>
    %31 = arith.negf %30 : vector<8x128xf32>
    %32 = math.exp %31 : vector<8x128xf32>
    %cst_15 = arith.constant 1.000000e+00 : f32
    %33 = vector.broadcast %cst_15 : f32 to vector<8x128xf32>
    %34 = arith.addf %33, %32 : vector<8x128xf32>
    %35 = arith.divf %33, %34 : vector<8x128xf32>
    %36 = arith.mulf %27, %12 : vector<8x128xf32>
    %37 = arith.mulf %21, %29 : vector<8x128xf32>
    %38 = arith.addf %36, %37 : vector<8x128xf32>
    %39 = math.tanh %38 : vector<8x128xf32>
    %40 = arith.mulf %35, %39 : vector<8x128xf32>
    %41 = tpu.concatenate %40, %12 in 1 : vector<8x128xf32>, vector<8x128xf32> -> vector<8x256xf32>
    %cst_16 = arith.constant dense<0.000000e+00> : vector<8x512xf32>
    %42 = tpu.matmul %41, %1, %cst_16 {dimension_numbers = #tpu.dot_dimension_numbers<[1], [0], [0], [1], [0, 0, 1, 1], [], []>} : vector<8x256xf32>, vector<256x512xf32>, vector<8x512xf32> -> vector<8x512xf32>
    %43 = arith.addf %42, %4 : vector<8x512xf32>
    %44 = vector.extract_strided_slice %43 {offsets = [0, 0], sizes = [8, 128], strides = [1, 1]} : vector<8x512xf32> to vector<8x128xf32>
    %45 = arith.negf %44 : vector<8x128xf32>
    %46 = math.exp %45 : vector<8x128xf32>
    %cst_17 = arith.constant 1.000000e+00 : f32
    %47 = vector.broadcast %cst_17 : f32 to vector<8x128xf32>
    %48 = arith.addf %47, %46 : vector<8x128xf32>
    %49 = arith.divf %47, %48 : vector<8x128xf32>
    %50 = vector.extract_strided_slice %43 {offsets = [0, 128], sizes = [8, 128], strides = [1, 1]} : vector<8x512xf32> to vector<8x128xf32>
    %51 = arith.negf %50 : vector<8x128xf32>
    %52 = math.exp %51 : vector<8x128xf32>
    %cst_18 = arith.constant 1.000000e+00 : f32
    %53 = vector.broadcast %cst_18 : f32 to vector<8x128xf32>
    %54 = arith.addf %53, %52 : vector<8x128xf32>
    %55 = arith.divf %53, %54 : vector<8x128xf32>
    %56 = vector.extract_strided_slice %43 {offsets = [0, 256], sizes = [8, 128], strides = [1, 1]} : vector<8x512xf32> to vector<8x128xf32>
    %57 = math.tanh %56 : vector<8x128xf32>
    %58 = vector.extract_strided_slice %43 {offsets = [0, 384], sizes = [8, 128], strides = [1, 1]} : vector<8x512xf32> to vector<8x128xf32>
    %59 = arith.negf %58 : vector<8x128xf32>
    %60 = math.exp %59 : vector<8x128xf32>
    %cst_19 = arith.constant 1.000000e+00 : f32
    %61 = vector.broadcast %cst_19 : f32 to vector<8x128xf32>
    %62 = arith.addf %61, %60 : vector<8x128xf32>
    %63 = arith.divf %61, %62 : vector<8x128xf32>
    %64 = arith.mulf %55, %12 : vector<8x128xf32>
    %65 = arith.mulf %49, %57 : vector<8x128xf32>
    %66 = arith.addf %64, %65 : vector<8x128xf32>
    %67 = math.tanh %66 : vector<8x128xf32>
    %68 = arith.mulf %63, %67 : vector<8x128xf32>
    %69 = vector.extract_strided_slice %11 {offsets = [8, 0], sizes = [8, 512], strides = [1, 1]} : vector<64x512xf32> to vector<8x512xf32>
    %cst_20 = arith.constant dense<0.000000e+00> : vector<8x512xf32>
    %70 = tpu.matmul %40, %0, %cst_20 {dimension_numbers = #tpu.dot_dimension_numbers<[1], [0], [0], [1], [0, 0, 1, 1], [], []>} : vector<8x128xf32>, vector<128x512xf32>, vector<8x512xf32> -> vector<8x512xf32>
    %71 = arith.addf %69, %70 : vector<8x512xf32>
    %72 = vector.extract_strided_slice %71 {offsets = [0, 0], sizes = [8, 128], strides = [1, 1]} : vector<8x512xf32> to vector<8x128xf32>
    %73 = arith.negf %72 : vector<8x128xf32>
    %74 = math.exp %73 : vector<8x128xf32>
    %cst_21 = arith.constant 1.000000e+00 : f32
    %75 = vector.broadcast %cst_21 : f32 to vector<8x128xf32>
    %76 = arith.addf %75, %74 : vector<8x128xf32>
    %77 = arith.divf %75, %76 : vector<8x128xf32>
    %78 = vector.extract_strided_slice %71 {offsets = [0, 128], sizes = [8, 128], strides = [1, 1]} : vector<8x512xf32> to vector<8x128xf32>
    %79 = arith.negf %78 : vector<8x128xf32>
    %80 = math.exp %79 : vector<8x128xf32>
    %cst_22 = arith.constant 1.000000e+00 : f32
    %81 = vector.broadcast %cst_22 : f32 to vector<8x128xf32>
    %82 = arith.addf %81, %80 : vector<8x128xf32>
    %83 = arith.divf %81, %82 : vector<8x128xf32>
    %84 = vector.extract_strided_slice %71 {offsets = [0, 256], sizes = [8, 128], strides = [1, 1]} : vector<8x512xf32> to vector<8x128xf32>
    %85 = math.tanh %84 : vector<8x128xf32>
    %86 = vector.extract_strided_slice %71 {offsets = [0, 384], sizes = [8, 128], strides = [1, 1]} : vector<8x512xf32> to vector<8x128xf32>
    %87 = arith.negf %86 : vector<8x128xf32>
    %88 = math.exp %87 : vector<8x128xf32>
    %cst_23 = arith.constant 1.000000e+00 : f32
    %89 = vector.broadcast %cst_23 : f32 to vector<8x128xf32>
    %90 = arith.addf %89, %88 : vector<8x128xf32>
    %91 = arith.divf %89, %90 : vector<8x128xf32>
    %92 = arith.mulf %83, %38 : vector<8x128xf32>
    %93 = arith.mulf %77, %85 : vector<8x128xf32>
    %94 = arith.addf %92, %93 : vector<8x128xf32>
    %95 = math.tanh %94 : vector<8x128xf32>
    %96 = arith.mulf %91, %95 : vector<8x128xf32>
    %97 = tpu.concatenate %96, %68 in 1 : vector<8x128xf32>, vector<8x128xf32> -> vector<8x256xf32>
    %cst_24 = arith.constant dense<0.000000e+00> : vector<8x512xf32>
    %98 = tpu.matmul %97, %1, %cst_24 {dimension_numbers = #tpu.dot_dimension_numbers<[1], [0], [0], [1], [0, 0, 1, 1], [], []>} : vector<8x256xf32>, vector<256x512xf32>, vector<8x512xf32> -> vector<8x512xf32>
    %99 = arith.addf %98, %4 : vector<8x512xf32>
    %100 = vector.extract_strided_slice %99 {offsets = [0, 0], sizes = [8, 128], strides = [1, 1]} : vector<8x512xf32> to vector<8x128xf32>
    %101 = arith.negf %100 : vector<8x128xf32>
    %102 = math.exp %101 : vector<8x128xf32>
    %cst_25 = arith.constant 1.000000e+00 : f32
    %103 = vector.broadcast %cst_25 : f32 to vector<8x128xf32>
    %104 = arith.addf %103, %102 : vector<8x128xf32>
    %105 = arith.divf %103, %104 : vector<8x128xf32>
    %106 = vector.extract_strided_slice %99 {offsets = [0, 128], sizes = [8, 128], strides = [1, 1]} : vector<8x512xf32> to vector<8x128xf32>
    %107 = arith.negf %106 : vector<8x128xf32>
    %108 = math.exp %107 : vector<8x128xf32>
    %cst_26 = arith.constant 1.000000e+00 : f32
    %109 = vector.broadcast %cst_26 : f32 to vector<8x128xf32>
    %110 = arith.addf %109, %108 : vector<8x128xf32>
    %111 = arith.divf %109, %110 : vector<8x128xf32>
    %112 = vector.extract_strided_slice %99 {offsets = [0, 256], sizes = [8, 128], strides = [1, 1]} : vector<8x512xf32> to vector<8x128xf32>
    %113 = math.tanh %112 : vector<8x128xf32>
    %114 = vector.extract_strided_slice %99 {offsets = [0, 384], sizes = [8, 128], strides = [1, 1]} : vector<8x512xf32> to vector<8x128xf32>
    %115 = arith.negf %114 : vector<8x128xf32>
    %116 = math.exp %115 : vector<8x128xf32>
    %cst_27 = arith.constant 1.000000e+00 : f32
    %117 = vector.broadcast %cst_27 : f32 to vector<8x128xf32>
    %118 = arith.addf %117, %116 : vector<8x128xf32>
    %119 = arith.divf %117, %118 : vector<8x128xf32>
    %120 = arith.mulf %111, %66 : vector<8x128xf32>
    %121 = arith.mulf %105, %113 : vector<8x128xf32>
    %122 = arith.addf %120, %121 : vector<8x128xf32>
    %123 = math.tanh %122 : vector<8x128xf32>
    %124 = arith.mulf %119, %123 : vector<8x128xf32>
    %125 = vector.extract_strided_slice %11 {offsets = [16, 0], sizes = [8, 512], strides = [1, 1]} : vector<64x512xf32> to vector<8x512xf32>
    %cst_28 = arith.constant dense<0.000000e+00> : vector<8x512xf32>
    %126 = tpu.matmul %96, %0, %cst_28 {dimension_numbers = #tpu.dot_dimension_numbers<[1], [0], [0], [1], [0, 0, 1, 1], [], []>} : vector<8x128xf32>, vector<128x512xf32>, vector<8x512xf32> -> vector<8x512xf32>
    %127 = arith.addf %125, %126 : vector<8x512xf32>
    %128 = vector.extract_strided_slice %127 {offsets = [0, 0], sizes = [8, 128], strides = [1, 1]} : vector<8x512xf32> to vector<8x128xf32>
    %129 = arith.negf %128 : vector<8x128xf32>
    %130 = math.exp %129 : vector<8x128xf32>
    %cst_29 = arith.constant 1.000000e+00 : f32
    %131 = vector.broadcast %cst_29 : f32 to vector<8x128xf32>
    %132 = arith.addf %131, %130 : vector<8x128xf32>
    %133 = arith.divf %131, %132 : vector<8x128xf32>
    %134 = vector.extract_strided_slice %127 {offsets = [0, 128], sizes = [8, 128], strides = [1, 1]} : vector<8x512xf32> to vector<8x128xf32>
    %135 = arith.negf %134 : vector<8x128xf32>
    %136 = math.exp %135 : vector<8x128xf32>
    %cst_30 = arith.constant 1.000000e+00 : f32
    %137 = vector.broadcast %cst_30 : f32 to vector<8x128xf32>
    %138 = arith.addf %137, %136 : vector<8x128xf32>
    %139 = arith.divf %137, %138 : vector<8x128xf32>
    %140 = vector.extract_strided_slice %127 {offsets = [0, 256], sizes = [8, 128], strides = [1, 1]} : vector<8x512xf32> to vector<8x128xf32>
    %141 = math.tanh %140 : vector<8x128xf32>
    %142 = vector.extract_strided_slice %127 {offsets = [0, 384], sizes = [8, 128], strides = [1, 1]} : vector<8x512xf32> to vector<8x128xf32>
    %143 = arith.negf %142 : vector<8x128xf32>
    %144 = math.exp %143 : vector<8x128xf32>
    %cst_31 = arith.constant 1.000000e+00 : f32
    %145 = vector.broadcast %cst_31 : f32 to vector<8x128xf32>
    %146 = arith.addf %145, %144 : vector<8x128xf32>
    %147 = arith.divf %145, %146 : vector<8x128xf32>
    %148 = arith.mulf %139, %94 : vector<8x128xf32>
    %149 = arith.mulf %133, %141 : vector<8x128xf32>
    %150 = arith.addf %148, %149 : vector<8x128xf32>
    %151 = math.tanh %150 : vector<8x128xf32>
    %152 = arith.mulf %147, %151 : vector<8x128xf32>
    %153 = tpu.concatenate %152, %124 in 1 : vector<8x128xf32>, vector<8x128xf32> -> vector<8x256xf32>
    %cst_32 = arith.constant dense<0.000000e+00> : vector<8x512xf32>
    %154 = tpu.matmul %153, %1, %cst_32 {dimension_numbers = #tpu.dot_dimension_numbers<[1], [0], [0], [1], [0, 0, 1, 1], [], []>} : vector<8x256xf32>, vector<256x512xf32>, vector<8x512xf32> -> vector<8x512xf32>
    %155 = arith.addf %154, %4 : vector<8x512xf32>
    %156 = vector.extract_strided_slice %155 {offsets = [0, 0], sizes = [8, 128], strides = [1, 1]} : vector<8x512xf32> to vector<8x128xf32>
    %157 = arith.negf %156 : vector<8x128xf32>
    %158 = math.exp %157 : vector<8x128xf32>
    %cst_33 = arith.constant 1.000000e+00 : f32
    %159 = vector.broadcast %cst_33 : f32 to vector<8x128xf32>
    %160 = arith.addf %159, %158 : vector<8x128xf32>
    %161 = arith.divf %159, %160 : vector<8x128xf32>
    %162 = vector.extract_strided_slice %155 {offsets = [0, 128], sizes = [8, 128], strides = [1, 1]} : vector<8x512xf32> to vector<8x128xf32>
    %163 = arith.negf %162 : vector<8x128xf32>
    %164 = math.exp %163 : vector<8x128xf32>
    %cst_34 = arith.constant 1.000000e+00 : f32
    %165 = vector.broadcast %cst_34 : f32 to vector<8x128xf32>
    %166 = arith.addf %165, %164 : vector<8x128xf32>
    %167 = arith.divf %165, %166 : vector<8x128xf32>
    %168 = vector.extract_strided_slice %155 {offsets = [0, 256], sizes = [8, 128], strides = [1, 1]} : vector<8x512xf32> to vector<8x128xf32>
    %169 = math.tanh %168 : vector<8x128xf32>
    %170 = vector.extract_strided_slice %155 {offsets = [0, 384], sizes = [8, 128], strides = [1, 1]} : vector<8x512xf32> to vector<8x128xf32>
    %171 = arith.negf %170 : vector<8x128xf32>
    %172 = math.exp %171 : vector<8x128xf32>
    %cst_35 = arith.constant 1.000000e+00 : f32
    %173 = vector.broadcast %cst_35 : f32 to vector<8x128xf32>
    %174 = arith.addf %173, %172 : vector<8x128xf32>
    %175 = arith.divf %173, %174 : vector<8x128xf32>
    %176 = arith.mulf %167, %122 : vector<8x128xf32>
    %177 = arith.mulf %161, %169 : vector<8x128xf32>
    %178 = arith.addf %176, %177 : vector<8x128xf32>
    %179 = math.tanh %178 : vector<8x128xf32>
    %180 = arith.mulf %175, %179 : vector<8x128xf32>
    %181 = vector.extract_strided_slice %11 {offsets = [24, 0], sizes = [8, 512], strides = [1, 1]} : vector<64x512xf32> to vector<8x512xf32>
    %cst_36 = arith.constant dense<0.000000e+00> : vector<8x512xf32>
    %182 = tpu.matmul %152, %0, %cst_36 {dimension_numbers = #tpu.dot_dimension_numbers<[1], [0], [0], [1], [0, 0, 1, 1], [], []>} : vector<8x128xf32>, vector<128x512xf32>, vector<8x512xf32> -> vector<8x512xf32>
    %183 = arith.addf %181, %182 : vector<8x512xf32>
    %184 = vector.extract_strided_slice %183 {offsets = [0, 0], sizes = [8, 128], strides = [1, 1]} : vector<8x512xf32> to vector<8x128xf32>
    %185 = arith.negf %184 : vector<8x128xf32>
    %186 = math.exp %185 : vector<8x128xf32>
    %cst_37 = arith.constant 1.000000e+00 : f32
    %187 = vector.broadcast %cst_37 : f32 to vector<8x128xf32>
    %188 = arith.addf %187, %186 : vector<8x128xf32>
    %189 = arith.divf %187, %188 : vector<8x128xf32>
    %190 = vector.extract_strided_slice %183 {offsets = [0, 128], sizes = [8, 128], strides = [1, 1]} : vector<8x512xf32> to vector<8x128xf32>
    %191 = arith.negf %190 : vector<8x128xf32>
    %192 = math.exp %191 : vector<8x128xf32>
    %cst_38 = arith.constant 1.000000e+00 : f32
    %193 = vector.broadcast %cst_38 : f32 to vector<8x128xf32>
    %194 = arith.addf %193, %192 : vector<8x128xf32>
    %195 = arith.divf %193, %194 : vector<8x128xf32>
    %196 = vector.extract_strided_slice %183 {offsets = [0, 256], sizes = [8, 128], strides = [1, 1]} : vector<8x512xf32> to vector<8x128xf32>
    %197 = math.tanh %196 : vector<8x128xf32>
    %198 = vector.extract_strided_slice %183 {offsets = [0, 384], sizes = [8, 128], strides = [1, 1]} : vector<8x512xf32> to vector<8x128xf32>
    %199 = arith.negf %198 : vector<8x128xf32>
    %200 = math.exp %199 : vector<8x128xf32>
    %cst_39 = arith.constant 1.000000e+00 : f32
    %201 = vector.broadcast %cst_39 : f32 to vector<8x128xf32>
    %202 = arith.addf %201, %200 : vector<8x128xf32>
    %203 = arith.divf %201, %202 : vector<8x128xf32>
    %204 = arith.mulf %195, %150 : vector<8x128xf32>
    %205 = arith.mulf %189, %197 : vector<8x128xf32>
    %206 = arith.addf %204, %205 : vector<8x128xf32>
    %207 = math.tanh %206 : vector<8x128xf32>
    %208 = arith.mulf %203, %207 : vector<8x128xf32>
    %209 = tpu.concatenate %208, %180 in 1 : vector<8x128xf32>, vector<8x128xf32> -> vector<8x256xf32>
    %cst_40 = arith.constant dense<0.000000e+00> : vector<8x512xf32>
    %210 = tpu.matmul %209, %1, %cst_40 {dimension_numbers = #tpu.dot_dimension_numbers<[1], [0], [0], [1], [0, 0, 1, 1], [], []>} : vector<8x256xf32>, vector<256x512xf32>, vector<8x512xf32> -> vector<8x512xf32>
    %211 = arith.addf %210, %4 : vector<8x512xf32>
    %212 = vector.extract_strided_slice %211 {offsets = [0, 0], sizes = [8, 128], strides = [1, 1]} : vector<8x512xf32> to vector<8x128xf32>
    %213 = arith.negf %212 : vector<8x128xf32>
    %214 = math.exp %213 : vector<8x128xf32>
    %cst_41 = arith.constant 1.000000e+00 : f32
    %215 = vector.broadcast %cst_41 : f32 to vector<8x128xf32>
    %216 = arith.addf %215, %214 : vector<8x128xf32>
    %217 = arith.divf %215, %216 : vector<8x128xf32>
    %218 = vector.extract_strided_slice %211 {offsets = [0, 128], sizes = [8, 128], strides = [1, 1]} : vector<8x512xf32> to vector<8x128xf32>
    %219 = arith.negf %218 : vector<8x128xf32>
    %220 = math.exp %219 : vector<8x128xf32>
    %cst_42 = arith.constant 1.000000e+00 : f32
    %221 = vector.broadcast %cst_42 : f32 to vector<8x128xf32>
    %222 = arith.addf %221, %220 : vector<8x128xf32>
    %223 = arith.divf %221, %222 : vector<8x128xf32>
    %224 = vector.extract_strided_slice %211 {offsets = [0, 256], sizes = [8, 128], strides = [1, 1]} : vector<8x512xf32> to vector<8x128xf32>
    %225 = math.tanh %224 : vector<8x128xf32>
    %226 = vector.extract_strided_slice %211 {offsets = [0, 384], sizes = [8, 128], strides = [1, 1]} : vector<8x512xf32> to vector<8x128xf32>
    %227 = arith.negf %226 : vector<8x128xf32>
    %228 = math.exp %227 : vector<8x128xf32>
    %cst_43 = arith.constant 1.000000e+00 : f32
    %229 = vector.broadcast %cst_43 : f32 to vector<8x128xf32>
    %230 = arith.addf %229, %228 : vector<8x128xf32>
    %231 = arith.divf %229, %230 : vector<8x128xf32>
    %232 = arith.mulf %223, %178 : vector<8x128xf32>
    %233 = arith.mulf %217, %225 : vector<8x128xf32>
    %234 = arith.addf %232, %233 : vector<8x128xf32>
    %235 = math.tanh %234 : vector<8x128xf32>
    %236 = arith.mulf %231, %235 : vector<8x128xf32>
    %237 = vector.extract_strided_slice %11 {offsets = [32, 0], sizes = [8, 512], strides = [1, 1]} : vector<64x512xf32> to vector<8x512xf32>
    %cst_44 = arith.constant dense<0.000000e+00> : vector<8x512xf32>
    %238 = tpu.matmul %208, %0, %cst_44 {dimension_numbers = #tpu.dot_dimension_numbers<[1], [0], [0], [1], [0, 0, 1, 1], [], []>} : vector<8x128xf32>, vector<128x512xf32>, vector<8x512xf32> -> vector<8x512xf32>
    %239 = arith.addf %237, %238 : vector<8x512xf32>
    %240 = vector.extract_strided_slice %239 {offsets = [0, 0], sizes = [8, 128], strides = [1, 1]} : vector<8x512xf32> to vector<8x128xf32>
    %241 = arith.negf %240 : vector<8x128xf32>
    %242 = math.exp %241 : vector<8x128xf32>
    %cst_45 = arith.constant 1.000000e+00 : f32
    %243 = vector.broadcast %cst_45 : f32 to vector<8x128xf32>
    %244 = arith.addf %243, %242 : vector<8x128xf32>
    %245 = arith.divf %243, %244 : vector<8x128xf32>
    %246 = vector.extract_strided_slice %239 {offsets = [0, 128], sizes = [8, 128], strides = [1, 1]} : vector<8x512xf32> to vector<8x128xf32>
    %247 = arith.negf %246 : vector<8x128xf32>
    %248 = math.exp %247 : vector<8x128xf32>
    %cst_46 = arith.constant 1.000000e+00 : f32
    %249 = vector.broadcast %cst_46 : f32 to vector<8x128xf32>
    %250 = arith.addf %249, %248 : vector<8x128xf32>
    %251 = arith.divf %249, %250 : vector<8x128xf32>
    %252 = vector.extract_strided_slice %239 {offsets = [0, 256], sizes = [8, 128], strides = [1, 1]} : vector<8x512xf32> to vector<8x128xf32>
    %253 = math.tanh %252 : vector<8x128xf32>
    %254 = vector.extract_strided_slice %239 {offsets = [0, 384], sizes = [8, 128], strides = [1, 1]} : vector<8x512xf32> to vector<8x128xf32>
    %255 = arith.negf %254 : vector<8x128xf32>
    %256 = math.exp %255 : vector<8x128xf32>
    %cst_47 = arith.constant 1.000000e+00 : f32
    %257 = vector.broadcast %cst_47 : f32 to vector<8x128xf32>
    %258 = arith.addf %257, %256 : vector<8x128xf32>
    %259 = arith.divf %257, %258 : vector<8x128xf32>
    %260 = arith.mulf %251, %206 : vector<8x128xf32>
    %261 = arith.mulf %245, %253 : vector<8x128xf32>
    %262 = arith.addf %260, %261 : vector<8x128xf32>
    %263 = math.tanh %262 : vector<8x128xf32>
    %264 = arith.mulf %259, %263 : vector<8x128xf32>
    %265 = tpu.concatenate %264, %236 in 1 : vector<8x128xf32>, vector<8x128xf32> -> vector<8x256xf32>
    %cst_48 = arith.constant dense<0.000000e+00> : vector<8x512xf32>
    %266 = tpu.matmul %265, %1, %cst_48 {dimension_numbers = #tpu.dot_dimension_numbers<[1], [0], [0], [1], [0, 0, 1, 1], [], []>} : vector<8x256xf32>, vector<256x512xf32>, vector<8x512xf32> -> vector<8x512xf32>
    %267 = arith.addf %266, %4 : vector<8x512xf32>
    %268 = vector.extract_strided_slice %267 {offsets = [0, 0], sizes = [8, 128], strides = [1, 1]} : vector<8x512xf32> to vector<8x128xf32>
    %269 = arith.negf %268 : vector<8x128xf32>
    %270 = math.exp %269 : vector<8x128xf32>
    %cst_49 = arith.constant 1.000000e+00 : f32
    %271 = vector.broadcast %cst_49 : f32 to vector<8x128xf32>
    %272 = arith.addf %271, %270 : vector<8x128xf32>
    %273 = arith.divf %271, %272 : vector<8x128xf32>
    %274 = vector.extract_strided_slice %267 {offsets = [0, 128], sizes = [8, 128], strides = [1, 1]} : vector<8x512xf32> to vector<8x128xf32>
    %275 = arith.negf %274 : vector<8x128xf32>
    %276 = math.exp %275 : vector<8x128xf32>
    %cst_50 = arith.constant 1.000000e+00 : f32
    %277 = vector.broadcast %cst_50 : f32 to vector<8x128xf32>
    %278 = arith.addf %277, %276 : vector<8x128xf32>
    %279 = arith.divf %277, %278 : vector<8x128xf32>
    %280 = vector.extract_strided_slice %267 {offsets = [0, 256], sizes = [8, 128], strides = [1, 1]} : vector<8x512xf32> to vector<8x128xf32>
    %281 = math.tanh %280 : vector<8x128xf32>
    %282 = vector.extract_strided_slice %267 {offsets = [0, 384], sizes = [8, 128], strides = [1, 1]} : vector<8x512xf32> to vector<8x128xf32>
    %283 = arith.negf %282 : vector<8x128xf32>
    %284 = math.exp %283 : vector<8x128xf32>
    %cst_51 = arith.constant 1.000000e+00 : f32
    %285 = vector.broadcast %cst_51 : f32 to vector<8x128xf32>
    %286 = arith.addf %285, %284 : vector<8x128xf32>
    %287 = arith.divf %285, %286 : vector<8x128xf32>
    %288 = arith.mulf %279, %234 : vector<8x128xf32>
    %289 = arith.mulf %273, %281 : vector<8x128xf32>
    %290 = arith.addf %288, %289 : vector<8x128xf32>
    %291 = math.tanh %290 : vector<8x128xf32>
    %292 = arith.mulf %287, %291 : vector<8x128xf32>
    %293 = vector.extract_strided_slice %11 {offsets = [40, 0], sizes = [8, 512], strides = [1, 1]} : vector<64x512xf32> to vector<8x512xf32>
    %cst_52 = arith.constant dense<0.000000e+00> : vector<8x512xf32>
    %294 = tpu.matmul %264, %0, %cst_52 {dimension_numbers = #tpu.dot_dimension_numbers<[1], [0], [0], [1], [0, 0, 1, 1], [], []>} : vector<8x128xf32>, vector<128x512xf32>, vector<8x512xf32> -> vector<8x512xf32>
    %295 = arith.addf %293, %294 : vector<8x512xf32>
    %296 = vector.extract_strided_slice %295 {offsets = [0, 0], sizes = [8, 128], strides = [1, 1]} : vector<8x512xf32> to vector<8x128xf32>
    %297 = arith.negf %296 : vector<8x128xf32>
    %298 = math.exp %297 : vector<8x128xf32>
    %cst_53 = arith.constant 1.000000e+00 : f32
    %299 = vector.broadcast %cst_53 : f32 to vector<8x128xf32>
    %300 = arith.addf %299, %298 : vector<8x128xf32>
    %301 = arith.divf %299, %300 : vector<8x128xf32>
    %302 = vector.extract_strided_slice %295 {offsets = [0, 128], sizes = [8, 128], strides = [1, 1]} : vector<8x512xf32> to vector<8x128xf32>
    %303 = arith.negf %302 : vector<8x128xf32>
    %304 = math.exp %303 : vector<8x128xf32>
    %cst_54 = arith.constant 1.000000e+00 : f32
    %305 = vector.broadcast %cst_54 : f32 to vector<8x128xf32>
    %306 = arith.addf %305, %304 : vector<8x128xf32>
    %307 = arith.divf %305, %306 : vector<8x128xf32>
    %308 = vector.extract_strided_slice %295 {offsets = [0, 256], sizes = [8, 128], strides = [1, 1]} : vector<8x512xf32> to vector<8x128xf32>
    %309 = math.tanh %308 : vector<8x128xf32>
    %310 = vector.extract_strided_slice %295 {offsets = [0, 384], sizes = [8, 128], strides = [1, 1]} : vector<8x512xf32> to vector<8x128xf32>
    %311 = arith.negf %310 : vector<8x128xf32>
    %312 = math.exp %311 : vector<8x128xf32>
    %cst_55 = arith.constant 1.000000e+00 : f32
    %313 = vector.broadcast %cst_55 : f32 to vector<8x128xf32>
    %314 = arith.addf %313, %312 : vector<8x128xf32>
    %315 = arith.divf %313, %314 : vector<8x128xf32>
    %316 = arith.mulf %307, %262 : vector<8x128xf32>
    %317 = arith.mulf %301, %309 : vector<8x128xf32>
    %318 = arith.addf %316, %317 : vector<8x128xf32>
    %319 = math.tanh %318 : vector<8x128xf32>
    %320 = arith.mulf %315, %319 : vector<8x128xf32>
    %321 = tpu.concatenate %320, %292 in 1 : vector<8x128xf32>, vector<8x128xf32> -> vector<8x256xf32>
    %cst_56 = arith.constant dense<0.000000e+00> : vector<8x512xf32>
    %322 = tpu.matmul %321, %1, %cst_56 {dimension_numbers = #tpu.dot_dimension_numbers<[1], [0], [0], [1], [0, 0, 1, 1], [], []>} : vector<8x256xf32>, vector<256x512xf32>, vector<8x512xf32> -> vector<8x512xf32>
    %323 = arith.addf %322, %4 : vector<8x512xf32>
    %324 = vector.extract_strided_slice %323 {offsets = [0, 0], sizes = [8, 128], strides = [1, 1]} : vector<8x512xf32> to vector<8x128xf32>
    %325 = arith.negf %324 : vector<8x128xf32>
    %326 = math.exp %325 : vector<8x128xf32>
    %cst_57 = arith.constant 1.000000e+00 : f32
    %327 = vector.broadcast %cst_57 : f32 to vector<8x128xf32>
    %328 = arith.addf %327, %326 : vector<8x128xf32>
    %329 = arith.divf %327, %328 : vector<8x128xf32>
    %330 = vector.extract_strided_slice %323 {offsets = [0, 128], sizes = [8, 128], strides = [1, 1]} : vector<8x512xf32> to vector<8x128xf32>
    %331 = arith.negf %330 : vector<8x128xf32>
    %332 = math.exp %331 : vector<8x128xf32>
    %cst_58 = arith.constant 1.000000e+00 : f32
    %333 = vector.broadcast %cst_58 : f32 to vector<8x128xf32>
    %334 = arith.addf %333, %332 : vector<8x128xf32>
    %335 = arith.divf %333, %334 : vector<8x128xf32>
    %336 = vector.extract_strided_slice %323 {offsets = [0, 256], sizes = [8, 128], strides = [1, 1]} : vector<8x512xf32> to vector<8x128xf32>
    %337 = math.tanh %336 : vector<8x128xf32>
    %338 = vector.extract_strided_slice %323 {offsets = [0, 384], sizes = [8, 128], strides = [1, 1]} : vector<8x512xf32> to vector<8x128xf32>
    %339 = arith.negf %338 : vector<8x128xf32>
    %340 = math.exp %339 : vector<8x128xf32>
    %cst_59 = arith.constant 1.000000e+00 : f32
    %341 = vector.broadcast %cst_59 : f32 to vector<8x128xf32>
    %342 = arith.addf %341, %340 : vector<8x128xf32>
    %343 = arith.divf %341, %342 : vector<8x128xf32>
    %344 = arith.mulf %335, %290 : vector<8x128xf32>
    %345 = arith.mulf %329, %337 : vector<8x128xf32>
    %346 = arith.addf %344, %345 : vector<8x128xf32>
    %347 = math.tanh %346 : vector<8x128xf32>
    %348 = arith.mulf %343, %347 : vector<8x128xf32>
    %349 = vector.extract_strided_slice %11 {offsets = [48, 0], sizes = [8, 512], strides = [1, 1]} : vector<64x512xf32> to vector<8x512xf32>
    %cst_60 = arith.constant dense<0.000000e+00> : vector<8x512xf32>
    %350 = tpu.matmul %320, %0, %cst_60 {dimension_numbers = #tpu.dot_dimension_numbers<[1], [0], [0], [1], [0, 0, 1, 1], [], []>} : vector<8x128xf32>, vector<128x512xf32>, vector<8x512xf32> -> vector<8x512xf32>
    %351 = arith.addf %349, %350 : vector<8x512xf32>
    %352 = vector.extract_strided_slice %351 {offsets = [0, 0], sizes = [8, 128], strides = [1, 1]} : vector<8x512xf32> to vector<8x128xf32>
    %353 = arith.negf %352 : vector<8x128xf32>
    %354 = math.exp %353 : vector<8x128xf32>
    %cst_61 = arith.constant 1.000000e+00 : f32
    %355 = vector.broadcast %cst_61 : f32 to vector<8x128xf32>
    %356 = arith.addf %355, %354 : vector<8x128xf32>
    %357 = arith.divf %355, %356 : vector<8x128xf32>
    %358 = vector.extract_strided_slice %351 {offsets = [0, 128], sizes = [8, 128], strides = [1, 1]} : vector<8x512xf32> to vector<8x128xf32>
    %359 = arith.negf %358 : vector<8x128xf32>
    %360 = math.exp %359 : vector<8x128xf32>
    %cst_62 = arith.constant 1.000000e+00 : f32
    %361 = vector.broadcast %cst_62 : f32 to vector<8x128xf32>
    %362 = arith.addf %361, %360 : vector<8x128xf32>
    %363 = arith.divf %361, %362 : vector<8x128xf32>
    %364 = vector.extract_strided_slice %351 {offsets = [0, 256], sizes = [8, 128], strides = [1, 1]} : vector<8x512xf32> to vector<8x128xf32>
    %365 = math.tanh %364 : vector<8x128xf32>
    %366 = vector.extract_strided_slice %351 {offsets = [0, 384], sizes = [8, 128], strides = [1, 1]} : vector<8x512xf32> to vector<8x128xf32>
    %367 = arith.negf %366 : vector<8x128xf32>
    %368 = math.exp %367 : vector<8x128xf32>
    %cst_63 = arith.constant 1.000000e+00 : f32
    %369 = vector.broadcast %cst_63 : f32 to vector<8x128xf32>
    %370 = arith.addf %369, %368 : vector<8x128xf32>
    %371 = arith.divf %369, %370 : vector<8x128xf32>
    %372 = arith.mulf %363, %318 : vector<8x128xf32>
    %373 = arith.mulf %357, %365 : vector<8x128xf32>
    %374 = arith.addf %372, %373 : vector<8x128xf32>
    %375 = math.tanh %374 : vector<8x128xf32>
    %376 = arith.mulf %371, %375 : vector<8x128xf32>
    %377 = tpu.concatenate %376, %348 in 1 : vector<8x128xf32>, vector<8x128xf32> -> vector<8x256xf32>
    %cst_64 = arith.constant dense<0.000000e+00> : vector<8x512xf32>
    %378 = tpu.matmul %377, %1, %cst_64 {dimension_numbers = #tpu.dot_dimension_numbers<[1], [0], [0], [1], [0, 0, 1, 1], [], []>} : vector<8x256xf32>, vector<256x512xf32>, vector<8x512xf32> -> vector<8x512xf32>
    %379 = arith.addf %378, %4 : vector<8x512xf32>
    %380 = vector.extract_strided_slice %379 {offsets = [0, 0], sizes = [8, 128], strides = [1, 1]} : vector<8x512xf32> to vector<8x128xf32>
    %381 = arith.negf %380 : vector<8x128xf32>
    %382 = math.exp %381 : vector<8x128xf32>
    %cst_65 = arith.constant 1.000000e+00 : f32
    %383 = vector.broadcast %cst_65 : f32 to vector<8x128xf32>
    %384 = arith.addf %383, %382 : vector<8x128xf32>
    %385 = arith.divf %383, %384 : vector<8x128xf32>
    %386 = vector.extract_strided_slice %379 {offsets = [0, 128], sizes = [8, 128], strides = [1, 1]} : vector<8x512xf32> to vector<8x128xf32>
    %387 = arith.negf %386 : vector<8x128xf32>
    %388 = math.exp %387 : vector<8x128xf32>
    %cst_66 = arith.constant 1.000000e+00 : f32
    %389 = vector.broadcast %cst_66 : f32 to vector<8x128xf32>
    %390 = arith.addf %389, %388 : vector<8x128xf32>
    %391 = arith.divf %389, %390 : vector<8x128xf32>
    %392 = vector.extract_strided_slice %379 {offsets = [0, 256], sizes = [8, 128], strides = [1, 1]} : vector<8x512xf32> to vector<8x128xf32>
    %393 = math.tanh %392 : vector<8x128xf32>
    %394 = vector.extract_strided_slice %379 {offsets = [0, 384], sizes = [8, 128], strides = [1, 1]} : vector<8x512xf32> to vector<8x128xf32>
    %395 = arith.negf %394 : vector<8x128xf32>
    %396 = math.exp %395 : vector<8x128xf32>
    %cst_67 = arith.constant 1.000000e+00 : f32
    %397 = vector.broadcast %cst_67 : f32 to vector<8x128xf32>
    %398 = arith.addf %397, %396 : vector<8x128xf32>
    %399 = arith.divf %397, %398 : vector<8x128xf32>
    %400 = arith.mulf %391, %346 : vector<8x128xf32>
    %401 = arith.mulf %385, %393 : vector<8x128xf32>
    %402 = arith.addf %400, %401 : vector<8x128xf32>
    %403 = math.tanh %402 : vector<8x128xf32>
    %404 = arith.mulf %399, %403 : vector<8x128xf32>
    %405 = vector.extract_strided_slice %11 {offsets = [56, 0], sizes = [8, 512], strides = [1, 1]} : vector<64x512xf32> to vector<8x512xf32>
    %cst_68 = arith.constant dense<0.000000e+00> : vector<8x512xf32>
    %406 = tpu.matmul %376, %0, %cst_68 {dimension_numbers = #tpu.dot_dimension_numbers<[1], [0], [0], [1], [0, 0, 1, 1], [], []>} : vector<8x128xf32>, vector<128x512xf32>, vector<8x512xf32> -> vector<8x512xf32>
    %407 = arith.addf %405, %406 : vector<8x512xf32>
    %408 = vector.extract_strided_slice %407 {offsets = [0, 0], sizes = [8, 128], strides = [1, 1]} : vector<8x512xf32> to vector<8x128xf32>
    %409 = arith.negf %408 : vector<8x128xf32>
    %410 = math.exp %409 : vector<8x128xf32>
    %cst_69 = arith.constant 1.000000e+00 : f32
    %411 = vector.broadcast %cst_69 : f32 to vector<8x128xf32>
    %412 = arith.addf %411, %410 : vector<8x128xf32>
    %413 = arith.divf %411, %412 : vector<8x128xf32>
    %414 = vector.extract_strided_slice %407 {offsets = [0, 128], sizes = [8, 128], strides = [1, 1]} : vector<8x512xf32> to vector<8x128xf32>
    %415 = arith.negf %414 : vector<8x128xf32>
    %416 = math.exp %415 : vector<8x128xf32>
    %cst_70 = arith.constant 1.000000e+00 : f32
    %417 = vector.broadcast %cst_70 : f32 to vector<8x128xf32>
    %418 = arith.addf %417, %416 : vector<8x128xf32>
    %419 = arith.divf %417, %418 : vector<8x128xf32>
    %420 = vector.extract_strided_slice %407 {offsets = [0, 256], sizes = [8, 128], strides = [1, 1]} : vector<8x512xf32> to vector<8x128xf32>
    %421 = math.tanh %420 : vector<8x128xf32>
    %422 = vector.extract_strided_slice %407 {offsets = [0, 384], sizes = [8, 128], strides = [1, 1]} : vector<8x512xf32> to vector<8x128xf32>
    %423 = arith.negf %422 : vector<8x128xf32>
    %424 = math.exp %423 : vector<8x128xf32>
    %cst_71 = arith.constant 1.000000e+00 : f32
    %425 = vector.broadcast %cst_71 : f32 to vector<8x128xf32>
    %426 = arith.addf %425, %424 : vector<8x128xf32>
    %427 = arith.divf %425, %426 : vector<8x128xf32>
    %428 = arith.mulf %419, %374 : vector<8x128xf32>
    %429 = arith.mulf %413, %421 : vector<8x128xf32>
    %430 = arith.addf %428, %429 : vector<8x128xf32>
    %431 = math.tanh %430 : vector<8x128xf32>
    %432 = arith.mulf %427, %431 : vector<8x128xf32>
    %433 = tpu.concatenate %432, %404 in 1 : vector<8x128xf32>, vector<8x128xf32> -> vector<8x256xf32>
    %cst_72 = arith.constant dense<0.000000e+00> : vector<8x512xf32>
    %434 = tpu.matmul %433, %1, %cst_72 {dimension_numbers = #tpu.dot_dimension_numbers<[1], [0], [0], [1], [0, 0, 1, 1], [], []>} : vector<8x256xf32>, vector<256x512xf32>, vector<8x512xf32> -> vector<8x512xf32>
    %435 = arith.addf %434, %4 : vector<8x512xf32>
    %436 = vector.extract_strided_slice %435 {offsets = [0, 0], sizes = [8, 128], strides = [1, 1]} : vector<8x512xf32> to vector<8x128xf32>
    %437 = arith.negf %436 : vector<8x128xf32>
    %438 = math.exp %437 : vector<8x128xf32>
    %cst_73 = arith.constant 1.000000e+00 : f32
    %439 = vector.broadcast %cst_73 : f32 to vector<8x128xf32>
    %440 = arith.addf %439, %438 : vector<8x128xf32>
    %441 = arith.divf %439, %440 : vector<8x128xf32>
    %442 = vector.extract_strided_slice %435 {offsets = [0, 128], sizes = [8, 128], strides = [1, 1]} : vector<8x512xf32> to vector<8x128xf32>
    %443 = arith.negf %442 : vector<8x128xf32>
    %444 = math.exp %443 : vector<8x128xf32>
    %cst_74 = arith.constant 1.000000e+00 : f32
    %445 = vector.broadcast %cst_74 : f32 to vector<8x128xf32>
    %446 = arith.addf %445, %444 : vector<8x128xf32>
    %447 = arith.divf %445, %446 : vector<8x128xf32>
    %448 = vector.extract_strided_slice %435 {offsets = [0, 256], sizes = [8, 128], strides = [1, 1]} : vector<8x512xf32> to vector<8x128xf32>
    %449 = math.tanh %448 : vector<8x128xf32>
    %450 = vector.extract_strided_slice %435 {offsets = [0, 384], sizes = [8, 128], strides = [1, 1]} : vector<8x512xf32> to vector<8x128xf32>
    %451 = arith.negf %450 : vector<8x128xf32>
    %452 = math.exp %451 : vector<8x128xf32>
    %cst_75 = arith.constant 1.000000e+00 : f32
    %453 = vector.broadcast %cst_75 : f32 to vector<8x128xf32>
    %454 = arith.addf %453, %452 : vector<8x128xf32>
    %455 = arith.divf %453, %454 : vector<8x128xf32>
    %456 = arith.mulf %447, %402 : vector<8x128xf32>
    %457 = arith.mulf %441, %449 : vector<8x128xf32>
    %458 = arith.addf %456, %457 : vector<8x128xf32>
    %459 = math.tanh %458 : vector<8x128xf32>
    %460 = arith.mulf %455, %459 : vector<8x128xf32>
    %c0_76 = arith.constant 0 : index
    %c0_77 = arith.constant 0 : index
    %461 = vector.load %arg7[%c0_76, %c0_77] : memref<128x128xf32, #tpu.memory_space<vmem>>, vector<128x128xf32>
    %cst_78 = arith.constant dense<0.000000e+00> : vector<8x128xf32>
    %462 = tpu.matmul %460, %461, %cst_78 {dimension_numbers = #tpu.dot_dimension_numbers<[1], [0], [0], [1], [0, 0, 1, 1], [], []>} : vector<8x128xf32>, vector<128x128xf32>, vector<8x128xf32> -> vector<8x128xf32>
    %c0_79 = arith.constant 0 : index
    %c0_80 = arith.constant 0 : index
    %463 = vector.load %arg8[%c0_79, %c0_80] : memref<1x128xf32, #tpu.memory_space<vmem>>, vector<1x128xf32>
    %464 = vector.shape_cast %463 : vector<1x128xf32> to vector<1x128xf32>
    %465 = vector.broadcast %464 : vector<1x128xf32> to vector<8x128xf32>
    %466 = arith.addf %462, %465 : vector<8x128xf32>
    %c0_81 = arith.constant 0 : index
    %c0_82 = arith.constant 0 : index
    %467 = vector.load %arg9[%c0_81, %c0_82] : memref<8x128xf32, #tpu.memory_space<vmem>>, vector<8x128xf32>
    tpu.vector_store %arg9[%c0_81, %c0_82], %466 {strides = array<i32>} : memref<8x128xf32, #tpu.memory_space<vmem>>, vector<8x128xf32>,
    return
  }
  func.func @transform_0(%arg0: i32) -> (i32, i32) {
    %c0_i32 = arith.constant 0 : i32
    %c0_i32_0 = arith.constant 0 : i32
    %c0_i32_1 = arith.constant 0 : i32
    return %c0_i32, %c0_i32_0 : i32, i32
  }
  func.func @transform_1(%arg0: i32) -> (i32, i32) {
    %c0_i32 = arith.constant 0 : i32
    %c0_i32_0 = arith.constant 0 : i32
    %c0_i32_1 = arith.constant 0 : i32
    return %c0_i32, %c0_i32_0 : i32, i32
  }
  func.func @transform_2(%arg0: i32) -> (i32, i32) {
    %c0_i32 = arith.constant 0 : i32
    %c0_i32_0 = arith.constant 0 : i32
    %c0_i32_1 = arith.constant 0 : i32
    return %c0_i32, %c0_i32_0 : i32, i32
  }
  func.func @transform_3(%arg0: i32) -> (i32, i32) {
    %c0_i32 = arith.constant 0 : i32
    %c0_i32_0 = arith.constant 0 : i32
    %c0_i32_1 = arith.constant 0 : i32
    return %c0_i32, %c0_i32_0 : i32, i32
  }
  func.func @transform_4(%arg0: i32) -> (i32, i32) {
    %c0_i32 = arith.constant 0 : i32
    %c0_i32_0 = arith.constant 0 : i32
    %c0_i32_1 = arith.constant 0 : i32
    return %c0_i32, %c0_i32_0 : i32, i32
  }
  func.func @transform_5(%arg0: i32) -> (i32, i32) {
    %c0_i32 = arith.constant 0 : i32
    %c0_i32_0 = arith.constant 0 : i32
    %c0_i32_1 = arith.constant 0 : i32
    return %c0_i32, %c0_i32_0 : i32, i32
  }
  func.func @transform_6(%arg0: i32) -> (i32, i32) {
    %c0_i32 = arith.constant 0 : i32
    %c0_i32_0 = arith.constant 0 : i32
    %c0_i32_1 = arith.constant 0 : i32
    return %c0_i32, %c0_i32_0 : i32, i32
  }
  func.func @transform_7(%arg0: i32) -> (i32, i32) {
    %c0_i32 = arith.constant 0 : i32
    %c0_i32_0 = arith.constant 0 : i32
    %c0_i32_1 = arith.constant 0 : i32
    return %c0_i32, %c0_i32_0 : i32, i32
  }
  func.func @transform_8(%arg0: i32) -> (i32, i32) {
    %c0_i32 = arith.constant 0 : i32
    %c0_i32_0 = arith.constant 0 : i32
    %c0_i32_1 = arith.constant 0 : i32
    return %c0_i32, %c0_i32_0 : i32, i32
  }
}

</mosaic_0001>

<bundles_post_ra>
// kernel: tpu_custom_call.1
= control target key start
LH: loop header
LB: loop body
LE: loop exit
PB: predicated region body
PF: predicated region fallthrough
CT: control target
= control target key end

     0   :  { %13 = vsyncpa [#allocation3], 0  ;;  %s8458_s0 = inlined_call_operand.hbm [shape: f32[64,126], index: 0, kind: input, shape index: {}]   ;;  %s8459_s1 = inlined_call_operand.hbm [shape: f32[126,512], index: 1, kind: input, shape index: {}]   ;;  %s8460_s2 = inlined_call_operand.hbm [shape: f32[128,512], index: 2, kind: input, shape index: {}]   ;;  %s8461_s3 = inlined_call_operand.hbm [shape: f32[1,512], index: 3, kind: input, shape index: {}]   ;;  %s8462_s4 = inlined_call_operand.hbm [shape: f32[256,512], index: 4, kind: input, shape index: {}]   ;;  %s8463_s5 = inlined_call_operand.vmem [shape: f32[1,512], index: 5, kind: input, shape index: {}]   ;;  %s8464_s6 = inlined_call_operand.hbm [shape: f32[128,128], index: 6, kind: input, shape index: {}]   ;;  %s8465_s7 = inlined_call_operand.vmem [shape: f32[1,128], index: 7, kind: input, shape index: {}]   ;;  %s8466_s8 = inlined_call_operand.hbm [shape: f32[8,128], index: 8, kind: output, shape index: {}]  }
   0x1   :  { %14 = vsyncpa [#allocation6], 0 }
   0x2   :  { %15 = vsyncpa [#allocation9], 0 }
   0x3   :  { %16 = vsyncpa [#allocation12], 0  ;;  %s35_s29 = sshll.u32 %s8459_s1, 4  ;;  %s36_s29 = int_to_ptr.hbm [resolvable:$true] %s35_s29 }
   0x4   :  { %17 = vsyncpa [#allocation4], 0  ;;  %s4768_s30 = smov [#allocation5]   ;;  %s62_s12 = sshll.u32 %s8461_s3, 4  ;;  %s63_s12 = int_to_ptr.hbm [resolvable:$true] %s62_s12 }
   0x5   :  { %s37_s9 = sshll.u32 %s4768_s30, 4  ;;  %s4769_s13 = smov 512   ;;  %s38_s9 = int_to_ptr.vmem [resolvable:$true] %s37_s9 }
   0x6   :  { %s4770_s14 = smov 32   ;;  %s4771_s15 = smov [#allocation8]  }
   0x7   :  { %43 = dma.hbm_to_vmem [thread:$0]  %s36_s29, 8192, %s38_s9, [#allocation6], %s4769_s13, %s4769_s13, %s4770_s14  }
   0x8   :  { %s64_s16 = sshll.u32 %s4771_s15, 4  ;;  %s22_s18 = sshll.u32 %s8458_s0, 4  ;;  %s65_s16 = int_to_ptr.vmem [resolvable:$true] %s64_s16  ;;  %s23_s18 = int_to_ptr.hbm [resolvable:$true] %s22_s18 }
   0x9   :  { %67 = dma.hbm_to_vmem [thread:$0]  %s63_s12, 64, %s65_s16, [#allocation9]  }
   0xa   :  { %s4772_s19 = smov [#allocation2]   ;;  %s48_s22 = sshll.u32 %s8460_s2, 4  ;;  %s49_s22 = int_to_ptr.hbm [resolvable:$true] %s48_s22 }
   0xb   :  { %s24_s20 = sshll.u32 %s4772_s19, 4  ;;  %s4773_s23 = smov 128   ;;  %s25_s20 = int_to_ptr.vmem [resolvable:$true] %s24_s20 }
   0xc   :  { %s4774_s24 = smov 8   ;;  %s4775_s25 = smov [#allocation7]  }
   0xd   :  { %30 = dma.hbm_to_vmem [thread:$0]  %s23_s18, 1024, %s25_s20, [#allocation3], %s4773_s23, %s4773_s23, %s4774_s24  }
   0xe   :  { %s50_s26 = sshll.u32 %s4775_s25, 4  ;;  %s72_s0 = sshll.u32 %s8462_s4, 4  ;;  %s51_s26 = int_to_ptr.vmem [resolvable:$true] %s50_s26  ;;  %s73_s0 = int_to_ptr.hbm [resolvable:$true] %s72_s0 }
   0xf   :  { %56 = dma.hbm_to_vmem [thread:$0]  %s49_s22, 8192, %s51_s26, [#allocation6], %s4769_s13, %s4769_s13, %s4770_s14  }
  0x10   :  { %s87_s2 = sshll.u32 %s8464_s6, 4  ;;  %s4776_s9 = smov [#allocation10]   ;;  %s88_s2 = int_to_ptr.hbm [resolvable:$true] %s87_s2 }
  0x11   :  { %s74_s10 = sshll.u32 %s4776_s9, 4  ;;  %s4777_s11 = smov [#allocation11]   ;;  %s75_s10 = int_to_ptr.vmem [resolvable:$true] %s74_s10 }
  0x12   :  { %80 = dma.hbm_to_vmem [thread:$0]  %s73_s0, 16384, %s75_s10, [#allocation9], %s4769_s13, %s4769_s13, %s4770_s14  }
  0x13   :  { %s89_s4 = sshll.u32 %s4777_s11, 4  ;;  %s90_s4 = int_to_ptr.vmem [resolvable:$true] %s89_s4 }
  0x14   :  { %95 = dma.hbm_to_vmem [thread:$0]  %s88_s2, 2048, %s90_s4, [#allocation12], %s4773_s23, %s4773_s23, %s4774_s24  }
  0x15   :  { %4758 = dma.done.wait [#allocation3], 1024  }
  0x16   :  { %4759 = vsyncadd [#allocation3], 4294966272 }
  0x17   :  { %4760 = dma.done.wait [#allocation6], 16384  }
  0x18   :  { %4761 = vsyncadd [#allocation6], 4294950912 }
  0x19   :  { %4762 = dma.done.wait [#allocation9], 16448  }
  0x1a   :  { %4763 = vsyncadd [#allocation9], 4294950848 }
  0x1b   :  { %4764 = dma.done.wait [#allocation12], 2048  }
  0x1c   :  { %4765 = vsyncadd [#allocation12], 4294965248  ;;  %vm431_vm0 = vcmask 1045504   ;;  %v392_v0 = vld [vmem:[#allocation5 + $0x1e0] sm:$0x3f]  ;;  %v389_v5 = vld [vmem:[#allocation5 + $0x1c8] sm:$0xff] }
  0x1d   :  { %v393_v1 = vld [vmem:[#allocation5 + $0x1e8] sm:$0x3f]  ;;  %v394_v2 = vld [vmem:[#allocation5 + $0x1f0] sm:$0x3f]  ;;  %3629 = vmatpush.msk.msra.mxu0 %vm431_vm0, %v392_v0  ;;  %v395_v3 = vld [vmem:[#allocation5 + $0x1f8] sm:$0x3f] }
  0x1e   :  { %3638 = vmatpush.msk.msra.mxu1 %vm431_vm0, %v393_v1  ;;  %v388_v4 = vld [vmem:[#allocation5 + $0x1c0] sm:$0xff]  ;;  %3647 = vmatpush.msk.msra.mxu2 %vm431_vm0, %v394_v2  ;;  %v390_v6 = vld [vmem:[#allocation5 + $0x1d0] sm:$0xff]  ;;  %v391_v7 = vld [vmem:[#allocation5 + $0x1d8] sm:$0xff]  ;;  %vm406_vm1 = vcmask 1031168   ;;  %s4779_s14 = smov [#allocation13]   ;;  %s3616_s1 = sshll.u32 %s8466_s8, 4  ;;  %s3617_s1 = int_to_ptr.hbm [resolvable:$true] %s3616_s1 }
  0x1f   :  { %3656 = vmatpush.msk.msra.mxu3 %vm431_vm0, %v395_v3  ;;  %v384_v8 = vld [vmem:[#allocation5 + $0x1a0] sm:$0xff]  ;;  %445 = vmatpush.msra.mxu0 %v388_v4  ;;  %v385_v9 = vld [vmem:[#allocation5 + $0x1a8] sm:$0xff]  ;;  %v386_v10 = vld [vmem:[#allocation5 + $0x1b0] sm:$0xff]  ;;  %s3614_s15 = sshll.u32 %s4779_s14, 4  ;;  %s3615_s15 = int_to_ptr.vmem [resolvable:$true] %s3614_s15 }
  0x20   :  { %486 = vmatpush.msra.mxu1 %v389_v5  ;;  %v387_v11 = vld [vmem:[#allocation5 + $0x1b8] sm:$0xff]  ;;  %527 = vmatpush.msra.mxu2 %v390_v6  ;;  %v380_v12 = vld [vmem:[#allocation5 + $0x180] sm:$0xff]  ;;  %v381_v13 = vld [vmem:[#allocation5 + $0x188] sm:$0xff] }
  0x21   :  { %568 = vmatpush.msra.mxu3 %v391_v7  ;;  %446 = vmatpush.msra.mxu0 %v384_v8  ;;  %v382_v14 = vld [vmem:[#allocation5 + $0x190] sm:$0xff]  ;;  %v383_v15 = vld [vmem:[#allocation5 + $0x198] sm:$0xff]  ;;  %v376_v16 = vld [vmem:[#allocation5 + $0x160] sm:$0xff] }
  0x22   :  { %487 = vmatpush.msra.mxu1 %v385_v9  ;;  %528 = vmatpush.msra.mxu2 %v386_v10  ;;  %v377_v17 = vld [vmem:[#allocation5 + $0x168] sm:$0xff]  ;;  %v378_v18 = vld [vmem:[#allocation5 + $0x170] sm:$0xff]  ;;  %v379_v19 = vld [vmem:[#allocation5 + $0x178] sm:$0xff] }
  0x23   :  { %569 = vmatpush.msra.mxu3 %v387_v11  ;;  %447 = vmatpush.msra.mxu0 %v380_v12  ;;  %v372_v20 = vld [vmem:[#allocation5 + $0x140] sm:$0xff]  ;;  %v373_v21 = vld [vmem:[#allocation5 + $0x148] sm:$0xff]  ;;  %v374_v22 = vld [vmem:[#allocation5 + $0x150] sm:$0xff] }
  0x24   :  { %488 = vmatpush.msra.mxu1 %v381_v13  ;;  %529 = vmatpush.msra.mxu2 %v382_v14  ;;  %v375_v23 = vld [vmem:[#allocation5 + $0x158] sm:$0xff]  ;;  %v368_v24 = vld [vmem:[#allocation5 + $0x120] sm:$0xff]  ;;  %v369_v25 = vld [vmem:[#allocation5 + $0x128] sm:$0xff] }
  0x25   :  { %570 = vmatpush.msra.mxu3 %v383_v15  ;;  %448 = vmatpush.msra.mxu0 %v376_v16  ;;  %v370_v26 = vld [vmem:[#allocation5 + $0x130] sm:$0xff]  ;;  %v371_v27 = vld [vmem:[#allocation5 + $0x138] sm:$0xff]  ;;  %v364_v28 = vld [vmem:[#allocation5 + $0x100] sm:$0xff] }
  0x26   :  { %489 = vmatpush.msra.mxu1 %v377_v17  ;;  %530 = vmatpush.msra.mxu2 %v378_v18  ;;  %v365_v29 = vld [vmem:[#allocation5 + $0x108] sm:$0xff]  ;;  %v366_v30 = vld [vmem:[#allocation5 + $0x110] sm:$0xff]  ;;  %v367_v31 = vld [vmem:[#allocation5 + $0x118] sm:$0xff] }
  0x27   :  { %571 = vmatpush.msra.mxu3 %v379_v19  ;;  %449 = vmatpush.msra.mxu0 %v372_v20  ;;  %v360_v32 = vld [vmem:[#allocation5 + $0xe0] sm:$0xff]  ;;  %v361_v33 = vld [vmem:[#allocation5 + $0xe8] sm:$0xff]  ;;  %v362_v34 = vld [vmem:[#allocation5 + $0xf0] sm:$0xff] }
  0x28   :  { %490 = vmatpush.msra.mxu1 %v373_v21  ;;  %531 = vmatpush.msra.mxu2 %v374_v22  ;;  %v363_v35 = vld [vmem:[#allocation5 + $0xf8] sm:$0xff]  ;;  %v356_v36 = vld [vmem:[#allocation5 + $0xc0] sm:$0xff]  ;;  %v357_v37 = vld [vmem:[#allocation5 + $0xc8] sm:$0xff] }
  0x29   :  { %572 = vmatpush.msra.mxu3 %v375_v23  ;;  %450 = vmatpush.msra.mxu0 %v368_v24  ;;  %v358_v38 = vld [vmem:[#allocation5 + $0xd0] sm:$0xff]  ;;  %v359_v39 = vld [vmem:[#allocation5 + $0xd8] sm:$0xff]  ;;  %v352_v40 = vld [vmem:[#allocation5 + $0xa0] sm:$0xff] }
  0x2a   :  { %491 = vmatpush.msra.mxu1 %v369_v25  ;;  %532 = vmatpush.msra.mxu2 %v370_v26  ;;  %v353_v41 = vld [vmem:[#allocation5 + $0xa8] sm:$0xff]  ;;  %v354_v42 = vld [vmem:[#allocation5 + $0xb0] sm:$0xff]  ;;  %v355_v43 = vld [vmem:[#allocation5 + $0xb8] sm:$0xff] }
  0x2b   :  { %573 = vmatpush.msra.mxu3 %v371_v27  ;;  %451 = vmatpush.msra.mxu0 %v364_v28  ;;  %v348_v44 = vld [vmem:[#allocation5 + $0x80] sm:$0xff]  ;;  %v349_v45 = vld [vmem:[#allocation5 + $0x88] sm:$0xff]  ;;  %v350_v46 = vld [vmem:[#allocation5 + $0x90] sm:$0xff] }
  0x2c   :  { %492 = vmatpush.msra.mxu1 %v365_v29  ;;  %533 = vmatpush.msra.mxu2 %v366_v30  ;;  %v351_v47 = vld [vmem:[#allocation5 + $0x98] sm:$0xff]  ;;  %v344_v48 = vld [vmem:[#allocation5 + $0x60] sm:$0xff]  ;;  %v345_v49 = vld [vmem:[#allocation5 + $0x68] sm:$0xff] }
  0x2d   :  { %574 = vmatpush.msra.mxu3 %v367_v31  ;;  %452 = vmatpush.msra.mxu0 %v360_v32  ;;  %v346_v50 = vld [vmem:[#allocation5 + $0x70] sm:$0xff]  ;;  %v347_v51 = vld [vmem:[#allocation5 + $0x78] sm:$0xff]  ;;  %v340_v52 = vld [vmem:[#allocation5 + $0x40] sm:$0xff] }
  0x2e   :  { %493 = vmatpush.msra.mxu1 %v361_v33  ;;  %534 = vmatpush.msra.mxu2 %v362_v34  ;;  %v341_v53 = vld [vmem:[#allocation5 + $0x48] sm:$0xff]  ;;  %v342_v54 = vld [vmem:[#allocation5 + $0x50] sm:$0xff]  ;;  %v343_v55 = vld [vmem:[#allocation5 + $0x58] sm:$0xff] }
  0x2f   :  { %575 = vmatpush.msra.mxu3 %v363_v35  ;;  %453 = vmatpush.msra.mxu0 %v356_v36  ;;  %v336_v56 = vld [vmem:[#allocation5 + $0x20] sm:$0xff]  ;;  %v337_v57 = vld [vmem:[#allocation5 + $0x28] sm:$0xff]  ;;  %v338_v58 = vld [vmem:[#allocation5 + $0x30] sm:$0xff] }
  0x30   :  { %494 = vmatpush.msra.mxu1 %v357_v37  ;;  %535 = vmatpush.msra.mxu2 %v358_v38  ;;  %v339_v59 = vld [vmem:[#allocation5 + $0x38] sm:$0xff]  ;;  %v332_v60 = vld [vmem:[#allocation5] sm:$0xff]  ;;  %v333_v61 = vld [vmem:[#allocation5 + $0x8] sm:$0xff] }
  0x31   :  { %576 = vmatpush.msra.mxu3 %v359_v39  ;;  %454 = vmatpush.msra.mxu0 %v352_v40  ;;  %v334_v62 = vld [vmem:[#allocation5 + $0x10] sm:$0xff]  ;;  %v335_v63 = vld [vmem:[#allocation5 + $0x18] sm:$0xff]  ;;  %v324_v0 = vld [vmem:[#allocation2] sm:$0xff] }
  0x32   :  { %495 = vmatpush.msra.mxu1 %v353_v41  ;;  %536 = vmatpush.msra.mxu2 %v354_v42  ;;  %v182_v1 = vld [vmem:[#allocation7 + $0x1e0] sm:$0xff]  ;;  %v4852_v2 = vld [vmem:[#allocation7 + $0x1e8] sm:$0xff]  ;;  %v4856_v3 = vld [vmem:[#allocation7 + $0x1f8] sm:$0xff] }
  0x33   :  { %577 = vmatpush.msra.mxu3 %v355_v43  ;;  %455 = vmatpush.msra.mxu0 %v348_v44  ;;  %v184_v4 = vld [vmem:[#allocation7 + $0x1f0] sm:$0xff]  ;;  %v178_v5 = vld [vmem:[#allocation7 + $0x1c0] sm:$0xff]  ;;  %v4860_v6 = vld [vmem:[#allocation7 + $0x1c8] sm:$0xff] }
  0x34   :  { %496 = vmatpush.msra.mxu1 %v349_v45  ;;  %537 = vmatpush.msra.mxu2 %v350_v46  ;;  %v4863_v7 = vld [vmem:[#allocation7 + $0x1d8] sm:$0xff]  ;;  %v180_v8 = vld [vmem:[#allocation7 + $0x1d0] sm:$0xff]  ;;  %v174_v9 = vld [vmem:[#allocation7 + $0x1a0] sm:$0xff] }
  0x35   :  { %578 = vmatpush.msra.mxu3 %v351_v47  ;;  %456 = vmatpush.msra.mxu0 %v344_v48  ;;  %v4866_v10 = vld [vmem:[#allocation7 + $0x1a8] sm:$0xff]  ;;  %v4869_v11 = vld [vmem:[#allocation7 + $0x1b8] sm:$0xff]  ;;  %v176_v12 = vld [vmem:[#allocation7 + $0x1b0] sm:$0xff] }
  0x36   :  { %497 = vmatpush.msra.mxu1 %v345_v49  ;;  %538 = vmatpush.msra.mxu2 %v346_v50  ;;  %v325_v13 = vld [vmem:[#allocation2 + $0x8] sm:$0xff]  ;;  %v170_v14 = vld [vmem:[#allocation7 + $0x180] sm:$0xff]  ;;  %v4878_v16 = vld [vmem:[#allocation7 + $0x198] sm:$0xff] }
  0x37   :  { %579 = vmatpush.msra.mxu3 %v347_v51  ;;  %457 = vmatpush.msra.mxu0 %v340_v52  ;;  %v4873_v15 = vld [vmem:[#allocation7 + $0x188] sm:$0xff]  ;;  %v172_v17 = vld [vmem:[#allocation7 + $0x190] sm:$0xff]  ;;  %v166_v18 = vld [vmem:[#allocation7 + $0x160] sm:$0xff] }
  0x38   :  { %498 = vmatpush.msra.mxu1 %v341_v53  ;;  %539 = vmatpush.msra.mxu2 %v342_v54  ;;  %v4882_v19 = vld [vmem:[#allocation7 + $0x168] sm:$0xff]  ;;  %v4885_v20 = vld [vmem:[#allocation7 + $0x178] sm:$0xff]  ;;  %v168_v21 = vld [vmem:[#allocation7 + $0x170] sm:$0xff] }
  0x39   :  { %580 = vmatpush.msra.mxu3 %v343_v55  ;;  %458 = vmatpush.msra.mxu0 %v336_v56  ;;  %v162_v22 = vld [vmem:[#allocation7 + $0x140] sm:$0xff]  ;;  %v4888_v23 = vld [vmem:[#allocation7 + $0x148] sm:$0xff]  ;;  %v4891_v24 = vld [vmem:[#allocation7 + $0x158] sm:$0xff] }
  0x3a   :  { %499 = vmatpush.msra.mxu1 %v337_v57  ;;  %540 = vmatpush.msra.mxu2 %v338_v58  ;;  %v164_v25 = vld [vmem:[#allocation7 + $0x150] sm:$0xff]  ;;  %v158_v27 = vld [vmem:[#allocation7 + $0x120] sm:$0xff]  ;;  %v4895_v28 = vld [vmem:[#allocation7 + $0x128] sm:$0xff] }
  0x3b   :  { %581 = vmatpush.msra.mxu3 %v339_v59  ;;  %459 = vmatpush.msra.mxu0 %v332_v60  ;;  %v326_v26 = vld [vmem:[#allocation2 + $0x10] sm:$0xff]  ;;  %v4900_v29 = vld [vmem:[#allocation7 + $0x138] sm:$0xff]  ;;  %v154_v31 = vld [vmem:[#allocation7 + $0x100] sm:$0xff] }
  0x3c   :  { %500 = vmatpush.msra.mxu1 %v333_v61  ;;  %541 = vmatpush.msra.mxu2 %v334_v62  ;;  %v160_v30 = vld [vmem:[#allocation7 + $0x130] sm:$0xff]  ;;  %v4904_v32 = vld [vmem:[#allocation7 + $0x108] sm:$0xff]  ;;  %v4907_v33 = vld [vmem:[#allocation7 + $0x118] sm:$0xff] }
  0x3d   :  { %582 = vmatpush.msra.mxu3 %v335_v63  ;;  %3630 = vmatmul.msk.f32.vlgmr.msra.gmra.mxu0 %vm406_vm1, %v324_v0  ;;  %v156_v34 = vld [vmem:[#allocation7 + $0x110] sm:$0xff]  ;;  %v150_v35 = vld [vmem:[#allocation7 + $0xe0] sm:$0xff]  ;;  %v4910_v36 = vld [vmem:[#allocation7 + $0xe8] sm:$0xff] }
  0x3e   :  { %3639 = vmatmul.msk.f32.vlgmr.msra.gmra.mxu1 %vm406_vm1, %v324_v0  ;;  %3648 = vmatmul.msk.f32.vlgmr.msra.gmra.mxu2 %vm406_vm1, %v324_v0  ;;  %v4913_v37 = vld [vmem:[#allocation7 + $0xf8] sm:$0xff]  ;;  %v152_v38 = vld [vmem:[#allocation7 + $0xf0] sm:$0xff]  ;;  %v146_v40 = vld [vmem:[#allocation7 + $0xc0] sm:$0xff] }
  0x3f   :  { %3657 = vmatmul.msk.f32.vlgmr.msra.gmra.mxu3 %vm406_vm1, %v324_v0  ;;  %608 = vmatpush.msrb.mxu0 %v182_v1  ;;  %v327_v39 = vld [vmem:[#allocation2 + $0x18] sm:$0xff]  ;;  %v4917_v41 = vld [vmem:[#allocation7 + $0xc8] sm:$0xff]  ;;  %v148_v43 = vld [vmem:[#allocation7 + $0xd0] sm:$0xff] }
  0x40   :  { %628 = vmatpush.msrb.mxu1 %v4852_v2  ;;  %668 = vmatpush.msrb.mxu3 %v4856_v3  ;;  %v4922_v42 = vld [vmem:[#allocation7 + $0xd8] sm:$0xff]  ;;  %v142_v44 = vld [vmem:[#allocation7 + $0xa0] sm:$0xff]  ;;  %v4926_v45 = vld [vmem:[#allocation7 + $0xa8] sm:$0xff] }
  0x41   :  { %648 = vmatpush.msrb.mxu2 %v184_v4  ;;  %609 = vmatpush.msrb.mxu0 %v178_v5  ;;  %v4929_v46 = vld [vmem:[#allocation7 + $0xb8] sm:$0xff]  ;;  %v144_v47 = vld [vmem:[#allocation7 + $0xb0] sm:$0xff]  ;;  %v138_v48 = vld [vmem:[#allocation7 + $0x80] sm:$0xff] }
  0x42   :  { %629 = vmatpush.msrb.mxu1 %v4860_v6  ;;  %669 = vmatpush.msrb.mxu3 %v4863_v7  ;;  %v4932_v49 = vld [vmem:[#allocation7 + $0x88] sm:$0xff]  ;;  %v4935_v50 = vld [vmem:[#allocation7 + $0x98] sm:$0xff]  ;;  %v140_v51 = vld [vmem:[#allocation7 + $0x90] sm:$0xff] }
  0x43   :  { %649 = vmatpush.msrb.mxu2 %v180_v8  ;;  %610 = vmatpush.msrb.mxu0 %v174_v9  ;;  %v328_v52 = vld [vmem:[#allocation2 + $0x20] sm:$0xff]  ;;  %v4939_v54 = vld [vmem:[#allocation7 + $0x68] sm:$0xff]  ;;  %v4944_v55 = vld [vmem:[#allocation7 + $0x78] sm:$0xff] }
  0x44   :  { %630 = vmatpush.msrb.mxu1 %v4866_v10  ;;  %670 = vmatpush.msrb.mxu3 %v4869_v11  ;;  %v134_v53 = vld [vmem:[#allocation7 + $0x60] sm:$0xff]  ;;  %v136_v56 = vld [vmem:[#allocation7 + $0x70] sm:$0xff]  ;;  %v4948_v58 = vld [vmem:[#allocation7 + $0x48] sm:$0xff] }
  0x45   :  { %650 = vmatpush.msrb.mxu2 %v176_v12  ;;  %3631 = vmatmul.msk.f32.gmra.mxu0 %vm406_vm1, %v325_v13  ;;  %v130_v57 = vld [vmem:[#allocation7 + $0x40] sm:$0xff]  ;;  %v4951_v59 = vld [vmem:[#allocation7 + $0x58] sm:$0xff]  ;;  %v132_v60 = vld [vmem:[#allocation7 + $0x50] sm:$0xff] }
  0x46   :  { %3640 = vmatmul.msk.f32.gmra.mxu1 %vm406_vm1, %v325_v13  ;;  %3649 = vmatmul.msk.f32.gmra.mxu2 %vm406_vm1, %v325_v13  ;;  %v126_v61 = vld [vmem:[#allocation7 + $0x20] sm:$0xff]  ;;  %v4954_v62 = vld [vmem:[#allocation7 + $0x28] sm:$0xff]  ;;  %v128_v63 = vld [vmem:[#allocation7 + $0x30] sm:$0xff] }
  0x47   :  { %3658 = vmatmul.msk.f32.gmra.mxu3 %vm406_vm1, %v325_v13  ;;  %611 = vmatpush.msrb.mxu0 %v170_v14  ;;  %v4957_v0 = vld [vmem:[#allocation7 + $0x38] sm:$0xff]  ;;  %v329_v1 = vld [vmem:[#allocation2 + $0x28] sm:$0xff]  ;;  %v122_v4 = vld [vmem:[#allocation7] sm:$0xff]  ;;  %v8467_v14 = vmov 0.0  }
  0x48   :  { %631 = vmatpush.msrb.mxu1 %v4873_v15  ;;  %671 = vmatpush.msrb.mxu3 %v4878_v16  ;;  %v4961_v5 = vld [vmem:[#allocation7 + $0x8] sm:$0xff]  ;;  %v124_v8 = vld [vmem:[#allocation7 + $0x10] sm:$0xff]  ;;  %v4966_v9 = vld [vmem:[#allocation7 + $0x18] sm:$0xff] }
  0x49   :  { %651 = vmatpush.msrb.mxu2 %v172_v17  ;;  %612 = vmatpush.msrb.mxu0 %v166_v18  ;;  %v330_v12 = vld [vmem:[#allocation2 + $0x30] sm:$0xff]  ;;  %v331_v13 = vld [vmem:[#allocation2 + $0x38] sm:$0xff]  ;;  %v4984_v17 = vld [vmem:[#allocation10 + $0x3e0] sm:$0xff] }
  0x4a   :  { %632 = vmatpush.msrb.mxu1 %v4882_v19  ;;  %672 = vmatpush.msrb.mxu3 %v4885_v20  ;;  %v4986_v18 = vld [vmem:[#allocation10 + $0x3e8] sm:$0xff] }
  0x4b   :  { %652 = vmatpush.msrb.mxu2 %v168_v21  ;;  %613 = vmatpush.msrb.mxu0 %v162_v22  ;;  %v4990_v21 = vld [vmem:[#allocation10 + $0x3c0] sm:$0xff]  ;;  %v4992_v22 = vld [vmem:[#allocation10 + $0x3c8] sm:$0xff] }
  0x4c   :  { %633 = vmatpush.msrb.mxu1 %v4888_v23  ;;  %673 = vmatpush.msrb.mxu3 %v4891_v24 }
  0x4d   :  { %653 = vmatpush.msrb.mxu2 %v164_v25  ;;  %3632 = vmatmul.msk.f32.gmra.mxu0 %vm406_vm1, %v326_v26  ;;  %v4994_v25 = vld [vmem:[#allocation10 + $0x3a0] sm:$0xff] }
  0x4e   :  { %3641 = vmatmul.msk.f32.gmra.mxu1 %vm406_vm1, %v326_v26  ;;  %3650 = vmatmul.msk.f32.gmra.mxu2 %vm406_vm1, %v326_v26 }
  0x4f   :  { %3659 = vmatmul.msk.f32.gmra.mxu3 %vm406_vm1, %v326_v26  ;;  %614 = vmatpush.msrb.mxu0 %v158_v27  ;;  %v4998_v26 = vld [vmem:[#allocation10 + $0x3a8] sm:$0xff]  ;;  %v5000_v27 = vld [vmem:[#allocation10 + $0x380] sm:$0xff] }
  0x50   :  { %634 = vmatpush.msrb.mxu1 %v4895_v28  ;;  %674 = vmatpush.msrb.mxu3 %v4900_v29 }
  0x51   :  { %654 = vmatpush.msrb.mxu2 %v160_v30  ;;  %615 = vmatpush.msrb.mxu0 %v154_v31  ;;  %v5002_v30 = vld [vmem:[#allocation10 + $0x388] sm:$0xff]  ;;  %v5008_v31 = vld [vmem:[#allocation10 + $0x360] sm:$0xff] }
  0x52   :  { %635 = vmatpush.msrb.mxu1 %v4904_v32  ;;  %675 = vmatpush.msrb.mxu3 %v4907_v33 }
  0x53   :  { %655 = vmatpush.msrb.mxu2 %v156_v34  ;;  %616 = vmatpush.msrb.mxu0 %v150_v35  ;;  %v5010_v34 = vld [vmem:[#allocation10 + $0x368] sm:$0xff]  ;;  %v5014_v35 = vld [vmem:[#allocation10 + $0x340] sm:$0xff] }
  0x54   :  { %636 = vmatpush.msrb.mxu1 %v4910_v36  ;;  %676 = vmatpush.msrb.mxu3 %v4913_v37 }
  0x55   :  { %656 = vmatpush.msrb.mxu2 %v152_v38  ;;  %3633 = vmatmul.msk.f32.gmra.mxu0 %vm406_vm1, %v327_v39  ;;  %v5016_v38 = vld [vmem:[#allocation10 + $0x348] sm:$0xff] }
  0x56   :  { %3642 = vmatmul.msk.f32.gmra.mxu1 %vm406_vm1, %v327_v39  ;;  %3651 = vmatmul.msk.f32.gmra.mxu2 %vm406_vm1, %v327_v39 }
  0x57   :  { %3660 = vmatmul.msk.f32.gmra.mxu3 %vm406_vm1, %v327_v39  ;;  %617 = vmatpush.msrb.mxu0 %v146_v40  ;;  %v5018_v39 = vld [vmem:[#allocation10 + $0x320] sm:$0xff]  ;;  %v5022_v40 = vld [vmem:[#allocation10 + $0x328] sm:$0xff] }
  0x58   :  { %637 = vmatpush.msrb.mxu1 %v4917_v41  ;;  %677 = vmatpush.msrb.mxu3 %v4922_v42 }
  0x59   :  { %657 = vmatpush.msrb.mxu2 %v148_v43  ;;  %618 = vmatpush.msrb.mxu0 %v142_v44  ;;  %v5024_v43 = vld [vmem:[#allocation10 + $0x300] sm:$0xff]  ;;  %v5026_v44 = vld [vmem:[#allocation10 + $0x308] sm:$0xff] }
  0x5a   :  { %638 = vmatpush.msrb.mxu1 %v4926_v45  ;;  %678 = vmatpush.msrb.mxu3 %v4929_v46 }
  0x5b   :  { %658 = vmatpush.msrb.mxu2 %v144_v47  ;;  %619 = vmatpush.msrb.mxu0 %v138_v48  ;;  %v5032_v47 = vld [vmem:[#allocation10 + $0x2e0] sm:$0xff]  ;;  %v5034_v48 = vld [vmem:[#allocation10 + $0x2e8] sm:$0xff] }
  0x5c   :  { %639 = vmatpush.msrb.mxu1 %v4932_v49  ;;  %679 = vmatpush.msrb.mxu3 %v4935_v50  ;;  %8959 = vst [vmem:[#allocation19_spill] sm:$0xff] %v5034_v48 }
  0x5d   :  { %659 = vmatpush.msrb.mxu2 %v140_v51  ;;  %3634 = vmatmul.msk.f32.gmra.mxu0 %vm406_vm1, %v328_v52 }
  0x5e   :  { %3643 = vmatmul.msk.f32.gmra.mxu1 %vm406_vm1, %v328_v52  ;;  %3652 = vmatmul.msk.f32.gmra.mxu2 %vm406_vm1, %v328_v52 }
  0x5f   :  { %3661 = vmatmul.msk.f32.gmra.mxu3 %vm406_vm1, %v328_v52  ;;  %620 = vmatpush.msrb.mxu0 %v134_v53  ;;  %v5042_v53 = vld [vmem:[#allocation10 + $0x2c0] sm:$0xff] }
  0x60   :  { %640 = vmatpush.msrb.mxu1 %v4939_v54  ;;  %680 = vmatpush.msrb.mxu3 %v4944_v55  ;;  %8960 = vst [vmem:[#allocation20_spill] sm:$0xff] %v5042_v53 }
  0x61   :  { %660 = vmatpush.msrb.mxu2 %v136_v56  ;;  %621 = vmatpush.msrb.mxu0 %v130_v57  ;;  %v5044_v56 = vld [vmem:[#allocation10 + $0x2c8] sm:$0xff]  ;;  %v5046_v57 = vld [vmem:[#allocation10 + $0x2a0] sm:$0xff] }
  0x62   :  { %641 = vmatpush.msrb.mxu1 %v4948_v58  ;;  %681 = vmatpush.msrb.mxu3 %v4951_v59  ;;  %8961 = vst [vmem:[#allocation21_spill] sm:$0xff] %v5044_v56 }
  0x63   :  { %661 = vmatpush.msrb.mxu2 %v132_v60  ;;  %622 = vmatpush.msrb.mxu0 %v126_v61  ;;  %8962 = vst [vmem:[#allocation22_spill] sm:$0xff] %v5046_v57  ;;  %v5050_v60 = vld [vmem:[#allocation10 + $0x2a8] sm:$0xff]  ;;  %v5052_v61 = vld [vmem:[#allocation10 + $0x280] sm:$0xff] }
  0x64   :  { %642 = vmatpush.msrb.mxu1 %v4954_v62  ;;  %682 = vmatpush.msrb.mxu3 %v4957_v0  ;;  %8963 = vst [vmem:[#allocation23_spill] sm:$0xff] %v5050_v60 }
  0x65   :  { %662 = vmatpush.msrb.mxu2 %v128_v63  ;;  %3635 = vmatmul.msk.f32.gmra.mxu0 %vm406_vm1, %v329_v1  ;;  %8964 = vst [vmem:[#allocation24_spill] sm:$0xff] %v5052_v61  ;;  %v5054_v63 = vld [vmem:[#allocation10 + $0x288] sm:$0xff] }
  0x66   :  { %3644 = vmatmul.msk.f32.gmra.mxu1 %vm406_vm1, %v329_v1  ;;  %3653 = vmatmul.msk.f32.gmra.mxu2 %vm406_vm1, %v329_v1  ;;  %8965 = vst [vmem:[#allocation25_spill] sm:$0xff] %v5054_v63 }
  0x67   :  { %3662 = vmatmul.msk.f32.gmra.mxu3 %vm406_vm1, %v329_v1  ;;  %623 = vmatpush.msrb.mxu0 %v122_v4 }
  0x68   :  { %643 = vmatpush.msrb.mxu1 %v4961_v5  ;;  %663 = vmatpush.msrb.mxu2 %v124_v8  ;;  %v5064_v8 = vld [vmem:[#allocation10 + $0x260] sm:$0xff] }
  0x69   :  { %683 = vmatpush.msrb.mxu3 %v4966_v9  ;;  %8966 = vst [vmem:[#allocation26_spill] sm:$0xff] %v5064_v8 }
  0x6a   :  { %775 = vmatpush.msra.mxu1 %v4984_v17 }
  0x6b   :  { %815 = vmatpush.msra.mxu3 %v4986_v18 }
  0x6c   :  { %776 = vmatpush.msra.mxu1 %v4990_v21 }
  0x6d   :  { %3636 = vmatmul.msk.f32.gmra.mxu0 %vm406_vm1, %v330_v12  ;;  %816 = vmatpush.msra.mxu3 %v4992_v22 }
  0x6e   :  { %3645 = vmatmul.msk.f32.gmra.mxu1 %vm406_vm1, %v330_v12  ;;  %3654 = vmatmul.msk.f32.gmra.mxu2 %vm406_vm1, %v330_v12 }
  0x6f   :  { %3663 = vmatmul.msk.f32.gmra.mxu3 %vm406_vm1, %v330_v12  ;;  %777 = vmatpush.msra.mxu1 %v4994_v25  ;;  %v5066_v12 = vld [vmem:[#allocation10 + $0x268] sm:$0xff] }
  0x70   :  { %817 = vmatpush.msra.mxu3 %v4998_v26  ;;  %8967 = vst [vmem:[#allocation27_spill] sm:$0xff] %v5066_v12 }
  0x71   :  { %778 = vmatpush.msra.mxu1 %v5000_v27 }
  0x72   :  { %818 = vmatpush.msra.mxu3 %v5002_v30 }
  0x73   :  { %779 = vmatpush.msra.mxu1 %v5008_v31 }
  0x74   :  { %819 = vmatpush.msra.mxu3 %v5010_v34 }
  0x75   :  { %3637 = vmatmul.msk.f32.gmra.mxu0 %vm406_vm1, %v331_v13  ;;  %780 = vmatpush.msra.mxu1 %v5014_v35 }
  0x76   :  { %3646 = vmatmul.msk.f32.gmra.mxu1 %vm406_vm1, %v331_v13  ;;  %3655 = vmatmul.msk.f32.gmra.mxu2 %vm406_vm1, %v331_v13 }
  0x77   :  { %3664 = vmatmul.msk.f32.gmra.mxu3 %vm406_vm1, %v331_v13  ;;  %781 = vmatpush.msra.mxu1 %v5018_v39 }
  0x78   :  { %820 = vmatpush.msra.mxu3 %v5016_v38 }
  0x79   :  { %782 = vmatpush.msra.mxu1 %v5024_v43 }
  0x7a   :  { %821 = vmatpush.msra.mxu3 %v5022_v40 }
  0x7b   :  { %783 = vmatpush.msra.mxu1 %v5032_v47 }
  0x7c   :  { %822 = vmatpush.msra.mxu3 %v5026_v44 }
  0x7d   :  { %624 = vmatmul.f32.vlgmr.msrb.gmra.mxu0 %v8467_v14  ;;  %784 = vmatpush.msra.mxu1 %v5042_v53  ;;  %v5114_v53 = vld [vmem:[#allocation10 + $0x1c8] sm:$0xff] }
  0x7e   :  { %644 = vmatmul.f32.vlgmr.msrb.gmra.mxu1 %v8467_v14  ;;  %664 = vmatmul.f32.vlgmr.msrb.gmra.mxu2 %v8467_v14  ;;  %8985 = vst [vmem:[#allocation45_spill] sm:$0xff] %v5114_v53 }
  0x7f   :  { %684 = vmatmul.f32.vlgmr.msrb.gmra.mxu3 %v8467_v14  ;;  %785 = vmatpush.msra.mxu1 %v5046_v57  ;;  %v5082_v57 = vld [vmem:[#allocation10 + $0x228] sm:$0xff] }
  0x80   :  { %823 = vmatpush.msra.mxu3 %v5034_v48  ;;  %8973 = vst [vmem:[#allocation33_spill] sm:$0xff] %v5082_v57 }
  0x81   :  { %786 = vmatpush.msra.mxu1 %v5052_v61  ;;  %v5076_v61 = vld [vmem:[#allocation10 + $0x248] sm:$0xff] }
  0x82   :  { %824 = vmatpush.msra.mxu3 %v5044_v56  ;;  %8971 = vst [vmem:[#allocation31_spill] sm:$0xff] %v5076_v61  ;;  %v5084_v56 = vld [vmem:[#allocation10 + $0x200] sm:$0xff] }
  0x83   :  { %787 = vmatpush.msra.mxu1 %v5064_v8  ;;  %8974 = vst [vmem:[#allocation34_spill] sm:$0xff] %v5084_v56 }
  0x84   :  { %825 = vmatpush.msra.mxu3 %v5050_v60  ;;  %v5074_v60 = vld [vmem:[#allocation10 + $0x240] sm:$0xff] }
  0x85   :  { %8970 = vst [vmem:[#allocation30_spill] sm:$0xff] %v5074_v60  ;;  %788 = vmatpush.msra.mxu1 %v5074_v60  ;;  %v5096_v60 = vld [vmem:[#allocation10 + $0x3f0] sm:$0xff] }
  0x86   :  { %826 = vmatpush.msra.mxu3 %v5054_v63  ;;  %v5078_v63 = vld [vmem:[#allocation10 + $0x220] sm:$0xff]  ;;  %8978 = vst [vmem:[#allocation38_spill] sm:$0xff] %v5096_v60 }
  0x87   :  { %8972 = vst [vmem:[#allocation32_spill] sm:$0xff] %v5078_v63  ;;  %789 = vmatpush.msra.mxu1 %v5078_v63  ;;  %v5104_v63 = vld [vmem:[#allocation10 + $0x3f8] sm:$0xff] }
  0x88   :  { %827 = vmatpush.msra.mxu3 %v5066_v12  ;;  %v5094_v12 = vld [vmem:[#allocation10 + $0x1e8] sm:$0xff]  ;;  %8981 = vst [vmem:[#allocation41_spill] sm:$0xff] %v5104_v63 }
  0x89   :  { %790 = vmatpush.msra.mxu1 %v5084_v56  ;;  %8977 = vst [vmem:[#allocation37_spill] sm:$0xff] %v5094_v12  ;;  %795 = vmatpush.msra.mxu2 %v5094_v12  ;;  %v5122_v12 = vld [vmem:[#allocation10 + $0x1a0] sm:$0xff] }
  0x8a   :  { %828 = vmatpush.msra.mxu3 %v5076_v61  ;;  %8988 = vst [vmem:[#allocation48_spill] sm:$0xff] %v5122_v12 }
  0x8b   :  { %855 = vmatpush.msrb.mxu1 %v5096_v60  ;;  %796 = vmatpush.msra.mxu2 %v5114_v53  ;;  %v5136_v53 = vld [vmem:[#allocation10 + $0x188] sm:$0xff]  ;;  %v5140_v60 = vld [vmem:[#allocation10 + $0x398] sm:$0xff] }
  0x8c   :  { %829 = vmatpush.msra.mxu3 %v5082_v57  ;;  %8993 = vst [vmem:[#allocation53_spill] sm:$0xff] %v5136_v53 }
  0x8d   :  { %8995 = vst [vmem:[#allocation55_spill] sm:$0xff] %v5140_v60 }
  0xba   :  { %v5036_v51 = vpop.f32.mrf.mxu0 }
  0xbb   :  { %v5038_v52 = vpop.f32.mrf.mxu1 }
  0xc1   :  { %v5060_v1 = vpop.f32.mrf.mxu2 }
  0xc2   :  { %v5062_v4 = vpop.f32.mrf.mxu3  ;;  %v5068_v13 = vpop.f32.mrf.mxu0 }
  0xc3   :  { %8968 = vst [vmem:[#allocation28_spill] sm:$0xff] %v5068_v13  ;;  %v5070_v14 = vpop.f32.mrf.mxu1  ;;  %v5086_v13 = vld [vmem:[#allocation10 + $0x208] sm:$0xff] }
  0xc4   :  { %8969 = vst [vmem:[#allocation29_spill] sm:$0xff] %v5070_v14  ;;  %830 = vmatpush.msra.mxu3 %v5086_v13  ;;  %v5092_v14 = vld [vmem:[#allocation10 + $0x1e0] sm:$0xff] }
  0xc5   :  { %8975 = vst [vmem:[#allocation35_spill] sm:$0xff] %v5086_v13  ;;  %755 = vmatpush.msra.mxu0 %v5092_v14  ;;  %v5112_v13 = vld [vmem:[#allocation10 + $0x1c0] sm:$0xff] }
  0xc6   :  { %8976 = vst [vmem:[#allocation36_spill] sm:$0xff] %v5092_v14  ;;  %895 = vmatpush.msrb.mxu3 %v5104_v63  ;;  %v5130_v14 = vld [vmem:[#allocation10 + $0x3b8] sm:$0xff]  ;;  %v5132_v63 = vld [vmem:[#allocation10 + $0x180] sm:$0xff] }
  0xc7   :  { %8984 = vst [vmem:[#allocation44_spill] sm:$0xff] %v5112_v13  ;;  %756 = vmatpush.msra.mxu0 %v5112_v13  ;;  %v5138_v13 = vld [vmem:[#allocation10 + $0x390] sm:$0xff] }
  0xc8   :  { %8991 = vst [vmem:[#allocation51_spill] sm:$0xff] %v5130_v14 }
  0xc9   :  { %v5098_v61 = vpop.f32.mrf.mxu2  ;;  %8992 = vst [vmem:[#allocation52_spill] sm:$0xff] %v5132_v63  ;;  %757 = vmatpush.msra.mxu0 %v5122_v12  ;;  %v5148_v12 = vld [vmem:[#allocation10 + $0x160] sm:$0xff] }
  0xca   :  { %8979 = vst [vmem:[#allocation39_spill] sm:$0xff] %v5098_v61  ;;  %v5100_v8 = vpop.f32.mrf.mxu3  ;;  %v5106_v57 = vpop.f32.mrf.mxu0  ;;  %v5116_v61 = vld [vmem:[#allocation10 + $0x3d0] sm:$0xff] }
  0xcb   :  { %8980 = vst [vmem:[#allocation40_spill] sm:$0xff] %v5100_v8  ;;  %v5108_v56 = vpop.f32.mrf.mxu1  ;;  %v5120_v8 = vld [vmem:[#allocation10 + $0x3d8] sm:$0xff]  ;;  %856 = vmatpush.msrb.mxu1 %v5116_v61  ;;  %758 = vmatpush.msra.mxu0 %v5132_v63 }
  0xcc   :  { %8982 = vst [vmem:[#allocation42_spill] sm:$0xff] %v5106_v57  ;;  %v5124_v57 = vld [vmem:[#allocation10 + $0x1a8] sm:$0xff]  ;;  %896 = vmatpush.msrb.mxu3 %v5120_v8  ;;  %v5160_v63 = vld [vmem:[#allocation10 + $0x378] sm:$0xff] }
  0xcd   :  { %8983 = vst [vmem:[#allocation43_spill] sm:$0xff] %v5108_v56  ;;  %v5128_v56 = vld [vmem:[#allocation10 + $0x3b0] sm:$0xff]  ;;  %797 = vmatpush.msra.mxu2 %v5124_v57  ;;  %759 = vmatpush.msra.mxu0 %v5148_v12 }
  0xce   :  { %8986 = vst [vmem:[#allocation46_spill] sm:$0xff] %v5116_v61  ;;  %857 = vmatpush.msrb.mxu1 %v5128_v56  ;;  %897 = vmatpush.msrb.mxu3 %v5130_v14  ;;  %v5170_v14 = vld [vmem:[#allocation10 + $0x148] sm:$0xff] }
  0xcf   :  { %8987 = vst [vmem:[#allocation47_spill] sm:$0xff] %v5120_v8  ;;  %798 = vmatpush.msra.mxu2 %v5136_v53  ;;  %v5152_v8 = vld [vmem:[#allocation10 + $0x370] sm:$0xff] }
  0xd0   :  { %8989 = vst [vmem:[#allocation49_spill] sm:$0xff] %v5124_v57  ;;  %858 = vmatpush.msrb.mxu1 %v5138_v13  ;;  %898 = vmatpush.msrb.mxu3 %v5140_v60  ;;  %v5150_v57 = vld [vmem:[#allocation10 + $0x168] sm:$0xff]  ;;  %v5168_v60 = vld [vmem:[#allocation10 + $0x140] sm:$0xff] }
  0xd1   :  { %8990 = vst [vmem:[#allocation50_spill] sm:$0xff] %v5128_v56  ;;  %v5154_v61 = vpop.f32.mrf.mxu2  ;;  %799 = vmatpush.msra.mxu2 %v5150_v57  ;;  %760 = vmatpush.msra.mxu0 %v5168_v60 }
  0xd2   :  { %8994 = vst [vmem:[#allocation54_spill] sm:$0xff] %v5138_v13  ;;  %v5156_v48 = vpop.f32.mrf.mxu3  ;;  %v5162_v53 = vpop.f32.mrf.mxu0  ;;  %859 = vmatpush.msrb.mxu1 %v5152_v8  ;;  %899 = vmatpush.msrb.mxu3 %v5160_v63 }
  0xd3   :  { %8996 = vst [vmem:[#allocation56_spill] sm:$0xff] %v5148_v12  ;;  %v5164_v13 = vpop.f32.mrf.mxu1  ;;  %800 = vmatpush.msra.mxu2 %v5170_v14  ;;  %v5186_v12 = vld [vmem:[#allocation10 + $0x338] sm:$0xff] }
  0xd4   :  { %8997 = vst [vmem:[#allocation57_spill] sm:$0xff] %v5150_v57  ;;  %v5178_v57 = vld [vmem:[#allocation10 + $0x120] sm:$0xff] }
  0xd5   :  { %8998 = vst [vmem:[#allocation58_spill] sm:$0xff] %v5152_v8  ;;  %761 = vmatpush.msra.mxu0 %v5178_v57  ;;  %v5196_v8 = vld [vmem:[#allocation10 + $0x318] sm:$0xff] }
  0xd6   :  { %8999 = vst [vmem:[#allocation59_spill] sm:$0xff] %v5154_v61  ;;  %v5172_v61 = vld [vmem:[#allocation10 + $0x350] sm:$0xff] }
  0xd7   :  { %9000 = vst [vmem:[#allocation60_spill] sm:$0xff] %v5156_v48  ;;  %v5176_v48 = vld [vmem:[#allocation10 + $0x358] sm:$0xff]  ;;  %860 = vmatpush.msrb.mxu1 %v5172_v61 }
  0xd8   :  { %9001 = vst [vmem:[#allocation61_spill] sm:$0xff] %v5160_v63  ;;  %900 = vmatpush.msrb.mxu3 %v5176_v48  ;;  %v5188_v63 = vld [vmem:[#allocation10 + $0x100] sm:$0xff] }
  0xd9   :  { %9002 = vst [vmem:[#allocation62_spill] sm:$0xff] %v5162_v53  ;;  %v5180_v53 = vld [vmem:[#allocation10 + $0x128] sm:$0xff]  ;;  %762 = vmatpush.msra.mxu0 %v5188_v63 }
  0xda   :  { %9003 = vst [vmem:[#allocation63_spill] sm:$0xff] %v5164_v13  ;;  %v5184_v13 = vld [vmem:[#allocation10 + $0x330] sm:$0xff]  ;;  %801 = vmatpush.msra.mxu2 %v5180_v53  ;;  %901 = vmatpush.msrb.mxu3 %v5186_v12  ;;  %v5212_v56 = vpop.f32.mrf.mxu3 }
  0xdb   :  { %9004 = vst [vmem:[#allocation64_spill] sm:$0xff] %v5168_v60  ;;  %v5194_v60 = vld [vmem:[#allocation10 + $0x310] sm:$0xff]  ;;  %861 = vmatpush.msrb.mxu1 %v5184_v13 }
  0xdc   :  { %9005 = vst [vmem:[#allocation65_spill] sm:$0xff] %v5170_v14  ;;  %v5192_v14 = vld [vmem:[#allocation10 + $0x108] sm:$0xff]  ;;  %902 = vmatpush.msrb.mxu3 %v5196_v8 }
  0xdd   :  { %9006 = vst [vmem:[#allocation66_spill] sm:$0xff] %v5172_v61  ;;  %802 = vmatpush.msra.mxu2 %v5192_v14  ;;  %862 = vmatpush.msrb.mxu1 %v5194_v60  ;;  %v5210_v61 = vpop.f32.mrf.mxu2 }
  0xde   :  { %9007 = vst [vmem:[#allocation67_spill] sm:$0xff] %v5176_v48  ;;  %v5208_v48 = vld [vmem:[#allocation10 + $0x2f0] sm:$0xff] }
  0xdf   :  { %9008 = vst [vmem:[#allocation68_spill] sm:$0xff] %v5178_v57  ;;  %v5204_v57 = vld [vmem:[#allocation10 + $0xe0] sm:$0xff]  ;;  %863 = vmatpush.msrb.mxu1 %v5208_v48 }
  0xe0   :  { %9009 = vst [vmem:[#allocation69_spill] sm:$0xff] %v5180_v53  ;;  %v5206_v53 = vld [vmem:[#allocation10 + $0xe8] sm:$0xff]  ;;  %763 = vmatpush.msra.mxu0 %v5204_v57 }
  0xe1   :  { %9010 = vst [vmem:[#allocation70_spill] sm:$0xff] %v5184_v13  ;;  %803 = vmatpush.msra.mxu2 %v5206_v53  ;;  %v5286_v13 = vld [vmem:[#allocation10 + $0x250] sm:$0xff] }
  0xe2   :  { %9011 = vst [vmem:[#allocation71_spill] sm:$0xff] %v5186_v12  ;;  %v5226_v12 = vld [vmem:[#allocation10 + $0xc8] sm:$0xff] }
  0xe3   :  { %9012 = vst [vmem:[#allocation72_spill] sm:$0xff] %v5188_v63  ;;  %v5216_v63 = vld [vmem:[#allocation10 + $0x2f8] sm:$0xff]  ;;  %804 = vmatpush.msra.mxu2 %v5226_v12 }
  0xe4   :  { %9013 = vst [vmem:[#allocation73_spill] sm:$0xff] %v5192_v14  ;;  %v5218_v14 = vpop.f32.mrf.mxu0  ;;  %903 = vmatpush.msrb.mxu3 %v5216_v63 }
  0xe5   :  { %9014 = vst [vmem:[#allocation74_spill] sm:$0xff] %v5194_v60  ;;  %v5220_v60 = vpop.f32.mrf.mxu1 }
  0xe6   :  { %9015 = vst [vmem:[#allocation75_spill] sm:$0xff] %v5196_v8  ;;  %v5224_v8 = vld [vmem:[#allocation10 + $0xc0] sm:$0xff] }
  0xe7   :  { %9016 = vst [vmem:[#allocation76_spill] sm:$0xff] %v5204_v57  ;;  %764 = vmatpush.msra.mxu0 %v5224_v8  ;;  %v5244_v57 = vld [vmem:[#allocation10 + $0x2b8] sm:$0xff] }
  0xe8   :  { %9017 = vst [vmem:[#allocation77_spill] sm:$0xff] %v5206_v53  ;;  %v5240_v53 = vld [vmem:[#allocation10 + $0x2b0] sm:$0xff] }
  0xe9   :  { %9018 = vst [vmem:[#allocation78_spill] sm:$0xff] %v5208_v48  ;;  %v5284_v48 = vld [vmem:[#allocation10 + $0x48] sm:$0xff] }
  0xea   :  { %9019 = vst [vmem:[#allocation79_spill] sm:$0xff] %v5210_v61  ;;  %v5228_v61 = vld [vmem:[#allocation10 + $0x2d0] sm:$0xff] }
  0xeb   :  { %9020 = vst [vmem:[#allocation80_spill] sm:$0xff] %v5212_v56  ;;  %v5232_v56 = vld [vmem:[#allocation10 + $0x2d8] sm:$0xff]  ;;  %864 = vmatpush.msrb.mxu1 %v5228_v61 }
  0xec   :  { %9021 = vst [vmem:[#allocation81_spill] sm:$0xff] %v5216_v63  ;;  %904 = vmatpush.msrb.mxu3 %v5232_v56  ;;  %v9039_v63 = vmov 0.0  }
  0xed   :  { %9022 = vst [vmem:[#allocation82_spill] sm:$0xff] %v5218_v14  ;;  %v5236_v14 = vld [vmem:[#allocation10 + $0xa0] sm:$0xff]  ;;  %865 = vmatpush.msrb.mxu1 %v5240_v53  ;;  %831 = vmatmul.f32.vlgmr.msra.gmra.mxu3 %v9039_v63 }
  0xee   :  { %9023 = vst [vmem:[#allocation83_spill] sm:$0xff] %v5220_v60  ;;  %v5238_v60 = vld [vmem:[#allocation10 + $0xa8] sm:$0xff]  ;;  %765 = vmatpush.msra.mxu0 %v5236_v14  ;;  %905 = vmatpush.msrb.mxu3 %v5244_v57 }
  0xef   :  { %9024 = vst [vmem:[#allocation84_spill] sm:$0xff] %v5224_v8  ;;  %805 = vmatpush.msra.mxu2 %v5238_v60  ;;  %v5250_v8 = vld [vmem:[#allocation10 + $0x88] sm:$0xff]  ;;  %791 = vmatmul.f32.vlgmr.msra.gmra.mxu1 %v9039_v63 }
  0xf0   :  { %9025 = vst [vmem:[#allocation85_spill] sm:$0xff] %v5226_v12  ;;  %v5248_v12 = vld [vmem:[#allocation10 + $0x80] sm:$0xff] }
  0xf1   :  { %9026 = vst [vmem:[#allocation86_spill] sm:$0xff] %v5228_v61  ;;  %766 = vmatpush.msra.mxu0 %v5248_v12  ;;  %806 = vmatpush.msra.mxu2 %v5250_v8  ;;  %v5256_v61 = vld [vmem:[#allocation10 + $0x298] sm:$0xff] }
  0xf2   :  { %9027 = vst [vmem:[#allocation87_spill] sm:$0xff] %v5232_v56  ;;  %v5252_v56 = vld [vmem:[#allocation10 + $0x290] sm:$0xff]  ;;  %906 = vmatpush.msrb.mxu3 %v5256_v61 }
  0xf3   :  { %9028 = vst [vmem:[#allocation88_spill] sm:$0xff] %v5236_v14  ;;  %866 = vmatpush.msrb.mxu1 %v5252_v56  ;;  %v5262_v14 = vld [vmem:[#allocation10 + $0x60] sm:$0xff] }
  0xf4   :  { %9029 = vst [vmem:[#allocation89_spill] sm:$0xff] %v5238_v60  ;;  %v5260_v60 = vpop.f32.mrf.mxu3  ;;  %767 = vmatpush.msra.mxu0 %v5262_v14 }
  0xf5   :  { %9030 = vst [vmem:[#allocation90_spill] sm:$0xff] %v5240_v53  ;;  %v5266_v53 = vld [vmem:[#allocation10 + $0x270] sm:$0xff] }
  0xf6   :  { %9031 = vst [vmem:[#allocation91_spill] sm:$0xff] %v5244_v57  ;;  %v5264_v57 = vld [vmem:[#allocation10 + $0x68] sm:$0xff]  ;;  %867 = vmatpush.msrb.mxu1 %v5266_v53 }
  0xf7   :  { %9032 = vst [vmem:[#allocation92_spill] sm:$0xff] %v5248_v12  ;;  %v5270_v12 = vpop.f32.mrf.mxu0  ;;  %807 = vmatpush.msra.mxu2 %v5264_v57 }
  0xf8   :  { %9033 = vst [vmem:[#allocation93_spill] sm:$0xff] %v5250_v8  ;;  %v5272_v8 = vpop.f32.mrf.mxu1  ;;  %868 = vmatpush.msrb.mxu1 %v5286_v13 }
  0xf9   :  { %9034 = vst [vmem:[#allocation94_spill] sm:$0xff] %v5252_v56  ;;  %v5282_v56 = vld [vmem:[#allocation10 + $0x40] sm:$0xff]  ;;  %808 = vmatpush.msra.mxu2 %v5284_v48 }
  0xfa   :  { %9035 = vst [vmem:[#allocation95_spill] sm:$0xff] %v5256_v61  ;;  %v5276_v61 = vld [vmem:[#allocation10 + $0x278] sm:$0xff]  ;;  %768 = vmatpush.msra.mxu0 %v5282_v56 }
  0xfb   :  { %9036 = vst [vmem:[#allocation96_spill] sm:$0xff] %v5260_v60  ;;  %v5278_v60 = vpop.f32.mrf.mxu2  ;;  %907 = vmatpush.msrb.mxu3 %v5276_v61 }
  0xfc   :  { %9037 = vst [vmem:[#allocation97_spill] sm:$0xff] %v5262_v14  ;;  %v5302_v14 = vld [vmem:[#allocation10 + $0x238] sm:$0xff] }
  0xfd   :  { %9038 = vst [vmem:[#allocation98_spill] sm:$0xff] %v5264_v57  ;;  %v5298_v57 = vld [vmem:[#allocation10 + $0x230] sm:$0xff] }
  0xfe   :  { %9040 = vst [vmem:[#allocation99_spill] sm:$0xff] %v5270_v12  ;;  %v5290_v12 = vld [vmem:[#allocation10 + $0x258] sm:$0xff]  ;;  %869 = vmatpush.msrb.mxu1 %v5298_v57 }
  0xff   :  { %9041 = vst [vmem:[#allocation100_spill] sm:$0xff] %v5272_v8  ;;  %908 = vmatpush.msrb.mxu3 %v5290_v12  ;;  %v5294_v8 = vld [vmem:[#allocation10 + $0x20] sm:$0xff] }
 0x100   :  { %9042 = vst [vmem:[#allocation101_spill] sm:$0xff] %v5276_v61  ;;  %769 = vmatpush.msra.mxu0 %v5294_v8  ;;  %v5320_v61 = vpop.f32.mrf.mxu3 }
 0x101   :  { %9043 = vst [vmem:[#allocation102_spill] sm:$0xff] %v5278_v60  ;;  %v5296_v60 = vld [vmem:[#allocation10 + $0x28] sm:$0xff]  ;;  %909 = vmatpush.msrb.mxu3 %v5302_v14 }
 0x102   :  { %9044 = vst [vmem:[#allocation103_spill] sm:$0xff] %v5282_v56  ;;  %809 = vmatpush.msra.mxu2 %v5296_v60  ;;  %v5308_v56 = vld [vmem:[#allocation10 + $0x8] sm:$0xff] }
 0x103   :  { %9045 = vst [vmem:[#allocation104_spill] sm:$0xff] %v5284_v48  ;;  %v5306_v48 = vld [vmem:[#allocation10] sm:$0xff] }
 0x104   :  { %9046 = vst [vmem:[#allocation105_spill] sm:$0xff] %v5286_v13  ;;  %770 = vmatpush.msra.mxu0 %v5306_v48  ;;  %810 = vmatpush.msra.mxu2 %v5308_v56  ;;  %v5314_v13 = vld [vmem:[#allocation10 + $0x218] sm:$0xff] }
 0x105   :  { %9047 = vst [vmem:[#allocation106_spill] sm:$0xff] %v5290_v12  ;;  %v5310_v12 = vld [vmem:[#allocation10 + $0x210] sm:$0xff]  ;;  %910 = vmatpush.msrb.mxu3 %v5314_v13 }
 0x106   :  { %9048 = vst [vmem:[#allocation107_spill] sm:$0xff] %v5294_v8  ;;  %v5316_v8 = vld [vmem:[#allocation10 + $0x1f0] sm:$0xff]  ;;  %870 = vmatpush.msrb.mxu1 %v5310_v12  ;;  %911 = vmatmul.f32.vlgmr.msrb.gmra.mxu3 %v9039_v63 }
 0x107   :  { %9049 = vst [vmem:[#allocation108_spill] sm:$0xff] %v5296_v60  ;;  %v5318_v60 = vld [vmem:[#allocation10 + $0x1f8] sm:$0xff]  ;;  %835 = vmatpush.msrb.mxu0 %v5316_v8  ;;  %1038 = vmatpush.msra.mxu3 %v4856_v3 }
 0x108   :  { %9050 = vst [vmem:[#allocation109_spill] sm:$0xff] %v5298_v57  ;;  %v5326_v57 = vpop.f32.mrf.mxu1  ;;  %875 = vmatpush.msrb.mxu2 %v5318_v60  ;;  %998 = vmatpush.msra.mxu1 %v4852_v2  ;;  %v5348_v2 = vld [vmem:[#allocation10 + $0x190] sm:$0xff]  ;;  %v5350_v3 = vld [vmem:[#allocation10 + $0x198] sm:$0xff] }
 0x109   :  { %9051 = vst [vmem:[#allocation110_spill] sm:$0xff] %v5302_v14  ;;  %v5324_v14 = vpop.f32.mrf.mxu0  ;;  %1039 = vmatpush.msra.mxu3 %v4863_v7  ;;  %v5360_v7 = vpop.f32.mrf.mxu3  ;;  %871 = vmatmul.f32.vlgmr.msrb.gmra.mxu1 %v9039_v63 }
 0x10a   :  { %9052 = vst [vmem:[#allocation111_spill] sm:$0xff] %v5306_v48  ;;  %v5332_v48 = vld [vmem:[#allocation10 + $0x1d8] sm:$0xff]  ;;  %999 = vmatpush.msra.mxu1 %v4860_v6 }
 0x10b   :  { %9053 = vst [vmem:[#allocation112_spill] sm:$0xff] %v5308_v56  ;;  %v5330_v56 = vld [vmem:[#allocation10 + $0x1d0] sm:$0xff]  ;;  %876 = vmatpush.msrb.mxu2 %v5332_v48  ;;  %1040 = vmatpush.msra.mxu3 %v4869_v11  ;;  %v5358_v6 = vld [vmem:[#allocation10 + $0x178] sm:$0xff] }
 0x10c   :  { %9054 = vst [vmem:[#allocation113_spill] sm:$0xff] %v5320_v61  ;;  %836 = vmatpush.msrb.mxu0 %v5330_v56  ;;  %v5338_v61 = vld [vmem:[#allocation10 + $0x1b0] sm:$0xff]  ;;  %1000 = vmatpush.msra.mxu1 %v4866_v10 }
 0x10d   :  { %9055 = vst [vmem:[#allocation114_spill] sm:$0xff] %v5324_v14  ;;  %v5340_v14 = vld [vmem:[#allocation10 + $0x1b8] sm:$0xff]  ;;  %1041 = vmatpush.msra.mxu3 %v4878_v16  ;;  %v5372_v11 = vld [vmem:[#allocation10 + $0x150] sm:$0xff] }
 0x10e   :  { %9056 = vst [vmem:[#allocation115_spill] sm:$0xff] %v5326_v57  ;;  %v5342_v57 = vpop.f32.mrf.mxu2  ;;  %837 = vmatpush.msrb.mxu0 %v5338_v61  ;;  %877 = vmatpush.msrb.mxu2 %v5340_v14  ;;  %v5382_v16 = vld [vmem:[#allocation10 + $0x138] sm:$0xff] }
 0x10f   :  { %9057 = vst [vmem:[#allocation116_spill] sm:$0xff] %v5338_v61  ;;  %1001 = vmatpush.msra.mxu1 %v4873_v15  ;;  %1042 = vmatpush.msra.mxu3 %v4885_v20  ;;  %v5380_v15 = vld [vmem:[#allocation10 + $0x130] sm:$0xff]  ;;  %v5396_v20 = vld [vmem:[#allocation10 + $0x118] sm:$0xff] }
 0x110   :  { %9058 = vst [vmem:[#allocation117_spill] sm:$0xff] %v5340_v14  ;;  %838 = vmatpush.msrb.mxu0 %v5348_v2  ;;  %878 = vmatpush.msrb.mxu2 %v5350_v3  ;;  %v5364_v14 = vld [vmem:[#allocation8] sm:$0xf]  ;;  %v5368_v10 = vpop.f32.mrf.mxu1 }
 0x111   :  { %9059 = vst [vmem:[#allocation118_spill] sm:$0xff] %v5342_v57  ;;  %v5356_v57 = vld [vmem:[#allocation10 + $0x170] sm:$0xff]  ;;  %v5366_v61 = vpop.f32.mrf.mxu0  ;;  %1002 = vmatpush.msra.mxu1 %v4882_v19  ;;  %1043 = vmatpush.msra.mxu3 %v4891_v24  ;;  %v5406_v24 = vld [vmem:[#allocation10 + $0xf8] sm:$0xff] }
 0x112   :  { %9060 = vst [vmem:[#allocation119_spill] sm:$0xff] %v5350_v3  ;;  %839 = vmatpush.msrb.mxu0 %v5356_v57  ;;  %879 = vmatpush.msrb.mxu2 %v5358_v6  ;;  %v5374_v3 = vld [vmem:[#allocation10 + $0x158] sm:$0xff]  ;;  %v5394_v19 = vld [vmem:[#allocation10 + $0x110] sm:$0xff] }
 0x113   :  { %9061 = vst [vmem:[#allocation120_spill] sm:$0xff] %v5360_v7  ;;  %1003 = vmatpush.msra.mxu1 %v4888_v23  ;;  %1044 = vmatpush.msra.mxu3 %v4900_v29  ;;  %v5404_v23 = vld [vmem:[#allocation10 + $0xf0] sm:$0xff] }
 0x114   :  { %9062 = vst [vmem:[#allocation121_spill] sm:$0xff] %v5366_v61  ;;  %840 = vmatpush.msrb.mxu0 %v5372_v11  ;;  %880 = vmatpush.msrb.mxu2 %v5374_v3  ;;  %v5385_v61 = vperm.slane %v5364_v14, 0 }
 0x115   :  { %9063 = vst [vmem:[#allocation122_spill] sm:$0xff] %v5368_v10  ;;  %v5388_v10 = vperm.slane %v5364_v14, 1  ;;  %1004 = vmatpush.msra.mxu1 %v4895_v28  ;;  %1045 = vmatpush.msra.mxu3 %v4907_v33  ;;  %v5429_v33 = vld [vmem:[#allocation10 + $0xb0] sm:$0xff] }
 0x116   :  { %9064 = vst [vmem:[#allocation123_spill] sm:$0xff] %v5374_v3  ;;  %841 = vmatpush.msrb.mxu0 %v5380_v15  ;;  %881 = vmatpush.msrb.mxu2 %v5382_v16  ;;  %v5398_v7 = vpop.f32.mrf.mxu2  ;;  %v5412_v3 = vpop.f32.mrf.mxu3 }
 0x117   :  { %9065 = vst [vmem:[#allocation124_spill] sm:$0xff] %v5380_v15  ;;  %v503_v15 = vadd.f32 %v5038_v52, %v5388_v10  ;;  %1005 = vmatpush.msra.mxu1 %v4904_v32  ;;  %1046 = vmatpush.msra.mxu3 %v4913_v37  ;;  %v5425_v32 = vperm.slane %v5364_v14, 3  ;;  %v5431_v52 = vld [vmem:[#allocation10 + $0xb8] sm:$0xff] }
 0x118   :  { %9066 = vst [vmem:[#allocation125_spill] sm:$0xff] %v5382_v16  ;;  %842 = vmatpush.msrb.mxu0 %v5394_v19  ;;  %882 = vmatpush.msrb.mxu2 %v5396_v20  ;;  %v462_v16 = vadd.f32 %v5036_v51, %v5385_v61  ;;  %v645_v29 = vpop.f32.mrf.mxu1  ;;  %v5439_v37 = vld [vmem:[#allocation10 + $0x98] sm:$0xff] }
 0x119   :  { %9067 = vst [vmem:[#allocation126_spill] sm:$0xff] %v5385_v61  ;;  %v625_v28 = vpop.f32.mrf.mxu0  ;;  %v689_v61 = vadd.f32 %v645_v29, %v503_v15  ;;  %1006 = vmatpush.msra.mxu1 %v4910_v36  ;;  %1047 = vmatpush.msra.mxu3 %v4922_v42  ;;  %v5437_v36 = vld [vmem:[#allocation10 + $0x90] sm:$0xff]  ;;  %v5449_v42 = vld [vmem:[#allocation10 + $0x78] sm:$0xff] }
 0x11a   :  { %9068 = vst [vmem:[#allocation127_spill] sm:$0xff] %v5388_v10  ;;  %843 = vmatpush.msrb.mxu0 %v5404_v23  ;;  %883 = vmatpush.msrb.mxu2 %v5406_v24  ;;  %v688_v51 = vadd.f32 %v625_v28, %v462_v16  ;;  %v5473_v29 = vld [vmem:[#allocation10 + $0x10] sm:$0xff] }
 0x11b   :  { %9069 = vst [vmem:[#allocation128_spill] sm:$0xff] %v5396_v20  ;;  %v5420_v20 = vld [vmem:[#allocation10 + $0xd8] sm:$0xff]  ;;  %v3666_v10 = vmul.f32 -1.442695, %v689_v61  ;;  %1007 = vmatpush.msra.mxu1 %v4917_v41  ;;  %1048 = vmatpush.msra.mxu3 %v4929_v46  ;;  %v585_v61 = vadd.f32 %v5062_v4, %v5425_v32  ;;  %v5447_v41 = vld [vmem:[#allocation10 + $0x70] sm:$0xff] }
 0x11c   :  { %9070 = vst [vmem:[#allocation129_spill] sm:$0xff] %v5398_v7  ;;  %v5418_v7 = vld [vmem:[#allocation10 + $0xd0] sm:$0xff]  ;;  %884 = vmatpush.msrb.mxu2 %v5420_v20  ;;  %v5459_v4 = vld [vmem:[#allocation10 + $0x58] sm:$0xff] }
 0x11d   :  { %9071 = vst [vmem:[#allocation130_spill] sm:$0xff] %v5412_v3  ;;  %844 = vmatpush.msrb.mxu0 %v5418_v7  ;;  %v3665_v3 = vmul.f32 -1.442695, %v688_v51  ;;  %1008 = vmatpush.msra.mxu1 %v4926_v45  ;;  %v5457_v46 = vld [vmem:[#allocation10 + $0x50] sm:$0xff]  ;;  %v5482_v51 = vperm.slane %v5364_v14, 2 }
 0x11e   :  { %9072 = vst [vmem:[#allocation131_spill] sm:$0xff] %v5425_v32  ;;  %885 = vmatpush.msrb.mxu2 %v5431_v52  ;;  %v5451_v15 = vpop.f32.mrf.mxu2  ;;  %v685_v16 = vpop.f32.mrf.mxu3  ;;  %1049 = vmatpush.msra.mxu3 %v4935_v50  ;;  %v5467_v50 = vld [vmem:[#allocation10 + $0x38] sm:$0xff] }
 0x11f   :  { %845 = vmatpush.msrb.mxu0 %v5429_v33  ;;  %3726 = vpow2.f32 %v3665_v3  ;;  %9073 = vst [vmem:[#allocation132_spill] sm:$0xff] %v5451_v15  ;;  %1009 = vmatpush.msra.mxu1 %v4932_v49  ;;  %v691_v45 = vadd.f32 %v685_v16, %v585_v61  ;;  %v5465_v49 = vld [vmem:[#allocation10 + $0x30] sm:$0xff] }
 0x120   :  { %3728 = vpow2.f32 %v3666_v10  ;;  %886 = vmatpush.msrb.mxu2 %v5439_v37  ;;  %1050 = vmatpush.msra.mxu3 %v4944_v55  ;;  %v5648_v15 = vld [vmem:[#allocation7 + $0x50] sm:$0xff] }
 0x121   :  { %846 = vmatpush.msrb.mxu0 %v5437_v36  ;;  %v3667_v3 = vmul.f32 -1.442695, %v691_v45  ;;  %1010 = vmatpush.msra.mxu1 %v4939_v54  ;;  %v5475_v54 = vld [vmem:[#allocation10 + $0x18] sm:$0xff] }
 0x122   :  { %887 = vmatpush.msrb.mxu2 %v5449_v42  ;;  %1051 = vmatpush.msra.mxu3 %v4951_v59 }
 0x123   :  { %847 = vmatpush.msrb.mxu0 %v5447_v41  ;;  %3730 = vpow2.f32 %v3667_v3  ;;  %1011 = vmatpush.msra.mxu1 %v4948_v58 }
 0x124   :  { %888 = vmatpush.msrb.mxu2 %v5459_v4  ;;  %1052 = vmatpush.msra.mxu3 %v4957_v0 }
 0x125   :  { %v3727_v10 = vpop.eup %3726  ;;  %848 = vmatpush.msrb.mxu0 %v5457_v46  ;;  %1012 = vmatpush.msra.mxu1 %v4954_v62  ;;  %v544_v62 = vadd.f32 %v5060_v1, %v5482_v51 }
 0x126   :  { %v3729_v63 = vpop.eup %3728  ;;  %v695_v28 = vadd.f32 1.0, %v3727_v10  ;;  %889 = vmatpush.msrb.mxu2 %v5467_v50  ;;  %1053 = vmatpush.msra.mxu3 %v4966_v9  ;;  %v665_v58 = vpop.f32.mrf.mxu2 }
 0x127   :  { %v5477_v55 = vadd.f32 1.0, %v3729_v63  ;;  %849 = vmatpush.msrb.mxu0 %v5465_v49  ;;  %1013 = vmatpush.msra.mxu1 %v4961_v5  ;;  %v690_v61 = vadd.f32 %v665_v58, %v544_v62 }
 0x128   :  { %3732 = vrcp.f32 %v695_v28  ;;  %890 = vmatpush.msrb.mxu2 %v5475_v54  ;;  %1185 = vmatpush.msrb.mxu3 %v4986_v18  ;;  %v705_v45 = vand.u32 2147483647, %v695_v28  ;;  %vm701_vm4 = vweird.f32 %v695_v28 }
 0x129   :  { %3734 = vrcp.f32 %v5477_v55  ;;  %850 = vmatpush.msrb.mxu0 %v5473_v29  ;;  %1145 = vmatpush.msrb.mxu1 %v4984_v17  ;;  %v3731_v59 = vpop.eup %3730  ;;  %vm720_vm5 = vweird.f32 %v5477_v55 }
 0x12a   :  { %v5495_v0 = vadd.f32 1.0, %v3731_v59  ;;  %1186 = vmatpush.msrb.mxu3 %v4992_v22  ;;  %v726_v22 = vand.u32 2147483648, %v5477_v55  ;;  %vm706_vm7 = vcmp.eq.f32.partialorder %v705_v45, 8.507059e+37  ;;  %v9082_v45 = vld [vmem:[#allocation27_spill] sm:$0xff] }
 0x12b   :  { %1146 = vmatpush.msrb.mxu1 %v4990_v21  ;;  %v707_v21 = vand.u32 2147483648, %v695_v28 }
 0x12c   :  { %3736 = vrcp.f32 %v5495_v0  ;;  %1187 = vmatpush.msrb.mxu3 %v4998_v26  ;;  %v724_v26 = vand.u32 2147483647, %v5477_v55  ;;  %v727_v63 = vor.u32 1.1754944e-38, %v726_v22  ;;  %vm740_vm11 = vweird.f32 %v5495_v0 }
 0x12d   :  { %1147 = vmatpush.msrb.mxu1 %v4994_v25  ;;  %3738 = vtanh.f32 %v690_v61  ;;  %v9074_v61 = vld [vmem:[#allocation19_spill] sm:$0xff] }
 0x12e   :  { %v3733_v14 = vpop.eup %3732  ;;  %1188 = vmatpush.msrb.mxu3 %v5002_v30  ;;  %v708_v30 = vor.u32 1.1754944e-38, %v707_v21  ;;  %vm725_vm9 = vcmp.eq.f32.partialorder %v724_v26, 8.507059e+37  ;;  %v9080_v21 = vld [vmem:[#allocation25_spill] sm:$0xff] }
 0x12f   :  { %v3735_v5 = vpop.eup %3734  ;;  %v697_v16 = vmul.f32 %v3733_v14, %v695_v28  ;;  %1148 = vmatpush.msrb.mxu1 %v5000_v27  ;;  %vm702_vm2 = vweird.f32 %v3733_v14 }
 0x130   :  { %v716_v9 = vmul.f32 %v3735_v5, %v5477_v55  ;;  %1189 = vmatpush.msrb.mxu3 %v5010_v34  ;;  %vm721_vm3 = vweird.f32 %v3735_v5  ;;  %vm703_vm6 = vmor %vm701_vm4, %vm702_vm2 }
 0x131   :  { %v698_v17 = vsub.f32 1.0, %v697_v16  ;;  %1149 = vmatpush.msrb.mxu1 %v5008_v31  ;;  %vm722_vm8 = vmor %vm720_vm5, %vm721_vm3  ;;  %v9075_v16 = vld [vmem:[#allocation20_spill] sm:$0xff] }
 0x132   :  { %v717_v18 = vsub.f32 1.0, %v716_v9  ;;  %v3737_v3 = vpop.eup %3736  ;;  %1190 = vmatpush.msrb.mxu3 %v5016_v38  ;;  %v9077_v9 = vld [vmem:[#allocation22_spill] sm:$0xff] }
 0x133   :  { %v699_v1 = vmul.f32 %v3733_v14, %v698_v17  ;;  %1150 = vmatpush.msrb.mxu1 %v5014_v35  ;;  %v736_v31 = vmul.f32 %v3737_v3, %v5495_v0  ;;  %v3739_v28 = vpop.eup %3738  ;;  %vm741_vm10 = vweird.f32 %v3737_v3 }
 0x134   :  { %v718_v25 = vmul.f32 %v3735_v5, %v717_v18  ;;  %1191 = vmatpush.msrb.mxu3 %v5022_v40  ;;  %vm742_vm12 = vmor %vm740_vm11, %vm741_vm10  ;;  %v9079_v18 = vld [vmem:[#allocation24_spill] sm:$0xff] }
 0x135   :  { %v700_v27 = vadd.f32 %v3733_v14, %v699_v1  ;;  %1151 = vmatpush.msrb.mxu1 %v5018_v39  ;;  %v737_v38 = vsub.f32 1.0, %v736_v31  ;;  %v9081_v1 = vld [vmem:[#allocation26_spill] sm:$0xff] }
 0x136   :  { %v719_v10 = vadd.f32 %v3735_v5, %v718_v25  ;;  %1192 = vmatpush.msrb.mxu3 %v5026_v44  ;;  %v744_v44 = vand.u32 2147483647, %v5495_v0  ;;  %v5548_v31 = vld [vmem:[#allocation7 + $0x1c0] sm:$0xff] }
 0x137   :  { %v704_v34 = vsel %vm703_vm6, %v3733_v14, %v700_v27  ;;  %1152 = vmatpush.msrb.mxu1 %v5024_v43  ;;  %v738_v14 = vmul.f32 %v3737_v3, %v737_v38  ;;  %v746_v43 = vand.u32 2147483648, %v5495_v0  ;;  %v9083_v0 = vld [vmem:[#allocation30_spill] sm:$0xff]  ;;  %v5560_v38 = vld [vmem:[#allocation7 + $0x1b0] sm:$0xff] }
 0x138   :  { %v709_v35 = vsel %vm706_vm7, %v708_v30, %v704_v34  ;;  %v723_v58 = vsel %vm722_vm8, %v3735_v5, %v719_v10  ;;  %1193 = vmatpush.msrb.mxu3 %v9074_v61  ;;  %v9076_v5 = vld [vmem:[#allocation21_spill] sm:$0xff]  ;;  %vm745_vm13 = vcmp.eq.f32.partialorder %v744_v44, 8.507059e+37  ;;  %v9084_v30 = vld [vmem:[#allocation31_spill] sm:$0xff] }
 0x139   :  { %v728_v55 = vsel %vm725_vm9, %v727_v63, %v723_v58  ;;  %v751_v59 = vmul.f32 %v3739_v28, %v709_v35  ;;  %1153 = vmatpush.msrb.mxu1 %v5032_v47  ;;  %v739_v40 = vadd.f32 %v3737_v3, %v738_v14  ;;  %v9078_v47 = vld [vmem:[#allocation23_spill] sm:$0xff]  ;;  %v747_v22 = vor.u32 1.1754944e-38, %v746_v43  ;;  %v9085_v63 = vld [vmem:[#allocation32_spill] sm:$0xff]  ;;  %v9086_v28 = vld [vmem:[#allocation33_spill] sm:$0xff] }
 0x13a   :  { %v750_v62 = vmul.f32 0.0, %v728_v55  ;;  %1194 = vmatpush.msrb.mxu3 %v9076_v5  ;;  %v5544_v10 = vld [vmem:[#allocation7 + $0x1f0] sm:$0xff]  ;;  %v5556_v35 = vld [vmem:[#allocation7 + $0x1a0] sm:$0xff]  ;;  %9112 = vst [vmem:[#allocation23_spill] sm:$0xff] %v5648_v15 }
 0x13b   :  { %1154 = vmatpush.msrb.mxu1 %v9075_v16  ;;  %v743_v17 = vsel %vm742_vm12, %v3737_v3, %v739_v40  ;;  %v5540_v3 = vld [vmem:[#allocation7 + $0x1e0] sm:$0xff]  ;;  %v5552_v34 = vld [vmem:[#allocation7 + $0x1d0] sm:$0xff] }
 0x13c   :  { %v5520_v39 = vadd.f32 %v751_v59, %v750_v62  ;;  %1195 = vmatpush.msrb.mxu3 %v9078_v47  ;;  %v748_v26 = vsel %vm745_vm13, %v747_v22, %v743_v17  ;;  %v9087_v58 = vld [vmem:[#allocation34_spill] sm:$0xff]  ;;  %v9088_v55 = vld [vmem:[#allocation35_spill] sm:$0xff]  ;;  %v9090_v16 = vld [vmem:[#allocation41_spill] sm:$0xff] }
 0x13d   :  { %1155 = vmatpush.msrb.mxu1 %v9077_v9  ;;  %v5564_v59 = vld [vmem:[#allocation7 + $0x180] sm:$0xff]  ;;  %v5568_v14 = vld [vmem:[#allocation7 + $0x190] sm:$0xff] }
 0x13e   :  { %3740 = vtanh.f32 %v5520_v39  ;;  %1196 = vmatpush.msrb.mxu3 %v9080_v21  ;;  %v9089_v62 = vld [vmem:[#allocation38_spill] sm:$0xff]  ;;  %v5576_v40 = vld [vmem:[#allocation7 + $0x170] sm:$0xff] }
 0x13f   :  { %1156 = vmatpush.msrb.mxu1 %v9079_v18  ;;  %v5573_v61 = vld [vmem:[#allocation7 + $0x160] sm:$0xff]  ;;  %v5584_v44 = vld [vmem:[#allocation7 + $0x150] sm:$0xff] }
 0x140   :  { %1197 = vmatpush.msrb.mxu3 %v9082_v45  ;;  %v5580_v5 = vld [vmem:[#allocation7 + $0x140] sm:$0xff]  ;;  %v9092_v9 = vld [vmem:[#allocation47_spill] sm:$0xff] }
 0x141   :  { %1157 = vmatpush.msrb.mxu1 %v9081_v1  ;;  %v9091_v43 = vld [vmem:[#allocation46_spill] sm:$0xff]  ;;  %v5592_v18 = vld [vmem:[#allocation7 + $0x130] sm:$0xff] }
 0x142   :  { %1198 = vmatpush.msrb.mxu3 %v9084_v30  ;;  %v5588_v47 = vld [vmem:[#allocation7 + $0x120] sm:$0xff]  ;;  %v9094_v21 = vld [vmem:[#allocation51_spill] sm:$0xff] }
 0x143   :  { %1158 = vmatpush.msrb.mxu1 %v9083_v0  ;;  %v9093_v17 = vld [vmem:[#allocation50_spill] sm:$0xff]  ;;  %v5600_v45 = vld [vmem:[#allocation7 + $0x110] sm:$0xff] }
 0x144   :  { %v3741_v25 = vpop.eup %3740  ;;  %1199 = vmatpush.msrb.mxu3 %v9086_v28  ;;  %v5596_v22 = vld [vmem:[#allocation7 + $0x100] sm:$0xff]  ;;  %v5608_v30 = vld [vmem:[#allocation7 + $0xf0] sm:$0xff] }
 0x145   :  { %v5534_v27 = vmul.f32 %v3741_v25, %v748_v26  ;;  %1159 = vmatpush.msrb.mxu1 %v9085_v63  ;;  %v9095_v1 = vld [vmem:[#allocation54_spill] sm:$0xff]  ;;  %v9096_v25 = vld [vmem:[#allocation55_spill] sm:$0xff]  ;;  %v9098_v63 = vld [vmem:[#allocation61_spill] sm:$0xff] }
 0x146   :  { %1200 = vmatpush.msrb.mxu3 %v9088_v55  ;;  %v5604_v26 = vld [vmem:[#allocation7 + $0xe0] sm:$0xff]  ;;  %v5616_v55 = vld [vmem:[#allocation7 + $0xd0] sm:$0xff] }
 0x147   :  { %771 = vmatmul.f32.vlgmr.msra.gmra.mxu0 %v5534_v27  ;;  %811 = vmatmul.f32.vlgmr.msra.gmra.mxu2 %v5534_v27  ;;  %v9097_v0 = vld [vmem:[#allocation58_spill] sm:$0xff] }
 0x148   :  { %978 = vmatpush.msra.mxu0 %v5540_v3  ;;  %1014 = vmatmul.f32.vlgmr.msra.gmra.mxu1 %v5534_v27  ;;  %v5612_v28 = vld [vmem:[#allocation7 + $0xc0] sm:$0xff] }
 0x149   :  { %1018 = vmatpush.msra.mxu2 %v5544_v10  ;;  %1054 = vmatmul.f32.vlgmr.msra.gmra.mxu3 %v5534_v27 }
 0x14a   :  { %979 = vmatpush.msra.mxu0 %v5548_v31  ;;  %1160 = vmatpush.msrb.mxu1 %v9087_v58  ;;  %v9099_v58 = vld [vmem:[#allocation66_spill] sm:$0xff] }
 0x14b   :  { %1019 = vmatpush.msra.mxu2 %v5552_v34  ;;  %1265 = vmatpush.msra.mxu3 %v9090_v16  ;;  %v5620_v16 = vld [vmem:[#allocation7 + $0xa0] sm:$0xff] }
 0x14c   :  { %980 = vmatpush.msra.mxu0 %v5556_v35  ;;  %1225 = vmatpush.msra.mxu1 %v9089_v62  ;;  %v9100_v62 = vld [vmem:[#allocation67_spill] sm:$0xff] }
 0x14d   :  { %1020 = vmatpush.msra.mxu2 %v5560_v38  ;;  %1266 = vmatpush.msra.mxu3 %v9092_v9  ;;  %v5624_v9 = vld [vmem:[#allocation7 + $0xb0] sm:$0xff] }
 0x14e   :  { %981 = vmatpush.msra.mxu0 %v5564_v59  ;;  %1226 = vmatpush.msra.mxu1 %v9091_v43  ;;  %v9101_v43 = vld [vmem:[#allocation70_spill] sm:$0xff] }
 0x14f   :  { %1021 = vmatpush.msra.mxu2 %v5568_v14  ;;  %851 = vmatmul.f32.vlgmr.msrb.gmra.mxu0 %v5534_v27 }
 0x150   :  { %891 = vmatmul.f32.vlgmr.msrb.gmra.mxu2 %v5534_v27  ;;  %982 = vmatpush.msra.mxu0 %v5573_v61 }
 0x151   :  { %1022 = vmatpush.msra.mxu2 %v5576_v40  ;;  %1227 = vmatpush.msra.mxu1 %v9093_v17  ;;  %v9102_v17 = vld [vmem:[#allocation71_spill] sm:$0xff] }
 0x152   :  { %983 = vmatpush.msra.mxu0 %v5580_v5  ;;  %1267 = vmatpush.msra.mxu3 %v9094_v21  ;;  %v5628_v21 = vld [vmem:[#allocation7 + $0x80] sm:$0xff] }
 0x153   :  { %1023 = vmatpush.msra.mxu2 %v5584_v44  ;;  %1228 = vmatpush.msra.mxu1 %v9095_v1  ;;  %v9103_v1 = vld [vmem:[#allocation74_spill] sm:$0xff] }
 0x154   :  { %984 = vmatpush.msra.mxu0 %v5588_v47  ;;  %1268 = vmatpush.msra.mxu3 %v9096_v25  ;;  %v5632_v25 = vld [vmem:[#allocation7 + $0x90] sm:$0xff] }
 0x155   :  { %1024 = vmatpush.msra.mxu2 %v5592_v18  ;;  %1229 = vmatpush.msra.mxu1 %v9097_v0  ;;  %9104 = vst [vmem:[#allocation19_spill] sm:$0xff] %v5632_v25  ;;  %v9105_v0 = vld [vmem:[#allocation75_spill] sm:$0xff] }
 0x156   :  { %985 = vmatpush.msra.mxu0 %v5596_v22  ;;  %1269 = vmatpush.msra.mxu3 %v9098_v63  ;;  %v5636_v63 = vld [vmem:[#allocation7 + $0x60] sm:$0xff] }
 0x157   :  { %1025 = vmatpush.msra.mxu2 %v5600_v45  ;;  %1230 = vmatpush.msra.mxu1 %v9099_v58  ;;  %9106 = vst [vmem:[#allocation20_spill] sm:$0xff] %v5636_v63  ;;  %v9107_v58 = vld [vmem:[#allocation78_spill] sm:$0xff] }
 0x158   :  { %986 = vmatpush.msra.mxu0 %v5604_v26  ;;  %1270 = vmatpush.msra.mxu3 %v9100_v62  ;;  %v5640_v62 = vld [vmem:[#allocation7 + $0x70] sm:$0xff] }
 0x159   :  { %1026 = vmatpush.msra.mxu2 %v5608_v30  ;;  %1231 = vmatpush.msra.mxu1 %v9101_v43  ;;  %9108 = vst [vmem:[#allocation21_spill] sm:$0xff] %v5640_v62  ;;  %v9109_v43 = vld [vmem:[#allocation81_spill] sm:$0xff] }
 0x15a   :  { %987 = vmatpush.msra.mxu0 %v5612_v28  ;;  %1271 = vmatpush.msra.mxu3 %v9102_v17  ;;  %v5644_v17 = vld [vmem:[#allocation7 + $0x40] sm:$0xff] }
 0x15b   :  { %1027 = vmatpush.msra.mxu2 %v5616_v55  ;;  %1232 = vmatpush.msra.mxu1 %v9103_v1  ;;  %9110 = vst [vmem:[#allocation22_spill] sm:$0xff] %v5644_v17  ;;  %v9111_v1 = vld [vmem:[#allocation86_spill] sm:$0xff] }
 0x15c   :  { %988 = vmatpush.msra.mxu0 %v5620_v16  ;;  %1272 = vmatpush.msra.mxu3 %v9105_v0  ;;  %v9113_v0 = vld [vmem:[#allocation87_spill] sm:$0xff] }
 0x15d   :  { %1028 = vmatpush.msra.mxu2 %v5624_v9  ;;  %1233 = vmatpush.msra.mxu1 %v9107_v58  ;;  %v9115_v58 = vld [vmem:[#allocation90_spill] sm:$0xff] }
 0x15e   :  { %989 = vmatpush.msra.mxu0 %v5628_v21  ;;  %1273 = vmatpush.msra.mxu3 %v9109_v43  ;;  %v9117_v43 = vld [vmem:[#allocation91_spill] sm:$0xff] }
 0x15f   :  { %1029 = vmatpush.msra.mxu2 %v5632_v25  ;;  %1234 = vmatpush.msra.mxu1 %v9111_v1  ;;  %v9119_v1 = vld [vmem:[#allocation94_spill] sm:$0xff]  ;;  %v9129_v25 = vld [vmem:[#allocation49_spill] sm:$0xff] }
 0x160   :  { %990 = vmatpush.msra.mxu0 %v5636_v63  ;;  %1274 = vmatpush.msra.mxu3 %v9113_v0  ;;  %v5652_v63 = vld [vmem:[#allocation7 + $0x20] sm:$0xff]  ;;  %v9121_v0 = vld [vmem:[#allocation36_spill] sm:$0xff] }
 0x161   :  { %1030 = vmatpush.msra.mxu2 %v5640_v62  ;;  %9114 = vst [vmem:[#allocation24_spill] sm:$0xff] %v5652_v63  ;;  %1235 = vmatpush.msra.mxu1 %v9115_v58  ;;  %v5656_v62 = vld [vmem:[#allocation7 + $0x30] sm:$0xff]  ;;  %v9122_v58 = vld [vmem:[#allocation37_spill] sm:$0xff] }
 0x162   :  { %991 = vmatpush.msra.mxu0 %v5644_v17  ;;  %9116 = vst [vmem:[#allocation25_spill] sm:$0xff] %v5656_v62  ;;  %1275 = vmatpush.msra.mxu3 %v9117_v43  ;;  %v5660_v17 = vld [vmem:[#allocation7] sm:$0xff]  ;;  %v9124_v43 = vld [vmem:[#allocation44_spill] sm:$0xff] }
 0x163   :  { %1031 = vmatpush.msra.mxu2 %v5648_v15  ;;  %9118 = vst [vmem:[#allocation26_spill] sm:$0xff] %v5660_v17  ;;  %1236 = vmatpush.msra.mxu1 %v9119_v1  ;;  %v5664_v15 = vld [vmem:[#allocation7 + $0x10] sm:$0xff]  ;;  %v9126_v1 = vld [vmem:[#allocation101_spill] sm:$0xff] }
 0x164   :  { %992 = vmatpush.msra.mxu0 %v5652_v63  ;;  %9120 = vst [vmem:[#allocation27_spill] sm:$0xff] %v5664_v15  ;;  %v9127_v63 = vld [vmem:[#allocation48_spill] sm:$0xff] }
 0x165   :  { %1032 = vmatpush.msra.mxu2 %v5656_v62  ;;  %v9123_v62 = vld [vmem:[#allocation95_spill] sm:$0xff]  ;;  %1237 = vmatpush.msra.mxu1 %v5266_v53  ;;  %v9135_v53 = vld [vmem:[#allocation56_spill] sm:$0xff] }
 0x166   :  { %993 = vmatpush.msra.mxu0 %v5660_v17  ;;  %1276 = vmatpush.msra.mxu3 %v9123_v62  ;;  %v9125_v17 = vld [vmem:[#allocation45_spill] sm:$0xff] }
 0x167   :  { %1033 = vmatpush.msra.mxu2 %v5664_v15  ;;  %994 = vmatmul.f32.vlgmr.msra.gmra.mxu0 %v5534_v27  ;;  %v9128_v15 = vld [vmem:[#allocation105_spill] sm:$0xff] }
 0x168   :  { %1034 = vmatmul.f32.vlgmr.msra.gmra.mxu2 %v5534_v27  ;;  %1125 = vmatpush.msrb.mxu0 %v9121_v0  ;;  %v9130_v27 = vld [vmem:[#allocation106_spill] sm:$0xff]  ;;  %v9131_v0 = vld [vmem:[#allocation52_spill] sm:$0xff]  ;;  %v9133_v62 = vld [vmem:[#allocation53_spill] sm:$0xff] }
 0x169   :  { %1165 = vmatpush.msrb.mxu2 %v9122_v58  ;;  %1277 = vmatpush.msra.mxu3 %v9126_v1  ;;  %v9132_v58 = vld [vmem:[#allocation109_spill] sm:$0xff] }
 0x16a   :  { %1126 = vmatpush.msrb.mxu0 %v9124_v43  ;;  %1238 = vmatpush.msra.mxu1 %v9128_v15  ;;  %v9134_v43 = vld [vmem:[#allocation110_spill] sm:$0xff]  ;;  %v9137_v15 = vld [vmem:[#allocation64_spill] sm:$0xff]  ;;  %v9140_v1 = vld [vmem:[#allocation69_spill] sm:$0xff] }
 0x16b   :  { %1166 = vmatpush.msrb.mxu2 %v9125_v17  ;;  %1278 = vmatpush.msra.mxu3 %v9130_v27  ;;  %v9136_v17 = vld [vmem:[#allocation57_spill] sm:$0xff]  ;;  %v9141_v27 = vld [vmem:[#allocation72_spill] sm:$0xff] }
 0x16c   :  { %1127 = vmatpush.msrb.mxu0 %v9127_v63  ;;  %1239 = vmatpush.msra.mxu1 %v9132_v58  ;;  %v9139_v63 = vld [vmem:[#allocation68_spill] sm:$0xff] }
 0x16d   :  { %1167 = vmatpush.msrb.mxu2 %v9129_v25  ;;  %1279 = vmatpush.msra.mxu3 %v9134_v43  ;;  %v9138_v25 = vld [vmem:[#allocation65_spill] sm:$0xff]  ;;  %v9143_v58 = vld [vmem:[#allocation76_spill] sm:$0xff] }
 0x16e   :  { %1128 = vmatpush.msrb.mxu0 %v9131_v0  ;;  %1240 = vmatpush.msra.mxu1 %v5310_v12  ;;  %v9142_v0 = vld [vmem:[#allocation73_spill] sm:$0xff]  ;;  %v9145_v12 = vld [vmem:[#allocation84_spill] sm:$0xff] }
 0x16f   :  { %1168 = vmatpush.msrb.mxu2 %v9133_v62  ;;  %1280 = vmatpush.msra.mxu3 %v5314_v13  ;;  %v9144_v62 = vld [vmem:[#allocation77_spill] sm:$0xff]  ;;  %v9147_v13 = vld [vmem:[#allocation88_spill] sm:$0xff] }
 0x170   :  { %1129 = vmatpush.msrb.mxu0 %v9135_v53  ;;  %v9146_v43 = vld [vmem:[#allocation85_spill] sm:$0xff] }
 0x171   :  { %1169 = vmatpush.msrb.mxu2 %v9136_v17  ;;  %v9148_v53 = vld [vmem:[#allocation89_spill] sm:$0xff]  ;;  %v9149_v17 = vld [vmem:[#allocation92_spill] sm:$0xff] }
 0x172   :  { %1130 = vmatpush.msrb.mxu0 %v9137_v15  ;;  %v9150_v15 = vld [vmem:[#allocation93_spill] sm:$0xff] }
 0x173   :  { %1170 = vmatpush.msrb.mxu2 %v9138_v25  ;;  %v9151_v25 = vld [vmem:[#allocation97_spill] sm:$0xff] }
 0x174   :  { %1131 = vmatpush.msrb.mxu0 %v9139_v63  ;;  %v9152_v63 = vld [vmem:[#allocation98_spill] sm:$0xff] }
 0x175   :  { %1171 = vmatpush.msrb.mxu2 %v9140_v1  ;;  %v9153_v1 = vld [vmem:[#allocation103_spill] sm:$0xff] }
 0x176   :  { %1132 = vmatpush.msrb.mxu0 %v9141_v27  ;;  %v9154_v27 = vld [vmem:[#allocation104_spill] sm:$0xff] }
 0x177   :  { %1172 = vmatpush.msrb.mxu2 %v9142_v0  ;;  %v9155_v0 = vld [vmem:[#allocation107_spill] sm:$0xff] }
 0x178   :  { %1133 = vmatpush.msrb.mxu0 %v9143_v58  ;;  %v9156_v58 = vld [vmem:[#allocation108_spill] sm:$0xff] }
 0x179   :  { %1173 = vmatpush.msrb.mxu2 %v9144_v62  ;;  %v9157_v62 = vld [vmem:[#allocation111_spill] sm:$0xff] }
 0x17a   :  { %1134 = vmatpush.msrb.mxu0 %v9145_v12  ;;  %v9158_v12 = vld [vmem:[#allocation112_spill] sm:$0xff] }
 0x17b   :  { %1174 = vmatpush.msrb.mxu2 %v9146_v43  ;;  %v9159_v43 = vld [vmem:[#allocation116_spill] sm:$0xff] }
 0x17c   :  { %1135 = vmatpush.msrb.mxu0 %v9147_v13  ;;  %v9160_v13 = vld [vmem:[#allocation117_spill] sm:$0xff] }
 0x17d   :  { %1175 = vmatpush.msrb.mxu2 %v9148_v53  ;;  %v9161_v53 = vld [vmem:[#allocation119_spill] sm:$0xff] }
 0x17e   :  { %1136 = vmatpush.msrb.mxu0 %v9149_v17 }
 0x17f   :  { %1176 = vmatpush.msrb.mxu2 %v9150_v15 }
 0x180   :  { %1137 = vmatpush.msrb.mxu0 %v9151_v25 }
 0x181   :  { %1177 = vmatpush.msrb.mxu2 %v9152_v63 }
 0x182   :  { %1138 = vmatpush.msrb.mxu0 %v9153_v1 }
 0x183   :  { %1178 = vmatpush.msrb.mxu2 %v9154_v27 }
 0x184   :  { %1139 = vmatpush.msrb.mxu0 %v9155_v0 }
 0x185   :  { %1179 = vmatpush.msrb.mxu2 %v9156_v58 }
 0x186   :  { %1140 = vmatpush.msrb.mxu0 %v9157_v62  ;;  %v9171_v62 = vld [vmem:[#allocation40_spill] sm:$0xff] }
 0x187   :  { %1180 = vmatpush.msrb.mxu2 %v9158_v12  ;;  %v588_v12 = vadd.f32 %v9171_v62, %v5425_v32 }
 0x188   :  { %1205 = vmatpush.msra.mxu0 %v5316_v8  ;;  %v9162_v8 = vld [vmem:[#allocation123_spill] sm:$0xff] }
 0x189   :  { %1245 = vmatpush.msra.mxu2 %v5318_v60  ;;  %v9163_v60 = vld [vmem:[#allocation124_spill] sm:$0xff] }
 0x18a   :  { %1206 = vmatpush.msra.mxu0 %v5330_v56  ;;  %v9164_v56 = vld [vmem:[#allocation125_spill] sm:$0xff] }
 0x18b   :  { %1246 = vmatpush.msra.mxu2 %v5332_v48  ;;  %v9165_v48 = vld [vmem:[#allocation128_spill] sm:$0xff] }
 0x18c   :  { %1207 = vmatpush.msra.mxu0 %v9159_v43 }
 0x18d   :  { %1247 = vmatpush.msra.mxu2 %v9160_v13 }
 0x18e   :  { %1208 = vmatpush.msra.mxu0 %v5348_v2  ;;  %v314_v2 = vld [vmem:[%s8463_s5] sm:$0xf] }
 0x18f   :  { %1248 = vmatpush.msra.mxu2 %v9161_v53  ;;  %v5753_v17 = vperm.slane %v314_v2, 3  ;;  %v5758_v13 = vperm.slane %v314_v2, 2 }
 0x190   :  { %1209 = vmatpush.msra.mxu0 %v5356_v57  ;;  %v792_v57 = vpop.f32.mrf.mxu1 }
 0x191   :  { %1249 = vmatpush.msra.mxu2 %v5358_v6  ;;  %9170 = vst [vmem:[#allocation32_spill] sm:$0xff] %v5753_v17 }
 0x192   :  { %1210 = vmatpush.msra.mxu0 %v5372_v11  ;;  %v832_v11 = vpop.f32.mrf.mxu3  ;;  %9172 = vst [vmem:[#allocation33_spill] sm:$0xff] %v5758_v13 }
 0x193   :  { %1250 = vmatpush.msra.mxu2 %v9162_v8 }
 0x194   :  { %1211 = vmatpush.msra.mxu0 %v9163_v60 }
 0x195   :  { %1251 = vmatpush.msra.mxu2 %v9164_v56 }
 0x196   :  { %1212 = vmatpush.msra.mxu0 %v5394_v19 }
 0x197   :  { %1252 = vmatpush.msra.mxu2 %v9165_v48 }
 0x198   :  { %1213 = vmatpush.msra.mxu0 %v5404_v23  ;;  %v872_v6 = vpop.f32.mrf.mxu1 }
 0x199   :  { %1253 = vmatpush.msra.mxu2 %v5406_v24  ;;  %v5748_v24 = vperm.slane %v314_v2, 1 }
 0x19a   :  { %1214 = vmatpush.msra.mxu0 %v5418_v7  ;;  %v5745_v7 = vperm.slane %v314_v2, 0 }
 0x19b   :  { %1254 = vmatpush.msra.mxu2 %v5420_v20  ;;  %9167 = vst [vmem:[#allocation31_spill] sm:$0xff] %v5748_v24 }
 0x19c   :  { %1215 = vmatpush.msra.mxu0 %v5429_v33  ;;  %9166 = vst [vmem:[#allocation30_spill] sm:$0xff] %v5745_v7 }
 0x19d   :  { %1255 = vmatpush.msra.mxu2 %v5431_v52 }
 0x19e   :  { %1216 = vmatpush.msra.mxu0 %v5437_v36 }
 0x19f   :  { %1256 = vmatpush.msra.mxu2 %v5439_v37 }
 0x1a0   :  { %1217 = vmatpush.msra.mxu0 %v5447_v41  ;;  %v9168_v41 = vld [vmem:[#allocation127_spill] sm:$0xff] }
 0x1a1   :  { %1257 = vmatpush.msra.mxu2 %v5449_v42  ;;  %v9169_v42 = vld [vmem:[#allocation29_spill] sm:$0xff] }
 0x1a2   :  { %1218 = vmatpush.msra.mxu0 %v5457_v46  ;;  %v506_v46 = vadd.f32 %v9169_v42, %v9168_v41  ;;  %v9173_v42 = vld [vmem:[#allocation126_spill] sm:$0xff] }
 0x1a3   :  { %1258 = vmatpush.msra.mxu2 %v5459_v4  ;;  %v912_v4 = vpop.f32.mrf.mxu3 }
 0x1a4   :  { %1219 = vmatpush.msra.mxu0 %v5465_v49 }
 0x1a5   :  { %1259 = vmatpush.msra.mxu2 %v5467_v50 }
 0x1a6   :  { %1220 = vmatpush.msra.mxu0 %v5473_v29 }
 0x1a7   :  { %1260 = vmatpush.msra.mxu2 %v5475_v54 }
 0x1c4   :  { %v772_v19 = vpop.f32.mrf.mxu0 }
 0x1c5   :  { %v773_v20 = vadd.f32 %v772_v19, %v5745_v7  ;;  %v1015_v36 = vpop.f32.mrf.mxu1 }
 0x1c6   :  { %v1059_v50 = vadd.f32 %v1015_v36, %v506_v46  ;;  %v9174_v46 = vld [vmem:[#allocation28_spill] sm:$0xff] }
 0x1c7   :  { %v793_v23 = vadd.f32 %v792_v57, %v773_v20 }
 0x1c8   :  { %v3672_v25 = vmul.f32 -1.442695, %v1059_v50 }
 0x1c9   :  { %v3668_v33 = vmul.f32 -1.442695, %v793_v23 }
 0x1ca   :  { %v812_v52 = vpop.f32.mrf.mxu2 }
 0x1cb   :  { %3742 = vpow2.f32 %v3668_v33  ;;  %v813_v37 = vadd.f32 %v812_v52, %v5748_v24 }
 0x1cc   :  { %v1055_v0 = vpop.f32.mrf.mxu3  ;;  %v852_v53 = vpop.f32.mrf.mxu0 }
 0x1cd   :  { %v833_v49 = vadd.f32 %v832_v11, %v813_v37  ;;  %v1061_v56 = vadd.f32 %v1055_v0, %v588_v12  ;;  %v853_v11 = vadd.f32 %v852_v53, %v5758_v13 }
 0x1cf   :  { %v3669_v29 = vmul.f32 -1.442695, %v833_v49  ;;  %v3673_v20 = vmul.f32 -1.442695, %v1061_v56  ;;  %v873_v36 = vadd.f32 %v872_v6, %v853_v11 }
 0x1d1   :  { %v3743_v54 = vpop.eup %3742  ;;  %3744 = vpow2.f32 %v3669_v29 }
 0x1d2   :  { %v918_v15 = vadd.f32 1.0, %v3743_v54 }
 0x1d3   :  { %v892_v63 = vpop.f32.mrf.mxu2 }
 0x1d4   :  { %3746 = vrcp.f32 %v918_v15  ;;  %v893_v1 = vadd.f32 %v892_v63, %v5753_v17  ;;  %v930_v49 = vand.u32 2147483648, %v918_v15  ;;  %vm924_vm15 = vweird.f32 %v918_v15 }
 0x1d5   :  { %3748 = vpow2.f32 %v3672_v25  ;;  %v928_v54 = vand.u32 2147483647, %v918_v15 }
 0x1d6   :  { %v913_v58 = vadd.f32 %v912_v4, %v893_v1  ;;  %v465_v4 = vadd.f32 %v9174_v46, %v9173_v42  ;;  %v931_v12 = vor.u32 1.1754944e-38, %v930_v49 }
 0x1d7   :  { %v3745_v27 = vpop.eup %3744  ;;  %vm929_vm3 = vcmp.eq.f32.partialorder %v928_v54, 8.507059e+37 }
 0x1d8   :  { %v937_v43 = vadd.f32 1.0, %v3745_v27  ;;  %v3670_v8 = vmul.f32 -1.442695, %v913_v58 }
 0x1da   :  { %v3747_v60 = vpop.eup %3746  ;;  %3750 = vrcp.f32 %v937_v43  ;;  %v949_v25 = vand.u32 2147483648, %v937_v43  ;;  %v947_v6 = vand.u32 2147483647, %v937_v43  ;;  %vm943_vm2 = vweird.f32 %v937_v43 }
 0x1db   :  { %v920_v48 = vmul.f32 %v3747_v60, %v918_v15  ;;  %v3749_v57 = vpop.eup %3748  ;;  %3752 = vpow2.f32 %v3670_v8  ;;  %vm925_vm14 = vweird.f32 %v3747_v60 }
 0x1dc   :  { %v5761_v23 = vadd.f32 1.0, %v3749_v57  ;;  %3754 = vpow2.f32 %v3673_v20  ;;  %vm5766_vm0 = vmor %vm924_vm15, %vm925_vm14  ;;  %v950_v56 = vor.u32 1.1754944e-38, %v949_v25  ;;  %vm948_vm5 = vcmp.eq.f32.partialorder %v947_v6, 8.507059e+37 }
 0x1dd   :  { %v921_v19 = vsub.f32 1.0, %v920_v48 }
 0x1de   :  { %3756 = vrcp.f32 %v5761_v23  ;;  %vm1090_vm11 = vweird.f32 %v5761_v23 }
 0x1df   :  { %v922_v33 = vmul.f32 %v3747_v60, %v921_v19  ;;  %3758 = vtanh.f32 %v873_v36 }
 0x1e0   :  { %v3751_v52 = vpop.eup %3750 }
 0x1e1   :  { %v939_v37 = vmul.f32 %v3751_v52, %v937_v43  ;;  %v923_v2 = vadd.f32 %v3747_v60, %v922_v33  ;;  %v3753_v50 = vpop.eup %3752  ;;  %vm944_vm1 = vweird.f32 %v3751_v52 }
 0x1e2   :  { %v957_v1 = vadd.f32 1.0, %v3753_v50  ;;  %v3755_v8 = vpop.eup %3754  ;;  %vm945_vm4 = vmor %vm943_vm2, %vm944_vm1 }
 0x1e3   :  { %v940_v29 = vsub.f32 1.0, %v939_v37  ;;  %v927_v58 = vsel %vm5766_vm0, %v3747_v60, %v923_v2  ;;  %v5774_v37 = vadd.f32 1.0, %v3755_v8 }
 0x1e4   :  { %v995_v27 = vpop.f32.mrf.mxu0  ;;  %3760 = vrcp.f32 %v957_v1  ;;  %v932_v48 = vsel %vm929_vm3, %v931_v12, %v927_v58  ;;  %v5772_v57 = vpop.eup %3756  ;;  %v969_v50 = vand.u32 2147483648, %v957_v1  ;;  %v967_v25 = vand.u32 2147483647, %v957_v1 }
 0x1e5   :  { %v941_v0 = vmul.f32 %v3751_v52, %v940_v29  ;;  %v1058_v62 = vadd.f32 %v995_v27, %v465_v4  ;;  %v3759_v19 = vpop.eup %3758  ;;  %v1086_v43 = vmul.f32 %v5772_v57, %v5761_v23  ;;  %vm963_vm7 = vweird.f32 %v957_v1 }
 0x1e6   :  { %v974_v33 = vmul.f32 %v3759_v19, %v932_v48  ;;  %v970_v6 = vor.u32 1.1754944e-38, %v969_v50  ;;  %vm968_vm9 = vcmp.eq.f32.partialorder %v967_v25, 8.507059e+37  ;;  %vm1091_vm10 = vweird.f32 %v5772_v57  ;;  %v5809_v50 = vld [vmem:[#allocation7 + $0x1c8] sm:$0xff] }
 0x1e7   :  { %v942_v15 = vadd.f32 %v3751_v52, %v941_v0  ;;  %v3671_v53 = vmul.f32 -1.442695, %v1058_v62  ;;  %v1087_v29 = vsub.f32 1.0, %v1086_v43  ;;  %vm5804_vm12 = vmor %vm1090_vm11, %vm1091_vm10  ;;  %vm1110_vm3 = vweird.f32 %v5774_v37 }
 0x1e9   :  { %v946_v11 = vsel %vm945_vm4, %v3751_v52, %v942_v15  ;;  %3762 = vpow2.f32 %v3671_v53  ;;  %v1088_v0 = vmul.f32 %v5772_v57, %v1087_v29  ;;  %v9177_v15 = vld [vmem:[#allocation39_spill] sm:$0xff]  ;;  %v5812_v29 = vld [vmem:[#allocation7 + $0x1d8] sm:$0xff] }
 0x1ea   :  { %v951_v20 = vsel %vm948_vm5, %v950_v56, %v946_v11  ;;  %v3761_v36 = vpop.eup %3760  ;;  %v547_v53 = vadd.f32 %v9177_v15, %v5482_v51 }
 0x1eb   :  { %v973_v60 = vmul.f32 0.0, %v951_v20  ;;  %v959_v46 = vmul.f32 %v3761_v36, %v957_v1  ;;  %vm964_vm6 = vweird.f32 %v3761_v36  ;;  %v1035_v58 = vpop.f32.mrf.mxu2  ;;  %v1089_v19 = vadd.f32 %v5772_v57, %v1088_v0  ;;  %v5822_v0 = vld [vmem:[#allocation7 + $0x1b8] sm:$0xff] }
 0x1ec   :  { %vm965_vm8 = vmor %vm963_vm7, %vm964_vm6  ;;  %v1060_v11 = vadd.f32 %v1035_v58, %v547_v53  ;;  %v1096_v20 = vand.u32 2147483648, %v5761_v23  ;;  %v5826_v53 = vld [vmem:[#allocation7 + $0x188] sm:$0xff] }
 0x1ed   :  { %v5778_v2 = vadd.f32 %v974_v33, %v973_v60  ;;  %v960_v49 = vsub.f32 1.0, %v959_v46  ;;  %v5796_v33 = vld [vmem:[#allocation7 + $0x1e8] sm:$0xff]  ;;  %v1094_v46 = vand.u32 2147483647, %v5761_v23  ;;  %v1093_v23 = vsel %vm5804_vm12, %v5772_v57, %v1089_v19  ;;  %v5829_v57 = vld [vmem:[#allocation7 + $0x198] sm:$0xff] }
 0x1ee   :  { %v5833_v19 = vld [vmem:[#allocation7 + $0x168] sm:$0xff] }
 0x1ef   :  { %v3763_v4 = vpop.eup %3762  ;;  %3764 = vtanh.f32 %v5778_v2  ;;  %v961_v54 = vmul.f32 %v3761_v36, %v960_v49  ;;  %vm1095_vm15 = vcmp.eq.f32.partialorder %v1094_v46, 8.507059e+37  ;;  %v5840_v46 = vld [vmem:[#allocation7 + $0x148] sm:$0xff] }
 0x1f0   :  { %3766 = vrcp.f32 %v5774_v37  ;;  %v5782_v52 = vadd.f32 1.0, %v3763_v4 }
 0x1f1   :  { %v962_v63 = vadd.f32 %v3761_v36, %v961_v54 }
 0x1f2   :  { %3768 = vrcp.f32 %v5782_v52  ;;  %v1077_v49 = vand.u32 2147483648, %v5782_v52  ;;  %v1075_v25 = vand.u32 2147483647, %v5782_v52  ;;  %vm1071_vm14 = vweird.f32 %v5782_v52 }
 0x1f3   :  { %v966_v62 = vsel %vm965_vm8, %v3761_v36, %v962_v63  ;;  %v5799_v36 = vld [vmem:[#allocation7 + $0x1f8] sm:$0xff]  ;;  %3770 = vtanh.f32 %v1060_v11  ;;  %v1097_v63 = vor.u32 1.1754944e-38, %v1096_v20 }
 0x1f4   :  { %v971_v8 = vsel %vm968_vm9, %v970_v6, %v966_v62  ;;  %v1078_v62 = vor.u32 1.1754944e-38, %v1077_v49  ;;  %vm1076_vm1 = vcmp.eq.f32.partialorder %v1075_v25, 8.507059e+37  ;;  %v5836_v20 = vld [vmem:[#allocation7 + $0x178] sm:$0xff]  ;;  %v5850_v49 = vld [vmem:[#allocation7 + $0x128] sm:$0xff]  ;;  %v1114_v25 = vand.u32 2147483647, %v5774_v37 }
 0x1f5   :  { %v3765_v27 = vpop.eup %3764  ;;  %v1098_v15 = vsel %vm1095_vm15, %v1097_v63, %v1093_v23  ;;  %v5860_v23 = vld [vmem:[#allocation7 + $0x108] sm:$0xff]  ;;  %v5863_v63 = vld [vmem:[#allocation7 + $0x118] sm:$0xff] }
 0x1f6   :  { %v5786_v12 = vpop.eup %3766  ;;  %v977_v56 = vmul.f32 %v3765_v27, %v971_v8  ;;  %v5819_v27 = vld [vmem:[#allocation7 + $0x1a8] sm:$0xff]  ;;  %vm1115_vm5 = vcmp.eq.f32.partialorder %v1114_v25, 8.507059e+37  ;;  %v5900_v25 = vld [vmem:[#allocation7 + $0x78] sm:$0xff] }
 0x1f7   :  { %v1106_v60 = vmul.f32 %v5786_v12, %v5774_v37  ;;  %vm1111_vm2 = vweird.f32 %v5786_v12 }
 0x1f8   :  { %v3769_v48 = vpop.eup %3768  ;;  %1161 = vmatmul.f32.vlgmr.msrb.gmra.mxu1 %v977_v56  ;;  %1201 = vmatmul.f32.vlgmr.msrb.gmra.mxu3 %v977_v56  ;;  %vm1112_vm4 = vmor %vm1110_vm3, %vm1111_vm2 }
 0x1f9   :  { %v1067_v1 = vmul.f32 %v3769_v48, %v5782_v52  ;;  %1368 = vmatpush.msrb.mxu1 %v5796_v33  ;;  %1408 = vmatpush.msrb.mxu3 %v5799_v36  ;;  %vm1072_vm13 = vweird.f32 %v3769_v48  ;;  %v1107_v6 = vsub.f32 1.0, %v1106_v60  ;;  %v3771_v11 = vpop.eup %3770  ;;  %v1120_v60 = vmul.f32 %v1098_v15, %v5520_v39  ;;  %v5853_v39 = vld [vmem:[#allocation7 + $0x138] sm:$0xff]  ;;  %v5873_v15 = vld [vmem:[#allocation7 + $0xc8] sm:$0xff] }
 0x1fa   :  { %vm1073_vm0 = vmor %vm1071_vm14, %vm1072_vm13 }
 0x1fb   :  { %v1068_v43 = vsub.f32 1.0, %v1067_v1  ;;  %1369 = vmatpush.msrb.mxu1 %v5809_v50  ;;  %1409 = vmatpush.msrb.mxu3 %v5812_v29  ;;  %v1108_v1 = vmul.f32 %v5786_v12, %v1107_v6 }
 0x1fd   :  { %v1069_v54 = vmul.f32 %v3769_v48, %v1068_v43  ;;  %1370 = vmatpush.msrb.mxu1 %v5819_v27  ;;  %1410 = vmatpush.msrb.mxu3 %v5822_v0  ;;  %v1109_v4 = vadd.f32 %v5786_v12, %v1108_v1 }
 0x1ff   :  { %v1070_v58 = vadd.f32 %v3769_v48, %v1069_v54  ;;  %1371 = vmatpush.msrb.mxu1 %v5826_v53  ;;  %1411 = vmatpush.msrb.mxu3 %v5829_v57  ;;  %v1116_v54 = vand.u32 2147483648, %v5774_v37  ;;  %v1113_v6 = vsel %vm1112_vm4, %v5786_v12, %v1109_v4  ;;  %v5890_v4 = vld [vmem:[#allocation7 + $0x98] sm:$0xff] }
 0x200   :  { %1241 = vmatmul.f32.vlgmr.msra.gmra.mxu1 %v977_v56  ;;  %1281 = vmatmul.f32.vlgmr.msra.gmra.mxu3 %v977_v56  ;;  %v5843_v56 = vld [vmem:[#allocation7 + $0x158] sm:$0xff] }
 0x201   :  { %v1074_v8 = vsel %vm1073_vm0, %v3769_v48, %v1070_v58  ;;  %1372 = vmatpush.msrb.mxu1 %v5833_v19  ;;  %1412 = vmatpush.msrb.mxu3 %v5836_v20  ;;  %v5867_v58 = vld [vmem:[#allocation7 + $0xe8] sm:$0xff]  ;;  %v1117_v37 = vor.u32 1.1754944e-38, %v1116_v54 }
 0x202   :  { %v1079_v52 = vsel %vm1076_vm1, %v1078_v62, %v1074_v8  ;;  %v5870_v62 = vld [vmem:[#allocation7 + $0xf8] sm:$0xff]  ;;  %v5897_v54 = vld [vmem:[#allocation7 + $0x68] sm:$0xff] }
 0x203   :  { %v1121_v43 = vmul.f32 %v3771_v11, %v1079_v52  ;;  %1373 = vmatpush.msrb.mxu1 %v5840_v46  ;;  %1413 = vmatpush.msrb.mxu3 %v5843_v56  ;;  %v5876_v8 = vld [vmem:[#allocation7 + $0xd8] sm:$0xff]  ;;  %v1118_v12 = vsel %vm1115_vm5, %v1117_v37, %v1113_v6  ;;  %v5881_v52 = vld [vmem:[#allocation7 + $0xa8] sm:$0xff] }
 0x204   :  { %v5905_v6 = vld [vmem:[#allocation7 + $0x48] sm:$0xff]  ;;  %v5908_v37 = vld [vmem:[#allocation7 + $0x58] sm:$0xff] }
 0x205   :  { %v5846_v48 = vadd.f32 %v1121_v43, %v1120_v60  ;;  %1374 = vmatpush.msrb.mxu1 %v5850_v49  ;;  %1414 = vmatpush.msrb.mxu3 %v5853_v39  ;;  %v5884_v60 = vld [vmem:[#allocation7 + $0xb8] sm:$0xff]  ;;  %v5887_v43 = vld [vmem:[#allocation7 + $0x88] sm:$0xff] }
 0x207   :  { %3772 = vtanh.f32 %v5846_v48  ;;  %1375 = vmatpush.msrb.mxu1 %v5860_v23  ;;  %1415 = vmatpush.msrb.mxu3 %v5863_v63 }
 0x209   :  { %1376 = vmatpush.msrb.mxu1 %v5867_v58  ;;  %1416 = vmatpush.msrb.mxu3 %v5870_v62 }
 0x20b   :  { %1377 = vmatpush.msrb.mxu1 %v5873_v15  ;;  %1417 = vmatpush.msrb.mxu3 %v5876_v8 }
 0x20d   :  { %v3773_v11 = vpop.eup %3772  ;;  %1378 = vmatpush.msrb.mxu1 %v5881_v52  ;;  %1418 = vmatpush.msrb.mxu3 %v5884_v60 }
 0x20e   :  { %v5879_v1 = vmul.f32 %v3773_v11, %v1118_v12  ;;  %v5994_v11 = vld [vmem:[#allocation10 + $0x308] sm:$0xff]  ;;  %v5998_v12 = vld [vmem:[#allocation10 + $0x2e0] sm:$0xff] }
 0x20f   :  { %1379 = vmatpush.msrb.mxu1 %v5887_v43  ;;  %1419 = vmatpush.msrb.mxu3 %v5890_v4  ;;  %9195 = vst [vmem:[#allocation66_spill] sm:$0xff] %v5994_v11 }
 0x210   :  { %1141 = vmatmul.f32.vlgmr.msrb.gmra.mxu0 %v5879_v1  ;;  %1181 = vmatmul.f32.vlgmr.msrb.gmra.mxu2 %v5879_v1  ;;  %9197 = vst [vmem:[#allocation67_spill] sm:$0xff] %v5998_v12 }
 0x211   :  { %1348 = vmatpush.msrb.mxu0 %v5540_v3  ;;  %1388 = vmatpush.msrb.mxu2 %v5544_v10  ;;  %v5913_v3 = vld [vmem:[#allocation7 + $0x28] sm:$0xff]  ;;  %v5916_v10 = vld [vmem:[#allocation7 + $0x38] sm:$0xff] }
 0x212   :  { %1380 = vmatpush.msrb.mxu1 %v5897_v54  ;;  %1420 = vmatpush.msrb.mxu3 %v5900_v25 }
 0x213   :  { %1349 = vmatpush.msrb.mxu0 %v5548_v31  ;;  %1389 = vmatpush.msrb.mxu2 %v5552_v34  ;;  %v5921_v31 = vld [vmem:[#allocation7 + $0x8] sm:$0xff]  ;;  %v5924_v34 = vld [vmem:[#allocation7 + $0x18] sm:$0xff] }
 0x214   :  { %1381 = vmatpush.msrb.mxu1 %v5905_v6  ;;  %1421 = vmatpush.msrb.mxu3 %v5908_v37 }
 0x215   :  { %1350 = vmatpush.msrb.mxu0 %v5556_v35  ;;  %1390 = vmatpush.msrb.mxu2 %v5560_v38  ;;  %v5934_v35 = vld [vmem:[#allocation10 + $0x3e0] sm:$0xff]  ;;  %v5938_v38 = vld [vmem:[#allocation10 + $0x3e8] sm:$0xff] }
 0x216   :  { %1382 = vmatpush.msrb.mxu1 %v5913_v3  ;;  %1422 = vmatpush.msrb.mxu3 %v5916_v10 }
 0x217   :  { %1351 = vmatpush.msrb.mxu0 %v5564_v59  ;;  %1391 = vmatpush.msrb.mxu2 %v5568_v14  ;;  %v5942_v59 = vld [vmem:[#allocation10 + $0x3c0] sm:$0xff]  ;;  %v5946_v14 = vld [vmem:[#allocation10 + $0x3c8] sm:$0xff] }
 0x218   :  { %1383 = vmatpush.msrb.mxu1 %v5921_v31  ;;  %1423 = vmatpush.msrb.mxu3 %v5924_v34  ;;  %9180 = vst [vmem:[#allocation34_spill] sm:$0xff] %v5946_v14 }
 0x219   :  { %1221 = vmatmul.f32.vlgmr.msra.gmra.mxu0 %v5879_v1  ;;  %1261 = vmatmul.f32.vlgmr.msra.gmra.mxu2 %v5879_v1 }
 0x21a   :  { %1352 = vmatpush.msrb.mxu0 %v5573_v61  ;;  %1384 = vmatmul.f32.vlgmr.msrb.gmra.mxu1 %v5879_v1  ;;  %v5950_v61 = vld [vmem:[#allocation10 + $0x3a0] sm:$0xff] }
 0x21b   :  { %1392 = vmatpush.msrb.mxu2 %v5576_v40  ;;  %1424 = vmatmul.f32.vlgmr.msrb.gmra.mxu3 %v5879_v1  ;;  %9181 = vst [vmem:[#allocation35_spill] sm:$0xff] %v5950_v61  ;;  %v5954_v40 = vld [vmem:[#allocation10 + $0x3a8] sm:$0xff] }
 0x21c   :  { %1353 = vmatpush.msrb.mxu0 %v5580_v5  ;;  %1515 = vmatpush.msra.mxu1 %v5934_v35  ;;  %9182 = vst [vmem:[#allocation38_spill] sm:$0xff] %v5954_v40  ;;  %v5958_v5 = vld [vmem:[#allocation10 + $0x380] sm:$0xff] }
 0x21d   :  { %1393 = vmatpush.msrb.mxu2 %v5584_v44  ;;  %1555 = vmatpush.msra.mxu3 %v5938_v38  ;;  %9183 = vst [vmem:[#allocation41_spill] sm:$0xff] %v5958_v5  ;;  %v5962_v44 = vld [vmem:[#allocation10 + $0x388] sm:$0xff] }
 0x21e   :  { %1354 = vmatpush.msrb.mxu0 %v5588_v47  ;;  %1516 = vmatpush.msra.mxu1 %v5942_v59  ;;  %9184 = vst [vmem:[#allocation46_spill] sm:$0xff] %v5962_v44  ;;  %v5966_v47 = vld [vmem:[#allocation10 + $0x360] sm:$0xff] }
 0x21f   :  { %1394 = vmatpush.msrb.mxu2 %v5592_v18  ;;  %1556 = vmatpush.msra.mxu3 %v5946_v14  ;;  %9185 = vst [vmem:[#allocation47_spill] sm:$0xff] %v5966_v47  ;;  %v5970_v18 = vld [vmem:[#allocation10 + $0x368] sm:$0xff] }
 0x220   :  { %1355 = vmatpush.msrb.mxu0 %v5596_v22  ;;  %1517 = vmatpush.msra.mxu1 %v5950_v61  ;;  %9186 = vst [vmem:[#allocation50_spill] sm:$0xff] %v5970_v18  ;;  %v5974_v22 = vld [vmem:[#allocation10 + $0x340] sm:$0xff] }
 0x221   :  { %1395 = vmatpush.msrb.mxu2 %v5600_v45  ;;  %1557 = vmatpush.msra.mxu3 %v5954_v40  ;;  %9187 = vst [vmem:[#allocation51_spill] sm:$0xff] %v5974_v22  ;;  %v5978_v45 = vld [vmem:[#allocation10 + $0x348] sm:$0xff] }
 0x222   :  { %1356 = vmatpush.msrb.mxu0 %v5604_v26  ;;  %1518 = vmatpush.msra.mxu1 %v5958_v5  ;;  %9188 = vst [vmem:[#allocation54_spill] sm:$0xff] %v5978_v45  ;;  %v5982_v26 = vld [vmem:[#allocation10 + $0x320] sm:$0xff] }
 0x223   :  { %1396 = vmatpush.msrb.mxu2 %v5608_v30  ;;  %1558 = vmatpush.msra.mxu3 %v5962_v44  ;;  %9189 = vst [vmem:[#allocation55_spill] sm:$0xff] %v5982_v26  ;;  %v9190_v30 = vld [vmem:[#allocation19_spill] sm:$0xff] }
 0x224   :  { %1357 = vmatpush.msrb.mxu0 %v5612_v28  ;;  %1519 = vmatpush.msra.mxu1 %v5966_v47  ;;  %v5986_v28 = vld [vmem:[#allocation10 + $0x328] sm:$0xff] }
 0x225   :  { %1397 = vmatpush.msrb.mxu2 %v5616_v55  ;;  %1559 = vmatpush.msra.mxu3 %v5970_v18  ;;  %9191 = vst [vmem:[#allocation58_spill] sm:$0xff] %v5986_v28  ;;  %v9192_v55 = vld [vmem:[#allocation20_spill] sm:$0xff]  ;;  %v9314_v18 = vld [vmem:[#allocation43_spill] sm:$0xff] }
 0x226   :  { %1358 = vmatpush.msrb.mxu0 %v5620_v16  ;;  %1520 = vmatpush.msra.mxu1 %v5974_v22  ;;  %v5990_v16 = vld [vmem:[#allocation10 + $0x300] sm:$0xff] }
 0x227   :  { %1398 = vmatpush.msrb.mxu2 %v5624_v9  ;;  %1560 = vmatpush.msra.mxu3 %v5978_v45  ;;  %9193 = vst [vmem:[#allocation61_spill] sm:$0xff] %v5990_v16  ;;  %v9194_v9 = vld [vmem:[#allocation21_spill] sm:$0xff] }
 0x228   :  { %1359 = vmatpush.msrb.mxu0 %v5628_v21  ;;  %1521 = vmatpush.msra.mxu1 %v5982_v26  ;;  %v9196_v21 = vld [vmem:[#allocation22_spill] sm:$0xff] }
 0x229   :  { %1399 = vmatpush.msrb.mxu2 %v9190_v30  ;;  %1561 = vmatpush.msra.mxu3 %v5986_v28  ;;  %v9198_v30 = vld [vmem:[#allocation23_spill] sm:$0xff] }
 0x22a   :  { %1360 = vmatpush.msrb.mxu0 %v9192_v55  ;;  %1522 = vmatpush.msra.mxu1 %v5990_v16  ;;  %v6002_v28 = vld [vmem:[#allocation10 + $0x2e8] sm:$0xff]  ;;  %v9200_v55 = vld [vmem:[#allocation24_spill] sm:$0xff]  ;;  %v6006_v16 = vld [vmem:[#allocation10 + $0x2c0] sm:$0xff] }
 0x22b   :  { %1400 = vmatpush.msrb.mxu2 %v9194_v9  ;;  %1562 = vmatpush.msra.mxu3 %v5994_v11  ;;  %9199 = vst [vmem:[#allocation70_spill] sm:$0xff] %v6002_v28  ;;  %v9202_v9 = vld [vmem:[#allocation25_spill] sm:$0xff]  ;;  %v6010_v11 = vld [vmem:[#allocation10 + $0x2c8] sm:$0xff] }
 0x22c   :  { %1361 = vmatpush.msrb.mxu0 %v9196_v21  ;;  %1523 = vmatpush.msra.mxu1 %v5998_v12  ;;  %9201 = vst [vmem:[#allocation71_spill] sm:$0xff] %v6006_v16  ;;  %v9204_v21 = vld [vmem:[#allocation26_spill] sm:$0xff] }
 0x22d   :  { %1401 = vmatpush.msrb.mxu2 %v9198_v30  ;;  %1563 = vmatpush.msra.mxu3 %v6002_v28  ;;  %9203 = vst [vmem:[#allocation74_spill] sm:$0xff] %v6010_v11  ;;  %v6014_v12 = vld [vmem:[#allocation10 + $0x2a0] sm:$0xff]  ;;  %v9206_v30 = vld [vmem:[#allocation27_spill] sm:$0xff] }
 0x22e   :  { %1362 = vmatpush.msrb.mxu0 %v9200_v55  ;;  %1524 = vmatpush.msra.mxu1 %v6006_v16  ;;  %9205 = vst [vmem:[#allocation75_spill] sm:$0xff] %v6014_v12  ;;  %v6020_v55 = vld [vmem:[#allocation10 + $0x2a8] sm:$0xff] }
 0x22f   :  { %1402 = vmatpush.msrb.mxu2 %v9202_v9  ;;  %1564 = vmatpush.msra.mxu3 %v6010_v11  ;;  %9207 = vst [vmem:[#allocation78_spill] sm:$0xff] %v6020_v55  ;;  %v6023_v9 = vld [vmem:[#allocation10 + $0x280] sm:$0xff] }
 0x230   :  { %1363 = vmatpush.msrb.mxu0 %v9204_v21  ;;  %1525 = vmatpush.msra.mxu1 %v6014_v12  ;;  %9208 = vst [vmem:[#allocation81_spill] sm:$0xff] %v6023_v9  ;;  %v6026_v11 = vld [vmem:[#allocation10 + $0x1e0] sm:$0xff]  ;;  %v6029_v21 = vld [vmem:[#allocation10 + $0x288] sm:$0xff] }
 0x231   :  { %1403 = vmatpush.msrb.mxu2 %v9206_v30  ;;  %1364 = vmatmul.f32.vlgmr.msrb.gmra.mxu0 %v5879_v1  ;;  %9209 = vst [vmem:[#allocation86_spill] sm:$0xff] %v6026_v11  ;;  %v6032_v30 = vld [vmem:[#allocation10 + $0x1e8] sm:$0xff] }
 0x232   :  { %1404 = vmatmul.f32.vlgmr.msrb.gmra.mxu2 %v5879_v1  ;;  %1565 = vmatpush.msra.mxu3 %v6020_v55  ;;  %9210 = vst [vmem:[#allocation87_spill] sm:$0xff] %v6029_v21  ;;  %v6035_v1 = vld [vmem:[#allocation10 + $0x260] sm:$0xff] }
 0x233   :  { %1526 = vmatpush.msra.mxu1 %v6023_v9  ;;  %1495 = vmatpush.msra.mxu0 %v6026_v11  ;;  %9211 = vst [vmem:[#allocation90_spill] sm:$0xff] %v6032_v30  ;;  %v6038_v55 = vld [vmem:[#allocation10 + $0x1c0] sm:$0xff]  ;;  %v6041_v9 = vld [vmem:[#allocation10 + $0x268] sm:$0xff] }
 0x234   :  { %1566 = vmatpush.msra.mxu3 %v6029_v21  ;;  %1535 = vmatpush.msra.mxu2 %v6032_v30  ;;  %9212 = vst [vmem:[#allocation91_spill] sm:$0xff] %v6035_v1  ;;  %v6044_v11 = vld [vmem:[#allocation10 + $0x1c8] sm:$0xff]  ;;  %v6047_v21 = vld [vmem:[#allocation10 + $0x240] sm:$0xff] }
 0x235   :  { %1527 = vmatpush.msra.mxu1 %v6035_v1  ;;  %9213 = vst [vmem:[#allocation94_spill] sm:$0xff] %v6038_v55  ;;  %1496 = vmatpush.msra.mxu0 %v6038_v55  ;;  %v6050_v30 = vld [vmem:[#allocation10 + $0x1a0] sm:$0xff]  ;;  %v6053_v1 = vld [vmem:[#allocation10 + $0x248] sm:$0xff] }
 0x236   :  { %9214 = vst [vmem:[#allocation36_spill] sm:$0xff] %v6041_v9  ;;  %1567 = vmatpush.msra.mxu3 %v6041_v9  ;;  %1536 = vmatpush.msra.mxu2 %v6044_v11  ;;  %v6056_v55 = vld [vmem:[#allocation10 + $0x1a8] sm:$0xff]  ;;  %v6059_v9 = vld [vmem:[#allocation10 + $0x220] sm:$0xff] }
 0x237   :  { %9215 = vst [vmem:[#allocation37_spill] sm:$0xff] %v6044_v11  ;;  %1528 = vmatpush.msra.mxu1 %v6047_v21  ;;  %1497 = vmatpush.msra.mxu0 %v6050_v30  ;;  %v6062_v11 = vld [vmem:[#allocation10 + $0x180] sm:$0xff] }
 0x238   :  { %9216 = vst [vmem:[#allocation95_spill] sm:$0xff] %v6047_v21  ;;  %1568 = vmatpush.msra.mxu3 %v6053_v1  ;;  %1537 = vmatpush.msra.mxu2 %v6056_v55  ;;  %v6065_v21 = vld [vmem:[#allocation10 + $0x228] sm:$0xff] }
 0x239   :  { %9217 = vst [vmem:[#allocation44_spill] sm:$0xff] %v6050_v30  ;;  %1529 = vmatpush.msra.mxu1 %v6059_v9  ;;  %1498 = vmatpush.msra.mxu0 %v6062_v11  ;;  %v6068_v30 = vld [vmem:[#allocation10 + $0x188] sm:$0xff] }
 0x23a   :  { %9218 = vst [vmem:[#allocation45_spill] sm:$0xff] %v6053_v1  ;;  %1569 = vmatpush.msra.mxu3 %v6065_v21  ;;  %1538 = vmatpush.msra.mxu2 %v6068_v30  ;;  %v6071_v1 = vld [vmem:[#allocation10 + $0x200] sm:$0xff] }
 0x23b   :  { %9219 = vst [vmem:[#allocation101_spill] sm:$0xff] %v6056_v55  ;;  %1530 = vmatpush.msra.mxu1 %v6071_v1  ;;  %v6074_v55 = vld [vmem:[#allocation10 + $0x160] sm:$0xff] }
 0x23c   :  { %9220 = vst [vmem:[#allocation48_spill] sm:$0xff] %v6059_v9  ;;  %1499 = vmatpush.msra.mxu0 %v6074_v55  ;;  %v6077_v9 = vld [vmem:[#allocation10 + $0x208] sm:$0xff] }
 0x23d   :  { %9221 = vst [vmem:[#allocation105_spill] sm:$0xff] %v6062_v11  ;;  %1570 = vmatpush.msra.mxu3 %v6077_v9  ;;  %v6080_v11 = vld [vmem:[#allocation10 + $0x168] sm:$0xff] }
 0x23e   :  { %9222 = vst [vmem:[#allocation49_spill] sm:$0xff] %v6065_v21  ;;  %1539 = vmatpush.msra.mxu2 %v6080_v11  ;;  %v6083_v21 = vld [vmem:[#allocation10 + $0x3f0] sm:$0xff] }
 0x23f   :  { %9223 = vst [vmem:[#allocation106_spill] sm:$0xff] %v6068_v30  ;;  %1595 = vmatpush.msrb.mxu1 %v6083_v21  ;;  %v6086_v30 = vld [vmem:[#allocation10 + $0x3f8] sm:$0xff] }
 0x240   :  { %9224 = vst [vmem:[#allocation52_spill] sm:$0xff] %v6071_v1  ;;  %1635 = vmatpush.msrb.mxu3 %v6086_v30  ;;  %v6089_v1 = vld [vmem:[#allocation10 + $0x140] sm:$0xff] }
 0x241   :  { %9225 = vst [vmem:[#allocation109_spill] sm:$0xff] %v6074_v55  ;;  %1500 = vmatpush.msra.mxu0 %v6089_v1  ;;  %v6092_v55 = vld [vmem:[#allocation10 + $0x148] sm:$0xff] }
 0x242   :  { %9226 = vst [vmem:[#allocation53_spill] sm:$0xff] %v6077_v9  ;;  %1540 = vmatpush.msra.mxu2 %v6092_v55  ;;  %v6095_v9 = vld [vmem:[#allocation10 + $0x3d0] sm:$0xff] }
 0x243   :  { %9227 = vst [vmem:[#allocation110_spill] sm:$0xff] %v6080_v11  ;;  %1596 = vmatpush.msrb.mxu1 %v6095_v9  ;;  %v6098_v11 = vld [vmem:[#allocation10 + $0x3d8] sm:$0xff] }
 0x244   :  { %9228 = vst [vmem:[#allocation56_spill] sm:$0xff] %v6083_v21  ;;  %1636 = vmatpush.msrb.mxu3 %v6098_v11  ;;  %v6101_v21 = vld [vmem:[#allocation10 + $0x120] sm:$0xff] }
 0x245   :  { %9229 = vst [vmem:[#allocation57_spill] sm:$0xff] %v6086_v30  ;;  %1501 = vmatpush.msra.mxu0 %v6101_v21  ;;  %v6104_v30 = vld [vmem:[#allocation10 + $0x128] sm:$0xff] }
 0x246   :  { %9230 = vst [vmem:[#allocation64_spill] sm:$0xff] %v6089_v1  ;;  %1541 = vmatpush.msra.mxu2 %v6104_v30  ;;  %v6107_v1 = vld [vmem:[#allocation10 + $0x3b0] sm:$0xff] }
 0x247   :  { %9231 = vst [vmem:[#allocation65_spill] sm:$0xff] %v6092_v55  ;;  %1597 = vmatpush.msrb.mxu1 %v6107_v1  ;;  %v6110_v55 = vld [vmem:[#allocation10 + $0x3b8] sm:$0xff] }
 0x248   :  { %9232 = vst [vmem:[#allocation68_spill] sm:$0xff] %v6095_v9  ;;  %1637 = vmatpush.msrb.mxu3 %v6110_v55  ;;  %v6113_v9 = vld [vmem:[#allocation10 + $0x100] sm:$0xff] }
 0x249   :  { %9233 = vst [vmem:[#allocation69_spill] sm:$0xff] %v6098_v11  ;;  %1502 = vmatpush.msra.mxu0 %v6113_v9  ;;  %v6116_v11 = vld [vmem:[#allocation10 + $0x108] sm:$0xff] }
 0x24a   :  { %9234 = vst [vmem:[#allocation72_spill] sm:$0xff] %v6101_v21  ;;  %1542 = vmatpush.msra.mxu2 %v6116_v11  ;;  %v6119_v21 = vld [vmem:[#allocation10 + $0x390] sm:$0xff] }
 0x24b   :  { %9235 = vst [vmem:[#allocation73_spill] sm:$0xff] %v6104_v30  ;;  %1598 = vmatpush.msrb.mxu1 %v6119_v21  ;;  %v6122_v30 = vld [vmem:[#allocation10 + $0x398] sm:$0xff] }
 0x24c   :  { %9236 = vst [vmem:[#allocation76_spill] sm:$0xff] %v6107_v1  ;;  %1638 = vmatpush.msrb.mxu3 %v6122_v30  ;;  %v6125_v1 = vld [vmem:[#allocation10 + $0xe0] sm:$0xff] }
 0x24d   :  { %9237 = vst [vmem:[#allocation77_spill] sm:$0xff] %v6110_v55  ;;  %1503 = vmatpush.msra.mxu0 %v6125_v1  ;;  %v6128_v55 = vld [vmem:[#allocation10 + $0xe8] sm:$0xff] }
 0x24e   :  { %9238 = vst [vmem:[#allocation84_spill] sm:$0xff] %v6113_v9  ;;  %1543 = vmatpush.msra.mxu2 %v6128_v55  ;;  %v6131_v9 = vld [vmem:[#allocation10 + $0x370] sm:$0xff] }
 0x24f   :  { %9239 = vst [vmem:[#allocation85_spill] sm:$0xff] %v6116_v11  ;;  %1599 = vmatpush.msrb.mxu1 %v6131_v9  ;;  %v6134_v11 = vld [vmem:[#allocation10 + $0x378] sm:$0xff] }
 0x250   :  { %9240 = vst [vmem:[#allocation88_spill] sm:$0xff] %v6119_v21  ;;  %1639 = vmatpush.msrb.mxu3 %v6134_v11  ;;  %v6137_v21 = vld [vmem:[#allocation10 + $0xc0] sm:$0xff] }
 0x251   :  { %9241 = vst [vmem:[#allocation89_spill] sm:$0xff] %v6122_v30  ;;  %1504 = vmatpush.msra.mxu0 %v6137_v21  ;;  %v6140_v30 = vld [vmem:[#allocation10 + $0xc8] sm:$0xff] }
 0x252   :  { %9242 = vst [vmem:[#allocation92_spill] sm:$0xff] %v6125_v1  ;;  %1544 = vmatpush.msra.mxu2 %v6140_v30  ;;  %v6143_v1 = vld [vmem:[#allocation10 + $0x350] sm:$0xff] }
 0x253   :  { %9243 = vst [vmem:[#allocation93_spill] sm:$0xff] %v6128_v55  ;;  %1600 = vmatpush.msrb.mxu1 %v6143_v1  ;;  %v6146_v55 = vld [vmem:[#allocation10 + $0x358] sm:$0xff] }
 0x254   :  { %9244 = vst [vmem:[#allocation97_spill] sm:$0xff] %v6131_v9  ;;  %1640 = vmatpush.msrb.mxu3 %v6146_v55  ;;  %v6149_v9 = vld [vmem:[#allocation10 + $0xa0] sm:$0xff] }
 0x255   :  { %9245 = vst [vmem:[#allocation98_spill] sm:$0xff] %v6134_v11  ;;  %1505 = vmatpush.msra.mxu0 %v6149_v9  ;;  %v6152_v11 = vld [vmem:[#allocation10 + $0xa8] sm:$0xff] }
 0x256   :  { %9246 = vst [vmem:[#allocation103_spill] sm:$0xff] %v6137_v21  ;;  %1545 = vmatpush.msra.mxu2 %v6152_v11  ;;  %v6155_v21 = vld [vmem:[#allocation10 + $0x330] sm:$0xff] }
 0x257   :  { %9247 = vst [vmem:[#allocation104_spill] sm:$0xff] %v6140_v30  ;;  %1601 = vmatpush.msrb.mxu1 %v6155_v21  ;;  %v6158_v30 = vld [vmem:[#allocation10 + $0x338] sm:$0xff] }
 0x258   :  { %9248 = vst [vmem:[#allocation107_spill] sm:$0xff] %v6143_v1  ;;  %1641 = vmatpush.msrb.mxu3 %v6158_v30  ;;  %v6161_v1 = vld [vmem:[#allocation10 + $0x80] sm:$0xff] }
 0x259   :  { %9249 = vst [vmem:[#allocation108_spill] sm:$0xff] %v6146_v55  ;;  %1506 = vmatpush.msra.mxu0 %v6161_v1  ;;  %v6164_v55 = vld [vmem:[#allocation10 + $0x88] sm:$0xff] }
 0x25a   :  { %9250 = vst [vmem:[#allocation111_spill] sm:$0xff] %v6149_v9  ;;  %1546 = vmatpush.msra.mxu2 %v6164_v55  ;;  %v6167_v9 = vld [vmem:[#allocation10 + $0x310] sm:$0xff] }
 0x25b   :  { %9251 = vst [vmem:[#allocation112_spill] sm:$0xff] %v6152_v11  ;;  %1602 = vmatpush.msrb.mxu1 %v6167_v9  ;;  %v6170_v11 = vld [vmem:[#allocation10 + $0x318] sm:$0xff] }
 0x25c   :  { %9252 = vst [vmem:[#allocation116_spill] sm:$0xff] %v6155_v21  ;;  %1642 = vmatpush.msrb.mxu3 %v6170_v11  ;;  %v6173_v21 = vld [vmem:[#allocation10 + $0x60] sm:$0xff] }
 0x25d   :  { %9253 = vst [vmem:[#allocation117_spill] sm:$0xff] %v6158_v30  ;;  %1507 = vmatpush.msra.mxu0 %v6173_v21  ;;  %v6176_v30 = vld [vmem:[#allocation10 + $0x68] sm:$0xff] }
 0x25e   :  { %9254 = vst [vmem:[#allocation119_spill] sm:$0xff] %v6161_v1  ;;  %1547 = vmatpush.msra.mxu2 %v6176_v30  ;;  %v6179_v1 = vld [vmem:[#allocation10 + $0x2f0] sm:$0xff] }
 0x25f   :  { %9255 = vst [vmem:[#allocation123_spill] sm:$0xff] %v6164_v55  ;;  %1603 = vmatpush.msrb.mxu1 %v6179_v1  ;;  %v6182_v55 = vld [vmem:[#allocation10 + $0x2f8] sm:$0xff] }
 0x260   :  { %9256 = vst [vmem:[#allocation124_spill] sm:$0xff] %v6167_v9  ;;  %1643 = vmatpush.msrb.mxu3 %v6182_v55  ;;  %v6185_v9 = vld [vmem:[#allocation10 + $0x40] sm:$0xff] }
 0x261   :  { %9257 = vst [vmem:[#allocation125_spill] sm:$0xff] %v6170_v11  ;;  %1508 = vmatpush.msra.mxu0 %v6185_v9  ;;  %v6188_v11 = vld [vmem:[#allocation10 + $0x48] sm:$0xff] }
 0x262   :  { %9258 = vst [vmem:[#allocation128_spill] sm:$0xff] %v6173_v21  ;;  %1548 = vmatpush.msra.mxu2 %v6188_v11  ;;  %v6191_v21 = vld [vmem:[#allocation10 + $0x2d0] sm:$0xff] }
 0x263   :  { %9259 = vst [vmem:[#allocation29_spill] sm:$0xff] %v6176_v30  ;;  %1604 = vmatpush.msrb.mxu1 %v6191_v21  ;;  %v6194_v30 = vld [vmem:[#allocation10 + $0x2d8] sm:$0xff] }
 0x264   :  { %9260 = vst [vmem:[#allocation40_spill] sm:$0xff] %v6179_v1  ;;  %1644 = vmatpush.msrb.mxu3 %v6194_v30  ;;  %v6197_v1 = vld [vmem:[#allocation10 + $0x20] sm:$0xff] }
 0x265   :  { %9261 = vst [vmem:[#allocation28_spill] sm:$0xff] %v6182_v55  ;;  %1509 = vmatpush.msra.mxu0 %v6197_v1  ;;  %v6200_v55 = vld [vmem:[#allocation10 + $0x28] sm:$0xff] }
 0x266   :  { %9262 = vst [vmem:[#allocation39_spill] sm:$0xff] %v6185_v9  ;;  %1549 = vmatpush.msra.mxu2 %v6200_v55  ;;  %v6203_v9 = vld [vmem:[#allocation10 + $0x2b0] sm:$0xff] }
 0x267   :  { %9263 = vst [vmem:[#allocation19_spill] sm:$0xff] %v6188_v11  ;;  %1605 = vmatpush.msrb.mxu1 %v6203_v9  ;;  %v6206_v11 = vld [vmem:[#allocation10 + $0x2b8] sm:$0xff] }
 0x268   :  { %9264 = vst [vmem:[#allocation20_spill] sm:$0xff] %v6191_v21  ;;  %1645 = vmatpush.msrb.mxu3 %v6206_v11  ;;  %v6209_v21 = vld [vmem:[#allocation10] sm:$0xff] }
 0x269   :  { %9265 = vst [vmem:[#allocation21_spill] sm:$0xff] %v6194_v30  ;;  %1510 = vmatpush.msra.mxu0 %v6209_v21  ;;  %v6212_v30 = vld [vmem:[#allocation10 + $0x8] sm:$0xff] }
 0x26a   :  { %9266 = vst [vmem:[#allocation22_spill] sm:$0xff] %v6197_v1  ;;  %1550 = vmatpush.msra.mxu2 %v6212_v30  ;;  %v6215_v1 = vld [vmem:[#allocation10 + $0x290] sm:$0xff] }
 0x26b   :  { %9267 = vst [vmem:[#allocation23_spill] sm:$0xff] %v6200_v55  ;;  %1606 = vmatpush.msrb.mxu1 %v6215_v1  ;;  %v6218_v55 = vld [vmem:[#allocation10 + $0x298] sm:$0xff] }
 0x26c   :  { %9268 = vst [vmem:[#allocation24_spill] sm:$0xff] %v6203_v9  ;;  %1646 = vmatpush.msrb.mxu3 %v6218_v55  ;;  %v6221_v9 = vld [vmem:[#allocation10 + $0x1f0] sm:$0xff] }
 0x26d   :  { %9269 = vst [vmem:[#allocation25_spill] sm:$0xff] %v6206_v11  ;;  %1575 = vmatpush.msrb.mxu0 %v6221_v9  ;;  %v6224_v11 = vld [vmem:[#allocation10 + $0x1f8] sm:$0xff] }
 0x26e   :  { %9270 = vst [vmem:[#allocation26_spill] sm:$0xff] %v6209_v21  ;;  %1615 = vmatpush.msrb.mxu2 %v6224_v11  ;;  %v6227_v21 = vld [vmem:[#allocation10 + $0x270] sm:$0xff] }
 0x26f   :  { %9271 = vst [vmem:[#allocation27_spill] sm:$0xff] %v6212_v30  ;;  %1607 = vmatpush.msrb.mxu1 %v6227_v21  ;;  %v6230_v30 = vld [vmem:[#allocation10 + $0x278] sm:$0xff] }
 0x270   :  { %9272 = vst [vmem:[#allocation133_spill] sm:$0xff] %v6215_v1  ;;  %1647 = vmatpush.msrb.mxu3 %v6230_v30  ;;  %v6233_v1 = vld [vmem:[#allocation10 + $0x1d0] sm:$0xff] }
 0x271   :  { %9273 = vst [vmem:[#allocation134_spill] sm:$0xff] %v6218_v55  ;;  %1576 = vmatpush.msrb.mxu0 %v6233_v1  ;;  %v6236_v55 = vld [vmem:[#allocation10 + $0x1d8] sm:$0xff] }
 0x272   :  { %9274 = vst [vmem:[#allocation135_spill] sm:$0xff] %v6221_v9  ;;  %1616 = vmatpush.msrb.mxu2 %v6236_v55  ;;  %v6239_v9 = vld [vmem:[#allocation10 + $0x250] sm:$0xff] }
 0x273   :  { %9275 = vst [vmem:[#allocation136_spill] sm:$0xff] %v6224_v11  ;;  %1608 = vmatpush.msrb.mxu1 %v6239_v9  ;;  %v6242_v11 = vld [vmem:[#allocation10 + $0x258] sm:$0xff] }
 0x274   :  { %9276 = vst [vmem:[#allocation137_spill] sm:$0xff] %v6227_v21  ;;  %1648 = vmatpush.msrb.mxu3 %v6242_v11  ;;  %v6245_v21 = vld [vmem:[#allocation10 + $0x1b0] sm:$0xff] }
 0x275   :  { %9277 = vst [vmem:[#allocation138_spill] sm:$0xff] %v6230_v30  ;;  %1577 = vmatpush.msrb.mxu0 %v6245_v21  ;;  %v6248_v30 = vld [vmem:[#allocation10 + $0x1b8] sm:$0xff] }
 0x276   :  { %9278 = vst [vmem:[#allocation139_spill] sm:$0xff] %v6233_v1  ;;  %1617 = vmatpush.msrb.mxu2 %v6248_v30  ;;  %v6251_v1 = vld [vmem:[#allocation10 + $0x230] sm:$0xff] }
 0x277   :  { %9279 = vst [vmem:[#allocation140_spill] sm:$0xff] %v6236_v55  ;;  %1609 = vmatpush.msrb.mxu1 %v6251_v1  ;;  %v6254_v55 = vld [vmem:[#allocation10 + $0x238] sm:$0xff] }
 0x278   :  { %9280 = vst [vmem:[#allocation141_spill] sm:$0xff] %v6239_v9  ;;  %1649 = vmatpush.msrb.mxu3 %v6254_v55  ;;  %v6257_v9 = vld [vmem:[#allocation10 + $0x190] sm:$0xff] }
 0x279   :  { %9281 = vst [vmem:[#allocation142_spill] sm:$0xff] %v6242_v11  ;;  %1578 = vmatpush.msrb.mxu0 %v6257_v9  ;;  %v6260_v11 = vld [vmem:[#allocation10 + $0x198] sm:$0xff] }
 0x27a   :  { %9282 = vst [vmem:[#allocation143_spill] sm:$0xff] %v6245_v21  ;;  %1618 = vmatpush.msrb.mxu2 %v6260_v11  ;;  %v6263_v21 = vld [vmem:[#allocation10 + $0x210] sm:$0xff] }
 0x27b   :  { %9283 = vst [vmem:[#allocation144_spill] sm:$0xff] %v6248_v30  ;;  %1610 = vmatpush.msrb.mxu1 %v6263_v21  ;;  %v6266_v30 = vld [vmem:[#allocation10 + $0x218] sm:$0xff]  ;;  %v1202_v16 = vpop.f32.mrf.mxu3 }
 0x27c   :  { %9284 = vst [vmem:[#allocation145_spill] sm:$0xff] %v6251_v1  ;;  %1650 = vmatpush.msrb.mxu3 %v6266_v30  ;;  %v6269_v1 = vld [vmem:[#allocation10 + $0x170] sm:$0xff] }
 0x27d   :  { %9285 = vst [vmem:[#allocation146_spill] sm:$0xff] %v6254_v55  ;;  %1579 = vmatpush.msrb.mxu0 %v6269_v1  ;;  %v6272_v55 = vld [vmem:[#allocation10 + $0x178] sm:$0xff] }
 0x27e   :  { %9286 = vst [vmem:[#allocation147_spill] sm:$0xff] %v6257_v9  ;;  %1619 = vmatpush.msrb.mxu2 %v6272_v55  ;;  %v6275_v9 = vld [vmem:[#allocation10 + $0x150] sm:$0xff] }
 0x27f   :  { %9287 = vst [vmem:[#allocation148_spill] sm:$0xff] %v6260_v11  ;;  %1580 = vmatpush.msrb.mxu0 %v6275_v9  ;;  %v6278_v11 = vld [vmem:[#allocation10 + $0x158] sm:$0xff] }
 0x280   :  { %9288 = vst [vmem:[#allocation149_spill] sm:$0xff] %v6263_v21  ;;  %1620 = vmatpush.msrb.mxu2 %v6278_v11  ;;  %v6281_v21 = vld [vmem:[#allocation10 + $0x130] sm:$0xff] }
 0x281   :  { %9289 = vst [vmem:[#allocation150_spill] sm:$0xff] %v6266_v30  ;;  %1581 = vmatpush.msrb.mxu0 %v6281_v21  ;;  %v6284_v30 = vld [vmem:[#allocation10 + $0x138] sm:$0xff] }
 0x282   :  { %9290 = vst [vmem:[#allocation151_spill] sm:$0xff] %v6269_v1  ;;  %1621 = vmatpush.msrb.mxu2 %v6284_v30  ;;  %v6287_v1 = vld [vmem:[#allocation10 + $0x110] sm:$0xff] }
 0x283   :  { %9291 = vst [vmem:[#allocation152_spill] sm:$0xff] %v6272_v55  ;;  %1582 = vmatpush.msrb.mxu0 %v6287_v1  ;;  %v6290_v55 = vld [vmem:[#allocation10 + $0x118] sm:$0xff]  ;;  %v1282_v5 = vpop.f32.mrf.mxu3 }
 0x284   :  { %9292 = vst [vmem:[#allocation153_spill] sm:$0xff] %v6275_v9  ;;  %1622 = vmatpush.msrb.mxu2 %v6290_v55  ;;  %v6293_v9 = vld [vmem:[#allocation10 + $0xf0] sm:$0xff] }
 0x285   :  { %9293 = vst [vmem:[#allocation154_spill] sm:$0xff] %v6278_v11  ;;  %1583 = vmatpush.msrb.mxu0 %v6293_v9  ;;  %v6296_v11 = vld [vmem:[#allocation10 + $0xf8] sm:$0xff] }
 0x286   :  { %9294 = vst [vmem:[#allocation155_spill] sm:$0xff] %v6281_v21  ;;  %1623 = vmatpush.msrb.mxu2 %v6296_v11  ;;  %v6299_v21 = vld [vmem:[#allocation10 + $0xd0] sm:$0xff] }
 0x287   :  { %9295 = vst [vmem:[#allocation156_spill] sm:$0xff] %v6284_v30  ;;  %1584 = vmatpush.msrb.mxu0 %v6299_v21  ;;  %v6302_v30 = vld [vmem:[#allocation10 + $0xd8] sm:$0xff] }
 0x288   :  { %9296 = vst [vmem:[#allocation157_spill] sm:$0xff] %v6287_v1  ;;  %1624 = vmatpush.msrb.mxu2 %v6302_v30  ;;  %v6305_v1 = vld [vmem:[#allocation10 + $0xb0] sm:$0xff] }
 0x289   :  { %9297 = vst [vmem:[#allocation158_spill] sm:$0xff] %v6290_v55  ;;  %1585 = vmatpush.msrb.mxu0 %v6305_v1  ;;  %v6308_v55 = vld [vmem:[#allocation10 + $0xb8] sm:$0xff] }
 0x28a   :  { %9298 = vst [vmem:[#allocation159_spill] sm:$0xff] %v6293_v9  ;;  %1625 = vmatpush.msrb.mxu2 %v6308_v55  ;;  %v6311_v9 = vld [vmem:[#allocation10 + $0x90] sm:$0xff] }
 0x28b   :  { %9299 = vst [vmem:[#allocation160_spill] sm:$0xff] %v6296_v11  ;;  %1586 = vmatpush.msrb.mxu0 %v6311_v9  ;;  %v6314_v11 = vld [vmem:[#allocation10 + $0x98] sm:$0xff] }
 0x28c   :  { %9300 = vst [vmem:[#allocation161_spill] sm:$0xff] %v6299_v21  ;;  %1626 = vmatpush.msrb.mxu2 %v6314_v11  ;;  %v6317_v21 = vld [vmem:[#allocation10 + $0x70] sm:$0xff] }
 0x28d   :  { %9301 = vst [vmem:[#allocation162_spill] sm:$0xff] %v6302_v30  ;;  %1587 = vmatpush.msrb.mxu0 %v6317_v21  ;;  %v6320_v30 = vld [vmem:[#allocation10 + $0x78] sm:$0xff]  ;;  %v1142_v12 = vpop.f32.mrf.mxu0 }
 0x28e   :  { %9302 = vst [vmem:[#allocation163_spill] sm:$0xff] %v6305_v1  ;;  %1627 = vmatpush.msrb.mxu2 %v6320_v30  ;;  %v6323_v1 = vld [vmem:[#allocation10 + $0x50] sm:$0xff] }
 0x28f   :  { %9303 = vst [vmem:[#allocation164_spill] sm:$0xff] %v6308_v55  ;;  %1588 = vmatpush.msrb.mxu0 %v6323_v1  ;;  %v6326_v55 = vld [vmem:[#allocation10 + $0x58] sm:$0xff] }
 0x290   :  { %9304 = vst [vmem:[#allocation165_spill] sm:$0xff] %v6311_v9  ;;  %1628 = vmatpush.msrb.mxu2 %v6326_v55  ;;  %v6329_v9 = vld [vmem:[#allocation10 + $0x30] sm:$0xff] }
 0x291   :  { %9305 = vst [vmem:[#allocation166_spill] sm:$0xff] %v6314_v11  ;;  %1589 = vmatpush.msrb.mxu0 %v6329_v9  ;;  %v6332_v11 = vld [vmem:[#allocation10 + $0x38] sm:$0xff] }
 0x292   :  { %9306 = vst [vmem:[#allocation167_spill] sm:$0xff] %v6317_v21  ;;  %1629 = vmatpush.msrb.mxu2 %v6332_v11  ;;  %v6335_v21 = vld [vmem:[#allocation10 + $0x10] sm:$0xff] }
 0x293   :  { %9307 = vst [vmem:[#allocation168_spill] sm:$0xff] %v6320_v30  ;;  %1590 = vmatpush.msrb.mxu0 %v6335_v21  ;;  %v6338_v30 = vld [vmem:[#allocation10 + $0x18] sm:$0xff]  ;;  %v1182_v45 = vpop.f32.mrf.mxu2 }
 0x294   :  { %9308 = vst [vmem:[#allocation169_spill] sm:$0xff] %v6323_v1  ;;  %1630 = vmatpush.msrb.mxu2 %v6338_v30  ;;  %v1162_v1 = vpop.f32.mrf.mxu1 }
 0x295   :  { %9309 = vst [vmem:[#allocation170_spill] sm:$0xff] %v6326_v55  ;;  %v1143_v55 = vadd.f32 %v1142_v12, %v5745_v7 }
 0x296   :  { %9310 = vst [vmem:[#allocation171_spill] sm:$0xff] %v6329_v9 }
 0x297   :  { %9311 = vst [vmem:[#allocation172_spill] sm:$0xff] %v6332_v11  ;;  %v1163_v26 = vadd.f32 %v1162_v1, %v1143_v55  ;;  %v1183_v11 = vadd.f32 %v1182_v45, %v5748_v24 }
 0x298   :  { %9312 = vst [vmem:[#allocation173_spill] sm:$0xff] %v6335_v21  ;;  %v509_v21 = vadd.f32 %v9314_v18, %v9168_v41  ;;  %v9315_v18 = vld [vmem:[#allocation60_spill] sm:$0xff] }
 0x299   :  { %9313 = vst [vmem:[#allocation174_spill] sm:$0xff] %v6338_v30  ;;  %v3674_v9 = vmul.f32 -1.442695, %v1163_v26  ;;  %v1203_v22 = vadd.f32 %v1202_v16, %v1183_v11  ;;  %v591_v11 = vadd.f32 %v9315_v18, %v5425_v32 }
 0x29b   :  { %3774 = vpow2.f32 %v3674_v9  ;;  %v3675_v44 = vmul.f32 -1.442695, %v1203_v22  ;;  %v1222_v9 = vpop.f32.mrf.mxu0 }
 0x29c   :  { %v1242_v28 = vpop.f32.mrf.mxu1  ;;  %v1262_v12 = vpop.f32.mrf.mxu2 }
 0x29d   :  { %3776 = vpow2.f32 %v3675_v44  ;;  %v1263_v26 = vadd.f32 %v1262_v12, %v5753_v17  ;;  %v1223_v44 = vadd.f32 %v1222_v9, %v5758_v13 }
 0x29e   :  { %v1425_v16 = vpop.f32.mrf.mxu3 }
 0x29f   :  { %v1283_v1 = vadd.f32 %v1282_v5, %v1263_v26  ;;  %v1243_v12 = vadd.f32 %v1242_v28, %v1223_v44 }
 0x2a1   :  { %v3775_v40 = vpop.eup %3774  ;;  %v3676_v22 = vmul.f32 -1.442695, %v1283_v1 }
 0x2a2   :  { %v1288_v61 = vadd.f32 1.0, %v3775_v40 }
 0x2a3   :  { %v3777_v55 = vpop.eup %3776 }
 0x2a4   :  { %v1385_v47 = vpop.f32.mrf.mxu1  ;;  %3778 = vrcp.f32 %v1288_v61  ;;  %v1307_v45 = vadd.f32 1.0, %v3777_v55  ;;  %v1300_v1 = vand.u32 2147483648, %v1288_v61  ;;  %vm1294_vm7 = vweird.f32 %v1288_v61 }
 0x2a5   :  { %v1429_v30 = vadd.f32 %v1385_v47, %v509_v21  ;;  %v1431_v47 = vadd.f32 %v1425_v16, %v591_v11  ;;  %v1298_v9 = vand.u32 2147483647, %v1288_v61  ;;  %v9316_v16 = vld [vmem:[#allocation42_spill] sm:$0xff] }
 0x2a6   :  { %v468_v11 = vadd.f32 %v9316_v16, %v9173_v42  ;;  %v1319_v28 = vand.u32 2147483648, %v1307_v45  ;;  %v1317_v44 = vand.u32 2147483647, %v1307_v45  ;;  %vm1313_vm10 = vweird.f32 %v1307_v45 }
 0x2a7   :  { %v3678_v7 = vmul.f32 -1.442695, %v1429_v30  ;;  %v3679_v24 = vmul.f32 -1.442695, %v1431_v47  ;;  %vm1299_vm11 = vcmp.eq.f32.partialorder %v1298_v9, 8.507059e+37 }
 0x2a8   :  { %vm1318_vm13 = vcmp.eq.f32.partialorder %v1317_v44, 8.507059e+37 }
 0x2a9   :  { %3780 = vpow2.f32 %v3678_v7 }
 0x2aa   :  { %v3779_v41 = vpop.eup %3778  ;;  %3782 = vrcp.f32 %v1307_v45 }
 0x2ab   :  { %v1290_v40 = vmul.f32 %v3779_v41, %v1288_v61  ;;  %3784 = vpow2.f32 %v3676_v22  ;;  %vm1295_vm6 = vweird.f32 %v3779_v41  ;;  %v1301_v61 = vor.u32 1.1754944e-38, %v1300_v1 }
 0x2ac   :  { %3786 = vtanh.f32 %v1243_v12  ;;  %vm6353_vm8 = vmor %vm1294_vm7, %vm1295_vm6  ;;  %v1320_v12 = vor.u32 1.1754944e-38, %v1319_v28 }
 0x2ad   :  { %v1291_v21 = vsub.f32 1.0, %v1290_v40  ;;  %3788 = vpow2.f32 %v3679_v24 }
 0x2ae   :  { %v1365_v47 = vpop.f32.mrf.mxu0 }
 0x2af   :  { %v3781_v30 = vpop.eup %3780  ;;  %v1292_v17 = vmul.f32 %v3779_v41, %v1291_v21  ;;  %v1428_v24 = vadd.f32 %v1365_v47, %v468_v11 }
 0x2b0   :  { %v3783_v5 = vpop.eup %3782  ;;  %v6349_v14 = vadd.f32 1.0, %v3781_v30 }
 0x2b1   :  { %v3785_v26 = vpop.eup %3784  ;;  %v1309_v7 = vmul.f32 %v3783_v5, %v1307_v45  ;;  %v1293_v55 = vadd.f32 %v3779_v41, %v1292_v17  ;;  %vm1314_vm9 = vweird.f32 %v3783_v5 }
 0x2b2   :  { %v1327_v18 = vadd.f32 1.0, %v3785_v26  ;;  %v3787_v30 = vpop.eup %3786  ;;  %vm1315_vm12 = vmor %vm1313_vm10, %vm1314_vm9  ;;  %vm1460_vm3 = vweird.f32 %v6349_v14 }
 0x2b3   :  { %v1310_v32 = vsub.f32 1.0, %v1309_v7  ;;  %v1297_v40 = vsel %vm6353_vm8, %v3779_v41, %v1293_v55  ;;  %v3677_v7 = vmul.f32 -1.442695, %v1428_v24  ;;  %v3789_v16 = vpop.eup %3788 }
 0x2b4   :  { %3790 = vrcp.f32 %v1327_v18  ;;  %v1302_v26 = vsel %vm1299_vm11, %v1301_v61, %v1297_v40  ;;  %v6367_v22 = vadd.f32 1.0, %v3789_v16  ;;  %v1339_v44 = vand.u32 2147483648, %v1327_v18 }
 0x2b5   :  { %v1311_v17 = vmul.f32 %v3783_v5, %v1310_v32  ;;  %3792 = vrcp.f32 %v6349_v14  ;;  %v1344_v1 = vmul.f32 %v3787_v30, %v1302_v26  ;;  %vm1333_vm15 = vweird.f32 %v1327_v18 }
 0x2b6   :  { %3794 = vpow2.f32 %v3677_v7  ;;  %v9319_v7 = vld [vmem:[#allocation59_spill] sm:$0xff]  ;;  %vm1480_vm11 = vweird.f32 %v6367_v22 }
 0x2b7   :  { %v1312_v21 = vadd.f32 %v3783_v5, %v1311_v17  ;;  %v1337_v17 = vand.u32 2147483647, %v1327_v18  ;;  %v550_v16 = vadd.f32 %v9319_v7, %v5482_v51  ;;  %v9328_v7 = vld [vmem:[#allocation50_spill] sm:$0xff] }
 0x2b9   :  { %v1316_v42 = vsel %vm1315_vm12, %v3783_v5, %v1312_v21  ;;  %vm1338_vm1 = vcmp.eq.f32.partialorder %v1337_v17, 8.507059e+37 }
 0x2ba   :  { %v3791_v32 = vpop.eup %3790  ;;  %v1321_v13 = vsel %vm1318_vm13, %v1320_v12, %v1316_v42  ;;  %v1405_v12 = vpop.f32.mrf.mxu2 }
 0x2bb   :  { %v6360_v41 = vpop.eup %3792  ;;  %v1343_v55 = vmul.f32 %v1321_v13, %v5778_v2  ;;  %v1329_v11 = vmul.f32 %v3791_v32, %v1327_v18  ;;  %vm1334_vm14 = vweird.f32 %v3791_v32  ;;  %v1340_v2 = vor.u32 1.1754944e-38, %v1339_v44 }
 0x2bc   :  { %v1456_v28 = vmul.f32 %v6360_v41, %v6349_v14  ;;  %v3795_v42 = vpop.eup %3794  ;;  %vm1335_vm0 = vmor %vm1333_vm15, %vm1334_vm14  ;;  %v1430_v18 = vadd.f32 %v1405_v12, %v550_v16  ;;  %vm1461_vm2 = vweird.f32 %v6360_v41  ;;  %v9327_v12 = vld [vmem:[#allocation47_spill] sm:$0xff]  ;;  %v6511_v16 = vld [vmem:[#allocation7 + $0xa0] sm:$0xff] }
 0x2bd   :  { %v6363_v45 = vadd.f32 %v1344_v1, %v1343_v55  ;;  %v1330_v9 = vsub.f32 1.0, %v1329_v11  ;;  %v1435_v40 = vadd.f32 1.0, %v3795_v42  ;;  %vm6387_vm4 = vmor %vm1460_vm3, %vm1461_vm2 }
 0x2be   :  { %v1457_v13 = vsub.f32 1.0, %v1456_v28 }
 0x2bf   :  { %3796 = vtanh.f32 %v6363_v45  ;;  %v1331_v5 = vmul.f32 %v3791_v32, %v1330_v9  ;;  %v1466_v9 = vand.u32 2147483648, %v6349_v14  ;;  %v1447_v44 = vand.u32 2147483648, %v1435_v40 }
 0x2c0   :  { %3798 = vrcp.f32 %v6367_v22  ;;  %v1458_v30 = vmul.f32 %v6360_v41, %v1457_v13  ;;  %vm1441_vm6 = vweird.f32 %v1435_v40 }
 0x2c1   :  { %v1332_v47 = vadd.f32 %v3791_v32, %v1331_v5  ;;  %3800 = vrcp.f32 %v1435_v40  ;;  %v1467_v17 = vor.u32 1.1754944e-38, %v1466_v9  ;;  %v6523_v9 = vld [vmem:[#allocation7 + $0x90] sm:$0xff] }
 0x2c2   :  { %v1459_v11 = vadd.f32 %v6360_v41, %v1458_v30  ;;  %3802 = vtanh.f32 %v1430_v18  ;;  %v6503_v30 = vld [vmem:[#allocation7 + $0xc0] sm:$0xff] }
 0x2c3   :  { %v1336_v61 = vsel %vm1335_vm0, %v3791_v32, %v1332_v47  ;;  %v9330_v18 = vld [vmem:[#allocation54_spill] sm:$0xff] }
 0x2c4   :  { %v1341_v21 = vsel %vm1338_vm1, %v1340_v2, %v1336_v61  ;;  %v6495_v61 = vld [vmem:[#allocation7 + $0xe0] sm:$0xff] }
 0x2c5   :  { %v3797_v24 = vpop.eup %3796 }
 0x2c6   :  { %v1347_v26 = vmul.f32 %v3797_v24, %v1341_v21  ;;  %v6374_v55 = vpop.eup %3798  ;;  %v6499_v24 = vld [vmem:[#allocation7 + $0xf0] sm:$0xff]  ;;  %v9326_v21 = vld [vmem:[#allocation46_spill] sm:$0xff] }
 0x2c7   :  { %v3801_v1 = vpop.eup %3800  ;;  %v1476_v28 = vmul.f32 %v6374_v55, %v6367_v22  ;;  %vm1481_vm10 = vweird.f32 %v6374_v55 }
 0x2c8   :  { %1531 = vmatmul.f32.vlgmr.msra.gmra.mxu1 %v1347_v26  ;;  %1571 = vmatmul.f32.vlgmr.msra.gmra.mxu3 %v1347_v26  ;;  %v1437_v32 = vmul.f32 %v3801_v1, %v1435_v40  ;;  %vm1442_vm5 = vweird.f32 %v3801_v1  ;;  %vm1482_vm12 = vmor %vm1480_vm11, %vm1481_vm10 }
 0x2c9   :  { %1738 = vmatpush.msra.mxu1 %v5796_v33  ;;  %1778 = vmatpush.msra.mxu3 %v5799_v36  ;;  %v1464_v33 = vand.u32 2147483647, %v6349_v14  ;;  %v1477_v47 = vsub.f32 1.0, %v1476_v28  ;;  %vm1443_vm8 = vmor %vm1441_vm6, %vm1442_vm5  ;;  %v9332_v28 = vld [vmem:[#allocation58_spill] sm:$0xff]  ;;  %v6531_v36 = vld [vmem:[#allocation7 + $0x70] sm:$0xff] }
 0x2ca   :  { %v1438_v5 = vsub.f32 1.0, %v1437_v32  ;;  %v6519_v32 = vld [vmem:[#allocation7 + $0x80] sm:$0xff] }
 0x2cb   :  { %1739 = vmatpush.msra.mxu1 %v5809_v50  ;;  %1779 = vmatpush.msra.mxu3 %v5812_v29  ;;  %v1445_v50 = vand.u32 2147483647, %v1435_v40  ;;  %v1463_v29 = vsel %vm6387_vm4, %v6360_v41, %v1459_v11  ;;  %vm1465_vm7 = vcmp.eq.f32.partialorder %v1464_v33, 8.507059e+37  ;;  %v3803_v41 = vpop.eup %3802  ;;  %v1478_v2 = vmul.f32 %v6374_v55, %v1477_v47  ;;  %v9331_v11 = vld [vmem:[#allocation55_spill] sm:$0xff]  ;;  %v9333_v33 = vld [vmem:[#allocation61_spill] sm:$0xff] }
 0x2cc   :  { %v1439_v42 = vmul.f32 %v3801_v1, %v1438_v5  ;;  %v6527_v5 = vld [vmem:[#allocation7 + $0x60] sm:$0xff] }
 0x2cd   :  { %1740 = vmatpush.msra.mxu1 %v5819_v27  ;;  %1780 = vmatpush.msra.mxu3 %v5822_v0  ;;  %v1448_v27 = vor.u32 1.1754944e-38, %v1447_v44  ;;  %v1468_v0 = vsel %vm1465_vm7, %v1467_v17, %v1463_v29  ;;  %vm1446_vm9 = vcmp.eq.f32.partialorder %v1445_v50, 8.507059e+37  ;;  %v9334_v44 = vld [vmem:[#allocation66_spill] sm:$0xff]  ;;  %v9335_v50 = vld [vmem:[#allocation67_spill] sm:$0xff] }
 0x2ce   :  { %v1440_v14 = vadd.f32 %v3801_v1, %v1439_v42  ;;  %v6535_v42 = vld [vmem:[#allocation7 + $0x40] sm:$0xff]  ;;  %v6539_v29 = vld [vmem:[#allocation7 + $0x50] sm:$0xff] }
 0x2cf   :  { %1741 = vmatpush.msra.mxu1 %v5826_v53  ;;  %1781 = vmatpush.msra.mxu3 %v5829_v57  ;;  %v1490_v57 = vmul.f32 %v1468_v0, %v5846_v48  ;;  %v9336_v17 = vld [vmem:[#allocation70_spill] sm:$0xff] }
 0x2d0   :  { %1611 = vmatmul.f32.vlgmr.msrb.gmra.mxu1 %v1347_v26  ;;  %1651 = vmatmul.f32.vlgmr.msrb.gmra.mxu3 %v1347_v26  ;;  %v1444_v13 = vsel %vm1443_vm8, %v3801_v1, %v1440_v14  ;;  %v6507_v26 = vld [vmem:[#allocation7 + $0xd0] sm:$0xff]  ;;  %v6543_v47 = vld [vmem:[#allocation7 + $0x20] sm:$0xff] }
 0x2d1   :  { %1742 = vmatpush.msra.mxu1 %v5833_v19  ;;  %1782 = vmatpush.msra.mxu3 %v5836_v20  ;;  %v1449_v53 = vsel %vm1446_vm9, %v1448_v27, %v1444_v13  ;;  %v1479_v20 = vadd.f32 %v6374_v55, %v1478_v2  ;;  %v6515_v1 = vld [vmem:[#allocation7 + $0xb0] sm:$0xff]  ;;  %v9338_v0 = vld [vmem:[#allocation74_spill] sm:$0xff] }
 0x2d2   :  { %v1491_v40 = vmul.f32 %v3803_v41, %v1449_v53  ;;  %v9337_v14 = vld [vmem:[#allocation71_spill] sm:$0xff]  ;;  %v6551_v13 = vld [vmem:[#allocation7] sm:$0xff] }
 0x2d3   :  { %1743 = vmatpush.msra.mxu1 %v5840_v46  ;;  %1783 = vmatpush.msra.mxu3 %v5843_v56  ;;  %v1486_v46 = vand.u32 2147483648, %v6367_v22  ;;  %v1484_v56 = vand.u32 2147483647, %v6367_v22  ;;  %v1483_v48 = vsel %vm1482_vm12, %v6374_v55, %v1479_v20  ;;  %v6491_v22 = vld [vmem:[#allocation7 + $0x110] sm:$0xff]  ;;  %v9340_v53 = vld [vmem:[#allocation78_spill] sm:$0xff] }
 0x2d4   :  { %v6406_v19 = vadd.f32 %v1491_v40, %v1490_v57  ;;  %v9329_v55 = vld [vmem:[#allocation51_spill] sm:$0xff]  ;;  %v9341_v57 = vld [vmem:[#allocation81_spill] sm:$0xff]  ;;  %v9342_v40 = vld [vmem:[#allocation86_spill] sm:$0xff] }
 0x2d5   :  { %1744 = vmatpush.msra.mxu1 %v5850_v49  ;;  %1784 = vmatpush.msra.mxu3 %v5853_v39  ;;  %v1487_v49 = vor.u32 1.1754944e-38, %v1486_v46  ;;  %vm1485_vm13 = vcmp.eq.f32.partialorder %v1484_v56, 8.507059e+37  ;;  %v6547_v27 = vld [vmem:[#allocation7 + $0x30] sm:$0xff]  ;;  %v9344_v46 = vld [vmem:[#allocation90_spill] sm:$0xff] }
 0x2d6   :  { %3804 = vtanh.f32 %v6406_v19  ;;  %v9339_v41 = vld [vmem:[#allocation75_spill] sm:$0xff] }
 0x2d7   :  { %1745 = vmatpush.msra.mxu1 %v5860_v23  ;;  %1785 = vmatpush.msra.mxu3 %v5863_v63  ;;  %v1488_v23 = vsel %vm1485_vm13, %v1487_v49, %v1483_v48  ;;  %v6555_v2 = vld [vmem:[#allocation7 + $0x10] sm:$0xff]  ;;  %v9346_v48 = vld [vmem:[#allocation94_spill] sm:$0xff] }
 0x2d8   :  { %v9343_v20 = vld [vmem:[#allocation87_spill] sm:$0xff]  ;;  %v9347_v49 = vld [vmem:[#allocation36_spill] sm:$0xff] }
 0x2d9   :  { %1746 = vmatpush.msra.mxu1 %v5867_v58  ;;  %1786 = vmatpush.msra.mxu3 %v5870_v62  ;;  %v6429_v58 = vld [vmem:[#allocation7 + $0x1e0] sm:$0xff]  ;;  %v6432_v62 = vld [vmem:[#allocation7 + $0x1f0] sm:$0xff] }
 0x2da   :  { %v9345_v56 = vld [vmem:[#allocation91_spill] sm:$0xff] }
 0x2db   :  { %1747 = vmatpush.msra.mxu1 %v5873_v15  ;;  %1787 = vmatpush.msra.mxu3 %v5876_v8  ;;  %v6437_v15 = vld [vmem:[#allocation7 + $0x1c0] sm:$0xff]  ;;  %v6440_v8 = vld [vmem:[#allocation7 + $0x1d0] sm:$0xff] }
 0x2dc   :  { %v3805_v39 = vpop.eup %3804 }
 0x2dd   :  { %1748 = vmatpush.msra.mxu1 %v5881_v52  ;;  %1788 = vmatpush.msra.mxu3 %v5884_v60  ;;  %v6423_v63 = vmul.f32 %v3805_v39, %v1488_v23  ;;  %v6445_v52 = vld [vmem:[#allocation7 + $0x1a0] sm:$0xff]  ;;  %v6448_v60 = vld [vmem:[#allocation7 + $0x1b0] sm:$0xff] }
 0x2de   :  { %v9348_v39 = vld [vmem:[#allocation37_spill] sm:$0xff]  ;;  %v9349_v23 = vld [vmem:[#allocation95_spill] sm:$0xff] }
 0x2df   :  { %1749 = vmatpush.msra.mxu1 %v5887_v43  ;;  %1789 = vmatpush.msra.mxu3 %v5890_v4  ;;  %v6453_v43 = vld [vmem:[#allocation7 + $0x180] sm:$0xff]  ;;  %v6456_v4 = vld [vmem:[#allocation7 + $0x190] sm:$0xff] }
 0x2e0   :  { %1511 = vmatmul.f32.vlgmr.msra.gmra.mxu0 %v6423_v63  ;;  %1551 = vmatmul.f32.vlgmr.msra.gmra.mxu2 %v6423_v63 }
 0x2e1   :  { %1718 = vmatpush.msra.mxu0 %v6429_v58  ;;  %1758 = vmatpush.msra.mxu2 %v6432_v62 }
 0x2e2   :  { %1750 = vmatpush.msra.mxu1 %v5897_v54  ;;  %1790 = vmatpush.msra.mxu3 %v5900_v25  ;;  %v6463_v54 = vld [vmem:[#allocation7 + $0x160] sm:$0xff]  ;;  %v6467_v25 = vld [vmem:[#allocation7 + $0x170] sm:$0xff] }
 0x2e3   :  { %1719 = vmatpush.msra.mxu0 %v6437_v15  ;;  %1759 = vmatpush.msra.mxu2 %v6440_v8 }
 0x2e4   :  { %1751 = vmatpush.msra.mxu1 %v5905_v6  ;;  %1791 = vmatpush.msra.mxu3 %v5908_v37  ;;  %v6471_v6 = vld [vmem:[#allocation7 + $0x140] sm:$0xff]  ;;  %v6475_v37 = vld [vmem:[#allocation7 + $0x150] sm:$0xff] }
 0x2e5   :  { %1720 = vmatpush.msra.mxu0 %v6445_v52  ;;  %1760 = vmatpush.msra.mxu2 %v6448_v60 }
 0x2e6   :  { %1752 = vmatpush.msra.mxu1 %v5913_v3  ;;  %1792 = vmatpush.msra.mxu3 %v5916_v10  ;;  %v6479_v3 = vld [vmem:[#allocation7 + $0x120] sm:$0xff]  ;;  %v6483_v10 = vld [vmem:[#allocation7 + $0x130] sm:$0xff] }
 0x2e7   :  { %1721 = vmatpush.msra.mxu0 %v6453_v43  ;;  %1761 = vmatpush.msra.mxu2 %v6456_v4 }
 0x2e8   :  { %1753 = vmatpush.msra.mxu1 %v5921_v31  ;;  %1793 = vmatpush.msra.mxu3 %v5924_v34  ;;  %v9322_v31 = vld [vmem:[#allocation34_spill] sm:$0xff] }
 0x2e9   :  { %1591 = vmatmul.f32.vlgmr.msrb.gmra.mxu0 %v6423_v63  ;;  %1631 = vmatmul.f32.vlgmr.msrb.gmra.mxu2 %v6423_v63  ;;  %v6487_v34 = vld [vmem:[#allocation7 + $0x100] sm:$0xff] }
 0x2ea   :  { %1722 = vmatpush.msra.mxu0 %v6463_v54  ;;  %1754 = vmatmul.f32.vlgmr.msra.gmra.mxu1 %v6423_v63 }
 0x2eb   :  { %1762 = vmatpush.msra.mxu2 %v6467_v25  ;;  %1794 = vmatmul.f32.vlgmr.msra.gmra.mxu3 %v6423_v63 }
 0x2ec   :  { %1723 = vmatpush.msra.mxu0 %v6471_v6  ;;  %1885 = vmatpush.msrb.mxu1 %v5934_v35  ;;  %v9323_v35 = vld [vmem:[#allocation35_spill] sm:$0xff] }
 0x2ed   :  { %1763 = vmatpush.msra.mxu2 %v6475_v37  ;;  %1925 = vmatpush.msrb.mxu3 %v5938_v38  ;;  %v9324_v38 = vld [vmem:[#allocation38_spill] sm:$0xff] }
 0x2ee   :  { %1724 = vmatpush.msra.mxu0 %v6479_v3  ;;  %1886 = vmatpush.msrb.mxu1 %v5942_v59  ;;  %v9325_v59 = vld [vmem:[#allocation41_spill] sm:$0xff] }
 0x2ef   :  { %1764 = vmatpush.msra.mxu2 %v6483_v10  ;;  %1926 = vmatpush.msrb.mxu3 %v9322_v31  ;;  %v9351_v31 = vld [vmem:[#allocation45_spill] sm:$0xff] }
 0x2f0   :  { %1725 = vmatpush.msra.mxu0 %v6487_v34  ;;  %1887 = vmatpush.msrb.mxu1 %v9323_v35  ;;  %v9352_v35 = vld [vmem:[#allocation101_spill] sm:$0xff] }
 0x2f1   :  { %1765 = vmatpush.msra.mxu2 %v6491_v22  ;;  %1927 = vmatpush.msrb.mxu3 %v9324_v38  ;;  %v9353_v38 = vld [vmem:[#allocation48_spill] sm:$0xff] }
 0x2f2   :  { %1726 = vmatpush.msra.mxu0 %v6495_v61  ;;  %1888 = vmatpush.msrb.mxu1 %v9325_v59  ;;  %v9354_v59 = vld [vmem:[#allocation105_spill] sm:$0xff] }
 0x2f3   :  { %1766 = vmatpush.msra.mxu2 %v6499_v24  ;;  %1928 = vmatpush.msrb.mxu3 %v9326_v21  ;;  %v9355_v21 = vld [vmem:[#allocation49_spill] sm:$0xff] }
 0x2f4   :  { %1727 = vmatpush.msra.mxu0 %v6503_v30  ;;  %1889 = vmatpush.msrb.mxu1 %v9327_v12  ;;  %v9356_v12 = vld [vmem:[#allocation106_spill] sm:$0xff] }
 0x2f5   :  { %1767 = vmatpush.msra.mxu2 %v6507_v26  ;;  %1929 = vmatpush.msrb.mxu3 %v9328_v7  ;;  %v9357_v7 = vld [vmem:[#allocation52_spill] sm:$0xff] }
 0x2f6   :  { %1728 = vmatpush.msra.mxu0 %v6511_v16  ;;  %1890 = vmatpush.msrb.mxu1 %v9329_v55  ;;  %v9358_v55 = vld [vmem:[#allocation109_spill] sm:$0xff] }
 0x2f7   :  { %1768 = vmatpush.msra.mxu2 %v6515_v1  ;;  %1930 = vmatpush.msrb.mxu3 %v9330_v18  ;;  %v9359_v18 = vld [vmem:[#allocation53_spill] sm:$0xff] }
 0x2f8   :  { %1729 = vmatpush.msra.mxu0 %v6519_v32  ;;  %1891 = vmatpush.msrb.mxu1 %v9331_v11  ;;  %v9360_v11 = vld [vmem:[#allocation110_spill] sm:$0xff] }
 0x2f9   :  { %1769 = vmatpush.msra.mxu2 %v6523_v9  ;;  %1931 = vmatpush.msrb.mxu3 %v9332_v28  ;;  %v9361_v28 = vld [vmem:[#allocation56_spill] sm:$0xff] }
 0x2fa   :  { %1730 = vmatpush.msra.mxu0 %v6527_v5  ;;  %1892 = vmatpush.msrb.mxu1 %v9333_v33  ;;  %v9362_v33 = vld [vmem:[#allocation57_spill] sm:$0xff] }
 0x2fb   :  { %1770 = vmatpush.msra.mxu2 %v6531_v36  ;;  %1932 = vmatpush.msrb.mxu3 %v9334_v44  ;;  %v9363_v44 = vld [vmem:[#allocation64_spill] sm:$0xff] }
 0x2fc   :  { %1731 = vmatpush.msra.mxu0 %v6535_v42  ;;  %1893 = vmatpush.msrb.mxu1 %v9335_v50  ;;  %v9364_v50 = vld [vmem:[#allocation65_spill] sm:$0xff] }
 0x2fd   :  { %1771 = vmatpush.msra.mxu2 %v6539_v29  ;;  %1933 = vmatpush.msrb.mxu3 %v9336_v17  ;;  %v9365_v17 = vld [vmem:[#allocation68_spill] sm:$0xff] }
 0x2fe   :  { %1732 = vmatpush.msra.mxu0 %v6543_v47  ;;  %1894 = vmatpush.msrb.mxu1 %v9337_v14  ;;  %v9366_v14 = vld [vmem:[#allocation69_spill] sm:$0xff] }
 0x2ff   :  { %1772 = vmatpush.msra.mxu2 %v6547_v27  ;;  %1934 = vmatpush.msrb.mxu3 %v9338_v0  ;;  %v9367_v0 = vld [vmem:[#allocation72_spill] sm:$0xff] }
 0x300   :  { %1733 = vmatpush.msra.mxu0 %v6551_v13  ;;  %1895 = vmatpush.msrb.mxu1 %v9339_v41  ;;  %v9368_v41 = vld [vmem:[#allocation73_spill] sm:$0xff] }
 0x301   :  { %1773 = vmatpush.msra.mxu2 %v6555_v2  ;;  %1734 = vmatmul.f32.vlgmr.msra.gmra.mxu0 %v6423_v63 }
 0x302   :  { %1774 = vmatmul.f32.vlgmr.msra.gmra.mxu2 %v6423_v63  ;;  %1935 = vmatpush.msrb.mxu3 %v9340_v53  ;;  %v9350_v63 = vld [vmem:[#allocation44_spill] sm:$0xff] }
 0x303   :  { %1896 = vmatpush.msrb.mxu1 %v9341_v57  ;;  %1865 = vmatpush.msrb.mxu0 %v9342_v40  ;;  %v9369_v53 = vld [vmem:[#allocation76_spill] sm:$0xff]  ;;  %v9370_v57 = vld [vmem:[#allocation77_spill] sm:$0xff] }
 0x304   :  { %1936 = vmatpush.msrb.mxu3 %v9343_v20  ;;  %1905 = vmatpush.msrb.mxu2 %v9344_v46  ;;  %v9371_v40 = vld [vmem:[#allocation84_spill] sm:$0xff]  ;;  %v9372_v20 = vld [vmem:[#allocation85_spill] sm:$0xff] }
 0x305   :  { %1897 = vmatpush.msrb.mxu1 %v9345_v56  ;;  %1866 = vmatpush.msrb.mxu0 %v9346_v48  ;;  %v9373_v46 = vld [vmem:[#allocation88_spill] sm:$0xff]  ;;  %v9374_v56 = vld [vmem:[#allocation89_spill] sm:$0xff] }
 0x306   :  { %1937 = vmatpush.msrb.mxu3 %v9347_v49  ;;  %1906 = vmatpush.msrb.mxu2 %v9348_v39  ;;  %v9375_v48 = vld [vmem:[#allocation92_spill] sm:$0xff]  ;;  %v9376_v49 = vld [vmem:[#allocation93_spill] sm:$0xff] }
 0x307   :  { %1898 = vmatpush.msrb.mxu1 %v9349_v23  ;;  %1867 = vmatpush.msrb.mxu0 %v9350_v63  ;;  %v9377_v39 = vld [vmem:[#allocation97_spill] sm:$0xff]  ;;  %v9378_v23 = vld [vmem:[#allocation98_spill] sm:$0xff]  ;;  %v9379_v63 = vld [vmem:[#allocation103_spill] sm:$0xff] }
 0x308   :  { %1938 = vmatpush.msrb.mxu3 %v9351_v31  ;;  %1907 = vmatpush.msrb.mxu2 %v9352_v35  ;;  %v9380_v31 = vld [vmem:[#allocation104_spill] sm:$0xff]  ;;  %v9381_v35 = vld [vmem:[#allocation107_spill] sm:$0xff] }
 0x309   :  { %1899 = vmatpush.msrb.mxu1 %v9353_v38  ;;  %1868 = vmatpush.msrb.mxu0 %v9354_v59  ;;  %v9382_v38 = vld [vmem:[#allocation108_spill] sm:$0xff]  ;;  %v9383_v59 = vld [vmem:[#allocation111_spill] sm:$0xff] }
 0x30a   :  { %1939 = vmatpush.msrb.mxu3 %v9355_v21  ;;  %1908 = vmatpush.msrb.mxu2 %v9356_v12  ;;  %v9384_v21 = vld [vmem:[#allocation112_spill] sm:$0xff] }
 0x30b   :  { %1900 = vmatpush.msrb.mxu1 %v9357_v7  ;;  %1869 = vmatpush.msrb.mxu0 %v9358_v55  ;;  %v9385_v12 = vld [vmem:[#allocation116_spill] sm:$0xff]  ;;  %v9386_v7 = vld [vmem:[#allocation117_spill] sm:$0xff]  ;;  %v9387_v55 = vld [vmem:[#allocation119_spill] sm:$0xff] }
 0x30c   :  { %1940 = vmatpush.msrb.mxu3 %v9359_v18  ;;  %1909 = vmatpush.msrb.mxu2 %v9360_v11  ;;  %v9388_v18 = vld [vmem:[#allocation123_spill] sm:$0xff]  ;;  %v9389_v11 = vld [vmem:[#allocation124_spill] sm:$0xff] }
 0x30d   :  { %1965 = vmatpush.msra.mxu1 %v9361_v28  ;;  %1870 = vmatpush.msrb.mxu0 %v9363_v44  ;;  %v9390_v28 = vld [vmem:[#allocation125_spill] sm:$0xff] }
 0x30e   :  { %2005 = vmatpush.msra.mxu3 %v9362_v33  ;;  %1910 = vmatpush.msrb.mxu2 %v9364_v50  ;;  %v9391_v33 = vld [vmem:[#allocation128_spill] sm:$0xff]  ;;  %v9392_v44 = vld [vmem:[#allocation29_spill] sm:$0xff] }
 0x30f   :  { %1966 = vmatpush.msra.mxu1 %v9365_v17  ;;  %1871 = vmatpush.msrb.mxu0 %v9367_v0  ;;  %v9393_v50 = vld [vmem:[#allocation40_spill] sm:$0xff]  ;;  %v9396_v0 = vld [vmem:[#allocation19_spill] sm:$0xff] }
 0x310   :  { %2006 = vmatpush.msra.mxu3 %v9366_v14  ;;  %1911 = vmatpush.msrb.mxu2 %v9368_v41  ;;  %v9394_v17 = vld [vmem:[#allocation28_spill] sm:$0xff]  ;;  %v9395_v14 = vld [vmem:[#allocation39_spill] sm:$0xff] }
 0x311   :  { %1967 = vmatpush.msra.mxu1 %v9369_v53  ;;  %1872 = vmatpush.msrb.mxu0 %v9371_v40  ;;  %v9397_v41 = vld [vmem:[#allocation20_spill] sm:$0xff]  ;;  %v9398_v53 = vld [vmem:[#allocation21_spill] sm:$0xff]  ;;  %v9400_v40 = vld [vmem:[#allocation23_spill] sm:$0xff] }
 0x312   :  { %2007 = vmatpush.msra.mxu3 %v9370_v57  ;;  %1912 = vmatpush.msrb.mxu2 %v9372_v20  ;;  %v9399_v57 = vld [vmem:[#allocation22_spill] sm:$0xff]  ;;  %v9401_v20 = vld [vmem:[#allocation24_spill] sm:$0xff] }
 0x313   :  { %1968 = vmatpush.msra.mxu1 %v9373_v46  ;;  %1873 = vmatpush.msrb.mxu0 %v9375_v48  ;;  %v9402_v46 = vld [vmem:[#allocation25_spill] sm:$0xff]  ;;  %v9404_v48 = vld [vmem:[#allocation27_spill] sm:$0xff] }
 0x314   :  { %2008 = vmatpush.msra.mxu3 %v9374_v56  ;;  %1913 = vmatpush.msrb.mxu2 %v9376_v49  ;;  %v9403_v56 = vld [vmem:[#allocation26_spill] sm:$0xff]  ;;  %v9405_v49 = vld [vmem:[#allocation133_spill] sm:$0xff] }
 0x315   :  { %1969 = vmatpush.msra.mxu1 %v9377_v39  ;;  %1874 = vmatpush.msrb.mxu0 %v9379_v63  ;;  %v9406_v39 = vld [vmem:[#allocation134_spill] sm:$0xff]  ;;  %v9408_v63 = vld [vmem:[#allocation136_spill] sm:$0xff] }
 0x316   :  { %2009 = vmatpush.msra.mxu3 %v9378_v23  ;;  %1914 = vmatpush.msrb.mxu2 %v9380_v31  ;;  %v9407_v23 = vld [vmem:[#allocation135_spill] sm:$0xff]  ;;  %v9409_v31 = vld [vmem:[#allocation137_spill] sm:$0xff] }
 0x317   :  { %1970 = vmatpush.msra.mxu1 %v9381_v35  ;;  %1875 = vmatpush.msrb.mxu0 %v9383_v59  ;;  %v9410_v35 = vld [vmem:[#allocation138_spill] sm:$0xff]  ;;  %v9412_v59 = vld [vmem:[#allocation140_spill] sm:$0xff] }
 0x318   :  { %2010 = vmatpush.msra.mxu3 %v9382_v38  ;;  %1915 = vmatpush.msrb.mxu2 %v9384_v21  ;;  %v9411_v38 = vld [vmem:[#allocation139_spill] sm:$0xff]  ;;  %v9413_v21 = vld [vmem:[#allocation141_spill] sm:$0xff] }
 0x319   :  { %1971 = vmatpush.msra.mxu1 %v9385_v12  ;;  %1876 = vmatpush.msrb.mxu0 %v9387_v55  ;;  %v9414_v12 = vld [vmem:[#allocation142_spill] sm:$0xff]  ;;  %v9416_v55 = vld [vmem:[#allocation144_spill] sm:$0xff] }
 0x31a   :  { %2011 = vmatpush.msra.mxu3 %v9386_v7  ;;  %1916 = vmatpush.msrb.mxu2 %v9388_v18  ;;  %v9415_v7 = vld [vmem:[#allocation143_spill] sm:$0xff]  ;;  %v9417_v18 = vld [vmem:[#allocation145_spill] sm:$0xff] }
 0x31b   :  { %1972 = vmatpush.msra.mxu1 %v9389_v11  ;;  %1877 = vmatpush.msrb.mxu0 %v9391_v33  ;;  %v9418_v11 = vld [vmem:[#allocation146_spill] sm:$0xff]  ;;  %v9420_v33 = vld [vmem:[#allocation148_spill] sm:$0xff] }
 0x31c   :  { %2012 = vmatpush.msra.mxu3 %v9390_v28  ;;  %1917 = vmatpush.msrb.mxu2 %v9392_v44  ;;  %v9419_v28 = vld [vmem:[#allocation147_spill] sm:$0xff]  ;;  %v9421_v44 = vld [vmem:[#allocation149_spill] sm:$0xff] }
 0x31d   :  { %1973 = vmatpush.msra.mxu1 %v9393_v50  ;;  %1878 = vmatpush.msrb.mxu0 %v9395_v14  ;;  %v9422_v50 = vld [vmem:[#allocation150_spill] sm:$0xff]  ;;  %v9424_v14 = vld [vmem:[#allocation152_spill] sm:$0xff] }
 0x31e   :  { %2013 = vmatpush.msra.mxu3 %v9394_v17  ;;  %1918 = vmatpush.msrb.mxu2 %v9396_v0  ;;  %v9423_v17 = vld [vmem:[#allocation151_spill] sm:$0xff]  ;;  %v9425_v0 = vld [vmem:[#allocation153_spill] sm:$0xff] }
 0x31f   :  { %1974 = vmatpush.msra.mxu1 %v9397_v41  ;;  %1879 = vmatpush.msrb.mxu0 %v9399_v57  ;;  %v9426_v41 = vld [vmem:[#allocation154_spill] sm:$0xff]  ;;  %v9428_v57 = vld [vmem:[#allocation156_spill] sm:$0xff] }
 0x320   :  { %2014 = vmatpush.msra.mxu3 %v9398_v53  ;;  %1919 = vmatpush.msrb.mxu2 %v9400_v40  ;;  %v9427_v53 = vld [vmem:[#allocation155_spill] sm:$0xff]  ;;  %v9429_v40 = vld [vmem:[#allocation157_spill] sm:$0xff] }
 0x321   :  { %1975 = vmatpush.msra.mxu1 %v9401_v20  ;;  %1880 = vmatpush.msrb.mxu0 %v9403_v56  ;;  %v9430_v20 = vld [vmem:[#allocation158_spill] sm:$0xff]  ;;  %v9432_v56 = vld [vmem:[#allocation160_spill] sm:$0xff] }
 0x322   :  { %2015 = vmatpush.msra.mxu3 %v9402_v46  ;;  %1920 = vmatpush.msrb.mxu2 %v9404_v48  ;;  %v9431_v46 = vld [vmem:[#allocation159_spill] sm:$0xff]  ;;  %v9433_v48 = vld [vmem:[#allocation161_spill] sm:$0xff] }
 0x323   :  { %1976 = vmatpush.msra.mxu1 %v9405_v49  ;;  %1945 = vmatpush.msra.mxu0 %v9407_v23  ;;  %v9434_v49 = vld [vmem:[#allocation162_spill] sm:$0xff]  ;;  %v9436_v23 = vld [vmem:[#allocation164_spill] sm:$0xff] }
 0x324   :  { %2016 = vmatpush.msra.mxu3 %v9406_v39  ;;  %1985 = vmatpush.msra.mxu2 %v9408_v63  ;;  %v9435_v39 = vld [vmem:[#allocation163_spill] sm:$0xff]  ;;  %v9437_v63 = vld [vmem:[#allocation165_spill] sm:$0xff] }
 0x325   :  { %1977 = vmatpush.msra.mxu1 %v9409_v31  ;;  %1946 = vmatpush.msra.mxu0 %v9411_v38  ;;  %v9438_v31 = vld [vmem:[#allocation166_spill] sm:$0xff]  ;;  %v9440_v38 = vld [vmem:[#allocation168_spill] sm:$0xff] }
 0x326   :  { %2017 = vmatpush.msra.mxu3 %v9410_v35  ;;  %1986 = vmatpush.msra.mxu2 %v9412_v59  ;;  %v9439_v35 = vld [vmem:[#allocation167_spill] sm:$0xff]  ;;  %v9441_v59 = vld [vmem:[#allocation169_spill] sm:$0xff] }
 0x327   :  { %1978 = vmatpush.msra.mxu1 %v9413_v21  ;;  %1947 = vmatpush.msra.mxu0 %v9415_v7  ;;  %v9442_v21 = vld [vmem:[#allocation170_spill] sm:$0xff]  ;;  %v9444_v7 = vld [vmem:[#allocation172_spill] sm:$0xff] }
 0x328   :  { %2018 = vmatpush.msra.mxu3 %v9414_v12  ;;  %1987 = vmatpush.msra.mxu2 %v9416_v55  ;;  %v9443_v12 = vld [vmem:[#allocation171_spill] sm:$0xff]  ;;  %v9445_v55 = vld [vmem:[#allocation173_spill] sm:$0xff] }
 0x329   :  { %1979 = vmatpush.msra.mxu1 %v9417_v18  ;;  %1948 = vmatpush.msra.mxu0 %v9419_v28  ;;  %v9446_v18 = vld [vmem:[#allocation174_spill] sm:$0xff] }
 0x32a   :  { %2019 = vmatpush.msra.mxu3 %v9418_v11  ;;  %1988 = vmatpush.msra.mxu2 %v9420_v33  ;;  %v9447_v33 = vld [vmem:[#allocation30_spill] sm:$0xff] }
 0x32b   :  { %1980 = vmatpush.msra.mxu1 %v9421_v44  ;;  %1949 = vmatpush.msra.mxu0 %v9423_v17 }
 0x32c   :  { %2020 = vmatpush.msra.mxu3 %v9422_v50  ;;  %1989 = vmatpush.msra.mxu2 %v9424_v14 }
 0x32d   :  { %1950 = vmatpush.msra.mxu0 %v9425_v0 }
 0x32e   :  { %1990 = vmatpush.msra.mxu2 %v9426_v41 }
 0x32f   :  { %1951 = vmatpush.msra.mxu0 %v9427_v53  ;;  %v9448_v53 = vld [vmem:[#allocation31_spill] sm:$0xff] }
 0x330   :  { %1991 = vmatpush.msra.mxu2 %v9428_v57 }
 0x331   :  { %1952 = vmatpush.msra.mxu0 %v9429_v40 }
 0x332   :  { %1992 = vmatpush.msra.mxu2 %v9430_v20  ;;  %v9449_v20 = vld [vmem:[#allocation127_spill] sm:$0xff] }
 0x333   :  { %1953 = vmatpush.msra.mxu0 %v9431_v46  ;;  %v9450_v46 = vld [vmem:[#allocation63_spill] sm:$0xff] }
 0x334   :  { %1993 = vmatpush.msra.mxu2 %v9432_v56  ;;  %v512_v56 = vadd.f32 %v9450_v46, %v9449_v20 }
 0x335   :  { %1954 = vmatpush.msra.mxu0 %v9433_v48 }
 0x336   :  { %1994 = vmatpush.msra.mxu2 %v9434_v49 }
 0x337   :  { %1955 = vmatpush.msra.mxu0 %v9435_v39 }
 0x338   :  { %1995 = vmatpush.msra.mxu2 %v9436_v23 }
 0x339   :  { %1956 = vmatpush.msra.mxu0 %v9437_v63 }
 0x33a   :  { %1996 = vmatpush.msra.mxu2 %v9438_v31 }
 0x33b   :  { %1957 = vmatpush.msra.mxu0 %v9439_v35 }
 0x33c   :  { %1997 = vmatpush.msra.mxu2 %v9440_v38 }
 0x33d   :  { %1958 = vmatpush.msra.mxu0 %v9441_v59  ;;  %v9451_v59 = vld [vmem:[#allocation32_spill] sm:$0xff] }
 0x33e   :  { %1998 = vmatpush.msra.mxu2 %v9442_v21 }
 0x33f   :  { %1959 = vmatpush.msra.mxu0 %v9443_v12 }
 0x340   :  { %1999 = vmatpush.msra.mxu2 %v9444_v7 }
 0x341   :  { %1960 = vmatpush.msra.mxu0 %v9445_v55 }
 0x342   :  { %2000 = vmatpush.msra.mxu2 %v9446_v18 }
 0x345   :  { %v1532_v11 = vpop.f32.mrf.mxu1 }
 0x34b   :  { %v1572_v50 = vpop.f32.mrf.mxu3 }
 0x34d   :  { %v1612_v17 = vpop.f32.mrf.mxu1 }
 0x353   :  { %v1652_v39 = vpop.f32.mrf.mxu3 }
 0x35d   :  { %v1512_v28 = vpop.f32.mrf.mxu0 }
 0x35e   :  { %v1513_v44 = vadd.f32 %v1512_v28, %v9447_v33  ;;  %v9452_v28 = vld [vmem:[#allocation131_spill] sm:$0xff] }
 0x360   :  { %v1533_v14 = vadd.f32 %v1532_v11, %v1513_v44  ;;  %v9453_v44 = vld [vmem:[#allocation80_spill] sm:$0xff] }
 0x362   :  { %v3680_v0 = vmul.f32 -1.442695, %v1533_v14 }
 0x363   :  { %v1552_v41 = vpop.f32.mrf.mxu2 }
 0x364   :  { %3806 = vpow2.f32 %v3680_v0  ;;  %v1553_v57 = vadd.f32 %v1552_v41, %v9448_v53  ;;  %v9454_v41 = vld [vmem:[#allocation33_spill] sm:$0xff] }
 0x366   :  { %v1573_v40 = vadd.f32 %v1572_v50, %v1553_v57  ;;  %v1592_v7 = vpop.f32.mrf.mxu0  ;;  %v594_v50 = vadd.f32 %v9453_v44, %v9452_v28 }
 0x367   :  { %v1755_v48 = vpop.f32.mrf.mxu1  ;;  %v1593_v57 = vadd.f32 %v1592_v7, %v9454_v41 }
 0x368   :  { %v3681_v49 = vmul.f32 -1.442695, %v1573_v40  ;;  %v1799_v23 = vadd.f32 %v1755_v48, %v512_v56 }
 0x36a   :  { %v3807_v63 = vpop.eup %3806  ;;  %3808 = vpow2.f32 %v3681_v49  ;;  %v3684_v38 = vmul.f32 -1.442695, %v1799_v23  ;;  %v1613_v49 = vadd.f32 %v1612_v17, %v1593_v57 }
 0x36b   :  { %v1658_v31 = vadd.f32 1.0, %v3807_v63 }
 0x36c   :  { %v1632_v35 = vpop.f32.mrf.mxu2 }
 0x36d   :  { %3810 = vrcp.f32 %v1658_v31  ;;  %v1633_v21 = vadd.f32 %v1632_v35, %v9451_v59  ;;  %vm1664_vm15 = vweird.f32 %v1658_v31  ;;  %v1668_v7 = vand.u32 2147483647, %v1658_v31 }
 0x36e   :  { %3812 = vpow2.f32 %v3684_v38  ;;  %v1795_v11 = vpop.f32.mrf.mxu3 }
 0x36f   :  { %v1653_v55 = vadd.f32 %v1652_v39, %v1633_v21  ;;  %v1801_v46 = vadd.f32 %v1795_v11, %v594_v50  ;;  %v9455_v11 = vld [vmem:[#allocation126_spill] sm:$0xff]  ;;  %vm1669_vm3 = vcmp.eq.f32.partialorder %v1668_v7, 8.507059e+37 }
 0x370   :  { %v3809_v12 = vpop.eup %3808  ;;  %v9456_v50 = vld [vmem:[#allocation62_spill] sm:$0xff] }
 0x371   :  { %v1677_v18 = vadd.f32 1.0, %v3809_v12  ;;  %v3682_v14 = vmul.f32 -1.442695, %v1653_v55  ;;  %v3685_v63 = vmul.f32 -1.442695, %v1801_v46  ;;  %v1670_v55 = vand.u32 2147483648, %v1658_v31 }
 0x373   :  { %v3811_v0 = vpop.eup %3810  ;;  %3814 = vrcp.f32 %v1677_v18  ;;  %v1689_v17 = vand.u32 2147483648, %v1677_v18  ;;  %vm1683_vm2 = vweird.f32 %v1677_v18 }
 0x374   :  { %v1660_v40 = vmul.f32 %v3811_v0, %v1658_v31  ;;  %3816 = vpow2.f32 %v3682_v14  ;;  %v3813_v48 = vpop.eup %3812  ;;  %vm1665_vm14 = vweird.f32 %v3811_v0  ;;  %v471_v14 = vadd.f32 %v9456_v50, %v9455_v11 }
 0x375   :  { %v6675_v12 = vadd.f32 1.0, %v3813_v48  ;;  %3818 = vtanh.f32 %v1613_v49  ;;  %vm6679_vm0 = vmor %vm1664_vm15, %vm1665_vm14  ;;  %v1671_v31 = vor.u32 1.1754944e-38, %v1670_v55 }
 0x376   :  { %v1661_v56 = vsub.f32 1.0, %v1660_v40  ;;  %3820 = vpow2.f32 %v3685_v63  ;;  %v1687_v40 = vand.u32 2147483647, %v1677_v18 }
 0x377   :  { %vm1830_vm11 = vweird.f32 %v6675_v12 }
 0x378   :  { %v1662_v23 = vmul.f32 %v3811_v0, %v1661_v56  ;;  %vm1688_vm5 = vcmp.eq.f32.partialorder %v1687_v40, 8.507059e+37 }
 0x379   :  { %v3815_v39 = vpop.eup %3814 }
 0x37a   :  { %v3817_v35 = vpop.eup %3816  ;;  %v1679_v38 = vmul.f32 %v3815_v39, %v1677_v18  ;;  %v1663_v21 = vadd.f32 %v3811_v0, %v1662_v23  ;;  %vm1684_vm1 = vweird.f32 %v3815_v39 }
 0x37b   :  { %v1697_v44 = vadd.f32 1.0, %v3817_v35  ;;  %v3819_v63 = vpop.eup %3818  ;;  %vm1685_vm4 = vmor %vm1683_vm2, %vm1684_vm1  ;;  %v1690_v35 = vor.u32 1.1754944e-38, %v1689_v17 }
 0x37c   :  { %v1680_v28 = vsub.f32 1.0, %v1679_v38  ;;  %v1667_v56 = vsel %vm6679_vm0, %v3811_v0, %v1663_v21  ;;  %v3821_v11 = vpop.eup %3820 }
 0x37d   :  { %3822 = vrcp.f32 %v1697_v44  ;;  %v1672_v38 = vsel %vm1669_vm3, %v1671_v31, %v1667_v56  ;;  %v6693_v57 = vadd.f32 1.0, %v3821_v11  ;;  %v1709_v40 = vand.u32 2147483648, %v1697_v44 }
 0x37e   :  { %v1681_v46 = vmul.f32 %v3815_v39, %v1680_v28  ;;  %3824 = vrcp.f32 %v6675_v12  ;;  %v1735_v48 = vpop.f32.mrf.mxu0  ;;  %v1714_v55 = vmul.f32 %v3819_v63, %v1672_v38  ;;  %vm1703_vm7 = vweird.f32 %v1697_v44  ;;  %v9459_v38 = vld [vmem:[#allocation79_spill] sm:$0xff] }
 0x37f   :  { %v1798_v49 = vadd.f32 %v1735_v48, %v471_v14  ;;  %v1710_v48 = vor.u32 1.1754944e-38, %v1709_v40  ;;  %vm1850_vm3 = vweird.f32 %v6693_v57 }
 0x380   :  { %v1682_v23 = vadd.f32 %v3815_v39, %v1681_v46  ;;  %v1707_v46 = vand.u32 2147483647, %v1697_v44 }
 0x381   :  { %v3683_v50 = vmul.f32 -1.442695, %v1798_v49 }
 0x382   :  { %v1686_v41 = vsel %vm1685_vm4, %v3815_v39, %v1682_v23  ;;  %vm1708_vm9 = vcmp.eq.f32.partialorder %v1707_v46, 8.507059e+37  ;;  %v6720_v46 = vld [vmem:[#allocation7 + $0x1d8] sm:$0xff] }
 0x383   :  { %v3823_v28 = vpop.eup %3822  ;;  %v1691_v59 = vsel %vm1688_vm5, %v1690_v35, %v1686_v41  ;;  %3826 = vpow2.f32 %v3683_v50  ;;  %v553_v50 = vadd.f32 %v9459_v38, %v5482_v51 }
 0x384   :  { %v6686_v0 = vpop.eup %3824  ;;  %v1713_v21 = vmul.f32 %v1691_v59, %v6363_v45  ;;  %v1699_v14 = vmul.f32 %v3823_v28, %v1697_v44  ;;  %vm1704_vm6 = vweird.f32 %v3823_v28 }
 0x385   :  { %v1826_v17 = vmul.f32 %v6686_v0, %v6675_v12  ;;  %vm1705_vm8 = vmor %vm1703_vm7, %vm1704_vm6  ;;  %v1775_v63 = vpop.f32.mrf.mxu2  ;;  %vm1831_vm10 = vweird.f32 %v6686_v0 }
 0x386   :  { %v6689_v18 = vadd.f32 %v1714_v55, %v1713_v21  ;;  %v1700_v7 = vsub.f32 1.0, %v1699_v14  ;;  %v1800_v55 = vadd.f32 %v1775_v63, %v553_v50  ;;  %v6705_v14 = vld [vmem:[#allocation7 + $0x1e8] sm:$0xff]  ;;  %vm6725_vm12 = vmor %vm1830_vm11, %vm1831_vm10 }
 0x387   :  { %v1827_v59 = vsub.f32 1.0, %v1826_v17 }
 0x388   :  { %3828 = vtanh.f32 %v6689_v18  ;;  %v1701_v39 = vmul.f32 %v3823_v28, %v1700_v7 }
 0x389   :  { %v3827_v41 = vpop.eup %3826  ;;  %3830 = vrcp.f32 %v6693_v57  ;;  %v1828_v23 = vmul.f32 %v6686_v0, %v1827_v59  ;;  %v1834_v59 = vand.u32 2147483647, %v6675_v12 }
 0x38a   :  { %v6696_v56 = vadd.f32 1.0, %v3827_v41  ;;  %v1702_v45 = vadd.f32 %v3823_v28, %v1701_v39  ;;  %v1836_v39 = vand.u32 2147483648, %v6675_v12  ;;  %v6717_v41 = vld [vmem:[#allocation7 + $0x1c8] sm:$0xff] }
 0x38b   :  { %v1829_v17 = vadd.f32 %v6686_v0, %v1828_v23  ;;  %vm1835_vm15 = vcmp.eq.f32.partialorder %v1834_v59, 8.507059e+37  ;;  %v6754_v59 = vld [vmem:[#allocation7 + $0x148] sm:$0xff] }
 0x38c   :  { %3832 = vrcp.f32 %v6696_v56  ;;  %v1706_v11 = vsel %vm1705_vm8, %v3823_v28, %v1702_v45  ;;  %v6708_v28 = vld [vmem:[#allocation7 + $0x1f8] sm:$0xff]  ;;  %v1815_v63 = vand.u32 2147483647, %v6696_v56  ;;  %v1837_v38 = vor.u32 1.1754944e-38, %v1836_v39 }
 0x38d   :  { %v1711_v49 = vsel %vm1708_vm9, %v1710_v48, %v1706_v11  ;;  %v1817_v11 = vand.u32 2147483648, %v6696_v56  ;;  %3834 = vtanh.f32 %v1800_v55  ;;  %v1833_v12 = vsel %vm6725_vm12, %v6686_v0, %v1829_v17  ;;  %v6743_v55 = vld [vmem:[#allocation7 + $0x198] sm:$0xff]  ;;  %v6747_v0 = vld [vmem:[#allocation7 + $0x168] sm:$0xff] }
 0x38e   :  { %v3829_v31 = vpop.eup %3828  ;;  %vm1811_vm14 = vweird.f32 %v6696_v56  ;;  %v1838_v48 = vsel %vm1835_vm15, %v1837_v38, %v1833_v12  ;;  %v6750_v17 = vld [vmem:[#allocation7 + $0x178] sm:$0xff]  ;;  %vm1816_vm1 = vcmp.eq.f32.partialorder %v1815_v63, 8.507059e+37  ;;  %v6761_v38 = vld [vmem:[#allocation7 + $0x128] sm:$0xff] }
 0x38f   :  { %v1717_v35 = vmul.f32 %v3829_v31, %v1711_v49  ;;  %v6703_v21 = vpop.eup %3830  ;;  %v6730_v31 = vld [vmem:[#allocation7 + $0x1a8] sm:$0xff]  ;;  %v6733_v49 = vld [vmem:[#allocation7 + $0x1b8] sm:$0xff] }
 0x390   :  { %v1846_v40 = vmul.f32 %v6703_v21, %v6693_v57  ;;  %9462 = vst [vmem:[#allocation43_spill] sm:$0xff] %v6730_v31  ;;  %vm1851_vm2 = vweird.f32 %v6703_v21 }
 0x391   :  { %1901 = vmatmul.f32.vlgmr.msrb.gmra.mxu1 %v1717_v35  ;;  %1941 = vmatmul.f32.vlgmr.msrb.gmra.mxu3 %v1717_v35  ;;  %vm1852_vm4 = vmor %vm1850_vm3, %vm1851_vm2 }
 0x392   :  { %v3833_v44 = vpop.eup %3832  ;;  %2108 = vmatpush.msrb.mxu1 %v6705_v14  ;;  %2148 = vmatpush.msrb.mxu3 %v6708_v28  ;;  %v1847_v50 = vsub.f32 1.0, %v1846_v40 }
 0x393   :  { %v1807_v7 = vmul.f32 %v3833_v44, %v6696_v56  ;;  %vm1812_vm13 = vweird.f32 %v3833_v44  ;;  %v3835_v40 = vpop.eup %3834 }
 0x394   :  { %2109 = vmatpush.msrb.mxu1 %v6717_v41  ;;  %2149 = vmatpush.msrb.mxu3 %v6720_v46  ;;  %vm1813_vm0 = vmor %vm1811_vm14, %vm1812_vm13 }
 0x395   :  { %v1808_v45 = vsub.f32 1.0, %v1807_v7  ;;  %v6740_v7 = vld [vmem:[#allocation7 + $0x188] sm:$0xff] }
 0x396   :  { %2110 = vmatpush.msrb.mxu1 %v6730_v31  ;;  %2150 = vmatpush.msrb.mxu3 %v6733_v49 }
 0x397   :  { %v1809_v23 = vmul.f32 %v3833_v44, %v1808_v45  ;;  %v1818_v45 = vor.u32 1.1754944e-38, %v1817_v11  ;;  %v1860_v11 = vmul.f32 %v1838_v48, %v6406_v19  ;;  %v6774_v19 = vld [vmem:[#allocation7 + $0x118] sm:$0xff]  ;;  %v1854_v48 = vand.u32 2147483647, %v6693_v57 }
 0x398   :  { %2111 = vmatpush.msrb.mxu1 %v6740_v7  ;;  %2151 = vmatpush.msrb.mxu3 %v6743_v55  ;;  %9463 = vst [vmem:[#allocation60_spill] sm:$0xff] %v6774_v19 }
 0x399   :  { %v1810_v31 = vadd.f32 %v3833_v44, %v1809_v23  ;;  %1981 = vmatmul.f32.vlgmr.msra.gmra.mxu1 %v1717_v35  ;;  %2021 = vmatmul.f32.vlgmr.msra.gmra.mxu3 %v1717_v35  ;;  %v1848_v23 = vmul.f32 %v6703_v21, %v1847_v50  ;;  %v6757_v35 = vld [vmem:[#allocation7 + $0x158] sm:$0xff]  ;;  %v6771_v50 = vld [vmem:[#allocation7 + $0x108] sm:$0xff]  ;;  %vm1855_vm5 = vcmp.eq.f32.partialorder %v1854_v48, 8.507059e+37 }
 0x39a   :  { %2112 = vmatpush.msrb.mxu1 %v6747_v0  ;;  %2152 = vmatpush.msrb.mxu3 %v6750_v17  ;;  %v6815_v48 = vld [vmem:[#allocation7 + $0x78] sm:$0xff] }
 0x39b   :  { %v1814_v39 = vsel %vm1813_vm0, %v3833_v44, %v1810_v31  ;;  %v6764_v44 = vld [vmem:[#allocation7 + $0x138] sm:$0xff]  ;;  %v1849_v63 = vadd.f32 %v6703_v21, %v1848_v23 }
 0x39c   :  { %v1819_v56 = vsel %vm1816_vm1, %v1818_v45, %v1814_v39  ;;  %2113 = vmatpush.msrb.mxu1 %v6754_v59  ;;  %2153 = vmatpush.msrb.mxu3 %v6757_v35  ;;  %v1856_v45 = vand.u32 2147483648, %v6693_v57  ;;  %v6781_v39 = vld [vmem:[#allocation7 + $0xe8] sm:$0xff] }
 0x39d   :  { %v1861_v12 = vmul.f32 %v3835_v40, %v1819_v56  ;;  %9464 = vst [vmem:[#allocation42_spill] sm:$0xff] %v6781_v39  ;;  %v6784_v40 = vld [vmem:[#allocation7 + $0xf8] sm:$0xff]  ;;  %v1853_v23 = vsel %vm1852_vm4, %v6703_v21, %v1849_v63  ;;  %v6788_v56 = vld [vmem:[#allocation7 + $0xc8] sm:$0xff] }
 0x39e   :  { %2114 = vmatpush.msrb.mxu1 %v6761_v38  ;;  %2154 = vmatpush.msrb.mxu3 %v6764_v44  ;;  %9465 = vst [vmem:[#allocation59_spill] sm:$0xff] %v6784_v40  ;;  %v1857_v57 = vor.u32 1.1754944e-38, %v1856_v45  ;;  %v6812_v45 = vld [vmem:[#allocation7 + $0x68] sm:$0xff] }
 0x39f   :  { %v6767_v31 = vadd.f32 %v1861_v12, %v1860_v11  ;;  %9466 = vst [vmem:[#allocation34_spill] sm:$0xff] %v6788_v56  ;;  %v6791_v11 = vld [vmem:[#allocation7 + $0xd8] sm:$0xff]  ;;  %v6794_v12 = vld [vmem:[#allocation7 + $0xa8] sm:$0xff] }
 0x3a0   :  { %2115 = vmatpush.msrb.mxu1 %v6771_v50  ;;  %2155 = vmatpush.msrb.mxu3 %v6774_v19  ;;  %v1858_v21 = vsel %vm1855_vm5, %v1857_v57, %v1853_v23  ;;  %v6802_v19 = vld [vmem:[#allocation7 + $0x88] sm:$0xff]  ;;  %v6823_v23 = vld [vmem:[#allocation7 + $0x58] sm:$0xff] }
 0x3a1   :  { %3836 = vtanh.f32 %v6767_v31  ;;  %v6956_v57 = vld [vmem:[#allocation10 + $0x268] sm:$0xff] }
 0x3a2   :  { %2116 = vmatpush.msrb.mxu1 %v6781_v39  ;;  %2156 = vmatpush.msrb.mxu3 %v6784_v40  ;;  %v6797_v39 = vld [vmem:[#allocation7 + $0xb8] sm:$0xff]  ;;  %9487 = vst [vmem:[#allocation87_spill] sm:$0xff] %v6956_v57 }
 0x3a4   :  { %2117 = vmatpush.msrb.mxu1 %v6788_v56  ;;  %2157 = vmatpush.msrb.mxu3 %v6791_v11  ;;  %v6805_v56 = vld [vmem:[#allocation7 + $0x98] sm:$0xff] }
 0x3a6   :  { %2118 = vmatpush.msrb.mxu1 %v6794_v12  ;;  %2158 = vmatpush.msrb.mxu3 %v6797_v39 }
 0x3a7   :  { %v3837_v40 = vpop.eup %3836 }
 0x3a8   :  { %v6800_v63 = vmul.f32 %v3837_v40, %v1858_v21  ;;  %2119 = vmatpush.msrb.mxu1 %v6802_v19  ;;  %2159 = vmatpush.msrb.mxu3 %v6805_v56  ;;  %v6820_v40 = vld [vmem:[#allocation7 + $0x48] sm:$0xff] }
 0x3a9   :  { %v6959_v21 = vld [vmem:[#allocation10 + $0x1c8] sm:$0xff] }
 0x3aa   :  { %1881 = vmatmul.f32.vlgmr.msrb.gmra.mxu0 %v6800_v63  ;;  %1921 = vmatmul.f32.vlgmr.msrb.gmra.mxu2 %v6800_v63  ;;  %9488 = vst [vmem:[#allocation90_spill] sm:$0xff] %v6959_v21 }
 0x3ab   :  { %2088 = vmatpush.msrb.mxu0 %v6429_v58  ;;  %2128 = vmatpush.msrb.mxu2 %v6432_v62  ;;  %v6828_v58 = vld [vmem:[#allocation7 + $0x28] sm:$0xff]  ;;  %v6831_v62 = vld [vmem:[#allocation7 + $0x38] sm:$0xff] }
 0x3ac   :  { %2120 = vmatpush.msrb.mxu1 %v6812_v45  ;;  %2160 = vmatpush.msrb.mxu3 %v6815_v48 }
 0x3ad   :  { %2089 = vmatpush.msrb.mxu0 %v6437_v15  ;;  %2129 = vmatpush.msrb.mxu2 %v6440_v8  ;;  %v6836_v15 = vld [vmem:[#allocation7 + $0x8] sm:$0xff]  ;;  %v6839_v8 = vld [vmem:[#allocation7 + $0x18] sm:$0xff] }
 0x3ae   :  { %2121 = vmatpush.msrb.mxu1 %v6820_v40  ;;  %2161 = vmatpush.msrb.mxu3 %v6823_v23 }
 0x3af   :  { %2090 = vmatpush.msrb.mxu0 %v6445_v52  ;;  %2130 = vmatpush.msrb.mxu2 %v6448_v60  ;;  %v6849_v52 = vld [vmem:[#allocation10 + $0x3e0] sm:$0xff]  ;;  %v6853_v60 = vld [vmem:[#allocation10 + $0x3e8] sm:$0xff] }
 0x3b0   :  { %2122 = vmatpush.msrb.mxu1 %v6828_v58  ;;  %2162 = vmatpush.msrb.mxu3 %v6831_v62 }
 0x3b1   :  { %2091 = vmatpush.msrb.mxu0 %v6453_v43  ;;  %2131 = vmatpush.msrb.mxu2 %v6456_v4  ;;  %v6857_v43 = vld [vmem:[#allocation10 + $0x3c0] sm:$0xff]  ;;  %v6861_v4 = vld [vmem:[#allocation10 + $0x3c8] sm:$0xff] }
 0x3b2   :  { %2123 = vmatpush.msrb.mxu1 %v6836_v15  ;;  %2163 = vmatpush.msrb.mxu3 %v6839_v8 }
 0x3b3   :  { %1961 = vmatmul.f32.vlgmr.msra.gmra.mxu0 %v6800_v63  ;;  %2001 = vmatmul.f32.vlgmr.msra.gmra.mxu2 %v6800_v63 }
 0x3b4   :  { %2092 = vmatpush.msrb.mxu0 %v6463_v54  ;;  %2124 = vmatmul.f32.vlgmr.msrb.gmra.mxu1 %v6800_v63  ;;  %v6865_v54 = vld [vmem:[#allocation10 + $0x3a0] sm:$0xff] }
 0x3b5   :  { %2132 = vmatpush.msrb.mxu2 %v6467_v25  ;;  %2164 = vmatmul.f32.vlgmr.msrb.gmra.mxu3 %v6800_v63  ;;  %v6869_v25 = vld [vmem:[#allocation10 + $0x3a8] sm:$0xff] }
 0x3b6   :  { %2093 = vmatpush.msrb.mxu0 %v6471_v6  ;;  %2255 = vmatpush.msra.mxu1 %v6849_v52  ;;  %v6873_v6 = vld [vmem:[#allocation10 + $0x380] sm:$0xff] }
 0x3b7   :  { %2133 = vmatpush.msrb.mxu2 %v6475_v37  ;;  %2295 = vmatpush.msra.mxu3 %v6853_v60  ;;  %v6877_v37 = vld [vmem:[#allocation10 + $0x388] sm:$0xff] }
 0x3b8   :  { %2094 = vmatpush.msrb.mxu0 %v6479_v3  ;;  %2256 = vmatpush.msra.mxu1 %v6857_v43  ;;  %v6881_v3 = vld [vmem:[#allocation10 + $0x360] sm:$0xff] }
 0x3b9   :  { %2134 = vmatpush.msrb.mxu2 %v6483_v10  ;;  %2296 = vmatpush.msra.mxu3 %v6861_v4  ;;  %9467 = vst [vmem:[#allocation35_spill] sm:$0xff] %v6881_v3  ;;  %v6885_v10 = vld [vmem:[#allocation10 + $0x368] sm:$0xff] }
 0x3ba   :  { %2095 = vmatpush.msrb.mxu0 %v6487_v34  ;;  %2257 = vmatpush.msra.mxu1 %v6865_v54  ;;  %9468 = vst [vmem:[#allocation38_spill] sm:$0xff] %v6885_v10  ;;  %v6889_v34 = vld [vmem:[#allocation10 + $0x340] sm:$0xff] }
 0x3bb   :  { %2135 = vmatpush.msrb.mxu2 %v6491_v22  ;;  %2297 = vmatpush.msra.mxu3 %v6869_v25  ;;  %9469 = vst [vmem:[#allocation41_spill] sm:$0xff] %v6889_v34  ;;  %v6893_v22 = vld [vmem:[#allocation10 + $0x348] sm:$0xff] }
 0x3bc   :  { %2096 = vmatpush.msrb.mxu0 %v6495_v61  ;;  %2258 = vmatpush.msra.mxu1 %v6873_v6  ;;  %9470 = vst [vmem:[#allocation46_spill] sm:$0xff] %v6893_v22  ;;  %v6897_v61 = vld [vmem:[#allocation10 + $0x320] sm:$0xff] }
 0x3bd   :  { %2136 = vmatpush.msrb.mxu2 %v6499_v24  ;;  %2298 = vmatpush.msra.mxu3 %v6877_v37  ;;  %9471 = vst [vmem:[#allocation47_spill] sm:$0xff] %v6897_v61  ;;  %v6901_v24 = vld [vmem:[#allocation10 + $0x328] sm:$0xff] }
 0x3be   :  { %2097 = vmatpush.msrb.mxu0 %v6503_v30  ;;  %2259 = vmatpush.msra.mxu1 %v6881_v3  ;;  %9472 = vst [vmem:[#allocation50_spill] sm:$0xff] %v6901_v24  ;;  %v6905_v30 = vld [vmem:[#allocation10 + $0x300] sm:$0xff] }
 0x3bf   :  { %2137 = vmatpush.msrb.mxu2 %v6507_v26  ;;  %2299 = vmatpush.msra.mxu3 %v6885_v10  ;;  %9473 = vst [vmem:[#allocation51_spill] sm:$0xff] %v6905_v30  ;;  %v6909_v26 = vld [vmem:[#allocation10 + $0x308] sm:$0xff] }
 0x3c0   :  { %2098 = vmatpush.msrb.mxu0 %v6511_v16  ;;  %2260 = vmatpush.msra.mxu1 %v6889_v34  ;;  %9474 = vst [vmem:[#allocation54_spill] sm:$0xff] %v6909_v26  ;;  %v6913_v16 = vld [vmem:[#allocation10 + $0x2e0] sm:$0xff] }
 0x3c1   :  { %2138 = vmatpush.msrb.mxu2 %v6515_v1  ;;  %2300 = vmatpush.msra.mxu3 %v6893_v22  ;;  %9475 = vst [vmem:[#allocation55_spill] sm:$0xff] %v6913_v16  ;;  %v6917_v1 = vld [vmem:[#allocation10 + $0x2e8] sm:$0xff] }
 0x3c2   :  { %2099 = vmatpush.msrb.mxu0 %v6519_v32  ;;  %2261 = vmatpush.msra.mxu1 %v6897_v61  ;;  %9476 = vst [vmem:[#allocation58_spill] sm:$0xff] %v6917_v1  ;;  %v6921_v32 = vld [vmem:[#allocation10 + $0x2c0] sm:$0xff] }
 0x3c3   :  { %2139 = vmatpush.msrb.mxu2 %v6523_v9  ;;  %2301 = vmatpush.msra.mxu3 %v6901_v24  ;;  %9477 = vst [vmem:[#allocation61_spill] sm:$0xff] %v6921_v32  ;;  %v6925_v9 = vld [vmem:[#allocation10 + $0x2c8] sm:$0xff] }
 0x3c4   :  { %2100 = vmatpush.msrb.mxu0 %v6527_v5  ;;  %2262 = vmatpush.msra.mxu1 %v6905_v30  ;;  %9478 = vst [vmem:[#allocation66_spill] sm:$0xff] %v6925_v9  ;;  %v6929_v5 = vld [vmem:[#allocation10 + $0x2a0] sm:$0xff] }
 0x3c5   :  { %2140 = vmatpush.msrb.mxu2 %v6531_v36  ;;  %2302 = vmatpush.msra.mxu3 %v6909_v26  ;;  %9479 = vst [vmem:[#allocation67_spill] sm:$0xff] %v6929_v5  ;;  %v6935_v36 = vld [vmem:[#allocation10 + $0x2a8] sm:$0xff] }
 0x3c6   :  { %2101 = vmatpush.msrb.mxu0 %v6535_v42  ;;  %2263 = vmatpush.msra.mxu1 %v6913_v16  ;;  %9480 = vst [vmem:[#allocation70_spill] sm:$0xff] %v6935_v36  ;;  %v6938_v42 = vld [vmem:[#allocation10 + $0x280] sm:$0xff] }
 0x3c7   :  { %2141 = vmatpush.msrb.mxu2 %v6539_v29  ;;  %2303 = vmatpush.msra.mxu3 %v6917_v1  ;;  %9481 = vst [vmem:[#allocation71_spill] sm:$0xff] %v6938_v42  ;;  %v6941_v29 = vld [vmem:[#allocation10 + $0x1e0] sm:$0xff] }
 0x3c8   :  { %2102 = vmatpush.msrb.mxu0 %v6543_v47  ;;  %2264 = vmatpush.msra.mxu1 %v6921_v32  ;;  %9482 = vst [vmem:[#allocation74_spill] sm:$0xff] %v6941_v29  ;;  %v6944_v47 = vld [vmem:[#allocation10 + $0x288] sm:$0xff] }
 0x3c9   :  { %2142 = vmatpush.msrb.mxu2 %v6547_v27  ;;  %2304 = vmatpush.msra.mxu3 %v6925_v9  ;;  %9483 = vst [vmem:[#allocation75_spill] sm:$0xff] %v6944_v47  ;;  %v6947_v27 = vld [vmem:[#allocation10 + $0x1e8] sm:$0xff] }
 0x3ca   :  { %2103 = vmatpush.msrb.mxu0 %v6551_v13  ;;  %2265 = vmatpush.msra.mxu1 %v6929_v5  ;;  %9484 = vst [vmem:[#allocation78_spill] sm:$0xff] %v6947_v27  ;;  %v6950_v13 = vld [vmem:[#allocation10 + $0x260] sm:$0xff]  ;;  %v9587_v32 = vld [vmem:[#allocation83_spill] sm:$0xff] }
 0x3cb   :  { %2143 = vmatpush.msrb.mxu2 %v6555_v2  ;;  %2104 = vmatmul.f32.vlgmr.msrb.gmra.mxu0 %v6800_v63  ;;  %9485 = vst [vmem:[#allocation81_spill] sm:$0xff] %v6950_v13  ;;  %v6953_v2 = vld [vmem:[#allocation10 + $0x1c0] sm:$0xff] }
 0x3cc   :  { %2144 = vmatmul.f32.vlgmr.msrb.gmra.mxu2 %v6800_v63  ;;  %2305 = vmatpush.msra.mxu3 %v6935_v36  ;;  %9486 = vst [vmem:[#allocation86_spill] sm:$0xff] %v6953_v2  ;;  %v6962_v63 = vld [vmem:[#allocation10 + $0x240] sm:$0xff] }
 0x3cd   :  { %2266 = vmatpush.msra.mxu1 %v6938_v42  ;;  %2235 = vmatpush.msra.mxu0 %v6941_v29  ;;  %9489 = vst [vmem:[#allocation91_spill] sm:$0xff] %v6962_v63 }
 0x3ce   :  { %2306 = vmatpush.msra.mxu3 %v6944_v47  ;;  %2275 = vmatpush.msra.mxu2 %v6947_v27  ;;  %v6965_v27 = vld [vmem:[#allocation10 + $0x1a0] sm:$0xff] }
 0x3cf   :  { %2267 = vmatpush.msra.mxu1 %v6950_v13  ;;  %2236 = vmatpush.msra.mxu0 %v6953_v2  ;;  %9490 = vst [vmem:[#allocation94_spill] sm:$0xff] %v6965_v27  ;;  %v6968_v13 = vld [vmem:[#allocation10 + $0x248] sm:$0xff] }
 0x3d0   :  { %2307 = vmatpush.msra.mxu3 %v6956_v57  ;;  %2276 = vmatpush.msra.mxu2 %v6959_v21  ;;  %9491 = vst [vmem:[#allocation36_spill] sm:$0xff] %v6968_v13  ;;  %v6971_v2 = vld [vmem:[#allocation10 + $0x1a8] sm:$0xff]  ;;  %v6974_v57 = vld [vmem:[#allocation10 + $0x220] sm:$0xff] }
 0x3d1   :  { %2268 = vmatpush.msra.mxu1 %v6962_v63  ;;  %2237 = vmatpush.msra.mxu0 %v6965_v27  ;;  %9492 = vst [vmem:[#allocation37_spill] sm:$0xff] %v6971_v2  ;;  %v6977_v21 = vld [vmem:[#allocation10 + $0x180] sm:$0xff]  ;;  %v6980_v63 = vld [vmem:[#allocation10 + $0x228] sm:$0xff] }
 0x3d2   :  { %2308 = vmatpush.msra.mxu3 %v6968_v13  ;;  %2277 = vmatpush.msra.mxu2 %v6971_v2  ;;  %9493 = vst [vmem:[#allocation95_spill] sm:$0xff] %v6974_v57  ;;  %v6983_v27 = vld [vmem:[#allocation10 + $0x188] sm:$0xff]  ;;  %v6986_v13 = vld [vmem:[#allocation10 + $0x200] sm:$0xff] }
 0x3d3   :  { %2269 = vmatpush.msra.mxu1 %v6974_v57  ;;  %9494 = vst [vmem:[#allocation44_spill] sm:$0xff] %v6977_v21  ;;  %2238 = vmatpush.msra.mxu0 %v6977_v21  ;;  %v6989_v2 = vld [vmem:[#allocation10 + $0x160] sm:$0xff]  ;;  %v6992_v57 = vld [vmem:[#allocation10 + $0x208] sm:$0xff] }
 0x3d4   :  { %9495 = vst [vmem:[#allocation45_spill] sm:$0xff] %v6980_v63  ;;  %2309 = vmatpush.msra.mxu3 %v6980_v63  ;;  %2278 = vmatpush.msra.mxu2 %v6983_v27  ;;  %v6995_v21 = vld [vmem:[#allocation10 + $0x168] sm:$0xff]  ;;  %v6998_v63 = vld [vmem:[#allocation10 + $0x3f0] sm:$0xff] }
 0x3d5   :  { %9496 = vst [vmem:[#allocation101_spill] sm:$0xff] %v6983_v27  ;;  %2270 = vmatpush.msra.mxu1 %v6986_v13  ;;  %2239 = vmatpush.msra.mxu0 %v6989_v2  ;;  %v7001_v27 = vld [vmem:[#allocation10 + $0x3f8] sm:$0xff] }
 0x3d6   :  { %9497 = vst [vmem:[#allocation48_spill] sm:$0xff] %v6986_v13  ;;  %2310 = vmatpush.msra.mxu3 %v6992_v57  ;;  %2279 = vmatpush.msra.mxu2 %v6995_v21  ;;  %v7004_v13 = vld [vmem:[#allocation10 + $0x140] sm:$0xff] }
 0x3d7   :  { %9498 = vst [vmem:[#allocation105_spill] sm:$0xff] %v6989_v2  ;;  %2335 = vmatpush.msrb.mxu1 %v6998_v63  ;;  %2240 = vmatpush.msra.mxu0 %v7004_v13  ;;  %v7007_v2 = vld [vmem:[#allocation10 + $0x148] sm:$0xff] }
 0x3d8   :  { %9499 = vst [vmem:[#allocation49_spill] sm:$0xff] %v6992_v57  ;;  %2375 = vmatpush.msrb.mxu3 %v7001_v27  ;;  %2280 = vmatpush.msra.mxu2 %v7007_v2  ;;  %v7010_v57 = vld [vmem:[#allocation10 + $0x3d0] sm:$0xff] }
 0x3d9   :  { %9500 = vst [vmem:[#allocation106_spill] sm:$0xff] %v6995_v21  ;;  %2336 = vmatpush.msrb.mxu1 %v7010_v57  ;;  %v7013_v21 = vld [vmem:[#allocation10 + $0x3d8] sm:$0xff] }
 0x3da   :  { %9501 = vst [vmem:[#allocation52_spill] sm:$0xff] %v6998_v63  ;;  %2376 = vmatpush.msrb.mxu3 %v7013_v21  ;;  %v7016_v63 = vld [vmem:[#allocation10 + $0x120] sm:$0xff] }
 0x3db   :  { %9502 = vst [vmem:[#allocation109_spill] sm:$0xff] %v7001_v27  ;;  %2241 = vmatpush.msra.mxu0 %v7016_v63  ;;  %v7019_v27 = vld [vmem:[#allocation10 + $0x128] sm:$0xff] }
 0x3dc   :  { %9503 = vst [vmem:[#allocation53_spill] sm:$0xff] %v7004_v13  ;;  %2281 = vmatpush.msra.mxu2 %v7019_v27  ;;  %v7022_v13 = vld [vmem:[#allocation10 + $0x3b0] sm:$0xff] }
 0x3dd   :  { %9504 = vst [vmem:[#allocation110_spill] sm:$0xff] %v7007_v2  ;;  %2337 = vmatpush.msrb.mxu1 %v7022_v13  ;;  %v7025_v2 = vld [vmem:[#allocation10 + $0x3b8] sm:$0xff] }
 0x3de   :  { %9505 = vst [vmem:[#allocation56_spill] sm:$0xff] %v7010_v57  ;;  %2377 = vmatpush.msrb.mxu3 %v7025_v2  ;;  %v7028_v57 = vld [vmem:[#allocation10 + $0x100] sm:$0xff] }
 0x3df   :  { %9506 = vst [vmem:[#allocation57_spill] sm:$0xff] %v7013_v21  ;;  %2242 = vmatpush.msra.mxu0 %v7028_v57  ;;  %v7031_v21 = vld [vmem:[#allocation10 + $0x108] sm:$0xff] }
 0x3e0   :  { %9507 = vst [vmem:[#allocation64_spill] sm:$0xff] %v7016_v63  ;;  %2282 = vmatpush.msra.mxu2 %v7031_v21  ;;  %v7034_v63 = vld [vmem:[#allocation10 + $0x390] sm:$0xff] }
 0x3e1   :  { %9508 = vst [vmem:[#allocation65_spill] sm:$0xff] %v7019_v27  ;;  %2338 = vmatpush.msrb.mxu1 %v7034_v63  ;;  %v7037_v27 = vld [vmem:[#allocation10 + $0x398] sm:$0xff] }
 0x3e2   :  { %9509 = vst [vmem:[#allocation68_spill] sm:$0xff] %v7022_v13  ;;  %2378 = vmatpush.msrb.mxu3 %v7037_v27  ;;  %v7040_v13 = vld [vmem:[#allocation10 + $0xe0] sm:$0xff] }
 0x3e3   :  { %9510 = vst [vmem:[#allocation69_spill] sm:$0xff] %v7025_v2  ;;  %2243 = vmatpush.msra.mxu0 %v7040_v13  ;;  %v7043_v2 = vld [vmem:[#allocation10 + $0xe8] sm:$0xff] }
 0x3e4   :  { %9511 = vst [vmem:[#allocation72_spill] sm:$0xff] %v7028_v57  ;;  %2283 = vmatpush.msra.mxu2 %v7043_v2  ;;  %v7046_v57 = vld [vmem:[#allocation10 + $0x370] sm:$0xff] }
 0x3e5   :  { %9512 = vst [vmem:[#allocation73_spill] sm:$0xff] %v7031_v21  ;;  %2339 = vmatpush.msrb.mxu1 %v7046_v57  ;;  %v7049_v21 = vld [vmem:[#allocation10 + $0x378] sm:$0xff] }
 0x3e6   :  { %9513 = vst [vmem:[#allocation76_spill] sm:$0xff] %v7034_v63  ;;  %2379 = vmatpush.msrb.mxu3 %v7049_v21  ;;  %v7052_v63 = vld [vmem:[#allocation10 + $0xc0] sm:$0xff] }
 0x3e7   :  { %9514 = vst [vmem:[#allocation77_spill] sm:$0xff] %v7037_v27  ;;  %2244 = vmatpush.msra.mxu0 %v7052_v63  ;;  %v7055_v27 = vld [vmem:[#allocation10 + $0xc8] sm:$0xff] }
 0x3e8   :  { %9515 = vst [vmem:[#allocation84_spill] sm:$0xff] %v7040_v13  ;;  %2284 = vmatpush.msra.mxu2 %v7055_v27  ;;  %v7058_v13 = vld [vmem:[#allocation10 + $0x350] sm:$0xff] }
 0x3e9   :  { %9516 = vst [vmem:[#allocation85_spill] sm:$0xff] %v7043_v2  ;;  %2340 = vmatpush.msrb.mxu1 %v7058_v13  ;;  %v7061_v2 = vld [vmem:[#allocation10 + $0x358] sm:$0xff] }
 0x3ea   :  { %9517 = vst [vmem:[#allocation88_spill] sm:$0xff] %v7046_v57  ;;  %2380 = vmatpush.msrb.mxu3 %v7061_v2  ;;  %v7064_v57 = vld [vmem:[#allocation10 + $0xa0] sm:$0xff] }
 0x3eb   :  { %9518 = vst [vmem:[#allocation89_spill] sm:$0xff] %v7049_v21  ;;  %2245 = vmatpush.msra.mxu0 %v7064_v57  ;;  %v7067_v21 = vld [vmem:[#allocation10 + $0xa8] sm:$0xff] }
 0x3ec   :  { %9519 = vst [vmem:[#allocation92_spill] sm:$0xff] %v7052_v63  ;;  %2285 = vmatpush.msra.mxu2 %v7067_v21  ;;  %v7070_v63 = vld [vmem:[#allocation10 + $0x330] sm:$0xff] }
 0x3ed   :  { %9520 = vst [vmem:[#allocation93_spill] sm:$0xff] %v7055_v27  ;;  %2341 = vmatpush.msrb.mxu1 %v7070_v63  ;;  %v7073_v27 = vld [vmem:[#allocation10 + $0x338] sm:$0xff] }
 0x3ee   :  { %9521 = vst [vmem:[#allocation97_spill] sm:$0xff] %v7058_v13  ;;  %2381 = vmatpush.msrb.mxu3 %v7073_v27  ;;  %v7076_v13 = vld [vmem:[#allocation10 + $0x80] sm:$0xff] }
 0x3ef   :  { %9522 = vst [vmem:[#allocation98_spill] sm:$0xff] %v7061_v2  ;;  %2246 = vmatpush.msra.mxu0 %v7076_v13  ;;  %v7079_v2 = vld [vmem:[#allocation10 + $0x88] sm:$0xff] }
 0x3f0   :  { %9523 = vst [vmem:[#allocation103_spill] sm:$0xff] %v7064_v57  ;;  %2286 = vmatpush.msra.mxu2 %v7079_v2  ;;  %v7082_v57 = vld [vmem:[#allocation10 + $0x310] sm:$0xff] }
 0x3f1   :  { %9524 = vst [vmem:[#allocation104_spill] sm:$0xff] %v7067_v21  ;;  %2342 = vmatpush.msrb.mxu1 %v7082_v57  ;;  %v7085_v21 = vld [vmem:[#allocation10 + $0x318] sm:$0xff] }
 0x3f2   :  { %9525 = vst [vmem:[#allocation107_spill] sm:$0xff] %v7070_v63  ;;  %2382 = vmatpush.msrb.mxu3 %v7085_v21  ;;  %v7088_v63 = vld [vmem:[#allocation10 + $0x60] sm:$0xff] }
 0x3f3   :  { %9526 = vst [vmem:[#allocation108_spill] sm:$0xff] %v7073_v27  ;;  %2247 = vmatpush.msra.mxu0 %v7088_v63  ;;  %v7091_v27 = vld [vmem:[#allocation10 + $0x68] sm:$0xff] }
 0x3f4   :  { %9527 = vst [vmem:[#allocation111_spill] sm:$0xff] %v7076_v13  ;;  %2287 = vmatpush.msra.mxu2 %v7091_v27  ;;  %v7094_v13 = vld [vmem:[#allocation10 + $0x2f0] sm:$0xff] }
 0x3f5   :  { %9528 = vst [vmem:[#allocation112_spill] sm:$0xff] %v7079_v2  ;;  %2343 = vmatpush.msrb.mxu1 %v7094_v13  ;;  %v7097_v2 = vld [vmem:[#allocation10 + $0x2f8] sm:$0xff] }
 0x3f6   :  { %9529 = vst [vmem:[#allocation116_spill] sm:$0xff] %v7082_v57  ;;  %2383 = vmatpush.msrb.mxu3 %v7097_v2  ;;  %v7100_v57 = vld [vmem:[#allocation10 + $0x40] sm:$0xff] }
 0x3f7   :  { %9530 = vst [vmem:[#allocation117_spill] sm:$0xff] %v7085_v21  ;;  %2248 = vmatpush.msra.mxu0 %v7100_v57  ;;  %v7103_v21 = vld [vmem:[#allocation10 + $0x48] sm:$0xff] }
 0x3f8   :  { %9531 = vst [vmem:[#allocation119_spill] sm:$0xff] %v7088_v63  ;;  %2288 = vmatpush.msra.mxu2 %v7103_v21  ;;  %v7106_v63 = vld [vmem:[#allocation10 + $0x2d0] sm:$0xff] }
 0x3f9   :  { %9532 = vst [vmem:[#allocation123_spill] sm:$0xff] %v7091_v27  ;;  %2344 = vmatpush.msrb.mxu1 %v7106_v63  ;;  %v7109_v27 = vld [vmem:[#allocation10 + $0x2d8] sm:$0xff] }
 0x3fa   :  { %9533 = vst [vmem:[#allocation124_spill] sm:$0xff] %v7094_v13  ;;  %2384 = vmatpush.msrb.mxu3 %v7109_v27  ;;  %v7112_v13 = vld [vmem:[#allocation10 + $0x20] sm:$0xff] }
 0x3fb   :  { %9534 = vst [vmem:[#allocation125_spill] sm:$0xff] %v7097_v2  ;;  %2249 = vmatpush.msra.mxu0 %v7112_v13  ;;  %v7115_v2 = vld [vmem:[#allocation10 + $0x28] sm:$0xff] }
 0x3fc   :  { %9535 = vst [vmem:[#allocation128_spill] sm:$0xff] %v7100_v57  ;;  %2289 = vmatpush.msra.mxu2 %v7115_v2  ;;  %v7118_v57 = vld [vmem:[#allocation10 + $0x2b0] sm:$0xff] }
 0x3fd   :  { %9536 = vst [vmem:[#allocation29_spill] sm:$0xff] %v7103_v21  ;;  %2345 = vmatpush.msrb.mxu1 %v7118_v57  ;;  %v7121_v21 = vld [vmem:[#allocation10 + $0x2b8] sm:$0xff] }
 0x3fe   :  { %9537 = vst [vmem:[#allocation40_spill] sm:$0xff] %v7106_v63  ;;  %2385 = vmatpush.msrb.mxu3 %v7121_v21  ;;  %v7124_v63 = vld [vmem:[#allocation10] sm:$0xff] }
 0x3ff   :  { %9538 = vst [vmem:[#allocation28_spill] sm:$0xff] %v7109_v27  ;;  %2250 = vmatpush.msra.mxu0 %v7124_v63  ;;  %v7127_v27 = vld [vmem:[#allocation10 + $0x8] sm:$0xff] }
 0x400   :  { %9539 = vst [vmem:[#allocation39_spill] sm:$0xff] %v7112_v13  ;;  %2290 = vmatpush.msra.mxu2 %v7127_v27  ;;  %v7130_v13 = vld [vmem:[#allocation10 + $0x290] sm:$0xff] }
 0x401   :  { %9540 = vst [vmem:[#allocation19_spill] sm:$0xff] %v7115_v2  ;;  %2346 = vmatpush.msrb.mxu1 %v7130_v13  ;;  %v7133_v2 = vld [vmem:[#allocation10 + $0x298] sm:$0xff] }
 0x402   :  { %9541 = vst [vmem:[#allocation20_spill] sm:$0xff] %v7118_v57  ;;  %2386 = vmatpush.msrb.mxu3 %v7133_v2  ;;  %v7136_v57 = vld [vmem:[#allocation10 + $0x1f0] sm:$0xff] }
 0x403   :  { %9542 = vst [vmem:[#allocation21_spill] sm:$0xff] %v7121_v21  ;;  %2315 = vmatpush.msrb.mxu0 %v7136_v57  ;;  %v7139_v21 = vld [vmem:[#allocation10 + $0x1f8] sm:$0xff] }
 0x404   :  { %9543 = vst [vmem:[#allocation22_spill] sm:$0xff] %v7124_v63  ;;  %2355 = vmatpush.msrb.mxu2 %v7139_v21  ;;  %v7142_v63 = vld [vmem:[#allocation10 + $0x270] sm:$0xff] }
 0x405   :  { %9544 = vst [vmem:[#allocation23_spill] sm:$0xff] %v7127_v27  ;;  %2347 = vmatpush.msrb.mxu1 %v7142_v63  ;;  %v7145_v27 = vld [vmem:[#allocation10 + $0x278] sm:$0xff] }
 0x406   :  { %9545 = vst [vmem:[#allocation24_spill] sm:$0xff] %v7130_v13  ;;  %2387 = vmatpush.msrb.mxu3 %v7145_v27  ;;  %v7148_v13 = vld [vmem:[#allocation10 + $0x1d0] sm:$0xff] }
 0x407   :  { %9546 = vst [vmem:[#allocation25_spill] sm:$0xff] %v7133_v2  ;;  %2316 = vmatpush.msrb.mxu0 %v7148_v13  ;;  %v7151_v2 = vld [vmem:[#allocation10 + $0x1d8] sm:$0xff] }
 0x408   :  { %9547 = vst [vmem:[#allocation26_spill] sm:$0xff] %v7136_v57  ;;  %2356 = vmatpush.msrb.mxu2 %v7151_v2  ;;  %v7154_v57 = vld [vmem:[#allocation10 + $0x250] sm:$0xff] }
 0x409   :  { %9548 = vst [vmem:[#allocation27_spill] sm:$0xff] %v7139_v21  ;;  %2348 = vmatpush.msrb.mxu1 %v7154_v57  ;;  %v7157_v21 = vld [vmem:[#allocation10 + $0x258] sm:$0xff] }
 0x40a   :  { %9549 = vst [vmem:[#allocation133_spill] sm:$0xff] %v7142_v63  ;;  %2388 = vmatpush.msrb.mxu3 %v7157_v21  ;;  %v7160_v63 = vld [vmem:[#allocation10 + $0x1b0] sm:$0xff] }
 0x40b   :  { %9550 = vst [vmem:[#allocation134_spill] sm:$0xff] %v7145_v27  ;;  %2317 = vmatpush.msrb.mxu0 %v7160_v63  ;;  %v7163_v27 = vld [vmem:[#allocation10 + $0x1b8] sm:$0xff] }
 0x40c   :  { %9551 = vst [vmem:[#allocation135_spill] sm:$0xff] %v7148_v13  ;;  %2357 = vmatpush.msrb.mxu2 %v7163_v27  ;;  %v7166_v13 = vld [vmem:[#allocation10 + $0x230] sm:$0xff] }
 0x40d   :  { %9552 = vst [vmem:[#allocation136_spill] sm:$0xff] %v7151_v2  ;;  %2349 = vmatpush.msrb.mxu1 %v7166_v13  ;;  %v7169_v2 = vld [vmem:[#allocation10 + $0x238] sm:$0xff] }
 0x40e   :  { %9553 = vst [vmem:[#allocation137_spill] sm:$0xff] %v7154_v57  ;;  %2389 = vmatpush.msrb.mxu3 %v7169_v2  ;;  %v7172_v57 = vld [vmem:[#allocation10 + $0x190] sm:$0xff] }
 0x40f   :  { %9554 = vst [vmem:[#allocation138_spill] sm:$0xff] %v7157_v21  ;;  %2318 = vmatpush.msrb.mxu0 %v7172_v57  ;;  %v7175_v21 = vld [vmem:[#allocation10 + $0x198] sm:$0xff] }
 0x410   :  { %9555 = vst [vmem:[#allocation139_spill] sm:$0xff] %v7160_v63  ;;  %2358 = vmatpush.msrb.mxu2 %v7175_v21  ;;  %v7178_v63 = vld [vmem:[#allocation10 + $0x210] sm:$0xff] }
 0x411   :  { %9556 = vst [vmem:[#allocation140_spill] sm:$0xff] %v7163_v27  ;;  %2350 = vmatpush.msrb.mxu1 %v7178_v63  ;;  %v7181_v27 = vld [vmem:[#allocation10 + $0x218] sm:$0xff] }
 0x412   :  { %9557 = vst [vmem:[#allocation141_spill] sm:$0xff] %v7166_v13  ;;  %2390 = vmatpush.msrb.mxu3 %v7181_v27  ;;  %v7184_v13 = vld [vmem:[#allocation10 + $0x170] sm:$0xff] }
 0x413   :  { %9558 = vst [vmem:[#allocation142_spill] sm:$0xff] %v7169_v2  ;;  %2319 = vmatpush.msrb.mxu0 %v7184_v13  ;;  %v7187_v2 = vld [vmem:[#allocation10 + $0x178] sm:$0xff] }
 0x414   :  { %9559 = vst [vmem:[#allocation143_spill] sm:$0xff] %v7172_v57  ;;  %2359 = vmatpush.msrb.mxu2 %v7187_v2  ;;  %v7190_v57 = vld [vmem:[#allocation10 + $0x150] sm:$0xff]  ;;  %v1942_v29 = vpop.f32.mrf.mxu3 }
 0x415   :  { %9560 = vst [vmem:[#allocation144_spill] sm:$0xff] %v7175_v21  ;;  %2320 = vmatpush.msrb.mxu0 %v7190_v57  ;;  %v7193_v21 = vld [vmem:[#allocation10 + $0x158] sm:$0xff] }
 0x416   :  { %9561 = vst [vmem:[#allocation145_spill] sm:$0xff] %v7178_v63  ;;  %2360 = vmatpush.msrb.mxu2 %v7193_v21  ;;  %v7196_v63 = vld [vmem:[#allocation10 + $0x130] sm:$0xff] }
 0x417   :  { %9562 = vst [vmem:[#allocation146_spill] sm:$0xff] %v7181_v27  ;;  %2321 = vmatpush.msrb.mxu0 %v7196_v63  ;;  %v7199_v27 = vld [vmem:[#allocation10 + $0x138] sm:$0xff] }
 0x418   :  { %9563 = vst [vmem:[#allocation147_spill] sm:$0xff] %v7184_v13  ;;  %2361 = vmatpush.msrb.mxu2 %v7199_v27  ;;  %v7202_v13 = vld [vmem:[#allocation10 + $0x110] sm:$0xff] }
 0x419   :  { %9564 = vst [vmem:[#allocation148_spill] sm:$0xff] %v7187_v2  ;;  %2322 = vmatpush.msrb.mxu0 %v7202_v13  ;;  %v7205_v2 = vld [vmem:[#allocation10 + $0x118] sm:$0xff] }
 0x41a   :  { %9565 = vst [vmem:[#allocation149_spill] sm:$0xff] %v7190_v57  ;;  %2362 = vmatpush.msrb.mxu2 %v7205_v2  ;;  %v7208_v57 = vld [vmem:[#allocation10 + $0xf0] sm:$0xff] }
 0x41b   :  { %9566 = vst [vmem:[#allocation150_spill] sm:$0xff] %v7193_v21  ;;  %2323 = vmatpush.msrb.mxu0 %v7208_v57  ;;  %v7211_v21 = vld [vmem:[#allocation10 + $0xf8] sm:$0xff] }
 0x41c   :  { %9567 = vst [vmem:[#allocation151_spill] sm:$0xff] %v7196_v63  ;;  %2363 = vmatpush.msrb.mxu2 %v7211_v21  ;;  %v7214_v63 = vld [vmem:[#allocation10 + $0xd0] sm:$0xff]  ;;  %v2022_v26 = vpop.f32.mrf.mxu3 }
 0x41d   :  { %9568 = vst [vmem:[#allocation152_spill] sm:$0xff] %v7199_v27  ;;  %2324 = vmatpush.msrb.mxu0 %v7214_v63  ;;  %v7217_v27 = vld [vmem:[#allocation10 + $0xd8] sm:$0xff] }
 0x41e   :  { %9569 = vst [vmem:[#allocation153_spill] sm:$0xff] %v7202_v13  ;;  %2364 = vmatpush.msrb.mxu2 %v7217_v27  ;;  %v7220_v13 = vld [vmem:[#allocation10 + $0xb0] sm:$0xff] }
 0x41f   :  { %9570 = vst [vmem:[#allocation154_spill] sm:$0xff] %v7205_v2  ;;  %2325 = vmatpush.msrb.mxu0 %v7220_v13  ;;  %v7223_v2 = vld [vmem:[#allocation10 + $0xb8] sm:$0xff] }
 0x420   :  { %9571 = vst [vmem:[#allocation155_spill] sm:$0xff] %v7208_v57  ;;  %2365 = vmatpush.msrb.mxu2 %v7223_v2  ;;  %v7226_v57 = vld [vmem:[#allocation10 + $0x90] sm:$0xff] }
 0x421   :  { %9572 = vst [vmem:[#allocation156_spill] sm:$0xff] %v7211_v21  ;;  %2326 = vmatpush.msrb.mxu0 %v7226_v57  ;;  %v7229_v21 = vld [vmem:[#allocation10 + $0x98] sm:$0xff] }
 0x422   :  { %9573 = vst [vmem:[#allocation157_spill] sm:$0xff] %v7214_v63  ;;  %2366 = vmatpush.msrb.mxu2 %v7229_v21  ;;  %v7232_v63 = vld [vmem:[#allocation10 + $0x70] sm:$0xff] }
 0x423   :  { %9574 = vst [vmem:[#allocation158_spill] sm:$0xff] %v7217_v27  ;;  %2327 = vmatpush.msrb.mxu0 %v7232_v63  ;;  %v7235_v27 = vld [vmem:[#allocation10 + $0x78] sm:$0xff] }
 0x424   :  { %9575 = vst [vmem:[#allocation159_spill] sm:$0xff] %v7220_v13  ;;  %2367 = vmatpush.msrb.mxu2 %v7235_v27  ;;  %v7238_v13 = vld [vmem:[#allocation10 + $0x50] sm:$0xff] }
 0x425   :  { %9576 = vst [vmem:[#allocation160_spill] sm:$0xff] %v7223_v2  ;;  %2328 = vmatpush.msrb.mxu0 %v7238_v13  ;;  %v7241_v2 = vld [vmem:[#allocation10 + $0x58] sm:$0xff] }
 0x426   :  { %9577 = vst [vmem:[#allocation161_spill] sm:$0xff] %v7226_v57  ;;  %2368 = vmatpush.msrb.mxu2 %v7241_v2  ;;  %v7244_v57 = vld [vmem:[#allocation10 + $0x30] sm:$0xff] }
 0x427   :  { %9578 = vst [vmem:[#allocation162_spill] sm:$0xff] %v7229_v21  ;;  %2329 = vmatpush.msrb.mxu0 %v7244_v57  ;;  %v7247_v21 = vld [vmem:[#allocation10 + $0x38] sm:$0xff]  ;;  %v1882_v47 = vpop.f32.mrf.mxu0 }
 0x428   :  { %9579 = vst [vmem:[#allocation163_spill] sm:$0xff] %v7232_v63  ;;  %2369 = vmatpush.msrb.mxu2 %v7247_v21  ;;  %v7250_v63 = vld [vmem:[#allocation10 + $0x10] sm:$0xff] }
 0x429   :  { %9580 = vst [vmem:[#allocation164_spill] sm:$0xff] %v7235_v27  ;;  %2330 = vmatpush.msrb.mxu0 %v7250_v63  ;;  %v7253_v27 = vld [vmem:[#allocation10 + $0x18] sm:$0xff] }
 0x42a   :  { %9581 = vst [vmem:[#allocation165_spill] sm:$0xff] %v7238_v13  ;;  %2370 = vmatpush.msrb.mxu2 %v7253_v27  ;;  %v1902_v13 = vpop.f32.mrf.mxu1 }
 0x42b   :  { %9582 = vst [vmem:[#allocation166_spill] sm:$0xff] %v7241_v2  ;;  %v1883_v2 = vadd.f32 %v1882_v47, %v9447_v33 }
 0x42c   :  { %9583 = vst [vmem:[#allocation167_spill] sm:$0xff] %v7244_v57 }
 0x42d   :  { %9584 = vst [vmem:[#allocation168_spill] sm:$0xff] %v7247_v21  ;;  %v1903_v36 = vadd.f32 %v1902_v13, %v1883_v2  ;;  %v1922_v5 = vpop.f32.mrf.mxu2  ;;  %v9588_v13 = vld [vmem:[#allocation32_spill] sm:$0xff] }
 0x42e   :  { %9585 = vst [vmem:[#allocation169_spill] sm:$0xff] %v7250_v63  ;;  %v1923_v21 = vadd.f32 %v1922_v5, %v9448_v53  ;;  %v515_v63 = vadd.f32 %v9587_v32, %v9449_v20  ;;  %v9590_v32 = vld [vmem:[#allocation96_spill] sm:$0xff] }
 0x42f   :  { %9586 = vst [vmem:[#allocation170_spill] sm:$0xff] %v7253_v27  ;;  %v3686_v57 = vmul.f32 -1.442695, %v1903_v36 }
 0x430   :  { %v1943_v9 = vadd.f32 %v1942_v29, %v1923_v21  ;;  %v9589_v21 = vld [vmem:[#allocation131_spill] sm:$0xff] }
 0x431   :  { %3838 = vpow2.f32 %v3686_v57  ;;  %v1962_v57 = vpop.f32.mrf.mxu0  ;;  %v597_v20 = vadd.f32 %v9590_v32, %v9589_v21 }
 0x432   :  { %v1982_v42 = vpop.f32.mrf.mxu1  ;;  %v3687_v16 = vmul.f32 -1.442695, %v1943_v9 }
 0x434   :  { %3840 = vpow2.f32 %v3687_v16 }
 0x436   :  { %v2002_v47 = vpop.f32.mrf.mxu2 }
 0x437   :  { %v3839_v30 = vpop.eup %3838  ;;  %v2003_v36 = vadd.f32 %v2002_v47, %v9588_v13 }
 0x438   :  { %v2028_v24 = vadd.f32 1.0, %v3839_v30  ;;  %v2165_v29 = vpop.f32.mrf.mxu3 }
 0x439   :  { %v2023_v61 = vadd.f32 %v2022_v26, %v2003_v36 }
 0x43a   :  { %v2125_v1 = vpop.f32.mrf.mxu1  ;;  %3842 = vrcp.f32 %v2028_v24  ;;  %v3841_v2 = vpop.eup %3840  ;;  %vm2034_vm7 = vweird.f32 %v2028_v24 }
 0x43b   :  { %v2169_v27 = vadd.f32 %v2125_v1, %v515_v63  ;;  %v2047_v5 = vadd.f32 1.0, %v3841_v2  ;;  %v3688_v9 = vmul.f32 -1.442695, %v2023_v61  ;;  %v9591_v1 = vld [vmem:[#allocation33_spill] sm:$0xff]  ;;  %v2171_v63 = vadd.f32 %v2165_v29, %v597_v20  ;;  %v9592_v20 = vld [vmem:[#allocation126_spill] sm:$0xff] }
 0x43c   :  { %v1963_v16 = vadd.f32 %v1962_v57, %v9591_v1  ;;  %v2040_v61 = vand.u32 2147483648, %v2028_v24  ;;  %v2038_v57 = vand.u32 2147483647, %v2028_v24  ;;  %v9593_v29 = vld [vmem:[#allocation82_spill] sm:$0xff] }
 0x43d   :  { %v3690_v33 = vmul.f32 -1.442695, %v2169_v27  ;;  %v3691_v34 = vmul.f32 -1.442695, %v2171_v63  ;;  %vm2053_vm10 = vweird.f32 %v2047_v5 }
 0x43e   :  { %v1983_v47 = vadd.f32 %v1982_v42, %v1963_v16  ;;  %v2059_v42 = vand.u32 2147483648, %v2047_v5  ;;  %vm2039_vm11 = vcmp.eq.f32.partialorder %v2038_v57, 8.507059e+37 }
 0x43f   :  { %3844 = vpow2.f32 %v3690_v33 }
 0x440   :  { %v3843_v53 = vpop.eup %3842  ;;  %3846 = vrcp.f32 %v2047_v5 }
 0x441   :  { %v2030_v30 = vmul.f32 %v3843_v53, %v2028_v24  ;;  %3848 = vpow2.f32 %v3688_v9  ;;  %vm2035_vm6 = vweird.f32 %v3843_v53  ;;  %v474_v9 = vadd.f32 %v9593_v29, %v9592_v20 }
 0x442   :  { %3850 = vtanh.f32 %v1983_v47  ;;  %vm7268_vm8 = vmor %vm2034_vm7, %vm2035_vm6  ;;  %v2041_v24 = vor.u32 1.1754944e-38, %v2040_v61 }
 0x443   :  { %v2031_v27 = vsub.f32 1.0, %v2030_v30  ;;  %3852 = vpow2.f32 %v3691_v34  ;;  %v2057_v30 = vand.u32 2147483647, %v2047_v5 }
 0x445   :  { %v3845_v22 = vpop.eup %3844  ;;  %v2032_v13 = vmul.f32 %v3843_v53, %v2031_v27  ;;  %vm2058_vm13 = vcmp.eq.f32.partialorder %v2057_v30, 8.507059e+37 }
 0x446   :  { %v3847_v26 = vpop.eup %3846  ;;  %v7264_v10 = vadd.f32 1.0, %v3845_v22 }
 0x447   :  { %v3849_v36 = vpop.eup %3848  ;;  %v2049_v33 = vmul.f32 %v3847_v26, %v2047_v5  ;;  %v2033_v2 = vadd.f32 %v3843_v53, %v2032_v13  ;;  %vm2054_vm9 = vweird.f32 %v3847_v26 }
 0x448   :  { %v2067_v32 = vadd.f32 1.0, %v3849_v36  ;;  %v2105_v63 = vpop.f32.mrf.mxu0  ;;  %v3851_v47 = vpop.eup %3850  ;;  %vm2055_vm12 = vmor %vm2053_vm10, %vm2054_vm9  ;;  %v2060_v36 = vor.u32 1.1754944e-38, %v2059_v42  ;;  %vm2200_vm3 = vweird.f32 %v7264_v10 }
 0x449   :  { %v2050_v21 = vsub.f32 1.0, %v2049_v33  ;;  %v2037_v22 = vsel %vm7268_vm8, %v3843_v53, %v2033_v2  ;;  %v2168_v34 = vadd.f32 %v2105_v63, %v474_v9  ;;  %v3853_v20 = vpop.eup %3852 }
 0x44a   :  { %3854 = vrcp.f32 %v2067_v32  ;;  %v2042_v33 = vsel %vm2039_vm11, %v2041_v24, %v2037_v22  ;;  %v7282_v16 = vadd.f32 1.0, %v3853_v20  ;;  %v2079_v30 = vand.u32 2147483648, %v2067_v32 }
 0x44b   :  { %v2051_v13 = vmul.f32 %v3847_v26, %v2050_v21  ;;  %3856 = vrcp.f32 %v7264_v10  ;;  %v3689_v29 = vmul.f32 -1.442695, %v2168_v34  ;;  %v2084_v61 = vmul.f32 %v3851_v47, %v2042_v33  ;;  %v9596_v33 = vld [vmem:[#allocation102_spill] sm:$0xff] }
 0x44c   :  { %vm2073_vm15 = vweird.f32 %v2067_v32  ;;  %vm2220_vm11 = vweird.f32 %v7282_v16 }
 0x44d   :  { %v2052_v27 = vadd.f32 %v3847_v26, %v2051_v13  ;;  %3858 = vpow2.f32 %v3689_v29  ;;  %v2077_v13 = vand.u32 2147483647, %v2067_v32  ;;  %v556_v29 = vadd.f32 %v9596_v33, %v5482_v51  ;;  %v7344_v33 = vld [vmem:[#allocation7 + $0x1e0] sm:$0xff] }
 0x44f   :  { %v2056_v1 = vsel %vm2055_vm12, %v3847_v26, %v2052_v27  ;;  %vm2078_vm1 = vcmp.eq.f32.partialorder %v2077_v13, 8.507059e+37  ;;  %v2145_v47 = vpop.f32.mrf.mxu2 }
 0x450   :  { %v3855_v21 = vpop.eup %3854  ;;  %v2061_v3 = vsel %vm2058_vm13, %v2060_v36, %v2056_v1 }
 0x451   :  { %v7275_v53 = vpop.eup %3856  ;;  %v2083_v2 = vmul.f32 %v2061_v3, %v6689_v18  ;;  %v2069_v9 = vmul.f32 %v3855_v21, %v2067_v32  ;;  %vm2074_vm14 = vweird.f32 %v3855_v21  ;;  %v2080_v3 = vor.u32 1.1754944e-38, %v2079_v30 }
 0x452   :  { %v2196_v42 = vmul.f32 %v7275_v53, %v7264_v10  ;;  %vm2075_vm0 = vmor %vm2073_vm15, %vm2074_vm14  ;;  %v2170_v32 = vadd.f32 %v2145_v47, %v556_v29  ;;  %vm2201_vm2 = vweird.f32 %v7275_v53  ;;  %v7402_v29 = vld [vmem:[#allocation7 + $0x100] sm:$0xff] }
 0x453   :  { %v7278_v5 = vadd.f32 %v2084_v61, %v2083_v2  ;;  %v2070_v57 = vsub.f32 1.0, %v2069_v9  ;;  %v3859_v1 = vpop.eup %3858  ;;  %vm7302_vm4 = vmor %vm2200_vm3, %vm2201_vm2 }
 0x454   :  { %v2175_v22 = vadd.f32 1.0, %v3859_v1  ;;  %v2197_v18 = vsub.f32 1.0, %v2196_v42  ;;  %v9599_v1 = vld [vmem:[#allocation43_spill] sm:$0xff] }
 0x455   :  { %3860 = vtanh.f32 %v7278_v5  ;;  %v2071_v26 = vmul.f32 %v3855_v21, %v2070_v57  ;;  %v2206_v57 = vand.u32 2147483648, %v7264_v10 }
 0x456   :  { %3862 = vrcp.f32 %v7282_v16  ;;  %v2198_v27 = vmul.f32 %v7275_v53, %v2197_v18  ;;  %v2187_v30 = vand.u32 2147483648, %v2175_v22  ;;  %vm2181_vm6 = vweird.f32 %v2175_v22 }
 0x457   :  { %v2072_v63 = vadd.f32 %v3855_v21, %v2071_v26  ;;  %3864 = vrcp.f32 %v2175_v22 }
 0x458   :  { %v2199_v9 = vadd.f32 %v7275_v53, %v2198_v27  ;;  %3866 = vtanh.f32 %v2170_v32  ;;  %v9603_v27 = vld [vmem:[#allocation34_spill] sm:$0xff]  ;;  %v7430_v32 = vld [vmem:[#allocation7 + $0xb0] sm:$0xff] }
 0x459   :  { %v2076_v24 = vsel %vm2075_vm0, %v3855_v21, %v2072_v63  ;;  %v2207_v63 = vor.u32 1.1754944e-38, %v2206_v57  ;;  %v7438_v57 = vld [vmem:[#allocation7 + $0x90] sm:$0xff] }
 0x45a   :  { %v2081_v34 = vsel %vm2078_vm1, %v2080_v3, %v2076_v24 }
 0x45b   :  { %v3861_v20 = vpop.eup %3860 }
 0x45c   :  { %v2087_v36 = vmul.f32 %v3861_v20, %v2081_v34  ;;  %v7289_v2 = vpop.eup %3862  ;;  %v9600_v34 = vld [vmem:[#allocation60_spill] sm:$0xff] }
 0x45d   :  { %v3865_v61 = vpop.eup %3864  ;;  %v2216_v42 = vmul.f32 %v7289_v2, %v7282_v16  ;;  %vm2221_vm10 = vweird.f32 %v7289_v2 }
 0x45e   :  { %2271 = vmatmul.f32.vlgmr.msra.gmra.mxu1 %v2087_v36  ;;  %2311 = vmatmul.f32.vlgmr.msra.gmra.mxu3 %v2087_v36  ;;  %v2177_v21 = vmul.f32 %v3865_v61, %v2175_v22  ;;  %vm2182_vm5 = vweird.f32 %v3865_v61  ;;  %vm2222_vm12 = vmor %vm2220_vm11, %vm2221_vm10 }
 0x45f   :  { %2478 = vmatpush.msra.mxu1 %v6705_v14  ;;  %2518 = vmatpush.msra.mxu3 %v6708_v28  ;;  %v2204_v14 = vand.u32 2147483647, %v7264_v10  ;;  %v2217_v18 = vsub.f32 1.0, %v2216_v42  ;;  %vm2183_vm8 = vmor %vm2181_vm6, %vm2182_vm5  ;;  %v9609_v42 = vld [vmem:[#allocation50_spill] sm:$0xff]  ;;  %v7446_v28 = vld [vmem:[#allocation7 + $0x70] sm:$0xff] }
 0x460   :  { %v2178_v26 = vsub.f32 1.0, %v2177_v21  ;;  %v7434_v21 = vld [vmem:[#allocation7 + $0x80] sm:$0xff] }
 0x461   :  { %2479 = vmatpush.msra.mxu1 %v6717_v41  ;;  %2519 = vmatpush.msra.mxu3 %v6720_v46  ;;  %v2185_v41 = vand.u32 2147483647, %v2175_v22  ;;  %v2203_v46 = vsel %vm7302_vm4, %v7275_v53, %v2199_v9  ;;  %vm2205_vm7 = vcmp.eq.f32.partialorder %v2204_v14, 8.507059e+37  ;;  %v3867_v53 = vpop.eup %3866  ;;  %v2218_v20 = vmul.f32 %v7289_v2, %v2217_v18  ;;  %v9608_v9 = vld [vmem:[#allocation47_spill] sm:$0xff]  ;;  %v9614_v18 = vld [vmem:[#allocation61_spill] sm:$0xff] }
 0x462   :  { %v2179_v13 = vmul.f32 %v3865_v61, %v2178_v26  ;;  %v2208_v3 = vsel %vm2205_vm7, %v2207_v63, %v2203_v46  ;;  %v7442_v26 = vld [vmem:[#allocation7 + $0x60] sm:$0xff]  ;;  %v9610_v14 = vld [vmem:[#allocation51_spill] sm:$0xff] }
 0x463   :  { %2480 = vmatpush.msra.mxu1 %v9599_v1  ;;  %2520 = vmatpush.msra.mxu3 %v6733_v49  ;;  %v2188_v49 = vor.u32 1.1754944e-38, %v2187_v30  ;;  %vm2186_vm9 = vcmp.eq.f32.partialorder %v2185_v41, 8.507059e+37  ;;  %v9611_v30 = vld [vmem:[#allocation54_spill] sm:$0xff]  ;;  %v7454_v41 = vld [vmem:[#allocation7 + $0x50] sm:$0xff] }
 0x464   :  { %v2180_v10 = vadd.f32 %v3865_v61, %v2179_v13  ;;  %v7450_v1 = vld [vmem:[#allocation7 + $0x40] sm:$0xff]  ;;  %v9612_v13 = vld [vmem:[#allocation55_spill] sm:$0xff] }
 0x465   :  { %2481 = vmatpush.msra.mxu1 %v6740_v7  ;;  %2521 = vmatpush.msra.mxu3 %v6743_v55  ;;  %v2230_v55 = vmul.f32 %v2208_v3, %v6767_v31  ;;  %v9613_v46 = vld [vmem:[#allocation58_spill] sm:$0xff] }
 0x466   :  { %2351 = vmatmul.f32.vlgmr.msrb.gmra.mxu1 %v2087_v36  ;;  %2391 = vmatmul.f32.vlgmr.msrb.gmra.mxu3 %v2087_v36  ;;  %v2184_v24 = vsel %vm2183_vm8, %v3865_v61, %v2180_v10  ;;  %v7426_v61 = vld [vmem:[#allocation7 + $0xa0] sm:$0xff]  ;;  %v7462_v10 = vld [vmem:[#allocation7 + $0x30] sm:$0xff] }
 0x467   :  { %2482 = vmatpush.msra.mxu1 %v6747_v0  ;;  %2522 = vmatpush.msra.mxu3 %v6750_v17  ;;  %v2189_v7 = vsel %vm2186_vm9, %v2188_v49, %v2184_v24  ;;  %v2219_v17 = vadd.f32 %v7289_v2, %v2218_v20  ;;  %v7458_v63 = vld [vmem:[#allocation7 + $0x20] sm:$0xff]  ;;  %v9616_v24 = vld [vmem:[#allocation67_spill] sm:$0xff] }
 0x468   :  { %v2231_v22 = vmul.f32 %v3867_v53, %v2189_v7  ;;  %v9615_v49 = vld [vmem:[#allocation66_spill] sm:$0xff]  ;;  %v7470_v53 = vld [vmem:[#allocation7 + $0x10] sm:$0xff] }
 0x469   :  { %2483 = vmatpush.msra.mxu1 %v6754_v59  ;;  %2523 = vmatpush.msra.mxu3 %v6757_v35  ;;  %v2226_v59 = vand.u32 2147483648, %v7282_v16  ;;  %v2224_v35 = vand.u32 2147483647, %v7282_v16  ;;  %v2223_v31 = vsel %vm2222_vm12, %v7289_v2, %v2219_v17  ;;  %v7422_v2 = vld [vmem:[#allocation7 + $0xd0] sm:$0xff]  ;;  %v7466_v3 = vld [vmem:[#allocation7] sm:$0xff] }
 0x46a   :  { %v7321_v0 = vadd.f32 %v2231_v22, %v2230_v55  ;;  %v9617_v20 = vld [vmem:[#allocation70_spill] sm:$0xff]  ;;  %v9618_v7 = vld [vmem:[#allocation71_spill] sm:$0xff] }
 0x46b   :  { %2484 = vmatpush.msra.mxu1 %v6761_v38  ;;  %2524 = vmatpush.msra.mxu3 %v6764_v44  ;;  %v9601_v38 = vld [vmem:[#allocation42_spill] sm:$0xff]  ;;  %v9602_v44 = vld [vmem:[#allocation59_spill] sm:$0xff]  ;;  %vm2225_vm13 = vcmp.eq.f32.partialorder %v2224_v35, 8.507059e+37 }
 0x46c   :  { %3868 = vtanh.f32 %v7321_v0  ;;  %v9619_v55 = vld [vmem:[#allocation74_spill] sm:$0xff]  ;;  %v9620_v22 = vld [vmem:[#allocation75_spill] sm:$0xff] }
 0x46d   :  { %2485 = vmatpush.msra.mxu1 %v6771_v50  ;;  %2525 = vmatpush.msra.mxu3 %v9600_v34  ;;  %v2227_v50 = vor.u32 1.1754944e-38, %v2226_v59  ;;  %v9621_v17 = vld [vmem:[#allocation78_spill] sm:$0xff]  ;;  %v9622_v34 = vld [vmem:[#allocation81_spill] sm:$0xff]  ;;  %v9624_v35 = vld [vmem:[#allocation87_spill] sm:$0xff] }
 0x46e   :  { %v9623_v59 = vld [vmem:[#allocation86_spill] sm:$0xff] }
 0x46f   :  { %2486 = vmatpush.msra.mxu1 %v9601_v38  ;;  %2526 = vmatpush.msra.mxu3 %v9602_v44  ;;  %v2228_v36 = vsel %vm2225_vm13, %v2227_v50, %v2223_v31  ;;  %v9625_v38 = vld [vmem:[#allocation90_spill] sm:$0xff]  ;;  %v9626_v44 = vld [vmem:[#allocation91_spill] sm:$0xff]  ;;  %v9629_v50 = vld [vmem:[#allocation37_spill] sm:$0xff] }
 0x470   :  { %v9627_v31 = vld [vmem:[#allocation94_spill] sm:$0xff] }
 0x471   :  { %2487 = vmatpush.msra.mxu1 %v9603_v27  ;;  %2527 = vmatpush.msra.mxu3 %v6791_v11  ;;  %v7347_v11 = vld [vmem:[#allocation7 + $0x1f0] sm:$0xff] }
 0x472   :  { %v3869_v47 = vpop.eup %3868  ;;  %v9628_v27 = vld [vmem:[#allocation36_spill] sm:$0xff] }
 0x473   :  { %2488 = vmatpush.msra.mxu1 %v6794_v12  ;;  %2528 = vmatpush.msra.mxu3 %v6797_v39  ;;  %v7338_v16 = vmul.f32 %v3869_v47, %v2228_v36  ;;  %v7352_v39 = vld [vmem:[#allocation7 + $0x1c0] sm:$0xff]  ;;  %v7363_v12 = vld [vmem:[#allocation7 + $0x1b0] sm:$0xff] }
 0x474   :  { %v9630_v47 = vld [vmem:[#allocation95_spill] sm:$0xff]  ;;  %v9631_v36 = vld [vmem:[#allocation44_spill] sm:$0xff] }
 0x475   :  { %2489 = vmatpush.msra.mxu1 %v6802_v19  ;;  %2529 = vmatpush.msra.mxu3 %v6805_v56  ;;  %v7355_v19 = vld [vmem:[#allocation7 + $0x1d0] sm:$0xff]  ;;  %v7360_v56 = vld [vmem:[#allocation7 + $0x1a0] sm:$0xff] }
 0x476   :  { %2251 = vmatmul.f32.vlgmr.msra.gmra.mxu0 %v7338_v16  ;;  %2291 = vmatmul.f32.vlgmr.msra.gmra.mxu2 %v7338_v16 }
 0x477   :  { %2458 = vmatpush.msra.mxu0 %v7344_v33  ;;  %2498 = vmatpush.msra.mxu2 %v7347_v11 }
 0x478   :  { %2490 = vmatpush.msra.mxu1 %v6812_v45  ;;  %2530 = vmatpush.msra.mxu3 %v6815_v48  ;;  %v7368_v45 = vld [vmem:[#allocation7 + $0x180] sm:$0xff]  ;;  %v7371_v48 = vld [vmem:[#allocation7 + $0x190] sm:$0xff] }
 0x479   :  { %2459 = vmatpush.msra.mxu0 %v7352_v39  ;;  %2499 = vmatpush.msra.mxu2 %v7355_v19 }
 0x47a   :  { %2491 = vmatpush.msra.mxu1 %v6820_v40  ;;  %2531 = vmatpush.msra.mxu3 %v6823_v23  ;;  %v7378_v40 = vld [vmem:[#allocation7 + $0x160] sm:$0xff]  ;;  %v7382_v23 = vld [vmem:[#allocation7 + $0x170] sm:$0xff] }
 0x47b   :  { %2460 = vmatpush.msra.mxu0 %v7360_v56  ;;  %2500 = vmatpush.msra.mxu2 %v7363_v12 }
 0x47c   :  { %2492 = vmatpush.msra.mxu1 %v6828_v58  ;;  %2532 = vmatpush.msra.mxu3 %v6831_v62  ;;  %v7386_v58 = vld [vmem:[#allocation7 + $0x140] sm:$0xff]  ;;  %v7390_v62 = vld [vmem:[#allocation7 + $0x150] sm:$0xff] }
 0x47d   :  { %2461 = vmatpush.msra.mxu0 %v7368_v45  ;;  %2501 = vmatpush.msra.mxu2 %v7371_v48 }
 0x47e   :  { %2493 = vmatpush.msra.mxu1 %v6836_v15  ;;  %2533 = vmatpush.msra.mxu3 %v6839_v8  ;;  %v7394_v15 = vld [vmem:[#allocation7 + $0x120] sm:$0xff]  ;;  %v7398_v8 = vld [vmem:[#allocation7 + $0x130] sm:$0xff] }
 0x47f   :  { %2331 = vmatmul.f32.vlgmr.msrb.gmra.mxu0 %v7338_v16  ;;  %2371 = vmatmul.f32.vlgmr.msrb.gmra.mxu2 %v7338_v16 }
 0x480   :  { %2462 = vmatpush.msra.mxu0 %v7378_v40  ;;  %2494 = vmatmul.f32.vlgmr.msra.gmra.mxu1 %v7338_v16 }
 0x481   :  { %2502 = vmatpush.msra.mxu2 %v7382_v23  ;;  %2534 = vmatmul.f32.vlgmr.msra.gmra.mxu3 %v7338_v16 }
 0x482   :  { %2463 = vmatpush.msra.mxu0 %v7386_v58  ;;  %2625 = vmatpush.msrb.mxu1 %v6849_v52  ;;  %v7406_v52 = vld [vmem:[#allocation7 + $0x110] sm:$0xff] }
 0x483   :  { %2503 = vmatpush.msra.mxu2 %v7390_v62  ;;  %2665 = vmatpush.msrb.mxu3 %v6853_v60  ;;  %v7410_v60 = vld [vmem:[#allocation7 + $0xe0] sm:$0xff] }
 0x484   :  { %2464 = vmatpush.msra.mxu0 %v7394_v15  ;;  %2626 = vmatpush.msrb.mxu1 %v6857_v43  ;;  %v7414_v43 = vld [vmem:[#allocation7 + $0xf0] sm:$0xff] }
 0x485   :  { %2504 = vmatpush.msra.mxu2 %v7398_v8  ;;  %2666 = vmatpush.msrb.mxu3 %v6861_v4  ;;  %v7418_v4 = vld [vmem:[#allocation7 + $0xc0] sm:$0xff] }
 0x486   :  { %2465 = vmatpush.msra.mxu0 %v7402_v29  ;;  %2627 = vmatpush.msrb.mxu1 %v6865_v54  ;;  %v9604_v54 = vld [vmem:[#allocation35_spill] sm:$0xff] }
 0x487   :  { %2505 = vmatpush.msra.mxu2 %v7406_v52  ;;  %2667 = vmatpush.msrb.mxu3 %v6869_v25  ;;  %v9605_v25 = vld [vmem:[#allocation38_spill] sm:$0xff] }
 0x488   :  { %2466 = vmatpush.msra.mxu0 %v7410_v60  ;;  %2628 = vmatpush.msrb.mxu1 %v6873_v6  ;;  %v9606_v6 = vld [vmem:[#allocation41_spill] sm:$0xff] }
 0x489   :  { %2506 = vmatpush.msra.mxu2 %v7414_v43  ;;  %2668 = vmatpush.msrb.mxu3 %v6877_v37  ;;  %v9607_v37 = vld [vmem:[#allocation46_spill] sm:$0xff] }
 0x48a   :  { %2467 = vmatpush.msra.mxu0 %v7418_v4  ;;  %2629 = vmatpush.msrb.mxu1 %v9604_v54  ;;  %v9633_v54 = vld [vmem:[#allocation101_spill] sm:$0xff] }
 0x48b   :  { %2507 = vmatpush.msra.mxu2 %v7422_v2  ;;  %2669 = vmatpush.msrb.mxu3 %v9605_v25  ;;  %v9634_v25 = vld [vmem:[#allocation48_spill] sm:$0xff] }
 0x48c   :  { %2468 = vmatpush.msra.mxu0 %v7426_v61  ;;  %2630 = vmatpush.msrb.mxu1 %v9606_v6  ;;  %v9635_v6 = vld [vmem:[#allocation105_spill] sm:$0xff] }
 0x48d   :  { %2508 = vmatpush.msra.mxu2 %v7430_v32  ;;  %2670 = vmatpush.msrb.mxu3 %v9607_v37  ;;  %v9636_v37 = vld [vmem:[#allocation49_spill] sm:$0xff] }
 0x48e   :  { %2469 = vmatpush.msra.mxu0 %v7434_v21  ;;  %2631 = vmatpush.msrb.mxu1 %v9608_v9  ;;  %v9637_v9 = vld [vmem:[#allocation106_spill] sm:$0xff] }
 0x48f   :  { %2509 = vmatpush.msra.mxu2 %v7438_v57  ;;  %2671 = vmatpush.msrb.mxu3 %v9609_v42  ;;  %v9638_v42 = vld [vmem:[#allocation52_spill] sm:$0xff] }
 0x490   :  { %2470 = vmatpush.msra.mxu0 %v7442_v26  ;;  %2632 = vmatpush.msrb.mxu1 %v9610_v14  ;;  %v9639_v14 = vld [vmem:[#allocation109_spill] sm:$0xff] }
 0x491   :  { %2510 = vmatpush.msra.mxu2 %v7446_v28  ;;  %2672 = vmatpush.msrb.mxu3 %v9611_v30  ;;  %v9640_v30 = vld [vmem:[#allocation53_spill] sm:$0xff] }
 0x492   :  { %2471 = vmatpush.msra.mxu0 %v7450_v1  ;;  %2633 = vmatpush.msrb.mxu1 %v9612_v13  ;;  %v9641_v13 = vld [vmem:[#allocation110_spill] sm:$0xff] }
 0x493   :  { %2511 = vmatpush.msra.mxu2 %v7454_v41  ;;  %2673 = vmatpush.msrb.mxu3 %v9613_v46  ;;  %v9642_v46 = vld [vmem:[#allocation56_spill] sm:$0xff] }
 0x494   :  { %2472 = vmatpush.msra.mxu0 %v7458_v63  ;;  %2634 = vmatpush.msrb.mxu1 %v9614_v18  ;;  %v9643_v18 = vld [vmem:[#allocation57_spill] sm:$0xff] }
 0x495   :  { %2512 = vmatpush.msra.mxu2 %v7462_v10  ;;  %2674 = vmatpush.msrb.mxu3 %v9615_v49  ;;  %v9644_v49 = vld [vmem:[#allocation64_spill] sm:$0xff] }
 0x496   :  { %2473 = vmatpush.msra.mxu0 %v7466_v3  ;;  %2635 = vmatpush.msrb.mxu1 %v9616_v24  ;;  %v9645_v24 = vld [vmem:[#allocation65_spill] sm:$0xff] }
 0x497   :  { %2513 = vmatpush.msra.mxu2 %v7470_v53  ;;  %2474 = vmatmul.f32.vlgmr.msra.gmra.mxu0 %v7338_v16 }
 0x498   :  { %2514 = vmatmul.f32.vlgmr.msra.gmra.mxu2 %v7338_v16  ;;  %2675 = vmatpush.msrb.mxu3 %v9617_v20  ;;  %v9632_v16 = vld [vmem:[#allocation45_spill] sm:$0xff]  ;;  %v9646_v20 = vld [vmem:[#allocation68_spill] sm:$0xff] }
 0x499   :  { %2636 = vmatpush.msrb.mxu1 %v9618_v7  ;;  %2605 = vmatpush.msrb.mxu0 %v9619_v55  ;;  %v9647_v7 = vld [vmem:[#allocation69_spill] sm:$0xff]  ;;  %v9648_v55 = vld [vmem:[#allocation72_spill] sm:$0xff] }
 0x49a   :  { %2676 = vmatpush.msrb.mxu3 %v9620_v22  ;;  %2645 = vmatpush.msrb.mxu2 %v9621_v17  ;;  %v9649_v22 = vld [vmem:[#allocation73_spill] sm:$0xff]  ;;  %v9650_v17 = vld [vmem:[#allocation76_spill] sm:$0xff] }
 0x49b   :  { %2637 = vmatpush.msrb.mxu1 %v9622_v34  ;;  %2606 = vmatpush.msrb.mxu0 %v9623_v59  ;;  %v9651_v34 = vld [vmem:[#allocation77_spill] sm:$0xff]  ;;  %v9652_v59 = vld [vmem:[#allocation84_spill] sm:$0xff] }
 0x49c   :  { %2677 = vmatpush.msrb.mxu3 %v9624_v35  ;;  %2646 = vmatpush.msrb.mxu2 %v9625_v38  ;;  %v9653_v35 = vld [vmem:[#allocation85_spill] sm:$0xff]  ;;  %v9654_v38 = vld [vmem:[#allocation88_spill] sm:$0xff] }
 0x49d   :  { %2638 = vmatpush.msrb.mxu1 %v9626_v44  ;;  %2607 = vmatpush.msrb.mxu0 %v9627_v31  ;;  %v9655_v44 = vld [vmem:[#allocation89_spill] sm:$0xff]  ;;  %v9656_v31 = vld [vmem:[#allocation92_spill] sm:$0xff] }
 0x49e   :  { %2678 = vmatpush.msrb.mxu3 %v9628_v27  ;;  %2647 = vmatpush.msrb.mxu2 %v9629_v50  ;;  %v9657_v27 = vld [vmem:[#allocation93_spill] sm:$0xff] }
 0x49f   :  { %2639 = vmatpush.msrb.mxu1 %v9630_v47  ;;  %2608 = vmatpush.msrb.mxu0 %v9631_v36  ;;  %v9658_v50 = vld [vmem:[#allocation97_spill] sm:$0xff]  ;;  %v9659_v47 = vld [vmem:[#allocation98_spill] sm:$0xff]  ;;  %v9660_v36 = vld [vmem:[#allocation103_spill] sm:$0xff] }
 0x4a0   :  { %2679 = vmatpush.msrb.mxu3 %v9632_v16  ;;  %2648 = vmatpush.msrb.mxu2 %v9633_v54  ;;  %v9661_v16 = vld [vmem:[#allocation104_spill] sm:$0xff]  ;;  %v9662_v54 = vld [vmem:[#allocation107_spill] sm:$0xff] }
 0x4a1   :  { %2640 = vmatpush.msrb.mxu1 %v9634_v25  ;;  %2609 = vmatpush.msrb.mxu0 %v9635_v6  ;;  %v9663_v25 = vld [vmem:[#allocation108_spill] sm:$0xff]  ;;  %v9664_v6 = vld [vmem:[#allocation111_spill] sm:$0xff] }
 0x4a2   :  { %2680 = vmatpush.msrb.mxu3 %v9636_v37  ;;  %2649 = vmatpush.msrb.mxu2 %v9637_v9  ;;  %v9665_v37 = vld [vmem:[#allocation112_spill] sm:$0xff] }
 0x4a3   :  { %2705 = vmatpush.msra.mxu1 %v9638_v42  ;;  %2610 = vmatpush.msrb.mxu0 %v9640_v30  ;;  %v9666_v9 = vld [vmem:[#allocation116_spill] sm:$0xff]  ;;  %v9667_v42 = vld [vmem:[#allocation117_spill] sm:$0xff]  ;;  %v9669_v30 = vld [vmem:[#allocation123_spill] sm:$0xff] }
 0x4a4   :  { %2745 = vmatpush.msra.mxu3 %v9639_v14  ;;  %2650 = vmatpush.msrb.mxu2 %v9641_v13  ;;  %v9668_v14 = vld [vmem:[#allocation119_spill] sm:$0xff]  ;;  %v9670_v13 = vld [vmem:[#allocation124_spill] sm:$0xff] }
 0x4a5   :  { %2706 = vmatpush.msra.mxu1 %v9642_v46  ;;  %2611 = vmatpush.msrb.mxu0 %v9644_v49  ;;  %v9671_v46 = vld [vmem:[#allocation125_spill] sm:$0xff] }
 0x4a6   :  { %2746 = vmatpush.msra.mxu3 %v9643_v18  ;;  %2651 = vmatpush.msrb.mxu2 %v9645_v24  ;;  %v9672_v18 = vld [vmem:[#allocation128_spill] sm:$0xff]  ;;  %v9673_v49 = vld [vmem:[#allocation29_spill] sm:$0xff] }
 0x4a7   :  { %2707 = vmatpush.msra.mxu1 %v9646_v20  ;;  %2612 = vmatpush.msrb.mxu0 %v9648_v55  ;;  %v9674_v24 = vld [vmem:[#allocation40_spill] sm:$0xff]  ;;  %v9677_v55 = vld [vmem:[#allocation19_spill] sm:$0xff] }
 0x4a8   :  { %2747 = vmatpush.msra.mxu3 %v9647_v7  ;;  %2652 = vmatpush.msrb.mxu2 %v9649_v22  ;;  %v9675_v20 = vld [vmem:[#allocation28_spill] sm:$0xff]  ;;  %v9676_v7 = vld [vmem:[#allocation39_spill] sm:$0xff] }
 0x4a9   :  { %2708 = vmatpush.msra.mxu1 %v9650_v17  ;;  %2613 = vmatpush.msrb.mxu0 %v9652_v59  ;;  %v9678_v22 = vld [vmem:[#allocation20_spill] sm:$0xff]  ;;  %v9679_v17 = vld [vmem:[#allocation21_spill] sm:$0xff]  ;;  %v9681_v59 = vld [vmem:[#allocation23_spill] sm:$0xff] }
 0x4aa   :  { %2748 = vmatpush.msra.mxu3 %v9651_v34  ;;  %2653 = vmatpush.msrb.mxu2 %v9653_v35  ;;  %v9680_v34 = vld [vmem:[#allocation22_spill] sm:$0xff]  ;;  %v9682_v35 = vld [vmem:[#allocation24_spill] sm:$0xff] }
 0x4ab   :  { %2709 = vmatpush.msra.mxu1 %v9654_v38  ;;  %2614 = vmatpush.msrb.mxu0 %v9656_v31  ;;  %v9683_v38 = vld [vmem:[#allocation25_spill] sm:$0xff]  ;;  %v9685_v31 = vld [vmem:[#allocation27_spill] sm:$0xff] }
 0x4ac   :  { %2749 = vmatpush.msra.mxu3 %v9655_v44  ;;  %2654 = vmatpush.msrb.mxu2 %v9657_v27  ;;  %v9684_v44 = vld [vmem:[#allocation26_spill] sm:$0xff]  ;;  %v9686_v27 = vld [vmem:[#allocation133_spill] sm:$0xff] }
 0x4ad   :  { %2710 = vmatpush.msra.mxu1 %v9658_v50  ;;  %2615 = vmatpush.msrb.mxu0 %v9660_v36  ;;  %v9687_v50 = vld [vmem:[#allocation134_spill] sm:$0xff]  ;;  %v9689_v36 = vld [vmem:[#allocation136_spill] sm:$0xff] }
 0x4ae   :  { %2750 = vmatpush.msra.mxu3 %v9659_v47  ;;  %2655 = vmatpush.msrb.mxu2 %v9661_v16  ;;  %v9688_v47 = vld [vmem:[#allocation135_spill] sm:$0xff]  ;;  %v9690_v16 = vld [vmem:[#allocation137_spill] sm:$0xff] }
 0x4af   :  { %2711 = vmatpush.msra.mxu1 %v9662_v54  ;;  %2616 = vmatpush.msrb.mxu0 %v9664_v6  ;;  %v9691_v54 = vld [vmem:[#allocation138_spill] sm:$0xff]  ;;  %v9693_v6 = vld [vmem:[#allocation140_spill] sm:$0xff] }
 0x4b0   :  { %2751 = vmatpush.msra.mxu3 %v9663_v25  ;;  %2656 = vmatpush.msrb.mxu2 %v9665_v37  ;;  %v9692_v25 = vld [vmem:[#allocation139_spill] sm:$0xff]  ;;  %v9694_v37 = vld [vmem:[#allocation141_spill] sm:$0xff] }
 0x4b1   :  { %2712 = vmatpush.msra.mxu1 %v9666_v9  ;;  %2617 = vmatpush.msrb.mxu0 %v9668_v14  ;;  %v9695_v9 = vld [vmem:[#allocation142_spill] sm:$0xff]  ;;  %v9697_v14 = vld [vmem:[#allocation144_spill] sm:$0xff] }
 0x4b2   :  { %2752 = vmatpush.msra.mxu3 %v9667_v42  ;;  %2657 = vmatpush.msrb.mxu2 %v9669_v30  ;;  %v9696_v42 = vld [vmem:[#allocation143_spill] sm:$0xff]  ;;  %v9698_v30 = vld [vmem:[#allocation145_spill] sm:$0xff] }
 0x4b3   :  { %2713 = vmatpush.msra.mxu1 %v9670_v13  ;;  %2618 = vmatpush.msrb.mxu0 %v9672_v18  ;;  %v9699_v13 = vld [vmem:[#allocation146_spill] sm:$0xff]  ;;  %v9701_v18 = vld [vmem:[#allocation148_spill] sm:$0xff] }
 0x4b4   :  { %2753 = vmatpush.msra.mxu3 %v9671_v46  ;;  %2658 = vmatpush.msrb.mxu2 %v9673_v49  ;;  %v9700_v46 = vld [vmem:[#allocation147_spill] sm:$0xff]  ;;  %v9702_v49 = vld [vmem:[#allocation149_spill] sm:$0xff] }
 0x4b5   :  { %2714 = vmatpush.msra.mxu1 %v9674_v24  ;;  %2619 = vmatpush.msrb.mxu0 %v9676_v7  ;;  %v9703_v24 = vld [vmem:[#allocation150_spill] sm:$0xff]  ;;  %v9705_v7 = vld [vmem:[#allocation152_spill] sm:$0xff] }
 0x4b6   :  { %2754 = vmatpush.msra.mxu3 %v9675_v20  ;;  %2659 = vmatpush.msrb.mxu2 %v9677_v55  ;;  %v9704_v20 = vld [vmem:[#allocation151_spill] sm:$0xff]  ;;  %v9706_v55 = vld [vmem:[#allocation153_spill] sm:$0xff] }
 0x4b7   :  { %2715 = vmatpush.msra.mxu1 %v9678_v22  ;;  %2620 = vmatpush.msrb.mxu0 %v9680_v34  ;;  %v9707_v22 = vld [vmem:[#allocation154_spill] sm:$0xff]  ;;  %v9709_v34 = vld [vmem:[#allocation156_spill] sm:$0xff] }
 0x4b8   :  { %2755 = vmatpush.msra.mxu3 %v9679_v17  ;;  %2660 = vmatpush.msrb.mxu2 %v9681_v59  ;;  %v9708_v17 = vld [vmem:[#allocation155_spill] sm:$0xff]  ;;  %v9710_v59 = vld [vmem:[#allocation157_spill] sm:$0xff] }
 0x4b9   :  { %2716 = vmatpush.msra.mxu1 %v9682_v35  ;;  %2685 = vmatpush.msra.mxu0 %v9684_v44  ;;  %v9711_v35 = vld [vmem:[#allocation158_spill] sm:$0xff]  ;;  %v9713_v44 = vld [vmem:[#allocation160_spill] sm:$0xff] }
 0x4ba   :  { %2756 = vmatpush.msra.mxu3 %v9683_v38  ;;  %2725 = vmatpush.msra.mxu2 %v9685_v31  ;;  %v9712_v38 = vld [vmem:[#allocation159_spill] sm:$0xff]  ;;  %v9714_v31 = vld [vmem:[#allocation161_spill] sm:$0xff] }
 0x4bb   :  { %2717 = vmatpush.msra.mxu1 %v9686_v27  ;;  %2686 = vmatpush.msra.mxu0 %v9688_v47  ;;  %v9715_v27 = vld [vmem:[#allocation162_spill] sm:$0xff]  ;;  %v9717_v47 = vld [vmem:[#allocation164_spill] sm:$0xff] }
 0x4bc   :  { %2757 = vmatpush.msra.mxu3 %v9687_v50  ;;  %2726 = vmatpush.msra.mxu2 %v9689_v36  ;;  %v9716_v50 = vld [vmem:[#allocation163_spill] sm:$0xff]  ;;  %v9718_v36 = vld [vmem:[#allocation165_spill] sm:$0xff] }
 0x4bd   :  { %2718 = vmatpush.msra.mxu1 %v9690_v16  ;;  %2687 = vmatpush.msra.mxu0 %v9692_v25  ;;  %v9719_v16 = vld [vmem:[#allocation166_spill] sm:$0xff]  ;;  %v9721_v25 = vld [vmem:[#allocation168_spill] sm:$0xff] }
 0x4be   :  { %2758 = vmatpush.msra.mxu3 %v9691_v54  ;;  %2727 = vmatpush.msra.mxu2 %v9693_v6  ;;  %v9720_v54 = vld [vmem:[#allocation167_spill] sm:$0xff]  ;;  %v9722_v6 = vld [vmem:[#allocation169_spill] sm:$0xff] }
 0x4bf   :  { %2719 = vmatpush.msra.mxu1 %v9694_v37  ;;  %2688 = vmatpush.msra.mxu0 %v9696_v42  ;;  %v9723_v37 = vld [vmem:[#allocation170_spill] sm:$0xff] }
 0x4c0   :  { %2759 = vmatpush.msra.mxu3 %v9695_v9  ;;  %2728 = vmatpush.msra.mxu2 %v9697_v14  ;;  %v9724_v14 = vld [vmem:[#allocation30_spill] sm:$0xff] }
 0x4c1   :  { %2720 = vmatpush.msra.mxu1 %v9698_v30  ;;  %2689 = vmatpush.msra.mxu0 %v9700_v46 }
 0x4c2   :  { %2760 = vmatpush.msra.mxu3 %v9699_v13  ;;  %2729 = vmatpush.msra.mxu2 %v9701_v18 }
 0x4c3   :  { %2690 = vmatpush.msra.mxu0 %v9702_v49 }
 0x4c4   :  { %2730 = vmatpush.msra.mxu2 %v9703_v24 }
 0x4c5   :  { %2691 = vmatpush.msra.mxu0 %v9704_v20  ;;  %v9725_v20 = vld [vmem:[#allocation31_spill] sm:$0xff] }
 0x4c6   :  { %2731 = vmatpush.msra.mxu2 %v9705_v7 }
 0x4c7   :  { %2692 = vmatpush.msra.mxu0 %v9706_v55 }
 0x4c8   :  { %2732 = vmatpush.msra.mxu2 %v9707_v22  ;;  %v9726_v22 = vld [vmem:[#allocation127_spill] sm:$0xff] }
 0x4c9   :  { %2693 = vmatpush.msra.mxu0 %v9708_v17  ;;  %v9727_v17 = vld [vmem:[#allocation100_spill] sm:$0xff] }
 0x4ca   :  { %2733 = vmatpush.msra.mxu2 %v9709_v34  ;;  %v518_v34 = vadd.f32 %v9727_v17, %v9726_v22 }
 0x4cb   :  { %2694 = vmatpush.msra.mxu0 %v9710_v59 }
 0x4cc   :  { %2734 = vmatpush.msra.mxu2 %v9711_v35 }
 0x4cd   :  { %2695 = vmatpush.msra.mxu0 %v9712_v38 }
 0x4ce   :  { %2735 = vmatpush.msra.mxu2 %v9713_v44 }
 0x4cf   :  { %2696 = vmatpush.msra.mxu0 %v9714_v31 }
 0x4d0   :  { %2736 = vmatpush.msra.mxu2 %v9715_v27 }
 0x4d1   :  { %2697 = vmatpush.msra.mxu0 %v9716_v50 }
 0x4d2   :  { %2737 = vmatpush.msra.mxu2 %v9717_v47 }
 0x4d3   :  { %2698 = vmatpush.msra.mxu0 %v9718_v36  ;;  %v9728_v36 = vld [vmem:[#allocation32_spill] sm:$0xff] }
 0x4d4   :  { %2738 = vmatpush.msra.mxu2 %v9719_v16 }
 0x4d5   :  { %2699 = vmatpush.msra.mxu0 %v9720_v54 }
 0x4d6   :  { %2739 = vmatpush.msra.mxu2 %v9721_v25 }
 0x4d7   :  { %2700 = vmatpush.msra.mxu0 %v9722_v6 }
 0x4d8   :  { %2740 = vmatpush.msra.mxu2 %v9723_v37 }
 0x4db   :  { %v2272_v9 = vpop.f32.mrf.mxu1 }
 0x4e1   :  { %v2312_v13 = vpop.f32.mrf.mxu3 }
 0x4e3   :  { %v2352_v46 = vpop.f32.mrf.mxu1 }
 0x4e9   :  { %v2392_v38 = vpop.f32.mrf.mxu3 }
 0x4f3   :  { %v2252_v42 = vpop.f32.mrf.mxu0 }
 0x4f4   :  { %v2253_v30 = vadd.f32 %v2252_v42, %v9724_v14  ;;  %v9729_v42 = vld [vmem:[#allocation131_spill] sm:$0xff] }
 0x4f6   :  { %v2273_v18 = vadd.f32 %v2272_v9, %v2253_v30  ;;  %v9730_v30 = vld [vmem:[#allocation113_spill] sm:$0xff] }
 0x4f8   :  { %v3692_v49 = vmul.f32 -1.442695, %v2273_v18 }
 0x4f9   :  { %v2292_v24 = vpop.f32.mrf.mxu2 }
 0x4fa   :  { %3870 = vpow2.f32 %v3692_v49  ;;  %v2293_v7 = vadd.f32 %v2292_v24, %v9725_v20  ;;  %v9731_v24 = vld [vmem:[#allocation33_spill] sm:$0xff] }
 0x4fc   :  { %v2313_v55 = vadd.f32 %v2312_v13, %v2293_v7  ;;  %v2332_v25 = vpop.f32.mrf.mxu0  ;;  %v600_v13 = vadd.f32 %v9730_v30, %v9729_v42 }
 0x4fd   :  { %v2495_v59 = vpop.f32.mrf.mxu1  ;;  %v2333_v7 = vadd.f32 %v2332_v25, %v9731_v24 }
 0x4fe   :  { %v3693_v35 = vmul.f32 -1.442695, %v2313_v55  ;;  %v2539_v44 = vadd.f32 %v2495_v59, %v518_v34 }
 0x500   :  { %v3871_v31 = vpop.eup %3870  ;;  %3872 = vpow2.f32 %v3693_v35  ;;  %v3696_v47 = vmul.f32 -1.442695, %v2539_v44  ;;  %v2353_v35 = vadd.f32 %v2352_v46, %v2333_v7 }
 0x501   :  { %v2398_v27 = vadd.f32 1.0, %v3871_v31 }
 0x502   :  { %v2372_v50 = vpop.f32.mrf.mxu2 }
 0x503   :  { %3874 = vrcp.f32 %v2398_v27  ;;  %v2373_v16 = vadd.f32 %v2372_v50, %v9728_v36  ;;  %vm2404_vm15 = vweird.f32 %v2398_v27  ;;  %v2408_v25 = vand.u32 2147483647, %v2398_v27 }
 0x504   :  { %3876 = vpow2.f32 %v3696_v47  ;;  %v2535_v9 = vpop.f32.mrf.mxu3 }
 0x505   :  { %v2393_v6 = vadd.f32 %v2392_v38, %v2373_v16  ;;  %v2541_v17 = vadd.f32 %v2535_v9, %v600_v13  ;;  %v9732_v9 = vld [vmem:[#allocation126_spill] sm:$0xff]  ;;  %v9733_v13 = vld [vmem:[#allocation99_spill] sm:$0xff]  ;;  %vm2409_vm3 = vcmp.eq.f32.partialorder %v2408_v25, 8.507059e+37 }
 0x506   :  { %v3873_v54 = vpop.eup %3872 }
 0x507   :  { %v2417_v37 = vadd.f32 1.0, %v3873_v54  ;;  %v3694_v18 = vmul.f32 -1.442695, %v2393_v6  ;;  %v3697_v31 = vmul.f32 -1.442695, %v2541_v17  ;;  %v2410_v6 = vand.u32 2147483648, %v2398_v27 }
 0x509   :  { %v3875_v49 = vpop.eup %3874  ;;  %3878 = vrcp.f32 %v2417_v37  ;;  %v2429_v46 = vand.u32 2147483648, %v2417_v37  ;;  %vm2423_vm2 = vweird.f32 %v2417_v37 }
 0x50a   :  { %v2400_v55 = vmul.f32 %v3875_v49, %v2398_v27  ;;  %3880 = vpow2.f32 %v3694_v18  ;;  %v3877_v59 = vpop.eup %3876  ;;  %vm2405_vm14 = vweird.f32 %v3875_v49  ;;  %v477_v18 = vadd.f32 %v9733_v13, %v9732_v9 }
 0x50b   :  { %v7590_v54 = vadd.f32 1.0, %v3877_v59  ;;  %3882 = vtanh.f32 %v2353_v35  ;;  %vm7594_vm0 = vmor %vm2404_vm15, %vm2405_vm14  ;;  %v2411_v27 = vor.u32 1.1754944e-38, %v2410_v6 }
 0x50c   :  { %v2401_v34 = vsub.f32 1.0, %v2400_v55  ;;  %3884 = vpow2.f32 %v3697_v31  ;;  %v2427_v55 = vand.u32 2147483647, %v2417_v37 }
 0x50d   :  { %vm2570_vm11 = vweird.f32 %v7590_v54 }
 0x50e   :  { %v2402_v44 = vmul.f32 %v3875_v49, %v2401_v34  ;;  %vm2428_vm5 = vcmp.eq.f32.partialorder %v2427_v55, 8.507059e+37 }
 0x50f   :  { %v3879_v38 = vpop.eup %3878 }
 0x510   :  { %v3881_v50 = vpop.eup %3880  ;;  %v2419_v47 = vmul.f32 %v3879_v38, %v2417_v37  ;;  %v2403_v16 = vadd.f32 %v3875_v49, %v2402_v44  ;;  %vm2424_vm1 = vweird.f32 %v3879_v38 }
 0x511   :  { %v2437_v30 = vadd.f32 1.0, %v3881_v50  ;;  %v3883_v31 = vpop.eup %3882  ;;  %vm2425_vm4 = vmor %vm2423_vm2, %vm2424_vm1  ;;  %v2430_v50 = vor.u32 1.1754944e-38, %v2429_v46 }
 0x512   :  { %v2420_v42 = vsub.f32 1.0, %v2419_v47  ;;  %v2407_v34 = vsel %vm7594_vm0, %v3875_v49, %v2403_v16  ;;  %v3885_v13 = vpop.eup %3884 }
 0x513   :  { %3886 = vrcp.f32 %v2437_v30  ;;  %v2412_v47 = vsel %vm2409_vm3, %v2411_v27, %v2407_v34  ;;  %v7608_v46 = vadd.f32 1.0, %v3885_v13  ;;  %v2449_v55 = vand.u32 2147483648, %v2437_v30 }
 0x514   :  { %v2421_v17 = vmul.f32 %v3879_v38, %v2420_v42  ;;  %3888 = vrcp.f32 %v7590_v54  ;;  %v2475_v59 = vpop.f32.mrf.mxu0  ;;  %v2454_v16 = vmul.f32 %v3883_v31, %v2412_v47  ;;  %vm2443_vm7 = vweird.f32 %v2437_v30 }
 0x515   :  { %v2538_v44 = vadd.f32 %v2475_v59, %v477_v18  ;;  %v2450_v27 = vor.u32 1.1754944e-38, %v2449_v55  ;;  %v7632_v55 = vld [vmem:[#allocation7 + $0x1d8] sm:$0xff]  ;;  %vm2590_vm3 = vweird.f32 %v7608_v46 }
 0x516   :  { %v2422_v35 = vadd.f32 %v3879_v38, %v2421_v17 }
 0x517   :  { %v3695_v42 = vmul.f32 -1.442695, %v2538_v44 }
 0x518   :  { %v2426_v9 = vsel %vm2425_vm4, %v3879_v38, %v2422_v35 }
 0x519   :  { %v3887_v24 = vpop.eup %3886  ;;  %v2431_v36 = vsel %vm2428_vm5, %v2430_v50, %v2426_v9  ;;  %3890 = vpow2.f32 %v3695_v42  ;;  %v2447_v9 = vand.u32 2147483647, %v2437_v30 }
 0x51a   :  { %v7601_v7 = vpop.eup %3888  ;;  %v2453_v49 = vmul.f32 %v2431_v36, %v7278_v5  ;;  %v2439_v6 = vmul.f32 %v3887_v24, %v2437_v30  ;;  %vm2444_vm6 = vweird.f32 %v3887_v24  ;;  %v9736_v30 = vld [vmem:[#allocation118_spill] sm:$0xff] }
 0x51b   :  { %v2566_v18 = vmul.f32 %v7601_v7, %v7590_v54  ;;  %vm2445_vm8 = vmor %vm2443_vm7, %vm2444_vm6  ;;  %vm2448_vm9 = vcmp.eq.f32.partialorder %v2447_v9, 8.507059e+37  ;;  %v2515_v47 = vpop.f32.mrf.mxu2  ;;  %v559_v13 = vadd.f32 %v9736_v30, %v5482_v51  ;;  %vm2571_vm10 = vweird.f32 %v7601_v7  ;;  %v7657_v30 = vld [vmem:[#allocation7 + $0x188] sm:$0xff] }
 0x51c   :  { %v7604_v37 = vadd.f32 %v2454_v16, %v2453_v49  ;;  %v2440_v25 = vsub.f32 1.0, %v2439_v6  ;;  %v7620_v49 = vld [vmem:[#allocation7 + $0x1e8] sm:$0xff]  ;;  %v2576_v9 = vand.u32 2147483648, %v7590_v54  ;;  %vm7648_vm12 = vmor %vm2570_vm11, %vm2571_vm10 }
 0x51d   :  { %v2567_v34 = vsub.f32 1.0, %v2566_v18  ;;  %v2540_v6 = vadd.f32 %v2515_v47, %v559_v13  ;;  %v7660_v13 = vld [vmem:[#allocation7 + $0x198] sm:$0xff] }
 0x51e   :  { %3892 = vtanh.f32 %v7604_v37  ;;  %v2441_v38 = vmul.f32 %v3887_v24, %v2440_v25  ;;  %9740 = vst [vmem:[#allocation172_spill] sm:$0xff] %v7660_v13 }
 0x51f   :  { %v3891_v17 = vpop.eup %3890  ;;  %3894 = vrcp.f32 %v7608_v46  ;;  %v2568_v50 = vmul.f32 %v7601_v7, %v2567_v34  ;;  %v2574_v34 = vand.u32 2147483647, %v7590_v54 }
 0x520   :  { %v2442_v5 = vadd.f32 %v3887_v24, %v2441_v38  ;;  %v7611_v36 = vadd.f32 1.0, %v3891_v17  ;;  %v7629_v38 = vld [vmem:[#allocation7 + $0x1c8] sm:$0xff] }
 0x521   :  { %v2569_v18 = vadd.f32 %v7601_v7, %v2568_v50  ;;  %vm2575_vm15 = vcmp.eq.f32.partialorder %v2574_v34, 8.507059e+37 }
 0x522   :  { %v2446_v59 = vsel %vm2445_vm8, %v3887_v24, %v2442_v5  ;;  %3896 = vrcp.f32 %v7611_v36  ;;  %v7623_v24 = vld [vmem:[#allocation7 + $0x1f8] sm:$0xff]  ;;  %v2555_v54 = vand.u32 2147483647, %v7611_v36  ;;  %vm2551_vm14 = vweird.f32 %v7611_v36 }
 0x523   :  { %v2451_v44 = vsel %vm2448_vm9, %v2450_v27, %v2446_v59  ;;  %v7640_v59 = vld [vmem:[#allocation7 + $0x1a8] sm:$0xff]  ;;  %v7643_v27 = vld [vmem:[#allocation7 + $0x1b8] sm:$0xff]  ;;  %3898 = vtanh.f32 %v2540_v6  ;;  %v2573_v47 = vsel %vm7648_vm12, %v7601_v7, %v2569_v18 }
 0x524   :  { %v3893_v35 = vpop.eup %3892  ;;  %9737 = vst [vmem:[#allocation171_spill] sm:$0xff] %v7643_v27  ;;  %v7667_v7 = vld [vmem:[#allocation7 + $0x178] sm:$0xff]  ;;  %vm2556_vm1 = vcmp.eq.f32.partialorder %v2555_v54, 8.507059e+37  ;;  %v7687_v54 = vld [vmem:[#allocation7 + $0x108] sm:$0xff] }
 0x525   :  { %v2457_v31 = vmul.f32 %v3893_v35, %v2451_v44  ;;  %v7618_v42 = vpop.eup %3894  ;;  %v2557_v44 = vand.u32 2147483648, %v7611_v36  ;;  %9742 = vst [vmem:[#allocation174_spill] sm:$0xff] %v7667_v7 }
 0x526   :  { %v2586_v17 = vmul.f32 %v7618_v42, %v7608_v46  ;;  %vm2591_vm2 = vweird.f32 %v7618_v42 }
 0x527   :  { %2641 = vmatmul.f32.vlgmr.msrb.gmra.mxu1 %v2457_v31  ;;  %2681 = vmatmul.f32.vlgmr.msrb.gmra.mxu3 %v2457_v31  ;;  %v2558_v18 = vor.u32 1.1754944e-38, %v2557_v44  ;;  %vm2592_vm4 = vmor %vm2590_vm3, %vm2591_vm2 }
 0x528   :  { %2848 = vmatpush.msrb.mxu1 %v7620_v49  ;;  %2888 = vmatpush.msrb.mxu3 %v7623_v24  ;;  %v3897_v16 = vpop.eup %3896 }
 0x529   :  { %v2547_v25 = vmul.f32 %v3897_v16, %v7611_v36  ;;  %vm2552_vm13 = vweird.f32 %v3897_v16  ;;  %v7674_v36 = vld [vmem:[#allocation7 + $0x158] sm:$0xff] }
 0x52a   :  { %2849 = vmatpush.msrb.mxu1 %v7629_v38  ;;  %2889 = vmatpush.msrb.mxu3 %v7632_v55  ;;  %vm2553_vm0 = vmor %vm2551_vm14, %vm2552_vm13 }
 0x52b   :  { %v2548_v5 = vsub.f32 1.0, %v2547_v25  ;;  %v2577_v25 = vor.u32 1.1754944e-38, %v2576_v9 }
 0x52c   :  { %2850 = vmatpush.msrb.mxu1 %v7640_v59  ;;  %2890 = vmatpush.msrb.mxu3 %v7643_v27  ;;  %v2587_v27 = vsub.f32 1.0, %v2586_v17  ;;  %v7671_v17 = vld [vmem:[#allocation7 + $0x148] sm:$0xff] }
 0x52d   :  { %v2549_v50 = vmul.f32 %v3897_v16, %v2548_v5  ;;  %v7664_v5 = vld [vmem:[#allocation7 + $0x168] sm:$0xff]  ;;  %v2578_v35 = vsel %vm2575_vm15, %v2577_v25, %v2573_v47  ;;  %v7690_v47 = vld [vmem:[#allocation7 + $0x118] sm:$0xff] }
 0x52e   :  { %2851 = vmatpush.msrb.mxu1 %v7657_v30  ;;  %2891 = vmatpush.msrb.mxu3 %v7660_v13  ;;  %9741 = vst [vmem:[#allocation173_spill] sm:$0xff] %v7664_v5  ;;  %v2588_v34 = vmul.f32 %v7618_v42, %v2587_v27  ;;  %v7679_v13 = vld [vmem:[#allocation7 + $0x128] sm:$0xff]  ;;  %v2596_v27 = vand.u32 2147483648, %v7608_v46 }
 0x52f   :  { %2721 = vmatmul.f32.vlgmr.msra.gmra.mxu1 %v2457_v31  ;;  %2761 = vmatmul.f32.vlgmr.msra.gmra.mxu3 %v2457_v31  ;;  %v2550_v6 = vadd.f32 %v3897_v16, %v2549_v50  ;;  %v3899_v31 = vpop.eup %3898  ;;  %v7697_v25 = vld [vmem:[#allocation7 + $0xe8] sm:$0xff] }
 0x530   :  { %2852 = vmatpush.msrb.mxu1 %v7664_v5  ;;  %2892 = vmatpush.msrb.mxu3 %v7667_v7  ;;  %v2600_v7 = vmul.f32 %v2578_v35, %v7321_v0  ;;  %v2589_v0 = vadd.f32 %v7618_v42, %v2588_v34  ;;  %v7715_v34 = vld [vmem:[#allocation7 + $0xb8] sm:$0xff] }
 0x531   :  { %v2554_v9 = vsel %vm2553_vm0, %v3897_v16, %v2550_v6  ;;  %v7682_v16 = vld [vmem:[#allocation7 + $0x138] sm:$0xff] }
 0x532   :  { %2853 = vmatpush.msrb.mxu1 %v7671_v17  ;;  %2893 = vmatpush.msrb.mxu3 %v7674_v36  ;;  %v2559_v50 = vsel %vm2556_vm1, %v2558_v18, %v2554_v9  ;;  %v7700_v6 = vld [vmem:[#allocation7 + $0xf8] sm:$0xff]  ;;  %v2593_v35 = vsel %vm2592_vm4, %v7618_v42, %v2589_v0  ;;  %v2597_v9 = vor.u32 1.1754944e-38, %v2596_v27  ;;  %v7726_v0 = vld [vmem:[#allocation7 + $0x68] sm:$0xff] }
 0x533   :  { %v2601_v5 = vmul.f32 %v3899_v31, %v2559_v50  ;;  %9743 = vst [vmem:[#allocation63_spill] sm:$0xff] %v7700_v6  ;;  %v7708_v18 = vld [vmem:[#allocation7 + $0xd8] sm:$0xff]  ;;  %v7712_v31 = vld [vmem:[#allocation7 + $0xa8] sm:$0xff] }
 0x534   :  { %2854 = vmatpush.msrb.mxu1 %v7679_v13  ;;  %2894 = vmatpush.msrb.mxu3 %v7682_v16  ;;  %v7729_v27 = vld [vmem:[#allocation7 + $0x78] sm:$0xff] }
 0x535   :  { %v7685_v44 = vadd.f32 %v2601_v5, %v2600_v7  ;;  %v2594_v5 = vand.u32 2147483647, %v7608_v46  ;;  %v7705_v7 = vld [vmem:[#allocation7 + $0xc8] sm:$0xff] }
 0x536   :  { %2855 = vmatpush.msrb.mxu1 %v7687_v54  ;;  %2895 = vmatpush.msrb.mxu3 %v7690_v47  ;;  %9744 = vst [vmem:[#allocation80_spill] sm:$0xff] %v7705_v7 }
 0x537   :  { %3900 = vtanh.f32 %v7685_v44  ;;  %vm2595_vm5 = vcmp.eq.f32.partialorder %v2594_v5, 8.507059e+37  ;;  %v7736_v5 = vld [vmem:[#allocation7 + $0x48] sm:$0xff] }
 0x538   :  { %2856 = vmatpush.msrb.mxu1 %v7697_v25  ;;  %2896 = vmatpush.msrb.mxu3 %v7700_v6  ;;  %v2598_v50 = vsel %vm2595_vm5, %v2597_v9, %v2593_v35  ;;  %v7718_v6 = vld [vmem:[#allocation7 + $0x88] sm:$0xff]  ;;  %v7739_v35 = vld [vmem:[#allocation7 + $0x58] sm:$0xff] }
 0x539   :  { %v7744_v9 = vld [vmem:[#allocation7 + $0x28] sm:$0xff] }
 0x53a   :  { %2857 = vmatpush.msrb.mxu1 %v7705_v7  ;;  %2897 = vmatpush.msrb.mxu3 %v7708_v18  ;;  %v7721_v7 = vld [vmem:[#allocation7 + $0x98] sm:$0xff] }
 0x53c   :  { %2858 = vmatpush.msrb.mxu1 %v7712_v31  ;;  %2898 = vmatpush.msrb.mxu3 %v7715_v34 }
 0x53d   :  { %v3901_v46 = vpop.eup %3900 }
 0x53e   :  { %2859 = vmatpush.msrb.mxu1 %v7718_v6  ;;  %2899 = vmatpush.msrb.mxu3 %v7721_v7  ;;  %v7724_v42 = vmul.f32 %v3901_v46, %v2598_v50  ;;  %v7747_v46 = vld [vmem:[#allocation7 + $0x38] sm:$0xff]  ;;  %v7880_v50 = vld [vmem:[#allocation10 + $0x240] sm:$0xff] }
 0x53f   :  { %9767 = vst [vmem:[#allocation66_spill] sm:$0xff] %v7880_v50 }
 0x540   :  { %2860 = vmatpush.msrb.mxu1 %v7726_v0  ;;  %2900 = vmatpush.msrb.mxu3 %v7729_v27 }
 0x541   :  { %2621 = vmatmul.f32.vlgmr.msrb.gmra.mxu0 %v7724_v42  ;;  %2661 = vmatmul.f32.vlgmr.msrb.gmra.mxu2 %v7724_v42 }
 0x542   :  { %2828 = vmatpush.msrb.mxu0 %v7344_v33  ;;  %2868 = vmatpush.msrb.mxu2 %v7347_v11  ;;  %v7752_v33 = vld [vmem:[#allocation7 + $0x8] sm:$0xff]  ;;  %v7755_v11 = vld [vmem:[#allocation7 + $0x18] sm:$0xff] }
 0x543   :  { %2861 = vmatpush.msrb.mxu1 %v7736_v5  ;;  %2901 = vmatpush.msrb.mxu3 %v7739_v35 }
 0x544   :  { %2829 = vmatpush.msrb.mxu0 %v7352_v39  ;;  %2869 = vmatpush.msrb.mxu2 %v7355_v19  ;;  %v7767_v39 = vld [vmem:[#allocation10 + $0x3e0] sm:$0xff]  ;;  %v7771_v19 = vld [vmem:[#allocation10 + $0x3e8] sm:$0xff] }
 0x545   :  { %2862 = vmatpush.msrb.mxu1 %v7744_v9  ;;  %2902 = vmatpush.msrb.mxu3 %v7747_v46 }
 0x546   :  { %2830 = vmatpush.msrb.mxu0 %v7360_v56  ;;  %2870 = vmatpush.msrb.mxu2 %v7363_v12  ;;  %v7775_v56 = vld [vmem:[#allocation10 + $0x3c0] sm:$0xff]  ;;  %v7779_v12 = vld [vmem:[#allocation10 + $0x3c8] sm:$0xff] }
 0x547   :  { %2863 = vmatpush.msrb.mxu1 %v7752_v33  ;;  %2903 = vmatpush.msrb.mxu3 %v7755_v11 }
 0x548   :  { %2831 = vmatpush.msrb.mxu0 %v7368_v45  ;;  %2871 = vmatpush.msrb.mxu2 %v7371_v48  ;;  %v7783_v45 = vld [vmem:[#allocation10 + $0x3a0] sm:$0xff]  ;;  %v7787_v48 = vld [vmem:[#allocation10 + $0x3a8] sm:$0xff] }
 0x549   :  { %2701 = vmatmul.f32.vlgmr.msra.gmra.mxu0 %v7724_v42  ;;  %2741 = vmatmul.f32.vlgmr.msra.gmra.mxu2 %v7724_v42 }
 0x54a   :  { %2832 = vmatpush.msrb.mxu0 %v7378_v40  ;;  %2864 = vmatmul.f32.vlgmr.msrb.gmra.mxu1 %v7724_v42  ;;  %v7791_v40 = vld [vmem:[#allocation10 + $0x380] sm:$0xff] }
 0x54b   :  { %2872 = vmatpush.msrb.mxu2 %v7382_v23  ;;  %2904 = vmatmul.f32.vlgmr.msrb.gmra.mxu3 %v7724_v42  ;;  %v7795_v23 = vld [vmem:[#allocation10 + $0x388] sm:$0xff] }
 0x54c   :  { %2833 = vmatpush.msrb.mxu0 %v7386_v58  ;;  %2995 = vmatpush.msra.mxu1 %v7767_v39  ;;  %v7799_v58 = vld [vmem:[#allocation10 + $0x360] sm:$0xff] }
 0x54d   :  { %2873 = vmatpush.msrb.mxu2 %v7390_v62  ;;  %3035 = vmatpush.msra.mxu3 %v7771_v19  ;;  %9745 = vst [vmem:[#allocation62_spill] sm:$0xff] %v7799_v58  ;;  %v7803_v62 = vld [vmem:[#allocation10 + $0x368] sm:$0xff] }
 0x54e   :  { %2834 = vmatpush.msrb.mxu0 %v7394_v15  ;;  %2996 = vmatpush.msra.mxu1 %v7775_v56  ;;  %9746 = vst [vmem:[#allocation79_spill] sm:$0xff] %v7803_v62  ;;  %v7807_v15 = vld [vmem:[#allocation10 + $0x340] sm:$0xff] }
 0x54f   :  { %2874 = vmatpush.msrb.mxu2 %v7398_v8  ;;  %3036 = vmatpush.msra.mxu3 %v7779_v12  ;;  %9747 = vst [vmem:[#allocation83_spill] sm:$0xff] %v7807_v15  ;;  %v7811_v8 = vld [vmem:[#allocation10 + $0x348] sm:$0xff] }
 0x550   :  { %2835 = vmatpush.msrb.mxu0 %v7402_v29  ;;  %2997 = vmatpush.msra.mxu1 %v7783_v45  ;;  %9748 = vst [vmem:[#allocation96_spill] sm:$0xff] %v7811_v8  ;;  %v7815_v29 = vld [vmem:[#allocation10 + $0x320] sm:$0xff] }
 0x551   :  { %2875 = vmatpush.msrb.mxu2 %v7406_v52  ;;  %3037 = vmatpush.msra.mxu3 %v7787_v48  ;;  %9749 = vst [vmem:[#allocation82_spill] sm:$0xff] %v7815_v29  ;;  %v7819_v52 = vld [vmem:[#allocation10 + $0x328] sm:$0xff] }
 0x552   :  { %2836 = vmatpush.msrb.mxu0 %v7410_v60  ;;  %2998 = vmatpush.msra.mxu1 %v7791_v40  ;;  %9750 = vst [vmem:[#allocation102_spill] sm:$0xff] %v7819_v52  ;;  %v7823_v60 = vld [vmem:[#allocation10 + $0x300] sm:$0xff] }
 0x553   :  { %2876 = vmatpush.msrb.mxu2 %v7414_v43  ;;  %3038 = vmatpush.msra.mxu3 %v7795_v23  ;;  %9751 = vst [vmem:[#allocation43_spill] sm:$0xff] %v7823_v60  ;;  %v7827_v43 = vld [vmem:[#allocation10 + $0x308] sm:$0xff] }
 0x554   :  { %2837 = vmatpush.msrb.mxu0 %v7418_v4  ;;  %2999 = vmatpush.msra.mxu1 %v7799_v58  ;;  %9752 = vst [vmem:[#allocation60_spill] sm:$0xff] %v7827_v43  ;;  %v7831_v4 = vld [vmem:[#allocation10 + $0x2e0] sm:$0xff] }
 0x555   :  { %2877 = vmatpush.msrb.mxu2 %v7422_v2  ;;  %3039 = vmatpush.msra.mxu3 %v7803_v62  ;;  %9753 = vst [vmem:[#allocation42_spill] sm:$0xff] %v7831_v4  ;;  %v7835_v2 = vld [vmem:[#allocation10 + $0x2e8] sm:$0xff] }
 0x556   :  { %2838 = vmatpush.msrb.mxu0 %v7426_v61  ;;  %3000 = vmatpush.msra.mxu1 %v7807_v15  ;;  %9754 = vst [vmem:[#allocation59_spill] sm:$0xff] %v7835_v2  ;;  %v7839_v61 = vld [vmem:[#allocation10 + $0x2c0] sm:$0xff] }
 0x557   :  { %2878 = vmatpush.msrb.mxu2 %v7430_v32  ;;  %3040 = vmatpush.msra.mxu3 %v7811_v8  ;;  %9755 = vst [vmem:[#allocation34_spill] sm:$0xff] %v7839_v61  ;;  %v7843_v32 = vld [vmem:[#allocation10 + $0x2c8] sm:$0xff] }
 0x558   :  { %2839 = vmatpush.msrb.mxu0 %v7434_v21  ;;  %3001 = vmatpush.msra.mxu1 %v7815_v29  ;;  %9756 = vst [vmem:[#allocation35_spill] sm:$0xff] %v7843_v32  ;;  %v7847_v21 = vld [vmem:[#allocation10 + $0x2a0] sm:$0xff] }
 0x559   :  { %2879 = vmatpush.msrb.mxu2 %v7438_v57  ;;  %3041 = vmatpush.msra.mxu3 %v7819_v52  ;;  %9757 = vst [vmem:[#allocation38_spill] sm:$0xff] %v7847_v21  ;;  %v7853_v57 = vld [vmem:[#allocation10 + $0x2a8] sm:$0xff] }
 0x55a   :  { %2840 = vmatpush.msrb.mxu0 %v7442_v26  ;;  %3002 = vmatpush.msra.mxu1 %v7823_v60  ;;  %9758 = vst [vmem:[#allocation41_spill] sm:$0xff] %v7853_v57  ;;  %v7856_v26 = vld [vmem:[#allocation10 + $0x280] sm:$0xff] }
 0x55b   :  { %2880 = vmatpush.msrb.mxu2 %v7446_v28  ;;  %3042 = vmatpush.msra.mxu3 %v7827_v43  ;;  %9759 = vst [vmem:[#allocation46_spill] sm:$0xff] %v7856_v26  ;;  %v7859_v28 = vld [vmem:[#allocation10 + $0x1e0] sm:$0xff] }
 0x55c   :  { %2841 = vmatpush.msrb.mxu0 %v7450_v1  ;;  %3003 = vmatpush.msra.mxu1 %v7831_v4  ;;  %9760 = vst [vmem:[#allocation47_spill] sm:$0xff] %v7859_v28  ;;  %v7862_v1 = vld [vmem:[#allocation10 + $0x288] sm:$0xff] }
 0x55d   :  { %2881 = vmatpush.msrb.mxu2 %v7454_v41  ;;  %3043 = vmatpush.msra.mxu3 %v7835_v2  ;;  %9761 = vst [vmem:[#allocation50_spill] sm:$0xff] %v7862_v1  ;;  %v7865_v41 = vld [vmem:[#allocation10 + $0x1e8] sm:$0xff] }
 0x55e   :  { %2842 = vmatpush.msrb.mxu0 %v7458_v63  ;;  %3004 = vmatpush.msra.mxu1 %v7839_v61  ;;  %9762 = vst [vmem:[#allocation51_spill] sm:$0xff] %v7865_v41  ;;  %v7868_v63 = vld [vmem:[#allocation10 + $0x260] sm:$0xff] }
 0x55f   :  { %2882 = vmatpush.msrb.mxu2 %v7462_v10  ;;  %3044 = vmatpush.msra.mxu3 %v7843_v32  ;;  %9763 = vst [vmem:[#allocation54_spill] sm:$0xff] %v7868_v63  ;;  %v7871_v10 = vld [vmem:[#allocation10 + $0x1c0] sm:$0xff] }
 0x560   :  { %2843 = vmatpush.msrb.mxu0 %v7466_v3  ;;  %3005 = vmatpush.msra.mxu1 %v7847_v21  ;;  %9764 = vst [vmem:[#allocation55_spill] sm:$0xff] %v7871_v10  ;;  %v7874_v3 = vld [vmem:[#allocation10 + $0x268] sm:$0xff] }
 0x561   :  { %2883 = vmatpush.msrb.mxu2 %v7470_v53  ;;  %2844 = vmatmul.f32.vlgmr.msrb.gmra.mxu0 %v7724_v42  ;;  %9765 = vst [vmem:[#allocation58_spill] sm:$0xff] %v7874_v3  ;;  %v7877_v53 = vld [vmem:[#allocation10 + $0x1c8] sm:$0xff] }
 0x562   :  { %2884 = vmatmul.f32.vlgmr.msrb.gmra.mxu2 %v7724_v42  ;;  %3045 = vmatpush.msra.mxu3 %v7853_v57  ;;  %9766 = vst [vmem:[#allocation61_spill] sm:$0xff] %v7877_v53  ;;  %v7883_v42 = vld [vmem:[#allocation10 + $0x1a0] sm:$0xff] }
 0x563   :  { %3006 = vmatpush.msra.mxu1 %v7856_v26  ;;  %2975 = vmatpush.msra.mxu0 %v7859_v28  ;;  %9768 = vst [vmem:[#allocation67_spill] sm:$0xff] %v7883_v42 }
 0x564   :  { %3046 = vmatpush.msra.mxu3 %v7862_v1  ;;  %3015 = vmatpush.msra.mxu2 %v7865_v41 }
 0x565   :  { %3007 = vmatpush.msra.mxu1 %v7868_v63  ;;  %2976 = vmatpush.msra.mxu0 %v7871_v10  ;;  %v7886_v63 = vld [vmem:[#allocation10 + $0x248] sm:$0xff] }
 0x566   :  { %3047 = vmatpush.msra.mxu3 %v7874_v3  ;;  %3016 = vmatpush.msra.mxu2 %v7877_v53  ;;  %9769 = vst [vmem:[#allocation70_spill] sm:$0xff] %v7886_v63  ;;  %v7889_v10 = vld [vmem:[#allocation10 + $0x1a8] sm:$0xff]  ;;  %v7892_v3 = vld [vmem:[#allocation10 + $0x220] sm:$0xff] }
 0x567   :  { %3008 = vmatpush.msra.mxu1 %v7880_v50  ;;  %2977 = vmatpush.msra.mxu0 %v7883_v42  ;;  %9770 = vst [vmem:[#allocation71_spill] sm:$0xff] %v7889_v10  ;;  %v7895_v53 = vld [vmem:[#allocation10 + $0x180] sm:$0xff]  ;;  %v7898_v50 = vld [vmem:[#allocation10 + $0x228] sm:$0xff] }
 0x568   :  { %3048 = vmatpush.msra.mxu3 %v7886_v63  ;;  %3017 = vmatpush.msra.mxu2 %v7889_v10  ;;  %9771 = vst [vmem:[#allocation74_spill] sm:$0xff] %v7892_v3  ;;  %v7901_v42 = vld [vmem:[#allocation10 + $0x188] sm:$0xff]  ;;  %v7904_v63 = vld [vmem:[#allocation10 + $0x200] sm:$0xff] }
 0x569   :  { %3009 = vmatpush.msra.mxu1 %v7892_v3  ;;  %9772 = vst [vmem:[#allocation75_spill] sm:$0xff] %v7895_v53  ;;  %2978 = vmatpush.msra.mxu0 %v7895_v53  ;;  %v7907_v10 = vld [vmem:[#allocation10 + $0x160] sm:$0xff]  ;;  %v7910_v3 = vld [vmem:[#allocation10 + $0x208] sm:$0xff] }
 0x56a   :  { %9773 = vst [vmem:[#allocation78_spill] sm:$0xff] %v7898_v50  ;;  %3049 = vmatpush.msra.mxu3 %v7898_v50  ;;  %3018 = vmatpush.msra.mxu2 %v7901_v42  ;;  %v7913_v53 = vld [vmem:[#allocation10 + $0x168] sm:$0xff]  ;;  %v7916_v50 = vld [vmem:[#allocation10 + $0x3f0] sm:$0xff] }
 0x56b   :  { %9774 = vst [vmem:[#allocation81_spill] sm:$0xff] %v7901_v42  ;;  %3010 = vmatpush.msra.mxu1 %v7904_v63  ;;  %2979 = vmatpush.msra.mxu0 %v7907_v10  ;;  %v7919_v42 = vld [vmem:[#allocation10 + $0x3f8] sm:$0xff] }
 0x56c   :  { %9775 = vst [vmem:[#allocation86_spill] sm:$0xff] %v7904_v63  ;;  %3050 = vmatpush.msra.mxu3 %v7910_v3  ;;  %3019 = vmatpush.msra.mxu2 %v7913_v53  ;;  %v7922_v63 = vld [vmem:[#allocation10 + $0x140] sm:$0xff] }
 0x56d   :  { %9776 = vst [vmem:[#allocation87_spill] sm:$0xff] %v7907_v10  ;;  %3075 = vmatpush.msrb.mxu1 %v7916_v50  ;;  %2980 = vmatpush.msra.mxu0 %v7922_v63  ;;  %v7925_v10 = vld [vmem:[#allocation10 + $0x148] sm:$0xff] }
 0x56e   :  { %9777 = vst [vmem:[#allocation90_spill] sm:$0xff] %v7910_v3  ;;  %3115 = vmatpush.msrb.mxu3 %v7919_v42  ;;  %3020 = vmatpush.msra.mxu2 %v7925_v10  ;;  %v7928_v3 = vld [vmem:[#allocation10 + $0x3d0] sm:$0xff] }
 0x56f   :  { %9778 = vst [vmem:[#allocation91_spill] sm:$0xff] %v7913_v53  ;;  %3076 = vmatpush.msrb.mxu1 %v7928_v3  ;;  %v7931_v53 = vld [vmem:[#allocation10 + $0x3d8] sm:$0xff] }
 0x570   :  { %9779 = vst [vmem:[#allocation94_spill] sm:$0xff] %v7916_v50  ;;  %3116 = vmatpush.msrb.mxu3 %v7931_v53  ;;  %v7934_v50 = vld [vmem:[#allocation10 + $0x120] sm:$0xff] }
 0x571   :  { %9780 = vst [vmem:[#allocation36_spill] sm:$0xff] %v7919_v42  ;;  %2981 = vmatpush.msra.mxu0 %v7934_v50  ;;  %v7937_v42 = vld [vmem:[#allocation10 + $0x128] sm:$0xff] }
 0x572   :  { %9781 = vst [vmem:[#allocation37_spill] sm:$0xff] %v7922_v63  ;;  %3021 = vmatpush.msra.mxu2 %v7937_v42  ;;  %v7940_v63 = vld [vmem:[#allocation10 + $0x3b0] sm:$0xff] }
 0x573   :  { %9782 = vst [vmem:[#allocation95_spill] sm:$0xff] %v7925_v10  ;;  %3077 = vmatpush.msrb.mxu1 %v7940_v63  ;;  %v7943_v10 = vld [vmem:[#allocation10 + $0x3b8] sm:$0xff] }
 0x574   :  { %9783 = vst [vmem:[#allocation44_spill] sm:$0xff] %v7928_v3  ;;  %3117 = vmatpush.msrb.mxu3 %v7943_v10  ;;  %v7946_v3 = vld [vmem:[#allocation10 + $0x100] sm:$0xff] }
 0x575   :  { %9784 = vst [vmem:[#allocation45_spill] sm:$0xff] %v7931_v53  ;;  %2982 = vmatpush.msra.mxu0 %v7946_v3  ;;  %v7949_v53 = vld [vmem:[#allocation10 + $0x108] sm:$0xff] }
 0x576   :  { %9785 = vst [vmem:[#allocation101_spill] sm:$0xff] %v7934_v50  ;;  %3022 = vmatpush.msra.mxu2 %v7949_v53  ;;  %v7952_v50 = vld [vmem:[#allocation10 + $0x390] sm:$0xff] }
 0x577   :  { %9786 = vst [vmem:[#allocation48_spill] sm:$0xff] %v7937_v42  ;;  %3078 = vmatpush.msrb.mxu1 %v7952_v50  ;;  %v7955_v42 = vld [vmem:[#allocation10 + $0x398] sm:$0xff] }
 0x578   :  { %9787 = vst [vmem:[#allocation105_spill] sm:$0xff] %v7940_v63  ;;  %3118 = vmatpush.msrb.mxu3 %v7955_v42  ;;  %v7958_v63 = vld [vmem:[#allocation10 + $0xe0] sm:$0xff] }
 0x579   :  { %9788 = vst [vmem:[#allocation49_spill] sm:$0xff] %v7943_v10  ;;  %2983 = vmatpush.msra.mxu0 %v7958_v63  ;;  %v7961_v10 = vld [vmem:[#allocation10 + $0xe8] sm:$0xff] }
 0x57a   :  { %9789 = vst [vmem:[#allocation106_spill] sm:$0xff] %v7946_v3  ;;  %3023 = vmatpush.msra.mxu2 %v7961_v10  ;;  %v7964_v3 = vld [vmem:[#allocation10 + $0x370] sm:$0xff] }
 0x57b   :  { %9790 = vst [vmem:[#allocation52_spill] sm:$0xff] %v7949_v53  ;;  %3079 = vmatpush.msrb.mxu1 %v7964_v3  ;;  %v7967_v53 = vld [vmem:[#allocation10 + $0x378] sm:$0xff] }
 0x57c   :  { %9791 = vst [vmem:[#allocation109_spill] sm:$0xff] %v7952_v50  ;;  %3119 = vmatpush.msrb.mxu3 %v7967_v53  ;;  %v7970_v50 = vld [vmem:[#allocation10 + $0xc0] sm:$0xff] }
 0x57d   :  { %9792 = vst [vmem:[#allocation53_spill] sm:$0xff] %v7955_v42  ;;  %2984 = vmatpush.msra.mxu0 %v7970_v50  ;;  %v7973_v42 = vld [vmem:[#allocation10 + $0xc8] sm:$0xff] }
 0x57e   :  { %9793 = vst [vmem:[#allocation110_spill] sm:$0xff] %v7958_v63  ;;  %3024 = vmatpush.msra.mxu2 %v7973_v42  ;;  %v7976_v63 = vld [vmem:[#allocation10 + $0x350] sm:$0xff] }
 0x57f   :  { %9794 = vst [vmem:[#allocation56_spill] sm:$0xff] %v7961_v10  ;;  %3080 = vmatpush.msrb.mxu1 %v7976_v63  ;;  %v7979_v10 = vld [vmem:[#allocation10 + $0x358] sm:$0xff] }
 0x580   :  { %9795 = vst [vmem:[#allocation57_spill] sm:$0xff] %v7964_v3  ;;  %3120 = vmatpush.msrb.mxu3 %v7979_v10  ;;  %v7982_v3 = vld [vmem:[#allocation10 + $0xa0] sm:$0xff] }
 0x581   :  { %9796 = vst [vmem:[#allocation64_spill] sm:$0xff] %v7967_v53  ;;  %2985 = vmatpush.msra.mxu0 %v7982_v3  ;;  %v7985_v53 = vld [vmem:[#allocation10 + $0xa8] sm:$0xff] }
 0x582   :  { %9797 = vst [vmem:[#allocation65_spill] sm:$0xff] %v7970_v50  ;;  %3025 = vmatpush.msra.mxu2 %v7985_v53  ;;  %v7988_v50 = vld [vmem:[#allocation10 + $0x330] sm:$0xff] }
 0x583   :  { %9798 = vst [vmem:[#allocation68_spill] sm:$0xff] %v7973_v42  ;;  %3081 = vmatpush.msrb.mxu1 %v7988_v50  ;;  %v7991_v42 = vld [vmem:[#allocation10 + $0x338] sm:$0xff] }
 0x584   :  { %9799 = vst [vmem:[#allocation69_spill] sm:$0xff] %v7976_v63  ;;  %3121 = vmatpush.msrb.mxu3 %v7991_v42  ;;  %v7994_v63 = vld [vmem:[#allocation10 + $0x80] sm:$0xff] }
 0x585   :  { %9800 = vst [vmem:[#allocation72_spill] sm:$0xff] %v7979_v10  ;;  %2986 = vmatpush.msra.mxu0 %v7994_v63  ;;  %v7997_v10 = vld [vmem:[#allocation10 + $0x88] sm:$0xff] }
 0x586   :  { %9801 = vst [vmem:[#allocation73_spill] sm:$0xff] %v7982_v3  ;;  %3026 = vmatpush.msra.mxu2 %v7997_v10  ;;  %v8000_v3 = vld [vmem:[#allocation10 + $0x310] sm:$0xff] }
 0x587   :  { %9802 = vst [vmem:[#allocation76_spill] sm:$0xff] %v7985_v53  ;;  %3082 = vmatpush.msrb.mxu1 %v8000_v3  ;;  %v8003_v53 = vld [vmem:[#allocation10 + $0x318] sm:$0xff] }
 0x588   :  { %9803 = vst [vmem:[#allocation77_spill] sm:$0xff] %v7988_v50  ;;  %3122 = vmatpush.msrb.mxu3 %v8003_v53  ;;  %v8006_v50 = vld [vmem:[#allocation10 + $0x60] sm:$0xff] }
 0x589   :  { %9804 = vst [vmem:[#allocation84_spill] sm:$0xff] %v7991_v42  ;;  %2987 = vmatpush.msra.mxu0 %v8006_v50  ;;  %v8009_v42 = vld [vmem:[#allocation10 + $0x68] sm:$0xff] }
 0x58a   :  { %9805 = vst [vmem:[#allocation85_spill] sm:$0xff] %v7994_v63  ;;  %3027 = vmatpush.msra.mxu2 %v8009_v42  ;;  %v8012_v63 = vld [vmem:[#allocation10 + $0x2f0] sm:$0xff] }
 0x58b   :  { %9806 = vst [vmem:[#allocation88_spill] sm:$0xff] %v7997_v10  ;;  %3083 = vmatpush.msrb.mxu1 %v8012_v63  ;;  %v8015_v10 = vld [vmem:[#allocation10 + $0x2f8] sm:$0xff] }
 0x58c   :  { %9807 = vst [vmem:[#allocation89_spill] sm:$0xff] %v8000_v3  ;;  %3123 = vmatpush.msrb.mxu3 %v8015_v10  ;;  %v8018_v3 = vld [vmem:[#allocation10 + $0x40] sm:$0xff] }
 0x58d   :  { %9808 = vst [vmem:[#allocation92_spill] sm:$0xff] %v8003_v53  ;;  %2988 = vmatpush.msra.mxu0 %v8018_v3  ;;  %v8021_v53 = vld [vmem:[#allocation10 + $0x48] sm:$0xff] }
 0x58e   :  { %9809 = vst [vmem:[#allocation93_spill] sm:$0xff] %v8006_v50  ;;  %3028 = vmatpush.msra.mxu2 %v8021_v53  ;;  %v8024_v50 = vld [vmem:[#allocation10 + $0x2d0] sm:$0xff] }
 0x58f   :  { %9810 = vst [vmem:[#allocation97_spill] sm:$0xff] %v8009_v42  ;;  %3084 = vmatpush.msrb.mxu1 %v8024_v50  ;;  %v8027_v42 = vld [vmem:[#allocation10 + $0x2d8] sm:$0xff] }
 0x590   :  { %9811 = vst [vmem:[#allocation98_spill] sm:$0xff] %v8012_v63  ;;  %3124 = vmatpush.msrb.mxu3 %v8027_v42  ;;  %v8030_v63 = vld [vmem:[#allocation10 + $0x20] sm:$0xff] }
 0x591   :  { %9812 = vst [vmem:[#allocation103_spill] sm:$0xff] %v8015_v10  ;;  %2989 = vmatpush.msra.mxu0 %v8030_v63  ;;  %v8033_v10 = vld [vmem:[#allocation10 + $0x28] sm:$0xff] }
 0x592   :  { %9813 = vst [vmem:[#allocation104_spill] sm:$0xff] %v8018_v3  ;;  %3029 = vmatpush.msra.mxu2 %v8033_v10  ;;  %v8036_v3 = vld [vmem:[#allocation10 + $0x2b0] sm:$0xff] }
 0x593   :  { %9814 = vst [vmem:[#allocation107_spill] sm:$0xff] %v8021_v53  ;;  %3085 = vmatpush.msrb.mxu1 %v8036_v3  ;;  %v8039_v53 = vld [vmem:[#allocation10 + $0x2b8] sm:$0xff] }
 0x594   :  { %9815 = vst [vmem:[#allocation108_spill] sm:$0xff] %v8024_v50  ;;  %3125 = vmatpush.msrb.mxu3 %v8039_v53  ;;  %v8042_v50 = vld [vmem:[#allocation10] sm:$0xff] }
 0x595   :  { %9816 = vst [vmem:[#allocation111_spill] sm:$0xff] %v8027_v42  ;;  %2990 = vmatpush.msra.mxu0 %v8042_v50  ;;  %v8045_v42 = vld [vmem:[#allocation10 + $0x8] sm:$0xff] }
 0x596   :  { %9817 = vst [vmem:[#allocation112_spill] sm:$0xff] %v8030_v63  ;;  %3030 = vmatpush.msra.mxu2 %v8045_v42  ;;  %v8048_v63 = vld [vmem:[#allocation10 + $0x290] sm:$0xff] }
 0x597   :  { %9818 = vst [vmem:[#allocation116_spill] sm:$0xff] %v8033_v10  ;;  %3086 = vmatpush.msrb.mxu1 %v8048_v63  ;;  %v8051_v10 = vld [vmem:[#allocation10 + $0x298] sm:$0xff] }
 0x598   :  { %9819 = vst [vmem:[#allocation117_spill] sm:$0xff] %v8036_v3  ;;  %3126 = vmatpush.msrb.mxu3 %v8051_v10  ;;  %v8054_v3 = vld [vmem:[#allocation10 + $0x1f0] sm:$0xff] }
 0x599   :  { %9820 = vst [vmem:[#allocation119_spill] sm:$0xff] %v8039_v53  ;;  %3055 = vmatpush.msrb.mxu0 %v8054_v3  ;;  %v8057_v53 = vld [vmem:[#allocation10 + $0x1f8] sm:$0xff] }
 0x59a   :  { %9821 = vst [vmem:[#allocation123_spill] sm:$0xff] %v8042_v50  ;;  %3095 = vmatpush.msrb.mxu2 %v8057_v53  ;;  %v8060_v50 = vld [vmem:[#allocation10 + $0x270] sm:$0xff] }
 0x59b   :  { %9822 = vst [vmem:[#allocation124_spill] sm:$0xff] %v8045_v42  ;;  %3087 = vmatpush.msrb.mxu1 %v8060_v50  ;;  %v8063_v42 = vld [vmem:[#allocation10 + $0x278] sm:$0xff] }
 0x59c   :  { %9823 = vst [vmem:[#allocation125_spill] sm:$0xff] %v8048_v63  ;;  %3127 = vmatpush.msrb.mxu3 %v8063_v42  ;;  %v8066_v63 = vld [vmem:[#allocation10 + $0x1d0] sm:$0xff] }
 0x59d   :  { %9824 = vst [vmem:[#allocation128_spill] sm:$0xff] %v8051_v10  ;;  %3056 = vmatpush.msrb.mxu0 %v8066_v63  ;;  %v8069_v10 = vld [vmem:[#allocation10 + $0x1d8] sm:$0xff] }
 0x59e   :  { %9825 = vst [vmem:[#allocation29_spill] sm:$0xff] %v8054_v3  ;;  %3096 = vmatpush.msrb.mxu2 %v8069_v10  ;;  %v8072_v3 = vld [vmem:[#allocation10 + $0x250] sm:$0xff] }
 0x59f   :  { %9826 = vst [vmem:[#allocation40_spill] sm:$0xff] %v8057_v53  ;;  %3088 = vmatpush.msrb.mxu1 %v8072_v3  ;;  %v8075_v53 = vld [vmem:[#allocation10 + $0x258] sm:$0xff] }
 0x5a0   :  { %9827 = vst [vmem:[#allocation28_spill] sm:$0xff] %v8060_v50  ;;  %3128 = vmatpush.msrb.mxu3 %v8075_v53  ;;  %v8078_v50 = vld [vmem:[#allocation10 + $0x1b0] sm:$0xff] }
 0x5a1   :  { %9828 = vst [vmem:[#allocation39_spill] sm:$0xff] %v8063_v42  ;;  %3057 = vmatpush.msrb.mxu0 %v8078_v50  ;;  %v8081_v42 = vld [vmem:[#allocation10 + $0x1b8] sm:$0xff] }
 0x5a2   :  { %9829 = vst [vmem:[#allocation19_spill] sm:$0xff] %v8066_v63  ;;  %3097 = vmatpush.msrb.mxu2 %v8081_v42  ;;  %v8084_v63 = vld [vmem:[#allocation10 + $0x230] sm:$0xff] }
 0x5a3   :  { %9830 = vst [vmem:[#allocation20_spill] sm:$0xff] %v8069_v10  ;;  %3089 = vmatpush.msrb.mxu1 %v8084_v63  ;;  %v8087_v10 = vld [vmem:[#allocation10 + $0x238] sm:$0xff] }
 0x5a4   :  { %9831 = vst [vmem:[#allocation21_spill] sm:$0xff] %v8072_v3  ;;  %3129 = vmatpush.msrb.mxu3 %v8087_v10  ;;  %v8090_v3 = vld [vmem:[#allocation10 + $0x190] sm:$0xff] }
 0x5a5   :  { %9832 = vst [vmem:[#allocation22_spill] sm:$0xff] %v8075_v53  ;;  %3058 = vmatpush.msrb.mxu0 %v8090_v3  ;;  %v8093_v53 = vld [vmem:[#allocation10 + $0x198] sm:$0xff] }
 0x5a6   :  { %9833 = vst [vmem:[#allocation23_spill] sm:$0xff] %v8078_v50  ;;  %3098 = vmatpush.msrb.mxu2 %v8093_v53  ;;  %v8096_v50 = vld [vmem:[#allocation10 + $0x210] sm:$0xff] }
 0x5a7   :  { %9834 = vst [vmem:[#allocation24_spill] sm:$0xff] %v8081_v42  ;;  %3090 = vmatpush.msrb.mxu1 %v8096_v50  ;;  %v8099_v42 = vld [vmem:[#allocation10 + $0x218] sm:$0xff] }
 0x5a8   :  { %9835 = vst [vmem:[#allocation25_spill] sm:$0xff] %v8084_v63  ;;  %3130 = vmatpush.msrb.mxu3 %v8099_v42  ;;  %v8102_v63 = vld [vmem:[#allocation10 + $0x170] sm:$0xff] }
 0x5a9   :  { %9836 = vst [vmem:[#allocation26_spill] sm:$0xff] %v8087_v10  ;;  %3059 = vmatpush.msrb.mxu0 %v8102_v63  ;;  %v8105_v10 = vld [vmem:[#allocation10 + $0x178] sm:$0xff] }
 0x5aa   :  { %9837 = vst [vmem:[#allocation27_spill] sm:$0xff] %v8090_v3  ;;  %3099 = vmatpush.msrb.mxu2 %v8105_v10  ;;  %v8108_v3 = vld [vmem:[#allocation10 + $0x150] sm:$0xff]  ;;  %v2682_v28 = vpop.f32.mrf.mxu3 }
 0x5ab   :  { %9838 = vst [vmem:[#allocation133_spill] sm:$0xff] %v8093_v53  ;;  %3060 = vmatpush.msrb.mxu0 %v8108_v3  ;;  %v8111_v53 = vld [vmem:[#allocation10 + $0x158] sm:$0xff] }
 0x5ac   :  { %9839 = vst [vmem:[#allocation134_spill] sm:$0xff] %v8096_v50  ;;  %3100 = vmatpush.msrb.mxu2 %v8111_v53  ;;  %v8114_v50 = vld [vmem:[#allocation10 + $0x130] sm:$0xff] }
 0x5ad   :  { %9840 = vst [vmem:[#allocation135_spill] sm:$0xff] %v8099_v42  ;;  %3061 = vmatpush.msrb.mxu0 %v8114_v50  ;;  %v8117_v42 = vld [vmem:[#allocation10 + $0x138] sm:$0xff] }
 0x5ae   :  { %9841 = vst [vmem:[#allocation136_spill] sm:$0xff] %v8102_v63  ;;  %3101 = vmatpush.msrb.mxu2 %v8117_v42  ;;  %v8120_v63 = vld [vmem:[#allocation10 + $0x110] sm:$0xff] }
 0x5af   :  { %9842 = vst [vmem:[#allocation137_spill] sm:$0xff] %v8105_v10  ;;  %3062 = vmatpush.msrb.mxu0 %v8120_v63  ;;  %v8123_v10 = vld [vmem:[#allocation10 + $0x118] sm:$0xff] }
 0x5b0   :  { %9843 = vst [vmem:[#allocation138_spill] sm:$0xff] %v8108_v3  ;;  %3102 = vmatpush.msrb.mxu2 %v8123_v10  ;;  %v8126_v3 = vld [vmem:[#allocation10 + $0xf0] sm:$0xff] }
 0x5b1   :  { %9844 = vst [vmem:[#allocation139_spill] sm:$0xff] %v8111_v53  ;;  %3063 = vmatpush.msrb.mxu0 %v8126_v3  ;;  %v8129_v53 = vld [vmem:[#allocation10 + $0xf8] sm:$0xff] }
 0x5b2   :  { %9845 = vst [vmem:[#allocation140_spill] sm:$0xff] %v8114_v50  ;;  %3103 = vmatpush.msrb.mxu2 %v8129_v53  ;;  %v8132_v50 = vld [vmem:[#allocation10 + $0xd0] sm:$0xff]  ;;  %v2762_v43 = vpop.f32.mrf.mxu3 }
 0x5b3   :  { %9846 = vst [vmem:[#allocation141_spill] sm:$0xff] %v8117_v42  ;;  %3064 = vmatpush.msrb.mxu0 %v8132_v50  ;;  %v8135_v42 = vld [vmem:[#allocation10 + $0xd8] sm:$0xff] }
 0x5b4   :  { %9847 = vst [vmem:[#allocation142_spill] sm:$0xff] %v8120_v63  ;;  %3104 = vmatpush.msrb.mxu2 %v8135_v42  ;;  %v8138_v63 = vld [vmem:[#allocation10 + $0xb0] sm:$0xff] }
 0x5b5   :  { %9848 = vst [vmem:[#allocation143_spill] sm:$0xff] %v8123_v10  ;;  %3065 = vmatpush.msrb.mxu0 %v8138_v63  ;;  %v8141_v10 = vld [vmem:[#allocation10 + $0xb8] sm:$0xff] }
 0x5b6   :  { %9849 = vst [vmem:[#allocation144_spill] sm:$0xff] %v8126_v3  ;;  %3105 = vmatpush.msrb.mxu2 %v8141_v10  ;;  %v8144_v3 = vld [vmem:[#allocation10 + $0x90] sm:$0xff] }
 0x5b7   :  { %9850 = vst [vmem:[#allocation145_spill] sm:$0xff] %v8129_v53  ;;  %3066 = vmatpush.msrb.mxu0 %v8144_v3  ;;  %v8147_v53 = vld [vmem:[#allocation10 + $0x98] sm:$0xff] }
 0x5b8   :  { %9851 = vst [vmem:[#allocation146_spill] sm:$0xff] %v8132_v50  ;;  %3106 = vmatpush.msrb.mxu2 %v8147_v53  ;;  %v8150_v50 = vld [vmem:[#allocation10 + $0x70] sm:$0xff] }
 0x5b9   :  { %9852 = vst [vmem:[#allocation147_spill] sm:$0xff] %v8135_v42  ;;  %3067 = vmatpush.msrb.mxu0 %v8150_v50  ;;  %v8153_v42 = vld [vmem:[#allocation10 + $0x78] sm:$0xff] }
 0x5ba   :  { %9853 = vst [vmem:[#allocation148_spill] sm:$0xff] %v8138_v63  ;;  %3107 = vmatpush.msrb.mxu2 %v8153_v42  ;;  %v8156_v63 = vld [vmem:[#allocation10 + $0x50] sm:$0xff] }
 0x5bb   :  { %9854 = vst [vmem:[#allocation149_spill] sm:$0xff] %v8141_v10  ;;  %3068 = vmatpush.msrb.mxu0 %v8156_v63  ;;  %v8159_v10 = vld [vmem:[#allocation10 + $0x58] sm:$0xff] }
 0x5bc   :  { %9855 = vst [vmem:[#allocation150_spill] sm:$0xff] %v8144_v3  ;;  %3108 = vmatpush.msrb.mxu2 %v8159_v10  ;;  %v8162_v3 = vld [vmem:[#allocation10 + $0x30] sm:$0xff] }
 0x5bd   :  { %9856 = vst [vmem:[#allocation151_spill] sm:$0xff] %v8147_v53  ;;  %3069 = vmatpush.msrb.mxu0 %v8162_v3  ;;  %v8165_v53 = vld [vmem:[#allocation10 + $0x38] sm:$0xff] }
 0x5be   :  { %9857 = vst [vmem:[#allocation152_spill] sm:$0xff] %v8150_v50  ;;  %3109 = vmatpush.msrb.mxu2 %v8165_v53  ;;  %v8168_v50 = vld [vmem:[#allocation10 + $0x10] sm:$0xff]  ;;  %v2622_v41 = vpop.f32.mrf.mxu0 }
 0x5bf   :  { %9858 = vst [vmem:[#allocation153_spill] sm:$0xff] %v8153_v42  ;;  %3070 = vmatpush.msrb.mxu0 %v8168_v50  ;;  %v8171_v42 = vld [vmem:[#allocation10 + $0x18] sm:$0xff] }
 0x5c0   :  { %9859 = vst [vmem:[#allocation154_spill] sm:$0xff] %v8156_v63  ;;  %3110 = vmatpush.msrb.mxu2 %v8171_v42  ;;  %v2642_v63 = vpop.f32.mrf.mxu1 }
 0x5c1   :  { %9860 = vst [vmem:[#allocation155_spill] sm:$0xff] %v8159_v10  ;;  %v2623_v10 = vadd.f32 %v2622_v41, %v9724_v14  ;;  %v9866_v41 = vld [vmem:[#allocation32_spill] sm:$0xff] }
 0x5c2   :  { %9861 = vst [vmem:[#allocation156_spill] sm:$0xff] %v8162_v3 }
 0x5c3   :  { %9862 = vst [vmem:[#allocation157_spill] sm:$0xff] %v8165_v53  ;;  %v2643_v26 = vadd.f32 %v2642_v63, %v2623_v10 }
 0x5c4   :  { %9863 = vst [vmem:[#allocation158_spill] sm:$0xff] %v8168_v50  ;;  %v2662_v57 = vpop.f32.mrf.mxu2  ;;  %v9865_v50 = vld [vmem:[#allocation115_spill] sm:$0xff] }
 0x5c5   :  { %9864 = vst [vmem:[#allocation159_spill] sm:$0xff] %v8171_v42  ;;  %v3698_v3 = vmul.f32 -1.442695, %v2643_v26  ;;  %v2663_v53 = vadd.f32 %v2662_v57, %v9725_v20  ;;  %v521_v61 = vadd.f32 %v9865_v50, %v9726_v22 }
 0x5c7   :  { %3902 = vpow2.f32 %v3698_v3  ;;  %v2683_v21 = vadd.f32 %v2682_v28, %v2663_v53  ;;  %v2702_v28 = vpop.f32.mrf.mxu0 }
 0x5c8   :  { %v2722_v1 = vpop.f32.mrf.mxu1 }
 0x5c9   :  { %v3699_v2 = vmul.f32 -1.442695, %v2683_v21  ;;  %v9867_v21 = vld [vmem:[#allocation131_spill] sm:$0xff] }
 0x5cb   :  { %3904 = vpow2.f32 %v3699_v2 }
 0x5cc   :  { %v2742_v52 = vpop.f32.mrf.mxu2 }
 0x5cd   :  { %v3903_v42 = vpop.eup %3902  ;;  %v2743_v14 = vadd.f32 %v2742_v52, %v9866_v41 }
 0x5ce   :  { %v2768_v60 = vadd.f32 1.0, %v3903_v42  ;;  %v2905_v53 = vpop.f32.mrf.mxu3  ;;  %v9869_v42 = vld [vmem:[#allocation33_spill] sm:$0xff] }
 0x5cf   :  { %v2763_v63 = vadd.f32 %v2762_v43, %v2743_v14  ;;  %v2703_v22 = vadd.f32 %v2702_v28, %v9869_v42  ;;  %v9870_v28 = vld [vmem:[#allocation126_spill] sm:$0xff] }
 0x5d0   :  { %v2865_v32 = vpop.f32.mrf.mxu1  ;;  %3906 = vrcp.f32 %v2768_v60  ;;  %v2780_v15 = vand.u32 2147483648, %v2768_v60  ;;  %vm2774_vm7 = vweird.f32 %v2768_v60 }
 0x5d1   :  { %v2909_v4 = vadd.f32 %v2865_v32, %v521_v61  ;;  %v3905_v10 = vpop.eup %3904  ;;  %v3700_v3 = vmul.f32 -1.442695, %v2763_v63  ;;  %v9868_v61 = vld [vmem:[#allocation120_spill] sm:$0xff]  ;;  %v2723_v14 = vadd.f32 %v2722_v1, %v2703_v22 }
 0x5d2   :  { %v2787_v57 = vadd.f32 1.0, %v3905_v10  ;;  %v603_v32 = vadd.f32 %v9868_v61, %v9867_v21  ;;  %v2778_v21 = vand.u32 2147483647, %v2768_v60 }
 0x5d3   :  { %v3702_v26 = vmul.f32 -1.442695, %v2909_v4 }
 0x5d4   :  { %v2911_v20 = vadd.f32 %v2905_v53, %v603_v32  ;;  %v9871_v53 = vld [vmem:[#allocation114_spill] sm:$0xff]  ;;  %vm2793_vm10 = vweird.f32 %v2787_v57  ;;  %vm2779_vm11 = vcmp.eq.f32.partialorder %v2778_v21, 8.507059e+37 }
 0x5d5   :  { %3908 = vpow2.f32 %v3702_v26  ;;  %v480_v32 = vadd.f32 %v9871_v53, %v9870_v28 }
 0x5d6   :  { %3910 = vpow2.f32 %v3700_v3  ;;  %v3907_v50 = vpop.eup %3906  ;;  %v3703_v29 = vmul.f32 -1.442695, %v2911_v20  ;;  %v2797_v20 = vand.u32 2147483647, %v2787_v57 }
 0x5d7   :  { %3912 = vrcp.f32 %v2787_v57  ;;  %v2770_v2 = vmul.f32 %v3907_v50, %v2768_v60  ;;  %vm2775_vm6 = vweird.f32 %v3907_v50  ;;  %v2781_v60 = vor.u32 1.1754944e-38, %v2780_v15 }
 0x5d8   :  { %vm8186_vm8 = vmor %vm2774_vm7, %vm2775_vm6  ;;  %vm2798_vm13 = vcmp.eq.f32.partialorder %v2797_v20, 8.507059e+37 }
 0x5d9   :  { %v2771_v52 = vsub.f32 1.0, %v2770_v2  ;;  %v2799_v2 = vand.u32 2147483648, %v2787_v57 }
 0x5db   :  { %v3909_v41 = vpop.eup %3908  ;;  %v2772_v43 = vmul.f32 %v3907_v50, %v2771_v52 }
 0x5dc   :  { %v3911_v4 = vpop.eup %3910  ;;  %v8182_v8 = vadd.f32 1.0, %v3909_v41 }
 0x5dd   :  { %v3913_v63 = vpop.eup %3912  ;;  %v2807_v10 = vadd.f32 1.0, %v3911_v4  ;;  %v2773_v3 = vadd.f32 %v3907_v50, %v2772_v43 }
 0x5de   :  { %v2789_v26 = vmul.f32 %v3913_v63, %v2787_v57  ;;  %v2845_v1 = vpop.f32.mrf.mxu0  ;;  %vm2794_vm9 = vweird.f32 %v3913_v63  ;;  %vm2940_vm3 = vweird.f32 %v8182_v8 }
 0x5df   :  { %3914 = vrcp.f32 %v2807_v10  ;;  %v2777_v41 = vsel %vm8186_vm8, %v3907_v50, %v2773_v3  ;;  %v2908_v4 = vadd.f32 %v2845_v1, %v480_v32  ;;  %vm2795_vm12 = vmor %vm2793_vm10, %vm2794_vm9  ;;  %vm2813_vm15 = vweird.f32 %v2807_v10 }
 0x5e0   :  { %v2790_v61 = vsub.f32 1.0, %v2789_v26  ;;  %3916 = vtanh.f32 %v2723_v14  ;;  %v2800_v26 = vor.u32 1.1754944e-38, %v2799_v2  ;;  %v2782_v53 = vsel %vm2779_vm11, %v2781_v60, %v2777_v41 }
 0x5e1   :  { %3918 = vpow2.f32 %v3703_v29  ;;  %v3701_v28 = vmul.f32 -1.442695, %v2908_v4  ;;  %v2817_v1 = vand.u32 2147483647, %v2807_v10 }
 0x5e2   :  { %v2791_v52 = vmul.f32 %v3913_v63, %v2790_v61  ;;  %3920 = vrcp.f32 %v8182_v8 }
 0x5e3   :  { %3922 = vpow2.f32 %v3701_v28  ;;  %vm2818_vm1 = vcmp.eq.f32.partialorder %v2817_v1, 8.507059e+37 }
 0x5e4   :  { %v2792_v14 = vadd.f32 %v3913_v63, %v2791_v52 }
 0x5e5   :  { %v3915_v43 = vpop.eup %3914  ;;  %v2885_v4 = vpop.f32.mrf.mxu2 }
 0x5e6   :  { %v3917_v42 = vpop.eup %3916  ;;  %v2796_v29 = vsel %vm2795_vm12, %v3913_v63, %v2792_v14  ;;  %v2809_v61 = vmul.f32 %v3915_v43, %v2807_v10  ;;  %vm2814_vm14 = vweird.f32 %v3915_v43  ;;  %v2819_v63 = vand.u32 2147483648, %v2807_v10 }
 0x5e7   :  { %v3919_v62 = vpop.eup %3918  ;;  %v2801_v58 = vsel %vm2798_vm13, %v2800_v26, %v2796_v29  ;;  %v2824_v3 = vmul.f32 %v3917_v42, %v2782_v53  ;;  %vm2815_vm0 = vmor %vm2813_vm15, %vm2814_vm14  ;;  %v9874_v26 = vld [vmem:[#allocation129_spill] sm:$0xff] }
 0x5e8   :  { %v8193_v50 = vpop.eup %3920  ;;  %v2823_v15 = vmul.f32 %v2801_v58, %v7604_v37  ;;  %v2810_v57 = vsub.f32 1.0, %v2809_v61  ;;  %v8200_v22 = vadd.f32 1.0, %v3919_v62  ;;  %v2820_v42 = vor.u32 1.1754944e-38, %v2819_v63  ;;  %v9877_v63 = vld [vmem:[#allocation171_spill] sm:$0xff] }
 0x5e9   :  { %v2936_v2 = vmul.f32 %v8193_v50, %v8182_v8  ;;  %v3923_v28 = vpop.eup %3922  ;;  %v562_v53 = vadd.f32 %v9874_v26, %v5482_v51  ;;  %vm2941_vm2 = vweird.f32 %v8193_v50 }
 0x5ea   :  { %v8196_v21 = vadd.f32 %v2824_v3, %v2823_v15  ;;  %v2811_v32 = vmul.f32 %v3915_v43, %v2810_v57  ;;  %v2915_v52 = vadd.f32 1.0, %v3923_v28  ;;  %v2946_v3 = vand.u32 2147483648, %v8182_v8  ;;  %vm8220_vm4 = vmor %vm2940_vm3, %vm2941_vm2 }
 0x5eb   :  { %v2937_v37 = vsub.f32 1.0, %v2936_v2  ;;  %v2910_v61 = vadd.f32 %v2885_v4, %v562_v53  ;;  %vm2960_vm11 = vweird.f32 %v8200_v22 }
 0x5ec   :  { %3924 = vtanh.f32 %v8196_v21  ;;  %v2812_v20 = vadd.f32 %v3915_v43, %v2811_v32  ;;  %v2927_v2 = vand.u32 2147483648, %v2915_v52  ;;  %v2947_v28 = vor.u32 1.1754944e-38, %v2946_v3  ;;  %v9886_v3 = vld [vmem:[#allocation96_spill] sm:$0xff] }
 0x5ed   :  { %3926 = vrcp.f32 %v8200_v22  ;;  %v2938_v60 = vmul.f32 %v8193_v50, %v2937_v37  ;;  %vm2921_vm6 = vweird.f32 %v2915_v52 }
 0x5ee   :  { %v2816_v58 = vsel %vm2815_vm0, %v3915_v43, %v2812_v20  ;;  %3928 = vrcp.f32 %v2915_v52 }
 0x5ef   :  { %v2821_v62 = vsel %vm2818_vm1, %v2820_v42, %v2816_v58  ;;  %v2939_v15 = vadd.f32 %v8193_v50, %v2938_v60  ;;  %3930 = vtanh.f32 %v2910_v61  ;;  %v9879_v42 = vld [vmem:[#allocation173_spill] sm:$0xff]  ;;  %v9883_v61 = vld [vmem:[#allocation62_spill] sm:$0xff] }
 0x5f2   :  { %v3925_v41 = vpop.eup %3924 }
 0x5f3   :  { %v2827_v14 = vmul.f32 %v3925_v41, %v2821_v62  ;;  %v8207_v29 = vpop.eup %3926  ;;  %v9880_v41 = vld [vmem:[#allocation174_spill] sm:$0xff] }
 0x5f4   :  { %v3929_v10 = vpop.eup %3928  ;;  %v2956_v57 = vmul.f32 %v8207_v29, %v8200_v22  ;;  %vm2961_vm10 = vweird.f32 %v8207_v29 }
 0x5f5   :  { %3011 = vmatmul.f32.vlgmr.msra.gmra.mxu1 %v2827_v14  ;;  %3051 = vmatmul.f32.vlgmr.msra.gmra.mxu3 %v2827_v14  ;;  %v2917_v43 = vmul.f32 %v3929_v10, %v2915_v52  ;;  %vm2922_vm5 = vweird.f32 %v3929_v10  ;;  %vm2962_vm12 = vmor %vm2960_vm11, %vm2961_vm10 }
 0x5f6   :  { %3218 = vmatpush.msra.mxu1 %v7620_v49  ;;  %3258 = vmatpush.msra.mxu3 %v7623_v24  ;;  %v2944_v49 = vand.u32 2147483647, %v8182_v8  ;;  %v2957_v1 = vsub.f32 1.0, %v2956_v57  ;;  %v9878_v8 = vld [vmem:[#allocation172_spill] sm:$0xff]  ;;  %vm2923_vm8 = vmor %vm2921_vm6, %vm2922_vm5  ;;  %v9887_v57 = vld [vmem:[#allocation82_spill] sm:$0xff] }
 0x5f7   :  { %v2918_v32 = vsub.f32 1.0, %v2917_v43  ;;  %v9884_v43 = vld [vmem:[#allocation79_spill] sm:$0xff] }
 0x5f8   :  { %3219 = vmatpush.msra.mxu1 %v7629_v38  ;;  %3259 = vmatpush.msra.mxu3 %v7632_v55  ;;  %v2925_v38 = vand.u32 2147483647, %v2915_v52  ;;  %v2943_v55 = vsel %vm8220_vm4, %v8193_v50, %v2939_v15  ;;  %vm2945_vm7 = vcmp.eq.f32.partialorder %v2944_v49, 8.507059e+37  ;;  %v3931_v50 = vpop.eup %3930  ;;  %v2958_v60 = vmul.f32 %v8207_v29, %v2957_v1  ;;  %v9885_v15 = vld [vmem:[#allocation83_spill] sm:$0xff]  ;;  %v4582_v49 = vld [vmem:[#allocation7 + $0x60] sm:$0xff] }
 0x5f9   :  { %v2919_v20 = vmul.f32 %v3929_v10, %v2918_v32  ;;  %v2948_v58 = vsel %vm2945_vm7, %v2947_v28, %v2943_v55  ;;  %v9888_v32 = vld [vmem:[#allocation102_spill] sm:$0xff]  ;;  %v9889_v24 = vld [vmem:[#allocation43_spill] sm:$0xff] }
 0x5fa   :  { %3220 = vmatpush.msra.mxu1 %v7640_v59  ;;  %3260 = vmatpush.msra.mxu3 %v9877_v63  ;;  %v2928_v59 = vor.u32 1.1754944e-38, %v2927_v2  ;;  %vm2926_vm9 = vcmp.eq.f32.partialorder %v2925_v38, 8.507059e+37  ;;  %v2970_v52 = vmul.f32 %v2948_v58, %v7685_v44  ;;  %v2959_v26 = vadd.f32 %v8207_v29, %v2958_v60  ;;  %v9882_v44 = vld [vmem:[#allocation80_spill] sm:$0xff]  ;;  %v9891_v38 = vld [vmem:[#allocation42_spill] sm:$0xff]  ;;  %v9892_v28 = vld [vmem:[#allocation59_spill] sm:$0xff] }
 0x5fb   :  { %v2920_v37 = vadd.f32 %v3929_v10, %v2919_v20  ;;  %v4583_v2 = vld [vmem:[#allocation7 + $0x70] sm:$0xff]  ;;  %v4584_v20 = vld [vmem:[#allocation7 + $0x40] sm:$0xff] }
 0x5fc   :  { %3221 = vmatpush.msra.mxu1 %v7657_v30  ;;  %3261 = vmatpush.msra.mxu3 %v9878_v8  ;;  %v9890_v63 = vld [vmem:[#allocation60_spill] sm:$0xff]  ;;  %v4586_v1 = vld [vmem:[#allocation7 + $0x20] sm:$0xff]  ;;  %v9898_v60 = vld [vmem:[#allocation47_spill] sm:$0xff] }
 0x5fd   :  { %3091 = vmatmul.f32.vlgmr.msrb.gmra.mxu1 %v2827_v14  ;;  %3131 = vmatmul.f32.vlgmr.msrb.gmra.mxu3 %v2827_v14  ;;  %v2924_v62 = vsel %vm2923_vm8, %v3929_v10, %v2920_v37  ;;  %v4573_v10 = vld [vmem:[#allocation7 + $0x110] sm:$0xff]  ;;  %v9893_v8 = vld [vmem:[#allocation34_spill] sm:$0xff] }
 0x5fe   :  { %3222 = vmatpush.msra.mxu1 %v9879_v42  ;;  %3262 = vmatpush.msra.mxu3 %v9880_v41  ;;  %v2929_v30 = vsel %vm2926_vm9, %v2928_v59, %v2924_v62  ;;  %v4585_v55 = vld [vmem:[#allocation7 + $0x50] sm:$0xff]  ;;  %v4588_v58 = vld [vmem:[#allocation7] sm:$0xff] }
 0x5ff   :  { %v2971_v4 = vmul.f32 %v3931_v50, %v2929_v30  ;;  %v4587_v37 = vld [vmem:[#allocation7 + $0x30] sm:$0xff]  ;;  %v9895_v42 = vld [vmem:[#allocation38_spill] sm:$0xff]  ;;  %v9896_v62 = vld [vmem:[#allocation41_spill] sm:$0xff] }
 0x600   :  { %3223 = vmatpush.msra.mxu1 %v7671_v17  ;;  %3263 = vmatpush.msra.mxu3 %v7674_v36  ;;  %v2966_v17 = vand.u32 2147483648, %v8200_v22  ;;  %v9881_v36 = vld [vmem:[#allocation63_spill] sm:$0xff]  ;;  %v9897_v50 = vld [vmem:[#allocation46_spill] sm:$0xff] }
 0x601   :  { %v8239_v14 = vadd.f32 %v2971_v4, %v2970_v52  ;;  %v9894_v59 = vld [vmem:[#allocation35_spill] sm:$0xff]  ;;  %v9899_v30 = vld [vmem:[#allocation50_spill] sm:$0xff] }
 0x602   :  { %3224 = vmatpush.msra.mxu1 %v7679_v13  ;;  %3264 = vmatpush.msra.mxu3 %v7682_v16  ;;  %v2964_v13 = vand.u32 2147483647, %v8200_v22  ;;  %v2963_v16 = vsel %vm2962_vm12, %v8207_v29, %v2959_v26  ;;  %v4564_v29 = vld [vmem:[#allocation7 + $0x180] sm:$0xff]  ;;  %v4589_v41 = vld [vmem:[#allocation7 + $0x10] sm:$0xff] }
 0x603   :  { %3932 = vtanh.f32 %v8239_v14  ;;  %v9900_v52 = vld [vmem:[#allocation51_spill] sm:$0xff]  ;;  %v9901_v4 = vld [vmem:[#allocation54_spill] sm:$0xff] }
 0x604   :  { %3225 = vmatpush.msra.mxu1 %v7687_v54  ;;  %3265 = vmatpush.msra.mxu3 %v7690_v47  ;;  %v2967_v54 = vor.u32 1.1754944e-38, %v2966_v17  ;;  %vm2965_vm13 = vcmp.eq.f32.partialorder %v2964_v13, 8.507059e+37  ;;  %v9902_v26 = vld [vmem:[#allocation55_spill] sm:$0xff]  ;;  %v9903_v17 = vld [vmem:[#allocation58_spill] sm:$0xff]  ;;  %v9904_v13 = vld [vmem:[#allocation61_spill] sm:$0xff] }
 0x606   :  { %3226 = vmatpush.msra.mxu1 %v7697_v25  ;;  %3266 = vmatpush.msra.mxu3 %v9881_v36  ;;  %v2968_v53 = vsel %vm2965_vm13, %v2967_v54, %v2963_v16  ;;  %v4558_v25 = vld [vmem:[#allocation7 + $0x1e0] sm:$0xff]  ;;  %v9906_v16 = vld [vmem:[#allocation67_spill] sm:$0xff] }
 0x607   :  { %v9905_v36 = vld [vmem:[#allocation66_spill] sm:$0xff]  ;;  %v9908_v54 = vld [vmem:[#allocation71_spill] sm:$0xff] }
 0x608   :  { %3227 = vmatpush.msra.mxu1 %v9882_v44  ;;  %3267 = vmatpush.msra.mxu3 %v7708_v18  ;;  %v4559_v18 = vld [vmem:[#allocation7 + $0x1f0] sm:$0xff]  ;;  %v9907_v44 = vld [vmem:[#allocation70_spill] sm:$0xff] }
 0x609   :  { %v3933_v47 = vpop.eup %3932 }
 0x60a   :  { %3228 = vmatpush.msra.mxu1 %v7712_v31  ;;  %3268 = vmatpush.msra.mxu3 %v7715_v34  ;;  %v8256_v22 = vmul.f32 %v3933_v47, %v2968_v53  ;;  %v4560_v31 = vld [vmem:[#allocation7 + $0x1c0] sm:$0xff]  ;;  %v4561_v34 = vld [vmem:[#allocation7 + $0x1d0] sm:$0xff] }
 0x60b   :  { %v9909_v47 = vld [vmem:[#allocation74_spill] sm:$0xff]  ;;  %v9910_v53 = vld [vmem:[#allocation75_spill] sm:$0xff] }
 0x60c   :  { %3229 = vmatpush.msra.mxu1 %v7718_v6  ;;  %3269 = vmatpush.msra.mxu3 %v7721_v7  ;;  %v4562_v6 = vld [vmem:[#allocation7 + $0x1a0] sm:$0xff]  ;;  %v4563_v7 = vld [vmem:[#allocation7 + $0x1b0] sm:$0xff] }
 0x60d   :  { %2991 = vmatmul.f32.vlgmr.msra.gmra.mxu0 %v8256_v22  ;;  %3031 = vmatmul.f32.vlgmr.msra.gmra.mxu2 %v8256_v22 }
 0x60e   :  { %3198 = vmatpush.msra.mxu0 %v4558_v25  ;;  %3238 = vmatpush.msra.mxu2 %v4559_v18  ;;  %v9912_v25 = vld [vmem:[#allocation81_spill] sm:$0xff]  ;;  %v9913_v18 = vld [vmem:[#allocation86_spill] sm:$0xff] }
 0x60f   :  { %3230 = vmatpush.msra.mxu1 %v7726_v0  ;;  %3270 = vmatpush.msra.mxu3 %v7729_v27  ;;  %v4565_v0 = vld [vmem:[#allocation7 + $0x190] sm:$0xff]  ;;  %v4566_v27 = vld [vmem:[#allocation7 + $0x160] sm:$0xff] }
 0x610   :  { %3199 = vmatpush.msra.mxu0 %v4560_v31  ;;  %3239 = vmatpush.msra.mxu2 %v4561_v34  ;;  %v9914_v31 = vld [vmem:[#allocation87_spill] sm:$0xff]  ;;  %v9915_v34 = vld [vmem:[#allocation90_spill] sm:$0xff] }
 0x611   :  { %3231 = vmatpush.msra.mxu1 %v7736_v5  ;;  %3271 = vmatpush.msra.mxu3 %v7739_v35  ;;  %v4567_v5 = vld [vmem:[#allocation7 + $0x170] sm:$0xff]  ;;  %v4568_v35 = vld [vmem:[#allocation7 + $0x140] sm:$0xff] }
 0x612   :  { %3200 = vmatpush.msra.mxu0 %v4562_v6  ;;  %3240 = vmatpush.msra.mxu2 %v4563_v7  ;;  %v9916_v6 = vld [vmem:[#allocation91_spill] sm:$0xff]  ;;  %v9917_v7 = vld [vmem:[#allocation94_spill] sm:$0xff] }
 0x613   :  { %3232 = vmatpush.msra.mxu1 %v7744_v9  ;;  %3272 = vmatpush.msra.mxu3 %v7747_v46  ;;  %v4569_v9 = vld [vmem:[#allocation7 + $0x150] sm:$0xff]  ;;  %v4570_v46 = vld [vmem:[#allocation7 + $0x120] sm:$0xff] }
 0x614   :  { %3201 = vmatpush.msra.mxu0 %v4564_v29  ;;  %3241 = vmatpush.msra.mxu2 %v4565_v0  ;;  %v9918_v29 = vld [vmem:[#allocation36_spill] sm:$0xff]  ;;  %v9919_v0 = vld [vmem:[#allocation37_spill] sm:$0xff] }
 0x615   :  { %3233 = vmatpush.msra.mxu1 %v7752_v33  ;;  %3273 = vmatpush.msra.mxu3 %v7755_v11  ;;  %v4571_v33 = vld [vmem:[#allocation7 + $0x130] sm:$0xff]  ;;  %v4572_v11 = vld [vmem:[#allocation7 + $0x100] sm:$0xff] }
 0x616   :  { %3071 = vmatmul.f32.vlgmr.msrb.gmra.mxu0 %v8256_v22  ;;  %3111 = vmatmul.f32.vlgmr.msrb.gmra.mxu2 %v8256_v22 }
 0x617   :  { %3202 = vmatpush.msra.mxu0 %v4566_v27  ;;  %3234 = vmatmul.f32.vlgmr.msra.gmra.mxu1 %v8256_v22  ;;  %v9920_v27 = vld [vmem:[#allocation95_spill] sm:$0xff] }
 0x618   :  { %3242 = vmatpush.msra.mxu2 %v4567_v5  ;;  %3274 = vmatmul.f32.vlgmr.msra.gmra.mxu3 %v8256_v22  ;;  %v9921_v5 = vld [vmem:[#allocation44_spill] sm:$0xff] }
 0x619   :  { %3203 = vmatpush.msra.mxu0 %v4568_v35  ;;  %3365 = vmatpush.msrb.mxu1 %v7767_v39  ;;  %v4574_v39 = vld [vmem:[#allocation7 + $0xe0] sm:$0xff] }
 0x61a   :  { %3243 = vmatpush.msra.mxu2 %v4569_v9  ;;  %3405 = vmatpush.msrb.mxu3 %v7771_v19  ;;  %v4575_v19 = vld [vmem:[#allocation7 + $0xf0] sm:$0xff]  ;;  %v9922_v35 = vld [vmem:[#allocation45_spill] sm:$0xff] }
 0x61b   :  { %3204 = vmatpush.msra.mxu0 %v4570_v46  ;;  %3366 = vmatpush.msrb.mxu1 %v7775_v56  ;;  %v4576_v56 = vld [vmem:[#allocation7 + $0xc0] sm:$0xff]  ;;  %v9924_v46 = vld [vmem:[#allocation48_spill] sm:$0xff] }
 0x61c   :  { %3244 = vmatpush.msra.mxu2 %v4571_v33  ;;  %3406 = vmatpush.msrb.mxu3 %v7779_v12  ;;  %v4577_v12 = vld [vmem:[#allocation7 + $0xd0] sm:$0xff]  ;;  %v9923_v9 = vld [vmem:[#allocation101_spill] sm:$0xff] }
 0x61d   :  { %3205 = vmatpush.msra.mxu0 %v4572_v11  ;;  %3367 = vmatpush.msrb.mxu1 %v7783_v45  ;;  %v4578_v45 = vld [vmem:[#allocation7 + $0xa0] sm:$0xff] }
 0x61e   :  { %3245 = vmatpush.msra.mxu2 %v4573_v10  ;;  %3407 = vmatpush.msrb.mxu3 %v7787_v48  ;;  %v4579_v48 = vld [vmem:[#allocation7 + $0xb0] sm:$0xff]  ;;  %v9925_v33 = vld [vmem:[#allocation105_spill] sm:$0xff]  ;;  %v9927_v10 = vld [vmem:[#allocation106_spill] sm:$0xff] }
 0x61f   :  { %3206 = vmatpush.msra.mxu0 %v4574_v39  ;;  %3368 = vmatpush.msrb.mxu1 %v7791_v40  ;;  %v4580_v40 = vld [vmem:[#allocation7 + $0x80] sm:$0xff]  ;;  %v9928_v39 = vld [vmem:[#allocation52_spill] sm:$0xff] }
 0x620   :  { %3246 = vmatpush.msra.mxu2 %v4575_v19  ;;  %3408 = vmatpush.msrb.mxu3 %v7795_v23  ;;  %v4581_v23 = vld [vmem:[#allocation7 + $0x90] sm:$0xff]  ;;  %v9926_v11 = vld [vmem:[#allocation49_spill] sm:$0xff] }
 0x621   :  { %3207 = vmatpush.msra.mxu0 %v4576_v56  ;;  %3369 = vmatpush.msrb.mxu1 %v9883_v61  ;;  %v9929_v19 = vld [vmem:[#allocation109_spill] sm:$0xff]  ;;  %v9931_v61 = vld [vmem:[#allocation110_spill] sm:$0xff] }
 0x622   :  { %3247 = vmatpush.msra.mxu2 %v4577_v12  ;;  %3409 = vmatpush.msrb.mxu3 %v9884_v43  ;;  %v9930_v56 = vld [vmem:[#allocation53_spill] sm:$0xff]  ;;  %v9932_v12 = vld [vmem:[#allocation56_spill] sm:$0xff] }
 0x623   :  { %3208 = vmatpush.msra.mxu0 %v4578_v45  ;;  %3370 = vmatpush.msrb.mxu1 %v9885_v15  ;;  %v9933_v43 = vld [vmem:[#allocation57_spill] sm:$0xff]  ;;  %v9934_v45 = vld [vmem:[#allocation64_spill] sm:$0xff] }
 0x624   :  { %3248 = vmatpush.msra.mxu2 %v4579_v48  ;;  %3410 = vmatpush.msrb.mxu3 %v9886_v3  ;;  %v9935_v15 = vld [vmem:[#allocation65_spill] sm:$0xff]  ;;  %v9936_v48 = vld [vmem:[#allocation68_spill] sm:$0xff] }
 0x625   :  { %3209 = vmatpush.msra.mxu0 %v4580_v40  ;;  %3371 = vmatpush.msrb.mxu1 %v9887_v57  ;;  %v9937_v3 = vld [vmem:[#allocation69_spill] sm:$0xff]  ;;  %v9938_v40 = vld [vmem:[#allocation72_spill] sm:$0xff] }
 0x626   :  { %3249 = vmatpush.msra.mxu2 %v4581_v23  ;;  %3411 = vmatpush.msrb.mxu3 %v9888_v32  ;;  %v9939_v57 = vld [vmem:[#allocation73_spill] sm:$0xff]  ;;  %v9940_v23 = vld [vmem:[#allocation76_spill] sm:$0xff] }
 0x627   :  { %3210 = vmatpush.msra.mxu0 %v4582_v49  ;;  %3372 = vmatpush.msrb.mxu1 %v9889_v24  ;;  %v9941_v32 = vld [vmem:[#allocation77_spill] sm:$0xff]  ;;  %v9942_v49 = vld [vmem:[#allocation84_spill] sm:$0xff] }
 0x628   :  { %3250 = vmatpush.msra.mxu2 %v4583_v2  ;;  %3412 = vmatpush.msrb.mxu3 %v9890_v63  ;;  %v9943_v24 = vld [vmem:[#allocation85_spill] sm:$0xff]  ;;  %v9944_v2 = vld [vmem:[#allocation88_spill] sm:$0xff] }
 0x629   :  { %3211 = vmatpush.msra.mxu0 %v4584_v20  ;;  %3373 = vmatpush.msrb.mxu1 %v9891_v38  ;;  %v9945_v63 = vld [vmem:[#allocation89_spill] sm:$0xff]  ;;  %v9946_v20 = vld [vmem:[#allocation92_spill] sm:$0xff] }
 0x62a   :  { %3251 = vmatpush.msra.mxu2 %v4585_v55  ;;  %3413 = vmatpush.msrb.mxu3 %v9892_v28  ;;  %v9947_v38 = vld [vmem:[#allocation93_spill] sm:$0xff]  ;;  %v9949_v28 = vld [vmem:[#allocation98_spill] sm:$0xff] }
 0x62b   :  { %3212 = vmatpush.msra.mxu0 %v4586_v1  ;;  %3374 = vmatpush.msrb.mxu1 %v9893_v8  ;;  %v9948_v55 = vld [vmem:[#allocation97_spill] sm:$0xff]  ;;  %v9950_v1 = vld [vmem:[#allocation103_spill] sm:$0xff]  ;;  %v9951_v8 = vld [vmem:[#allocation104_spill] sm:$0xff] }
 0x62c   :  { %3252 = vmatpush.msra.mxu2 %v4587_v37  ;;  %3414 = vmatpush.msrb.mxu3 %v9894_v59  ;;  %v9952_v37 = vld [vmem:[#allocation107_spill] sm:$0xff]  ;;  %v9953_v59 = vld [vmem:[#allocation108_spill] sm:$0xff] }
 0x62d   :  { %3213 = vmatpush.msra.mxu0 %v4588_v58  ;;  %3375 = vmatpush.msrb.mxu1 %v9895_v42  ;;  %v9954_v58 = vld [vmem:[#allocation111_spill] sm:$0xff]  ;;  %v9955_v42 = vld [vmem:[#allocation112_spill] sm:$0xff] }
 0x62e   :  { %3253 = vmatpush.msra.mxu2 %v4589_v41  ;;  %3214 = vmatmul.f32.vlgmr.msra.gmra.mxu0 %v8256_v22  ;;  %v9956_v41 = vld [vmem:[#allocation116_spill] sm:$0xff] }
 0x62f   :  { %3254 = vmatmul.f32.vlgmr.msra.gmra.mxu2 %v8256_v22  ;;  %3415 = vmatpush.msrb.mxu3 %v9896_v62  ;;  %v9911_v22 = vld [vmem:[#allocation78_spill] sm:$0xff]  ;;  %v9957_v62 = vld [vmem:[#allocation117_spill] sm:$0xff] }
 0x630   :  { %3376 = vmatpush.msrb.mxu1 %v9897_v50  ;;  %3345 = vmatpush.msrb.mxu0 %v9898_v60  ;;  %v9958_v50 = vld [vmem:[#allocation119_spill] sm:$0xff] }
 0x631   :  { %3416 = vmatpush.msrb.mxu3 %v9899_v30  ;;  %3385 = vmatpush.msrb.mxu2 %v9900_v52  ;;  %v9959_v60 = vld [vmem:[#allocation123_spill] sm:$0xff]  ;;  %v9960_v30 = vld [vmem:[#allocation124_spill] sm:$0xff]  ;;  %v9961_v52 = vld [vmem:[#allocation125_spill] sm:$0xff] }
 0x632   :  { %3377 = vmatpush.msrb.mxu1 %v9901_v4  ;;  %3346 = vmatpush.msrb.mxu0 %v9902_v26  ;;  %v9962_v4 = vld [vmem:[#allocation128_spill] sm:$0xff]  ;;  %v9963_v26 = vld [vmem:[#allocation29_spill] sm:$0xff] }
 0x633   :  { %3417 = vmatpush.msrb.mxu3 %v9903_v17  ;;  %3386 = vmatpush.msrb.mxu2 %v9904_v13  ;;  %v9964_v17 = vld [vmem:[#allocation40_spill] sm:$0xff] }
 0x634   :  { %3378 = vmatpush.msrb.mxu1 %v9905_v36  ;;  %3347 = vmatpush.msrb.mxu0 %v9906_v16  ;;  %v9965_v13 = vld [vmem:[#allocation28_spill] sm:$0xff]  ;;  %v9966_v36 = vld [vmem:[#allocation39_spill] sm:$0xff] }
 0x635   :  { %3418 = vmatpush.msrb.mxu3 %v9907_v44  ;;  %3387 = vmatpush.msrb.mxu2 %v9908_v54  ;;  %v9967_v16 = vld [vmem:[#allocation19_spill] sm:$0xff]  ;;  %v9968_v44 = vld [vmem:[#allocation20_spill] sm:$0xff]  ;;  %v9969_v54 = vld [vmem:[#allocation21_spill] sm:$0xff] }
 0x636   :  { %3379 = vmatpush.msrb.mxu1 %v9909_v47  ;;  %3348 = vmatpush.msrb.mxu0 %v9910_v53  ;;  %v9970_v47 = vld [vmem:[#allocation22_spill] sm:$0xff]  ;;  %v9971_v53 = vld [vmem:[#allocation23_spill] sm:$0xff] }
 0x637   :  { %3419 = vmatpush.msrb.mxu3 %v9911_v22  ;;  %3388 = vmatpush.msrb.mxu2 %v9912_v25  ;;  %v9972_v22 = vld [vmem:[#allocation24_spill] sm:$0xff]  ;;  %v9973_v25 = vld [vmem:[#allocation25_spill] sm:$0xff] }
 0x638   :  { %3380 = vmatpush.msrb.mxu1 %v9913_v18  ;;  %3349 = vmatpush.msrb.mxu0 %v9914_v31  ;;  %v9974_v18 = vld [vmem:[#allocation26_spill] sm:$0xff]  ;;  %v9975_v31 = vld [vmem:[#allocation27_spill] sm:$0xff] }
 0x639   :  { %3420 = vmatpush.msrb.mxu3 %v9915_v34  ;;  %3389 = vmatpush.msrb.mxu2 %v9916_v6  ;;  %v9976_v34 = vld [vmem:[#allocation133_spill] sm:$0xff]  ;;  %v9977_v6 = vld [vmem:[#allocation134_spill] sm:$0xff] }
 0x63a   :  { %3445 = vmatpush.msra.mxu1 %v9917_v7  ;;  %3350 = vmatpush.msrb.mxu0 %v9919_v0  ;;  %v9978_v7 = vld [vmem:[#allocation135_spill] sm:$0xff]  ;;  %v9980_v0 = vld [vmem:[#allocation137_spill] sm:$0xff] }
 0x63b   :  { %3485 = vmatpush.msra.mxu3 %v9918_v29  ;;  %3390 = vmatpush.msrb.mxu2 %v9920_v27  ;;  %v9979_v29 = vld [vmem:[#allocation136_spill] sm:$0xff]  ;;  %v9981_v27 = vld [vmem:[#allocation138_spill] sm:$0xff] }
 0x63c   :  { %3446 = vmatpush.msra.mxu1 %v9921_v5  ;;  %3351 = vmatpush.msrb.mxu0 %v9923_v9  ;;  %v9982_v5 = vld [vmem:[#allocation139_spill] sm:$0xff]  ;;  %v9984_v9 = vld [vmem:[#allocation141_spill] sm:$0xff] }
 0x63d   :  { %3486 = vmatpush.msra.mxu3 %v9922_v35  ;;  %3391 = vmatpush.msrb.mxu2 %v9924_v46  ;;  %v9983_v35 = vld [vmem:[#allocation140_spill] sm:$0xff]  ;;  %v9985_v46 = vld [vmem:[#allocation142_spill] sm:$0xff] }
 0x63e   :  { %3447 = vmatpush.msra.mxu1 %v9925_v33  ;;  %3352 = vmatpush.msrb.mxu0 %v9927_v10  ;;  %v9986_v33 = vld [vmem:[#allocation143_spill] sm:$0xff]  ;;  %v9988_v10 = vld [vmem:[#allocation145_spill] sm:$0xff] }
 0x63f   :  { %3487 = vmatpush.msra.mxu3 %v9926_v11  ;;  %3392 = vmatpush.msrb.mxu2 %v9928_v39  ;;  %v9987_v11 = vld [vmem:[#allocation144_spill] sm:$0xff]  ;;  %v9989_v39 = vld [vmem:[#allocation146_spill] sm:$0xff] }
 0x640   :  { %3448 = vmatpush.msra.mxu1 %v9929_v19  ;;  %3353 = vmatpush.msrb.mxu0 %v9931_v61  ;;  %v9990_v19 = vld [vmem:[#allocation147_spill] sm:$0xff]  ;;  %v9992_v61 = vld [vmem:[#allocation149_spill] sm:$0xff] }
 0x641   :  { %3488 = vmatpush.msra.mxu3 %v9930_v56  ;;  %3393 = vmatpush.msrb.mxu2 %v9932_v12  ;;  %v9991_v56 = vld [vmem:[#allocation148_spill] sm:$0xff]  ;;  %v9993_v12 = vld [vmem:[#allocation150_spill] sm:$0xff] }
 0x642   :  { %3449 = vmatpush.msra.mxu1 %v9933_v43  ;;  %3354 = vmatpush.msrb.mxu0 %v9935_v15  ;;  %v9994_v43 = vld [vmem:[#allocation151_spill] sm:$0xff]  ;;  %v9996_v15 = vld [vmem:[#allocation153_spill] sm:$0xff] }
 0x643   :  { %3489 = vmatpush.msra.mxu3 %v9934_v45  ;;  %3394 = vmatpush.msrb.mxu2 %v9936_v48  ;;  %v9995_v45 = vld [vmem:[#allocation152_spill] sm:$0xff]  ;;  %v9997_v48 = vld [vmem:[#allocation154_spill] sm:$0xff] }
 0x644   :  { %3450 = vmatpush.msra.mxu1 %v9937_v3  ;;  %3355 = vmatpush.msrb.mxu0 %v9939_v57  ;;  %v9998_v3 = vld [vmem:[#allocation155_spill] sm:$0xff]  ;;  %v10000_v57 = vld [vmem:[#allocation157_spill] sm:$0xff] }
 0x645   :  { %3490 = vmatpush.msra.mxu3 %v9938_v40  ;;  %3395 = vmatpush.msrb.mxu2 %v9940_v23  ;;  %v9999_v40 = vld [vmem:[#allocation156_spill] sm:$0xff]  ;;  %v10001_v23 = vld [vmem:[#allocation158_spill] sm:$0xff] }
 0x646   :  { %3451 = vmatpush.msra.mxu1 %v9941_v32  ;;  %3356 = vmatpush.msrb.mxu0 %v9943_v24  ;;  %v10002_v32 = vld [vmem:[#allocation159_spill] sm:$0xff] }
 0x647   :  { %3491 = vmatpush.msra.mxu3 %v9942_v49  ;;  %3396 = vmatpush.msrb.mxu2 %v9944_v2  ;;  %v10003_v2 = vld [vmem:[#allocation30_spill] sm:$0xff] }
 0x648   :  { %3452 = vmatpush.msra.mxu1 %v9945_v63  ;;  %3357 = vmatpush.msrb.mxu0 %v9947_v38 }
 0x649   :  { %3492 = vmatpush.msra.mxu3 %v9946_v20  ;;  %3397 = vmatpush.msrb.mxu2 %v9948_v55 }
 0x64a   :  { %3453 = vmatpush.msra.mxu1 %v9949_v28  ;;  %3358 = vmatpush.msrb.mxu0 %v9951_v8  ;;  %v10004_v8 = vld [vmem:[#allocation31_spill] sm:$0xff] }
 0x64b   :  { %3493 = vmatpush.msra.mxu3 %v9950_v1  ;;  %3398 = vmatpush.msrb.mxu2 %v9952_v37 }
 0x64c   :  { %3454 = vmatpush.msra.mxu1 %v9953_v59  ;;  %3359 = vmatpush.msrb.mxu0 %v9955_v42  ;;  %v10006_v42 = vld [vmem:[#allocation122_spill] sm:$0xff] }
 0x64d   :  { %3494 = vmatpush.msra.mxu3 %v9954_v58  ;;  %3399 = vmatpush.msrb.mxu2 %v9956_v41  ;;  %v10005_v58 = vld [vmem:[#allocation127_spill] sm:$0xff] }
 0x64e   :  { %3455 = vmatpush.msra.mxu1 %v9957_v62  ;;  %3360 = vmatpush.msrb.mxu0 %v9959_v60  ;;  %v524_v41 = vadd.f32 %v10006_v42, %v10005_v58 }
 0x64f   :  { %3495 = vmatpush.msra.mxu3 %v9958_v50  ;;  %3400 = vmatpush.msrb.mxu2 %v9960_v30 }
 0x650   :  { %3456 = vmatpush.msra.mxu1 %v9961_v52  ;;  %3425 = vmatpush.msra.mxu0 %v9963_v26 }
 0x651   :  { %3496 = vmatpush.msra.mxu3 %v9962_v4  ;;  %3465 = vmatpush.msra.mxu2 %v9964_v17 }
 0x652   :  { %3457 = vmatpush.msra.mxu1 %v9965_v13  ;;  %3426 = vmatpush.msra.mxu0 %v9967_v16  ;;  %v10007_v13 = vld [vmem:[#allocation32_spill] sm:$0xff] }
 0x653   :  { %3497 = vmatpush.msra.mxu3 %v9966_v36  ;;  %3466 = vmatpush.msra.mxu2 %v9968_v44 }
 0x654   :  { %3458 = vmatpush.msra.mxu1 %v9969_v54  ;;  %3427 = vmatpush.msra.mxu0 %v9971_v53 }
 0x655   :  { %3498 = vmatpush.msra.mxu3 %v9970_v47  ;;  %3467 = vmatpush.msra.mxu2 %v9972_v22  ;;  %v10008_v22 = vld [vmem:[#allocation131_spill] sm:$0xff] }
 0x656   :  { %3459 = vmatpush.msra.mxu1 %v9973_v25  ;;  %3428 = vmatpush.msra.mxu0 %v9975_v31  ;;  %v10009_v25 = vld [vmem:[#allocation130_spill] sm:$0xff] }
 0x657   :  { %3499 = vmatpush.msra.mxu3 %v9974_v18  ;;  %3468 = vmatpush.msra.mxu2 %v9976_v34  ;;  %v606_v18 = vadd.f32 %v10009_v25, %v10008_v22 }
 0x658   :  { %3460 = vmatpush.msra.mxu1 %v9977_v6  ;;  %3429 = vmatpush.msra.mxu0 %v9979_v29  ;;  %v10010_v6 = vld [vmem:[#allocation33_spill] sm:$0xff] }
 0x659   :  { %3500 = vmatpush.msra.mxu3 %v9978_v7  ;;  %3469 = vmatpush.msra.mxu2 %v9980_v0 }
 0x65a   :  { %3430 = vmatpush.msra.mxu0 %v9981_v27 }
 0x65b   :  { %3470 = vmatpush.msra.mxu2 %v9982_v5 }
 0x65c   :  { %3431 = vmatpush.msra.mxu0 %v9983_v35 }
 0x65d   :  { %3471 = vmatpush.msra.mxu2 %v9984_v9 }
 0x65e   :  { %3432 = vmatpush.msra.mxu0 %v9985_v46 }
 0x65f   :  { %3472 = vmatpush.msra.mxu2 %v9986_v33 }
 0x660   :  { %3433 = vmatpush.msra.mxu0 %v9987_v11 }
 0x661   :  { %3473 = vmatpush.msra.mxu2 %v9988_v10 }
 0x662   :  { %3434 = vmatpush.msra.mxu0 %v9989_v39 }
 0x663   :  { %3474 = vmatpush.msra.mxu2 %v9990_v19 }
 0x664   :  { %3435 = vmatpush.msra.mxu0 %v9991_v56 }
 0x665   :  { %3475 = vmatpush.msra.mxu2 %v9992_v61 }
 0x666   :  { %3436 = vmatpush.msra.mxu0 %v9993_v12 }
 0x667   :  { %3476 = vmatpush.msra.mxu2 %v9994_v43 }
 0x668   :  { %3437 = vmatpush.msra.mxu0 %v9995_v45  ;;  %v10011_v45 = vld [vmem:[#allocation126_spill] sm:$0xff] }
 0x669   :  { %3477 = vmatpush.msra.mxu2 %v9996_v15  ;;  %v10012_v15 = vld [vmem:[#allocation121_spill] sm:$0xff] }
 0x66a   :  { %3438 = vmatpush.msra.mxu0 %v9997_v48  ;;  %v483_v48 = vadd.f32 %v10012_v15, %v10011_v45 }
 0x66b   :  { %3478 = vmatpush.msra.mxu2 %v9998_v3 }
 0x66c   :  { %3439 = vmatpush.msra.mxu0 %v9999_v40 }
 0x66d   :  { %3479 = vmatpush.msra.mxu2 %v10000_v57 }
 0x66e   :  { %3440 = vmatpush.msra.mxu0 %v10001_v23 }
 0x66f   :  { %3480 = vmatpush.msra.mxu2 %v10002_v32 }
 0x672   :  { %v3012_v49 = vpop.f32.mrf.mxu1 }
 0x678   :  { %v3052_v20 = vpop.f32.mrf.mxu3 }
 0x67a   :  { %v3092_v38 = vpop.f32.mrf.mxu1 }
 0x680   :  { %v3132_v60 = vpop.f32.mrf.mxu3 }
 0x68a   :  { %v2992_v24 = vpop.f32.mrf.mxu0 }
 0x68b   :  { %v2993_v63 = vadd.f32 %v2992_v24, %v10003_v2 }
 0x68d   :  { %v3013_v55 = vadd.f32 %v3012_v49, %v2993_v63 }
 0x68f   :  { %v3704_v28 = vmul.f32 -1.442695, %v3013_v55 }
 0x690   :  { %v3032_v1 = vpop.f32.mrf.mxu2 }
 0x691   :  { %3934 = vpow2.f32 %v3704_v28  ;;  %v3033_v37 = vadd.f32 %v3032_v1, %v10004_v8 }
 0x693   :  { %v3053_v59 = vadd.f32 %v3052_v20, %v3033_v37  ;;  %v3072_v44 = vpop.f32.mrf.mxu0 }
 0x694   :  { %v3235_v62 = vpop.f32.mrf.mxu1  ;;  %v3073_v7 = vadd.f32 %v3072_v44, %v10010_v6 }
 0x695   :  { %v3705_v50 = vmul.f32 -1.442695, %v3053_v59  ;;  %v3279_v30 = vadd.f32 %v3235_v62, %v524_v41 }
 0x696   :  { %v3093_v35 = vadd.f32 %v3092_v38, %v3073_v7 }
 0x697   :  { %v3935_v52 = vpop.eup %3934  ;;  %3936 = vpow2.f32 %v3705_v50  ;;  %v3708_v17 = vmul.f32 -1.442695, %v3279_v30 }
 0x698   :  { %v3138_v4 = vadd.f32 1.0, %v3935_v52 }
 0x699   :  { %v3112_v26 = vpop.f32.mrf.mxu2 }
 0x69a   :  { %3938 = vrcp.f32 %v3138_v4  ;;  %v3113_v36 = vadd.f32 %v3112_v26, %v10007_v13  ;;  %v3150_v56 = vand.u32 2147483648, %v3138_v4  ;;  %vm3144_vm15 = vweird.f32 %v3138_v4 }
 0x69b   :  { %3940 = vpow2.f32 %v3708_v17  ;;  %v3275_v53 = vpop.f32.mrf.mxu3  ;;  %v3148_v43 = vand.u32 2147483647, %v3138_v4 }
 0x69c   :  { %v3133_v54 = vadd.f32 %v3132_v60, %v3113_v36  ;;  %v3281_v0 = vadd.f32 %v3275_v53, %v606_v18  ;;  %v3151_v24 = vor.u32 1.1754944e-38, %v3150_v56 }
 0x69d   :  { %v3937_v16 = vpop.eup %3936  ;;  %vm3149_vm3 = vcmp.eq.f32.partialorder %v3148_v43, 8.507059e+37 }
 0x69e   :  { %v3157_v47 = vadd.f32 1.0, %v3937_v16  ;;  %v3706_v31 = vmul.f32 -1.442695, %v3133_v54  ;;  %v3709_v46 = vmul.f32 -1.442695, %v3281_v0 }
 0x6a0   :  { %v3939_v34 = vpop.eup %3938  ;;  %3942 = vrcp.f32 %v3157_v47  ;;  %v3169_v3 = vand.u32 2147483648, %v3157_v47  ;;  %v3167_v57 = vand.u32 2147483647, %v3157_v47  ;;  %vm3163_vm2 = vweird.f32 %v3157_v47 }
 0x6a1   :  { %v3140_v29 = vmul.f32 %v3939_v34, %v3138_v4  ;;  %3944 = vpow2.f32 %v3706_v31  ;;  %v3941_v5 = vpop.eup %3940  ;;  %vm3145_vm14 = vweird.f32 %v3939_v34 }
 0x6a2   :  { %v8412_v19 = vadd.f32 1.0, %v3941_v5  ;;  %3946 = vtanh.f32 %v3093_v35  ;;  %vm8416_vm0 = vmor %vm3144_vm15, %vm3145_vm14  ;;  %v3170_v55 = vor.u32 1.1754944e-38, %v3169_v3  ;;  %vm3168_vm5 = vcmp.eq.f32.partialorder %v3167_v57, 8.507059e+37 }
 0x6a3   :  { %v3141_v27 = vsub.f32 1.0, %v3140_v29  ;;  %3948 = vpow2.f32 %v3709_v46  ;;  %v10015_v29 = vld [vmem:[#allocation132_spill] sm:$0xff] }
 0x6a4   :  { %v565_v0 = vadd.f32 %v10015_v29, %v5482_v51  ;;  %vm3310_vm11 = vweird.f32 %v8412_v19 }
 0x6a5   :  { %v3142_v9 = vmul.f32 %v3939_v34, %v3141_v27 }
 0x6a6   :  { %v3943_v33 = vpop.eup %3942 }
 0x6a7   :  { %v3945_v11 = vpop.eup %3944  ;;  %v3159_v10 = vmul.f32 %v3943_v33, %v3157_v47  ;;  %v3143_v39 = vadd.f32 %v3939_v34, %v3142_v9  ;;  %vm3164_vm1 = vweird.f32 %v3943_v33 }
 0x6a8   :  { %v3177_v61 = vadd.f32 1.0, %v3945_v11  ;;  %v3947_v38 = vpop.eup %3946  ;;  %vm3165_vm4 = vmor %vm3163_vm2, %vm3164_vm1 }
 0x6a9   :  { %v3160_v12 = vsub.f32 1.0, %v3159_v10  ;;  %v3147_v32 = vsel %vm8416_vm0, %v3939_v34, %v3143_v39  ;;  %v3949_v1 = vpop.eup %3948  ;;  %v3314_v39 = vand.u32 2147483647, %v8412_v19 }
 0x6aa   :  { %3950 = vrcp.f32 %v3177_v61  ;;  %v3152_v28 = vsel %vm3149_vm3, %v3151_v24, %v3147_v32  ;;  %v8427_v26 = vadd.f32 1.0, %v3949_v1  ;;  %v3189_v36 = vand.u32 2147483648, %v3177_v61 }
 0x6ab   :  { %v3161_v23 = vmul.f32 %v3943_v33, %v3160_v12  ;;  %3952 = vrcp.f32 %v8412_v19  ;;  %v3215_v49 = vpop.f32.mrf.mxu0  ;;  %v3194_v50 = vmul.f32 %v3947_v38, %v3152_v28  ;;  %v3187_v16 = vand.u32 2147483647, %v3177_v61 }
 0x6ac   :  { %v3278_v20 = vadd.f32 %v3215_v49, %v483_v48  ;;  %vm3183_vm7 = vweird.f32 %v3177_v61  ;;  %v3190_v22 = vor.u32 1.1754944e-38, %v3189_v36  ;;  %vm3315_vm15 = vcmp.eq.f32.partialorder %v3314_v39, 8.507059e+37  ;;  %v3568_v39 = vld [vmem:[#allocation11] sm:$0xff] }
 0x6ad   :  { %v3162_v63 = vadd.f32 %v3943_v33, %v3161_v23  ;;  %vm3188_vm9 = vcmp.eq.f32.partialorder %v3187_v16, 8.507059e+37  ;;  %v3336_v38 = vand.u32 2147483648, %v8427_v26  ;;  %vm3330_vm3 = vweird.f32 %v8427_v26  ;;  %v3577_v16 = vld [vmem:[#allocation11 + $0x48] sm:$0xff] }
 0x6ae   :  { %v3707_v59 = vmul.f32 -1.442695, %v3278_v20 }
 0x6af   :  { %v3166_v37 = vsel %vm3165_vm4, %v3943_v33, %v3162_v63  ;;  %v3316_v33 = vand.u32 2147483648, %v8412_v19  ;;  %v3337_v1 = vor.u32 1.1754944e-38, %v3336_v38 }
 0x6b0   :  { %v3951_v58 = vpop.eup %3950  ;;  %v3171_v42 = vsel %vm3168_vm5, %v3170_v55, %v3166_v37  ;;  %3954 = vpow2.f32 %v3707_v59  ;;  %v3334_v55 = vand.u32 2147483647, %v8427_v26 }
 0x6b1   :  { %v3953_v41 = vpop.eup %3952  ;;  %v3193_v62 = vmul.f32 %v3171_v42, %v8196_v21  ;;  %v3179_v60 = vmul.f32 %v3951_v58, %v3177_v61  ;;  %vm3184_vm6 = vweird.f32 %v3951_v58  ;;  %v3317_v45 = vor.u32 1.1754944e-38, %v3316_v33  ;;  %v3582_v42 = vld [vmem:[#allocation11 + $0x70] sm:$0xff]  ;;  %v3569_v33 = vld [vmem:[#allocation11 + $0x8] sm:$0xff] }
 0x6b2   :  { %v3306_v4 = vmul.f32 %v3953_v41, %v8412_v19  ;;  %vm3185_vm8 = vmor %vm3183_vm7, %vm3184_vm6  ;;  %v3255_v7 = vpop.f32.mrf.mxu2  ;;  %vm3311_vm10 = vweird.f32 %v3953_v41  ;;  %vm3335_vm5 = vcmp.eq.f32.partialorder %v3334_v55, 8.507059e+37 }
 0x6b3   :  { %v8424_v30 = vadd.f32 %v3194_v50, %v3193_v62  ;;  %v3180_v52 = vsub.f32 1.0, %v3179_v60  ;;  %v3280_v35 = vadd.f32 %v3255_v7, %v565_v0  ;;  %vm8437_vm12 = vmor %vm3310_vm11, %vm3311_vm10  ;;  %v3580_v62 = vld [vmem:[#allocation11 + $0x60] sm:$0xff] }
 0x6b4   :  { %v3307_v47 = vsub.f32 1.0, %v3306_v4 }
 0x6b5   :  { %3956 = vtanh.f32 %v8424_v30  ;;  %v3181_v17 = vmul.f32 %v3951_v58, %v3180_v52  ;;  %v3579_v52 = vld [vmem:[#allocation11 + $0x58] sm:$0xff] }
 0x6b6   :  { %v3955_v44 = vpop.eup %3954  ;;  %3958 = vrcp.f32 %v8427_v26  ;;  %v3308_v34 = vmul.f32 %v3953_v41, %v3307_v47  ;;  %v3576_v47 = vld [vmem:[#allocation11 + $0x40] sm:$0xff] }
 0x6b7   :  { %v3182_v54 = vadd.f32 %v3951_v58, %v3181_v17  ;;  %v3285_v21 = vadd.f32 1.0, %v3955_v44  ;;  %v3578_v17 = vld [vmem:[#allocation11 + $0x50] sm:$0xff] }
 0x6b8   :  { %v3309_v46 = vadd.f32 %v3953_v41, %v3308_v34  ;;  %v3572_v34 = vld [vmem:[#allocation11 + $0x20] sm:$0xff] }
 0x6b9   :  { %v3186_v53 = vsel %vm3185_vm8, %v3951_v58, %v3182_v54  ;;  %3960 = vrcp.f32 %v3285_v21  ;;  %v3297_v51 = vand.u32 2147483648, %v3285_v21  ;;  %v3295_v12 = vand.u32 2147483647, %v3285_v21 }
 0x6ba   :  { %v3191_v18 = vsel %vm3188_vm9, %v3190_v22, %v3186_v53  ;;  %3962 = vtanh.f32 %v3280_v35  ;;  %v3313_v43 = vsel %vm8437_vm12, %v3953_v41, %v3309_v46  ;;  %vm3291_vm14 = vweird.f32 %v3285_v21  ;;  %v3581_v41 = vld [vmem:[#allocation11 + $0x68] sm:$0xff]  ;;  %v3575_v22 = vld [vmem:[#allocation11 + $0x38] sm:$0xff]  ;;  %v3570_v35 = vld [vmem:[#allocation11 + $0x10] sm:$0xff] }
 0x6bb   :  { %v3957_v25 = vpop.eup %3956  ;;  %v3298_v19 = vor.u32 1.1754944e-38, %v3297_v51  ;;  %v3318_v3 = vsel %vm3315_vm15, %v3317_v45, %v3313_v43  ;;  %vm3296_vm1 = vcmp.eq.f32.partialorder %v3295_v12, 8.507059e+37 }
 0x6bc   :  { %v3197_v31 = vmul.f32 %v3957_v25, %v3191_v18  ;;  %v3959_v27 = vpop.eup %3958  ;;  %v3340_v49 = vmul.f32 %v3318_v3, %v8239_v14  ;;  %v3583_v14 = vld [vmem:[#allocation11 + $0x78] sm:$0xff]  ;;  %v3574_v25 = vld [vmem:[#allocation11 + $0x30] sm:$0xff]  ;;  %v3573_v18 = vld [vmem:[#allocation11 + $0x28] sm:$0xff] }
 0x6bd   :  { %v3326_v11 = vmul.f32 %v3959_v27, %v8427_v26  ;;  %vm3331_vm2 = vweird.f32 %v3959_v27 }
 0x6be   :  { %3381 = vmatmul.f32.vlgmr.msrb.gmra.mxu1 %v3197_v31  ;;  %3421 = vmatmul.f32.vlgmr.msrb.gmra.mxu3 %v3197_v31  ;;  %vm3332_vm4 = vmor %vm3330_vm3, %vm3331_vm2 }
 0x6bf   :  { %v3961_v5 = vpop.eup %3960  ;;  %v3327_v15 = vsub.f32 1.0, %v3326_v11 }
 0x6c0   :  { %v3287_v9 = vmul.f32 %v3961_v5, %v3285_v21  ;;  %vm3292_vm13 = vweird.f32 %v3961_v5  ;;  %v3963_v57 = vpop.eup %3962 }
 0x6c1   :  { %vm3293_vm0 = vmor %vm3291_vm14, %vm3292_vm13  ;;  %v3328_v23 = vmul.f32 %v3959_v27, %v3327_v15 }
 0x6c2   :  { %v3288_v10 = vsub.f32 1.0, %v3287_v9 }
 0x6c3   :  { %v3329_v20 = vadd.f32 %v3959_v27, %v3328_v23 }
 0x6c4   :  { %v3289_v61 = vmul.f32 %v3961_v5, %v3288_v10 }
 0x6c5   :  { %v3333_v28 = vsel %vm3332_vm4, %v3959_v27, %v3329_v20  ;;  %v3571_v27 = vld [vmem:[#allocation11 + $0x18] sm:$0xff] }
 0x6c6   :  { %3461 = vmatmul.f32.vlgmr.msra.gmra.mxu1 %v3197_v31  ;;  %3501 = vmatmul.f32.vlgmr.msra.gmra.mxu3 %v3197_v31  ;;  %v3290_v48 = vadd.f32 %v3961_v5, %v3289_v61  ;;  %v3338_v59 = vsel %vm3335_vm5, %v3337_v1, %v3333_v28 }
 0x6c8   :  { %v3294_v40 = vsel %vm3293_vm0, %v3961_v5, %v3290_v48 }
 0x6c9   :  { %v3299_v32 = vsel %vm3296_vm1, %v3298_v19, %v3294_v40 }
 0x6ca   :  { %v3341_v24 = vmul.f32 %v3963_v57, %v3299_v32 }
 0x6cc   :  { %v3342_v63 = vadd.f32 %v3341_v24, %v3340_v49 }
 0x6ce   :  { %3964 = vtanh.f32 %v3342_v63 }
 0x6d4   :  { %v3965_v37 = vpop.eup %3964 }
 0x6d5   :  { %v3344_v58 = vmul.f32 %v3965_v37, %v3338_v59 }
 0x6d7   :  { %3361 = vmatmul.f32.vlgmr.msrb.gmra.mxu0 %v3344_v58  ;;  %3401 = vmatmul.f32.vlgmr.msrb.gmra.mxu2 %v3344_v58 }
 0x6d8   :  { %3588 = vmatpush.msrb.mxu0 %v3583_v14 }
 0x6da   :  { %3589 = vmatpush.msrb.mxu0 %v3582_v42 }
 0x6dc   :  { %3590 = vmatpush.msrb.mxu0 %v3581_v41 }
 0x6de   :  { %3591 = vmatpush.msrb.mxu0 %v3580_v62 }
 0x6df   :  { %3441 = vmatmul.f32.vlgmr.msra.gmra.mxu0 %v3344_v58  ;;  %3481 = vmatmul.f32.vlgmr.msra.gmra.mxu2 %v3344_v58 }
 0x6e0   :  { %3592 = vmatpush.msrb.mxu0 %v3579_v52 }
 0x6e2   :  { %3593 = vmatpush.msrb.mxu0 %v3578_v17 }
 0x6e4   :  { %3594 = vmatpush.msrb.mxu0 %v3577_v16 }
 0x6e6   :  { %3595 = vmatpush.msrb.mxu0 %v3576_v47 }
 0x6e8   :  { %3596 = vmatpush.msrb.mxu0 %v3575_v22 }
 0x6ea   :  { %3597 = vmatpush.msrb.mxu0 %v3574_v25 }
 0x6ec   :  { %3598 = vmatpush.msrb.mxu0 %v3573_v18 }
 0x6ee   :  { %3599 = vmatpush.msrb.mxu0 %v3572_v34 }
 0x6f0   :  { %3600 = vmatpush.msrb.mxu0 %v3571_v27 }
 0x6f2   :  { %3601 = vmatpush.msrb.mxu0 %v3570_v35 }
 0x6f4   :  { %3602 = vmatpush.msrb.mxu0 %v3569_v33 }
 0x6f6   :  { %3603 = vmatpush.msrb.mxu0 %v3568_v39 }
 0x73b   :  { %v3382_v4 = vpop.f32.mrf.mxu1 }
 0x741   :  { %v3422_v44 = vpop.f32.mrf.mxu3 }
 0x743   :  { %v3462_v43 = vpop.f32.mrf.mxu1 }
 0x749   :  { %v3502_v5 = vpop.f32.mrf.mxu3 }
 0x754   :  { %v3362_v50 = vpop.f32.mrf.mxu0 }
 0x755   :  { %v3363_v60 = vadd.f32 %v3362_v50, %v10003_v2 }
 0x757   :  { %v3383_v26 = vadd.f32 %v3382_v4, %v3363_v60 }
 0x759   :  { %v3710_v36 = vmul.f32 -1.442695, %v3383_v26 }
 0x75a   :  { %v3402_v54 = vpop.f32.mrf.mxu2 }
 0x75b   :  { %3966 = vpow2.f32 %v3710_v36  ;;  %v3403_v21 = vadd.f32 %v3402_v54, %v10004_v8 }
 0x75c   :  { %v3442_v10 = vpop.f32.mrf.mxu0 }
 0x75d   :  { %v3423_v53 = vadd.f32 %v3422_v44, %v3403_v21 }
 0x75f   :  { %v3711_v2 = vmul.f32 -1.442695, %v3423_v53 }
 0x761   :  { %v3967_v31 = vpop.eup %3966  ;;  %3968 = vpow2.f32 %v3711_v2 }
 0x762   :  { %v3508_v7 = vadd.f32 1.0, %v3967_v31  ;;  %v3482_v29 = vpop.f32.mrf.mxu2 }
 0x763   :  { %v3483_v0 = vadd.f32 %v3482_v29, %v10007_v13  ;;  %v3443_v13 = vadd.f32 %v3442_v10, %v10010_v6 }
 0x764   :  { %3970 = vrcp.f32 %v3508_v7  ;;  %v3520_v57 = vand.u32 2147483648, %v3508_v7  ;;  %vm3514_vm7 = vweird.f32 %v3508_v7  ;;  %v3518_v32 = vand.u32 2147483647, %v3508_v7 }
 0x765   :  { %v3503_v8 = vadd.f32 %v3502_v5, %v3483_v0  ;;  %v3463_v48 = vadd.f32 %v3462_v43, %v3443_v13 }
 0x766   :  { %v3521_v20 = vor.u32 1.1754944e-38, %v3520_v57  ;;  %vm3519_vm11 = vcmp.eq.f32.partialorder %v3518_v32, 8.507059e+37 }
 0x767   :  { %v3969_v9 = vpop.eup %3968  ;;  %v3712_v46 = vmul.f32 -1.442695, %v3503_v8 }
 0x768   :  { %v3527_v11 = vadd.f32 1.0, %v3969_v9 }
 0x769   :  { %3972 = vpow2.f32 %v3712_v46 }
 0x76a   :  { %v3971_v56 = vpop.eup %3970  ;;  %3974 = vrcp.f32 %v3527_v11  ;;  %v3539_v49 = vand.u32 2147483648, %v3527_v11  ;;  %v3537_v63 = vand.u32 2147483647, %v3527_v11  ;;  %vm3533_vm10 = vweird.f32 %v3527_v11 }
 0x76b   :  { %v3510_v51 = vmul.f32 %v3971_v56, %v3508_v7  ;;  %vm3515_vm6 = vweird.f32 %v3971_v56 }
 0x76c   :  { %vm3516_vm8 = vmor %vm3514_vm7, %vm3515_vm6  ;;  %v3540_v28 = vor.u32 1.1754944e-38, %v3539_v49  ;;  %vm3538_vm13 = vcmp.eq.f32.partialorder %v3537_v63, 8.507059e+37 }
 0x76d   :  { %v3511_v61 = vsub.f32 1.0, %v3510_v51 }
 0x76f   :  { %v3973_v12 = vpop.eup %3972  ;;  %v3512_v45 = vmul.f32 %v3971_v56, %v3511_v61 }
 0x770   :  { %v3975_v15 = vpop.eup %3974  ;;  %v3547_v19 = vadd.f32 1.0, %v3973_v12 }
 0x771   :  { %v3529_v3 = vmul.f32 %v3975_v15, %v3527_v11  ;;  %v3513_v40 = vadd.f32 %v3971_v56, %v3512_v45  ;;  %vm3534_vm9 = vweird.f32 %v3975_v15 }
 0x772   :  { %3976 = vrcp.f32 %v3547_v19  ;;  %vm3535_vm12 = vmor %vm3533_vm10, %vm3534_vm9  ;;  %v3559_v52 = vand.u32 2147483648, %v3547_v19  ;;  %vm3553_vm15 = vweird.f32 %v3547_v19  ;;  %v3557_v26 = vand.u32 2147483647, %v3547_v19 }
 0x773   :  { %v3530_v23 = vsub.f32 1.0, %v3529_v3  ;;  %3978 = vtanh.f32 %v3463_v48  ;;  %v3517_v24 = vsel %vm3516_vm8, %v3971_v56, %v3513_v40 }
 0x774   :  { %v3522_v1 = vsel %vm3519_vm11, %v3521_v20, %v3517_v24  ;;  %v3560_v36 = vor.u32 1.1754944e-38, %v3559_v52  ;;  %vm3558_vm1 = vcmp.eq.f32.partialorder %v3557_v26, 8.507059e+37 }
 0x775   :  { %v3531_v6 = vmul.f32 %v3975_v15, %v3530_v23 }
 0x777   :  { %v3532_v38 = vadd.f32 %v3975_v15, %v3531_v6 }
 0x778   :  { %v3977_v55 = vpop.eup %3976 }
 0x779   :  { %v3536_v37 = vsel %vm3535_vm12, %v3975_v15, %v3532_v38  ;;  %v3549_v59 = vmul.f32 %v3977_v55, %v3547_v19  ;;  %v3979_v58 = vpop.eup %3978  ;;  %vm3554_vm14 = vweird.f32 %v3977_v55 }
 0x77a   :  { %v3541_v14 = vsel %vm3538_vm13, %v3540_v28, %v3536_v37  ;;  %v3564_v41 = vmul.f32 %v3979_v58, %v3522_v1  ;;  %vm3555_vm0 = vmor %vm3553_vm15, %vm3554_vm14 }
 0x77b   :  { %v3563_v42 = vmul.f32 %v3541_v14, %v8424_v30  ;;  %v3550_v62 = vsub.f32 1.0, %v3549_v59  ;;  %v3725_v30 = vld [vmem:[%s8465_s7] ss:$0 sm:$0xff] }
 0x77d   :  { %v3565_v50 = vadd.f32 %v3564_v41, %v3563_v42  ;;  %v3551_v60 = vmul.f32 %v3977_v55, %v3550_v62 }
 0x77f   :  { %3980 = vtanh.f32 %v3565_v50  ;;  %v3552_v4 = vadd.f32 %v3977_v55, %v3551_v60 }
 0x781   :  { %v3556_v17 = vsel %vm3555_vm0, %v3977_v55, %v3552_v4 }
 0x782   :  { %v3561_v44 = vsel %vm3558_vm1, %v3560_v36, %v3556_v17 }
 0x785   :  { %v3981_v16 = vpop.eup %3980 }
 0x786   :  { %v3567_v54 = vmul.f32 %v3981_v16, %v3561_v44 }
 0x788   :  { %3604 = vmatmul.f32.vlgmr.msrb.gmra.mxu0 %v3567_v54 }
 0x805   :  { %v3605_v21 = vpop.f32.mrf.mxu0 }
 0x806   :  { %v3606_v47 = vadd.f32 %v3725_v30, %v3605_v21 }
 0x808   :  { %3608 = vst [vmem:[#allocation13] sm:$0xff] %v3606_v47 }
 0x809   :  { %3619 = dma.vmem_to_hbm [thread:$0]  %s3615_s15, 128, %s3617_s1, [#allocation4]  }
 0x80a   :  { %4766 = dma.done.wait [#allocation4], 128  }
 0x80b   :  { %4767 = vsyncadd [#allocation4], 4294967168 }
 0x80c   :  { %3624 = vsyncpa [#allocation3], 1 }
 0x80d   :  { %3625 = vsyncpa [#allocation6], 1 }
 0x80e   :  { %3626 = vsyncpa [#allocation9], 1 }
 0x80f   :  { %3627 = vsyncpa [#allocation12], 1 }
 0x810   :  { %3628 = vsyncpa [#allocation4], 1 }

</bundles_post_ra>
